<compile_context>
chip_gen: v5e
topology: v5e:2x2
jax: 0.10.0
libtpu: 0.0.40
codegen_flags: <defaults>
</compile_context>

<pallas_src>
import functools
import math

import jax
import jax.numpy as jnp
import numpy as np
from jax.experimental import pallas as pl
from jax.experimental.pallas import tpu as pltpu

_VMEM_LIMIT = 32 * 1024 * 1024   # ample (kernel footprint ~2 MiB), safe on v5e/v6e/v7x
_BN_EPS = 1e-5


# ----------------------------------------------------------------------------
# Host-side weight lowering
# ----------------------------------------------------------------------------
def _banded_conv_weight(w_hwio, w_in, stride):
    """Lower a 3x3 conv (padding=1) to 3 column-banded GEMM matrices (bf16).

    For kernel row ky the matrix maps (w_in*Cin) input lanes -> (Wout*Cout)
    output lanes; out-of-range taps are simply dropped (== zero padding), and
    the column stride is encoded in the band placement, so the kernel never
    needs column padding or a parity split.
    """
    w_np = np.asarray(w_hwio, dtype=np.float32)           # (3, 3, Cin, Cout)
    _, _, cin, cout = w_np.shape
    wout = (w_in + 2 - 3) // stride + 1
    mats = np.zeros((3, w_in * cin, wout * cout), np.float32)
    for ky in range(3):
        for kx in range(3):
            for j in range(wout):
                col = stride * j + kx - 1
                if 0 <= col < w_in:
                    mats[ky, col * cin:(col + 1) * cin,
                         j * cout:(j + 1) * cout] += w_np[ky, kx]
    # entries are already bf16-representable (dense weights pre-rounded)
    return jnp.asarray(mats, dtype=jnp.bfloat16)


def _even_row_select(h_in):
    """(h_in//2, h_in) {0,1} matrix selecting even rows (stride-2 row subsample)."""
    s = np.zeros((h_in // 2, h_in), np.float32)
    s[np.arange(h_in // 2), 2 * np.arange(h_in // 2)] = 1.0
    return jnp.asarray(s)


def _tiled_bias(bias, wout):
    """Tile a (Cout,) bias to the lane-dense (1, Wout*Cout) layout."""
    return jnp.tile(jnp.asarray(bias, jnp.float32).reshape(1, -1), (1, wout))


# ----------------------------------------------------------------------------
# The single fused kernel
# ----------------------------------------------------------------------------
def _siamese_kernel(x_ref, w1_ref, b1_ref, w2a_ref, b2a_ref, w2b_ref,
                    fold32_ref, exp32_ref, g32_ref, beta32_ref, sel2_ref,
                    w3a_ref, b3a_ref, w3b_ref,
                    fold64_ref, exp64_ref, g64_ref, beta64_ref, sel3_ref,
                    wf1_ref, bf1_ref, wf2_ref, bf2_ref,
                    o_ref, x2_ref, x4_ref,
                    *, n, h, w, eps):
    h2, w2 = h // 2, w // 2
    h4, w4 = h // 4, w // 4
    hp1, hp2 = h + 2, h2 + 2

    def conv_rows(x_stacked, w_ref, hp, rows):
        """Banded 3x3 conv: one whole-batch bf16 GEMM per kernel row, then
        per-image shifted-window accumulation.  Returns a list of per-image
        row-dense (rows, fw) f32 tiles."""
        lhs = x_stacked.astype(jnp.bfloat16)
        f = [jnp.dot(lhs, w_ref[k], preferred_element_type=jnp.float32)
             for k in range(3)]
        outs = []
        for i in range(n):
            b = i * hp
            outs.append(f[0][b:b + rows, :]
                        + f[1][b + 1:b + 1 + rows, :]
                        + f[2][b + 2:b + 2 + rows, :])
        return outs

    def write_padded(dst_ref, ys, hp, zero):
        """Store per-image tiles into the row-padded stacked scratch layout."""
        if zero:
            dst_ref[...] = jnp.zeros(dst_ref.shape, dst_ref.dtype)
        for i, y in enumerate(ys):
            dst_ref[pl.ds(i * hp + 1, y.shape[0]), :] = y

    def batchnorm_relu(ys, fold_ref, exp_ref, g_ref, beta_ref, count):
        """Training-mode BN over the whole (VMEM-resident) batch + ReLU.
        Shifted two-pass variance; fold/expand matmuls move between the
        (w, c)-tiled lane layout and per-channel vectors."""
        colsum = ys[0].sum(axis=0, keepdims=True)
        for y in ys[1:]:
            colsum = colsum + y.sum(axis=0, keepdims=True)
        inv = 1.0 / float(count)
        mean_c = jnp.dot(colsum, fold_ref[...],
                         preferred_element_type=jnp.float32) * inv          # (1, C)
        mean_t = jnp.dot(mean_c, exp_ref[...],
                         preferred_element_type=jnp.float32)                # (1, fw)
        cs = [y - mean_t for y in ys]
        sqsum = (cs[0] * cs[0]).sum(axis=0, keepdims=True)
        for c in cs[1:]:
            sqsum = sqsum + (c * c).sum(axis=0, keepdims=True)
        var_c = jnp.dot(sqsum, fold_ref[...],
                        preferred_element_type=jnp.float32) * inv           # (1, C)
        scale_c = g_ref[...] * jax.lax.rsqrt(var_c + eps)
        scale_t = jnp.dot(scale_c, exp_ref[...], preferred_element_type=jnp.float32)
        shift_t = jnp.dot(beta_ref[...], exp_ref[...], preferred_element_type=jnp.float32)
        return [jnp.maximum(c * scale_t + shift_t, 0.0) for c in cs]

    # ---- conv1 (1 -> 16) + ReLU -------------------------------------------
    y = conv_rows(x_ref[...], w1_ref, hp1, h)
    y = [jnp.maximum(t + b1_ref[...], 0.0) for t in y]
    write_padded(x2_ref, y, hp1, zero=True)

    # ---- conv2a (16 -> 16) + ReLU ------------------------------------------
    y = conv_rows(x2_ref[...], w2a_ref, hp1, h)
    y = [jnp.maximum(t + b2a_ref[...], 0.0) for t in y]
    write_padded(x2_ref, y, hp1, zero=False)          # reuse the same scratch

    # ---- conv2b (16 -> 32, stride 2) + BatchNorm(32) + ReLU ----------------
    # (conv bias omitted: it cancels exactly through the batch-stat BN)
    z = conv_rows(x2_ref[...], w2b_ref, hp1, h)       # row-dense, col-stride-2
    y = [jnp.dot(sel2_ref[...], t, preferred_element_type=jnp.float32) for t in z]
    y = batchnorm_relu(y, fold32_ref, exp32_ref, g32_ref, beta32_ref,
                       count=n * h2 * w2)
    write_padded(x4_ref, y, hp2, zero=True)

    # ---- conv3a (32 -> 32) + ReLU ------------------------------------------
    y = conv_rows(x4_ref[...], w3a_ref, hp2, h2)
    y = [jnp.maximum(t + b3a_ref[...], 0.0) for t in y]
    write_padded(x4_ref, y, hp2, zero=False)

    # ---- conv3b (32 -> 64, stride 2) + BatchNorm(64) + ReLU ----------------
    z = conv_rows(x4_ref[...], w3b_ref, hp2, h2)
    y = [jnp.dot(sel3_ref[...], t, preferred_element_type=jnp.float32) for t in z]
    y = batchnorm_relu(y, fold64_ref, exp64_ref, g64_ref, beta64_ref,
                       count=n * h4 * w4)

    # ---- flatten (NHWC order) + fc1 + ReLU + fc2 (output padded to 128) ----
    for i in range(n):
        acc = None
        for r in range(h4):
            row = y[i][r:r + 1, :].astype(jnp.bfloat16)          # (1, w4*64)
            t = jnp.dot(row, wf1_ref[r], preferred_element_type=jnp.float32)
            acc = t if acc is None else acc + t
        hid = jnp.maximum(acc + bf1_ref[...], 0.0)               # (1, height)
        out = jnp.dot(hid.astype(jnp.bfloat16), wf2_ref[...],
                      preferred_element_type=jnp.float32) + bf2_ref[...]
        o_ref[pl.ds(i, 1), :] = out


# ----------------------------------------------------------------------------
# Wrapper: one pallas_call for the whole forward pass
# ----------------------------------------------------------------------------
def siamese_conv_forward(kp, x_nchw, *, height, width, fc_out):
    n = x_nchw.shape[0]
    h2, w2 = height // 2, width // 2

    # Row-padded, batch-stacked, channels-last (Cin=1) input: (N*(H+2), W).
    x = x_nchw[:, 0, :, :]
    x = jnp.pad(x, ((0, 0), (1, 1), (0, 0))).reshape(n * (height + 2), width)

    kernel = functools.partial(_siamese_kernel, n=n, h=height, w=width, eps=_BN_EPS)
    vmem = pl.BlockSpec(memory_space=pltpu.MemorySpace.VMEM)
    out = pl.pallas_call(
        kernel,
        out_shape=jax.ShapeDtypeStruct((n, 128), jnp.float32),
        in_specs=[vmem] * 23,
        out_specs=vmem,
        scratch_shapes=[
            pltpu.VMEM((n * (height + 2), width * 16), jnp.float32),   # conv2 input
            pltpu.VMEM((n * (h2 + 2), w2 * 32), jnp.float32),          # conv3 input
        ],
        compiler_params=pltpu.CompilerParams(vmem_limit_bytes=_VMEM_LIMIT),
    )(x,
      kp["w1"], kp["b1"], kp["w2a"], kp["b2a"], kp["w2b"],
      kp["fold32"], kp["exp32"], kp["g32"], kp["beta32"], kp["sel2"],
      kp["w3a"], kp["b3a"], kp["w3b"],
      kp["fold64"], kp["exp64"], kp["g64"], kp["beta64"], kp["sel3"],
      kp["wf1"], kp["bf1"], kp["wf2"], kp["bf2"])
    return out[:, :fc_out]


# ----------------------------------------------------------------------------
# Parameters (deterministic synthetic init; matmul weights pre-rounded to bf16)
# ----------------------------------------------------------------------------
def init_dense_params(key, height, width):
    ks = jax.random.split(key, 14)
    q = lambda a: a.astype(jnp.bfloat16).astype(jnp.float32)

    def cw(k, cin, cout):  # HWIO conv weight
        return q(jax.random.normal(k, (3, 3, cin, cout), jnp.float32)
                 / np.sqrt(cin * 9.0))

    def cb(k, cout):
        return jax.random.normal(k, (cout,), jnp.float32) * 0.01

    h4, w4 = height // 4, width // 4
    fc_out = int(math.sqrt(height))            # (truncates for non-square heights)
    n_in = 64 * h4 * w4                        # == 4 * height * width
    return dict(
        w1=cw(ks[0], 1, 16), b1=cb(ks[1], 16),
        w2a=cw(ks[2], 16, 16), b2a=cb(ks[3], 16),
        w2b=cw(ks[4], 16, 32), b2b=cb(ks[5], 32),
        w3a=cw(ks[6], 32, 32), b3a=cb(ks[7], 32),
        w3b=cw(ks[8], 32, 64), b3b=cb(ks[9], 64),
        g32=jnp.ones((32,), jnp.float32), beta32=jnp.zeros((32,), jnp.float32),
        g64=jnp.ones((64,), jnp.float32), beta64=jnp.zeros((64,), jnp.float32),
        wf1=q(jax.random.normal(ks[10], (n_in, height), jnp.float32) / np.sqrt(n_in)),
        bf1=jax.random.normal(ks[11], (height,), jnp.float32) * 0.01,
        wf2=q(jax.random.normal(ks[12], (height, fc_out), jnp.float32) / np.sqrt(height)),
        bf2=jax.random.normal(ks[13], (fc_out,), jnp.float32) * 0.01,
    )


def prepare_kernel_params(p, height, width):
    h2, w2 = height // 2, width // 2
    h4, w4 = height // 4, width // 4
    fc_out = p["wf2"].shape[1]
    kp = {}
    kp["w1"] = _banded_conv_weight(p["w1"], width, 1)
    kp["b1"] = _tiled_bias(p["b1"], width)
    kp["w2a"] = _banded_conv_weight(p["w2a"], width, 1)
    kp["b2a"] = _tiled_bias(p["b2a"], width)
    kp["w2b"] = _banded_conv_weight(p["w2b"], width, 2)
    kp["w3a"] = _banded_conv_weight(p["w3a"], w2, 1)
    kp["b3a"] = _tiled_bias(p["b3a"], w2)
    kp["w3b"] = _banded_conv_weight(p["w3b"], w2, 2)
    # BN fold/expand: (w, c)-tiled lanes <-> per-channel vectors.
    kp["fold32"] = jnp.asarray(np.tile(np.eye(32, dtype=np.float32), (w2, 1)))
    kp["exp32"] = jnp.asarray(np.tile(np.eye(32, dtype=np.float32), (1, w2)))
    kp["fold64"] = jnp.asarray(np.tile(np.eye(64, dtype=np.float32), (w4, 1)))
    kp["exp64"] = jnp.asarray(np.tile(np.eye(64, dtype=np.float32), (1, w4)))
    kp["g32"] = p["g32"].reshape(1, 32)
    kp["beta32"] = p["beta32"].reshape(1, 32)
    kp["g64"] = p["g64"].reshape(1, 64)
    kp["beta64"] = p["beta64"].reshape(1, 64)
    kp["sel2"] = _even_row_select(height)      # (h2, height)
    kp["sel3"] = _even_row_select(h2)          # (h4, h2)
    # fc1 weight arranged as one (w4*64, height) block per output-height row
    # of the last conv (NHWC flatten order).
    kp["wf1"] = p["wf1"].reshape(h4, w4 * 64, height).astype(jnp.bfloat16)
    kp["bf1"] = p["bf1"].reshape(1, height)
    wf2 = jnp.zeros((height, 128), jnp.float32).at[:, :fc_out].set(p["wf2"])
    kp["wf2"] = wf2.astype(jnp.bfloat16)
    kp["bf2"] = jnp.zeros((1, 128), jnp.float32).at[0, :fc_out].set(p["bf2"])
    return kp


# ----------------------------------------------------------------------------
# Pure-JAX reference (lax.conv + dense BN/MLP), emulating the kernel's bf16
# operand rounding at each matmul input so the comparison is apples-to-apples.
# ----------------------------------------------------------------------------
def reference_forward(p, x_nchw, eps=_BN_EPS):
    q = lambda a: a.astype(jnp.bfloat16).astype(jnp.float32)

    def conv(x, wgt, b, stride):
        y = jax.lax.conv_general_dilated(
            q(x), wgt, window_strides=(stride, stride), padding=((1, 1), (1, 1)),
            dimension_numbers=("NHWC", "HWIO", "NHWC"))
        return y + b

    def bn_relu(x, gamma, beta):
        mean = jnp.mean(x, axis=(0, 1, 2))
        var = jnp.mean((x - mean) ** 2, axis=(0, 1, 2))
        y = (x - mean) * jax.lax.rsqrt(var + eps) * gamma + beta
        return jnp.maximum(y, 0.0)

    x = jnp.transpose(x_nchw, (0, 2, 3, 1))                     # NHWC
    x = jnp.maximum(conv(x, p["w1"], p["b1"], 1), 0.0)
    x = jnp.maximum(conv(x, p["w2a"], p["b2a"], 1), 0.0)
    x = bn_relu(conv(x, p["w2b"], p["b2b"], 2), p["g32"], p["beta32"])
    x = jnp.maximum(conv(x, p["w3a"], p["b3a"], 1), 0.0)
    x = bn_relu(conv(x, p["w3b"], p["b3b"], 2), p["g64"], p["beta64"])
    x = x.reshape(x.shape[0], -1)                                # NHWC flatten
    hid = jnp.maximum(q(x) @ p["wf1"] + p["bf1"], 0.0)
    return q(hid) @ p["wf2"] + p["bf2"]


# ----------------------------------------------------------------------------
if __name__ == "__main__":
    height, width = 16, 16
    batch = 2
    fc_out = int(math.sqrt(height))

    key = jax.random.PRNGKey(0)
    k_params, k_x = jax.random.split(key)
    dense = init_dense_params(k_params, height, width)
    kparams = prepare_kernel_params(dense, height, width)
    x = jax.random.normal(k_x, (batch, 1, height, width), jnp.float32)   # NCHW

    fwd = jax.jit(functools.partial(siamese_conv_forward,
                                    height=height, width=width, fc_out=fc_out))
    out = jax.block_until_ready(fwd(kparams, x))

    ref = jax.block_until_ready(jax.jit(reference_forward)(dense, x))

    assert out.shape == (batch, fc_out), (out.shape, (batch, fc_out))
    assert bool(jnp.all(jnp.isfinite(out)))
    max_err = float(jnp.max(jnp.abs(out - ref)))
    tol = 1e-2 + 1e-2 * float(jnp.max(jnp.abs(ref)))
    assert max_err <= tol, f"mismatch vs reference: max|diff|={max_err} tol={tol}"
    print("KERNEL_OK")
</pallas_src>

<mosaic_0001>
module attributes {stable_mosaic.version = 11 : i64} {
  func.func @_siamese_kernel(%arg0: memref<36x16xf32, #tpu.memory_space<vmem>>, %arg1: memref<3x16x256xbf16, #tpu.memory_space<vmem>>, %arg2: memref<1x256xf32, #tpu.memory_space<vmem>>, %arg3: memref<3x256x256xbf16, #tpu.memory_space<vmem>>, %arg4: memref<1x256xf32, #tpu.memory_space<vmem>>, %arg5: memref<3x256x256xbf16, #tpu.memory_space<vmem>>, %arg6: memref<256x32xf32, #tpu.memory_space<vmem>>, %arg7: memref<32x256xf32, #tpu.memory_space<vmem>>, %arg8: memref<1x32xf32, #tpu.memory_space<vmem>>, %arg9: memref<1x32xf32, #tpu.memory_space<vmem>>, %arg10: memref<8x16xf32, #tpu.memory_space<vmem>>, %arg11: memref<3x256x256xbf16, #tpu.memory_space<vmem>>, %arg12: memref<1x256xf32, #tpu.memory_space<vmem>>, %arg13: memref<3x256x256xbf16, #tpu.memory_space<vmem>>, %arg14: memref<256x64xf32, #tpu.memory_space<vmem>>, %arg15: memref<64x256xf32, #tpu.memory_space<vmem>>, %arg16: memref<1x64xf32, #tpu.memory_space<vmem>>, %arg17: memref<1x64xf32, #tpu.memory_space<vmem>>, %arg18: memref<4x8xf32, #tpu.memory_space<vmem>>, %arg19: memref<4x256x16xbf16, #tpu.memory_space<vmem>>, %arg20: memref<1x16xf32, #tpu.memory_space<vmem>>, %arg21: memref<16x128xbf16, #tpu.memory_space<vmem>>, %arg22: memref<1x128xf32, #tpu.memory_space<vmem>>, %arg23: memref<2x128xf32, #tpu.memory_space<vmem>>, %arg24: memref<36x256xf32, #tpu.memory_space<vmem>>, %arg25: memref<20x256xf32, #tpu.memory_space<vmem>>) attributes {dimension_semantics = [], scalar_prefetch = 0 : i64, scratch_operands = 2 : i64, tpu.core_type = #tpu.core_type<tc>} {
    %c0 = arith.constant 0 : index
    %c0_0 = arith.constant 0 : index
    %0 = vector.load %arg0[%c0, %c0_0] : memref<36x16xf32, #tpu.memory_space<vmem>>, vector<36x16xf32>
    %1 = arith.truncf %0 : vector<36x16xf32> to vector<36x16xbf16>
    %c0_1 = arith.constant 0 : index
    %c0_2 = arith.constant 0 : index
    %c0_3 = arith.constant 0 : index
    %2 = vector.load %arg1[%c0_1, %c0_2, %c0_3] : memref<3x16x256xbf16, #tpu.memory_space<vmem>>, vector<1x16x256xbf16>
    %3 = vector.shape_cast %2 : vector<1x16x256xbf16> to vector<16x256xbf16>
    %cst = arith.constant dense<0.000000e+00> : vector<36x256xf32>
    %4 = tpu.matmul %1, %3, %cst {dimension_numbers = #tpu.dot_dimension_numbers<[1], [0], [0], [1], [0, 0, 1, 1], [], []>} : vector<36x16xbf16>, vector<16x256xbf16>, vector<36x256xf32> -> vector<36x256xf32>
    %c1 = arith.constant 1 : index
    %c0_4 = arith.constant 0 : index
    %c0_5 = arith.constant 0 : index
    %5 = vector.load %arg1[%c1, %c0_4, %c0_5] : memref<3x16x256xbf16, #tpu.memory_space<vmem>>, vector<1x16x256xbf16>
    %6 = vector.shape_cast %5 : vector<1x16x256xbf16> to vector<16x256xbf16>
    %cst_6 = arith.constant dense<0.000000e+00> : vector<36x256xf32>
    %7 = tpu.matmul %1, %6, %cst_6 {dimension_numbers = #tpu.dot_dimension_numbers<[1], [0], [0], [1], [0, 0, 1, 1], [], []>} : vector<36x16xbf16>, vector<16x256xbf16>, vector<36x256xf32> -> vector<36x256xf32>
    %c2 = arith.constant 2 : index
    %c0_7 = arith.constant 0 : index
    %c0_8 = arith.constant 0 : index
    %8 = vector.load %arg1[%c2, %c0_7, %c0_8] : memref<3x16x256xbf16, #tpu.memory_space<vmem>>, vector<1x16x256xbf16>
    %9 = vector.shape_cast %8 : vector<1x16x256xbf16> to vector<16x256xbf16>
    %cst_9 = arith.constant dense<0.000000e+00> : vector<36x256xf32>
    %10 = tpu.matmul %1, %9, %cst_9 {dimension_numbers = #tpu.dot_dimension_numbers<[1], [0], [0], [1], [0, 0, 1, 1], [], []>} : vector<36x16xbf16>, vector<16x256xbf16>, vector<36x256xf32> -> vector<36x256xf32>
    %11 = vector.extract_strided_slice %4 {offsets = [0, 0], sizes = [16, 256], strides = [1, 1]} : vector<36x256xf32> to vector<16x256xf32>
    %12 = vector.extract_strided_slice %7 {offsets = [1, 0], sizes = [16, 256], strides = [1, 1]} : vector<36x256xf32> to vector<16x256xf32>
    %13 = arith.addf %11, %12 : vector<16x256xf32>
    %14 = vector.extract_strided_slice %10 {offsets = [2, 0], sizes = [16, 256], strides = [1, 1]} : vector<36x256xf32> to vector<16x256xf32>
    %15 = arith.addf %13, %14 : vector<16x256xf32>
    %16 = vector.extract_strided_slice %4 {offsets = [18, 0], sizes = [16, 256], strides = [1, 1]} : vector<36x256xf32> to vector<16x256xf32>
    %17 = vector.extract_strided_slice %7 {offsets = [19, 0], sizes = [16, 256], strides = [1, 1]} : vector<36x256xf32> to vector<16x256xf32>
    %18 = arith.addf %16, %17 : vector<16x256xf32>
    %19 = vector.extract_strided_slice %10 {offsets = [20, 0], sizes = [16, 256], strides = [1, 1]} : vector<36x256xf32> to vector<16x256xf32>
    %20 = arith.addf %18, %19 : vector<16x256xf32>
    %c0_10 = arith.constant 0 : index
    %c0_11 = arith.constant 0 : index
    %21 = vector.load %arg2[%c0_10, %c0_11] : memref<1x256xf32, #tpu.memory_space<vmem>>, vector<1x256xf32>
    %22 = vector.broadcast %21 : vector<1x256xf32> to vector<16x256xf32>
    %23 = arith.addf %15, %22 : vector<16x256xf32>
    %cst_12 = arith.constant 0.000000e+00 : f32
    %24 = vector.broadcast %cst_12 : f32 to vector<16x256xf32>
    %25 = arith.maximumf %23, %24 : vector<16x256xf32>
    %c0_13 = arith.constant 0 : index
    %c0_14 = arith.constant 0 : index
    %26 = vector.load %arg2[%c0_13, %c0_14] : memref<1x256xf32, #tpu.memory_space<vmem>>, vector<1x256xf32>
    %27 = vector.broadcast %26 : vector<1x256xf32> to vector<16x256xf32>
    %28 = arith.addf %20, %27 : vector<16x256xf32>
    %cst_15 = arith.constant 0.000000e+00 : f32
    %29 = vector.broadcast %cst_15 : f32 to vector<16x256xf32>
    %30 = arith.maximumf %28, %29 : vector<16x256xf32>
    %cst_16 = arith.constant 0.000000e+00 : f32
    %31 = vector.broadcast %cst_16 : f32 to vector<36x256xf32>
    %c0_17 = arith.constant 0 : index
    %c0_18 = arith.constant 0 : index
    %32 = vector.load %arg24[%c0_17, %c0_18] : memref<36x256xf32, #tpu.memory_space<vmem>>, vector<36x256xf32>
    tpu.vector_store %arg24[%c0_17, %c0_18], %31 {strides = array<i32>} : memref<36x256xf32, #tpu.memory_space<vmem>>, vector<36x256xf32>,
    %c1_19 = arith.constant 1 : index
    %c0_20 = arith.constant 0 : index
    %33 = vector.load %arg24[%c1_19, %c0_20] : memref<36x256xf32, #tpu.memory_space<vmem>>, vector<16x256xf32>
    tpu.vector_store %arg24[%c1_19, %c0_20], %25 {strides = array<i32>} : memref<36x256xf32, #tpu.memory_space<vmem>>, vector<16x256xf32>,
    %c19 = arith.constant 19 : index
    %c0_21 = arith.constant 0 : index
    %34 = vector.load %arg24[%c19, %c0_21] : memref<36x256xf32, #tpu.memory_space<vmem>>, vector<16x256xf32>
    tpu.vector_store %arg24[%c19, %c0_21], %30 {strides = array<i32>} : memref<36x256xf32, #tpu.memory_space<vmem>>, vector<16x256xf32>,
    %c0_22 = arith.constant 0 : index
    %c0_23 = arith.constant 0 : index
    %35 = vector.load %arg24[%c0_22, %c0_23] : memref<36x256xf32, #tpu.memory_space<vmem>>, vector<36x256xf32>
    %36 = arith.truncf %35 : vector<36x256xf32> to vector<36x256xbf16>
    %c0_24 = arith.constant 0 : index
    %c0_25 = arith.constant 0 : index
    %c0_26 = arith.constant 0 : index
    %37 = vector.load %arg3[%c0_24, %c0_25, %c0_26] : memref<3x256x256xbf16, #tpu.memory_space<vmem>>, vector<1x256x256xbf16>
    %38 = vector.shape_cast %37 : vector<1x256x256xbf16> to vector<256x256xbf16>
    %cst_27 = arith.constant dense<0.000000e+00> : vector<36x256xf32>
    %39 = tpu.matmul %36, %38, %cst_27 {dimension_numbers = #tpu.dot_dimension_numbers<[1], [0], [0], [1], [0, 0, 1, 1], [], []>} : vector<36x256xbf16>, vector<256x256xbf16>, vector<36x256xf32> -> vector<36x256xf32>
    %c1_28 = arith.constant 1 : index
    %c0_29 = arith.constant 0 : index
    %c0_30 = arith.constant 0 : index
    %40 = vector.load %arg3[%c1_28, %c0_29, %c0_30] : memref<3x256x256xbf16, #tpu.memory_space<vmem>>, vector<1x256x256xbf16>
    %41 = vector.shape_cast %40 : vector<1x256x256xbf16> to vector<256x256xbf16>
    %cst_31 = arith.constant dense<0.000000e+00> : vector<36x256xf32>
    %42 = tpu.matmul %36, %41, %cst_31 {dimension_numbers = #tpu.dot_dimension_numbers<[1], [0], [0], [1], [0, 0, 1, 1], [], []>} : vector<36x256xbf16>, vector<256x256xbf16>, vector<36x256xf32> -> vector<36x256xf32>
    %c2_32 = arith.constant 2 : index
    %c0_33 = arith.constant 0 : index
    %c0_34 = arith.constant 0 : index
    %43 = vector.load %arg3[%c2_32, %c0_33, %c0_34] : memref<3x256x256xbf16, #tpu.memory_space<vmem>>, vector<1x256x256xbf16>
    %44 = vector.shape_cast %43 : vector<1x256x256xbf16> to vector<256x256xbf16>
    %cst_35 = arith.constant dense<0.000000e+00> : vector<36x256xf32>
    %45 = tpu.matmul %36, %44, %cst_35 {dimension_numbers = #tpu.dot_dimension_numbers<[1], [0], [0], [1], [0, 0, 1, 1], [], []>} : vector<36x256xbf16>, vector<256x256xbf16>, vector<36x256xf32> -> vector<36x256xf32>
    %46 = vector.extract_strided_slice %39 {offsets = [0, 0], sizes = [16, 256], strides = [1, 1]} : vector<36x256xf32> to vector<16x256xf32>
    %47 = vector.extract_strided_slice %42 {offsets = [1, 0], sizes = [16, 256], strides = [1, 1]} : vector<36x256xf32> to vector<16x256xf32>
    %48 = arith.addf %46, %47 : vector<16x256xf32>
    %49 = vector.extract_strided_slice %45 {offsets = [2, 0], sizes = [16, 256], strides = [1, 1]} : vector<36x256xf32> to vector<16x256xf32>
    %50 = arith.addf %48, %49 : vector<16x256xf32>
    %51 = vector.extract_strided_slice %39 {offsets = [18, 0], sizes = [16, 256], strides = [1, 1]} : vector<36x256xf32> to vector<16x256xf32>
    %52 = vector.extract_strided_slice %42 {offsets = [19, 0], sizes = [16, 256], strides = [1, 1]} : vector<36x256xf32> to vector<16x256xf32>
    %53 = arith.addf %51, %52 : vector<16x256xf32>
    %54 = vector.extract_strided_slice %45 {offsets = [20, 0], sizes = [16, 256], strides = [1, 1]} : vector<36x256xf32> to vector<16x256xf32>
    %55 = arith.addf %53, %54 : vector<16x256xf32>
    %c0_36 = arith.constant 0 : index
    %c0_37 = arith.constant 0 : index
    %56 = vector.load %arg4[%c0_36, %c0_37] : memref<1x256xf32, #tpu.memory_space<vmem>>, vector<1x256xf32>
    %57 = vector.broadcast %56 : vector<1x256xf32> to vector<16x256xf32>
    %58 = arith.addf %50, %57 : vector<16x256xf32>
    %cst_38 = arith.constant 0.000000e+00 : f32
    %59 = vector.broadcast %cst_38 : f32 to vector<16x256xf32>
    %60 = arith.maximumf %58, %59 : vector<16x256xf32>
    %c0_39 = arith.constant 0 : index
    %c0_40 = arith.constant 0 : index
    %61 = vector.load %arg4[%c0_39, %c0_40] : memref<1x256xf32, #tpu.memory_space<vmem>>, vector<1x256xf32>
    %62 = vector.broadcast %61 : vector<1x256xf32> to vector<16x256xf32>
    %63 = arith.addf %55, %62 : vector<16x256xf32>
    %cst_41 = arith.constant 0.000000e+00 : f32
    %64 = vector.broadcast %cst_41 : f32 to vector<16x256xf32>
    %65 = arith.maximumf %63, %64 : vector<16x256xf32>
    %c1_42 = arith.constant 1 : index
    %c0_43 = arith.constant 0 : index
    %66 = vector.load %arg24[%c1_42, %c0_43] : memref<36x256xf32, #tpu.memory_space<vmem>>, vector<16x256xf32>
    tpu.vector_store %arg24[%c1_42, %c0_43], %60 {strides = array<i32>} : memref<36x256xf32, #tpu.memory_space<vmem>>, vector<16x256xf32>,
    %c19_44 = arith.constant 19 : index
    %c0_45 = arith.constant 0 : index
    %67 = vector.load %arg24[%c19_44, %c0_45] : memref<36x256xf32, #tpu.memory_space<vmem>>, vector<16x256xf32>
    tpu.vector_store %arg24[%c19_44, %c0_45], %65 {strides = array<i32>} : memref<36x256xf32, #tpu.memory_space<vmem>>, vector<16x256xf32>,
    %c0_46 = arith.constant 0 : index
    %c0_47 = arith.constant 0 : index
    %68 = vector.load %arg24[%c0_46, %c0_47] : memref<36x256xf32, #tpu.memory_space<vmem>>, vector<36x256xf32>
    %69 = arith.truncf %68 : vector<36x256xf32> to vector<36x256xbf16>
    %c0_48 = arith.constant 0 : index
    %c0_49 = arith.constant 0 : index
    %c0_50 = arith.constant 0 : index
    %70 = vector.load %arg5[%c0_48, %c0_49, %c0_50] : memref<3x256x256xbf16, #tpu.memory_space<vmem>>, vector<1x256x256xbf16>
    %71 = vector.shape_cast %70 : vector<1x256x256xbf16> to vector<256x256xbf16>
    %cst_51 = arith.constant dense<0.000000e+00> : vector<36x256xf32>
    %72 = tpu.matmul %69, %71, %cst_51 {dimension_numbers = #tpu.dot_dimension_numbers<[1], [0], [0], [1], [0, 0, 1, 1], [], []>} : vector<36x256xbf16>, vector<256x256xbf16>, vector<36x256xf32> -> vector<36x256xf32>
    %c1_52 = arith.constant 1 : index
    %c0_53 = arith.constant 0 : index
    %c0_54 = arith.constant 0 : index
    %73 = vector.load %arg5[%c1_52, %c0_53, %c0_54] : memref<3x256x256xbf16, #tpu.memory_space<vmem>>, vector<1x256x256xbf16>
    %74 = vector.shape_cast %73 : vector<1x256x256xbf16> to vector<256x256xbf16>
    %cst_55 = arith.constant dense<0.000000e+00> : vector<36x256xf32>
    %75 = tpu.matmul %69, %74, %cst_55 {dimension_numbers = #tpu.dot_dimension_numbers<[1], [0], [0], [1], [0, 0, 1, 1], [], []>} : vector<36x256xbf16>, vector<256x256xbf16>, vector<36x256xf32> -> vector<36x256xf32>
    %c2_56 = arith.constant 2 : index
    %c0_57 = arith.constant 0 : index
    %c0_58 = arith.constant 0 : index
    %76 = vector.load %arg5[%c2_56, %c0_57, %c0_58] : memref<3x256x256xbf16, #tpu.memory_space<vmem>>, vector<1x256x256xbf16>
    %77 = vector.shape_cast %76 : vector<1x256x256xbf16> to vector<256x256xbf16>
    %cst_59 = arith.constant dense<0.000000e+00> : vector<36x256xf32>
    %78 = tpu.matmul %69, %77, %cst_59 {dimension_numbers = #tpu.dot_dimension_numbers<[1], [0], [0], [1], [0, 0, 1, 1], [], []>} : vector<36x256xbf16>, vector<256x256xbf16>, vector<36x256xf32> -> vector<36x256xf32>
    %79 = vector.extract_strided_slice %72 {offsets = [0, 0], sizes = [16, 256], strides = [1, 1]} : vector<36x256xf32> to vector<16x256xf32>
    %80 = vector.extract_strided_slice %75 {offsets = [1, 0], sizes = [16, 256], strides = [1, 1]} : vector<36x256xf32> to vector<16x256xf32>
    %81 = arith.addf %79, %80 : vector<16x256xf32>
    %82 = vector.extract_strided_slice %78 {offsets = [2, 0], sizes = [16, 256], strides = [1, 1]} : vector<36x256xf32> to vector<16x256xf32>
    %83 = arith.addf %81, %82 : vector<16x256xf32>
    %84 = vector.extract_strided_slice %72 {offsets = [18, 0], sizes = [16, 256], strides = [1, 1]} : vector<36x256xf32> to vector<16x256xf32>
    %85 = vector.extract_strided_slice %75 {offsets = [19, 0], sizes = [16, 256], strides = [1, 1]} : vector<36x256xf32> to vector<16x256xf32>
    %86 = arith.addf %84, %85 : vector<16x256xf32>
    %87 = vector.extract_strided_slice %78 {offsets = [20, 0], sizes = [16, 256], strides = [1, 1]} : vector<36x256xf32> to vector<16x256xf32>
    %88 = arith.addf %86, %87 : vector<16x256xf32>
    %c0_60 = arith.constant 0 : index
    %c0_61 = arith.constant 0 : index
    %89 = vector.load %arg10[%c0_60, %c0_61] : memref<8x16xf32, #tpu.memory_space<vmem>>, vector<8x16xf32>
    %cst_62 = arith.constant dense<0.000000e+00> : vector<8x256xf32>
    %90 = tpu.matmul %89, %83, %cst_62 {dimension_numbers = #tpu.dot_dimension_numbers<[1], [0], [0], [1], [0, 0, 1, 1], [], []>} : vector<8x16xf32>, vector<16x256xf32>, vector<8x256xf32> -> vector<8x256xf32>
    %c0_63 = arith.constant 0 : index
    %c0_64 = arith.constant 0 : index
    %91 = vector.load %arg10[%c0_63, %c0_64] : memref<8x16xf32, #tpu.memory_space<vmem>>, vector<8x16xf32>
    %cst_65 = arith.constant dense<0.000000e+00> : vector<8x256xf32>
    %92 = tpu.matmul %91, %88, %cst_65 {dimension_numbers = #tpu.dot_dimension_numbers<[1], [0], [0], [1], [0, 0, 1, 1], [], []>} : vector<8x16xf32>, vector<16x256xf32>, vector<8x256xf32> -> vector<8x256xf32>
    %cst_66 = arith.constant dense<0.000000e+00> : vector<256xf32>
    %93 = vector.multi_reduction <add>, %90, %cst_66 [0] : vector<8x256xf32> to vector<256xf32>
    %94 = vector.shape_cast %93 : vector<256xf32> to vector<1x256xf32>
    %cst_67 = arith.constant dense<0.000000e+00> : vector<256xf32>
    %95 = vector.multi_reduction <add>, %92, %cst_67 [0] : vector<8x256xf32> to vector<256xf32>
    %96 = vector.shape_cast %95 : vector<256xf32> to vector<1x256xf32>
    %97 = arith.addf %94, %96 : vector<1x256xf32>
    %c0_68 = arith.constant 0 : index
    %c0_69 = arith.constant 0 : index
    %98 = vector.load %arg6[%c0_68, %c0_69] : memref<256x32xf32, #tpu.memory_space<vmem>>, vector<256x32xf32>
    %cst_70 = arith.constant dense<0.000000e+00> : vector<1x32xf32>
    %99 = tpu.matmul %97, %98, %cst_70 {dimension_numbers = #tpu.dot_dimension_numbers<[1], [0], [0], [1], [0, 0, 1, 1], [], []>} : vector<1x256xf32>, vector<256x32xf32>, vector<1x32xf32> -> vector<1x32xf32>
    %cst_71 = arith.constant 7.812500e-03 : f32
    %100 = vector.broadcast %cst_71 : f32 to vector<1x32xf32>
    %101 = arith.mulf %99, %100 : vector<1x32xf32>
    %c0_72 = arith.constant 0 : index
    %c0_73 = arith.constant 0 : index
    %102 = vector.load %arg7[%c0_72, %c0_73] : memref<32x256xf32, #tpu.memory_space<vmem>>, vector<32x256xf32>
    %cst_74 = arith.constant dense<0.000000e+00> : vector<1x256xf32>
    %103 = tpu.matmul %101, %102, %cst_74 {dimension_numbers = #tpu.dot_dimension_numbers<[1], [0], [0], [1], [0, 0, 1, 1], [], []>} : vector<1x32xf32>, vector<32x256xf32>, vector<1x256xf32> -> vector<1x256xf32>
    %104 = vector.broadcast %103 : vector<1x256xf32> to vector<8x256xf32>
    %105 = arith.subf %90, %104 : vector<8x256xf32>
    %106 = vector.broadcast %103 : vector<1x256xf32> to vector<8x256xf32>
    %107 = arith.subf %92, %106 : vector<8x256xf32>
    %108 = arith.mulf %105, %105 : vector<8x256xf32>
    %cst_75 = arith.constant dense<0.000000e+00> : vector<256xf32>
    %109 = vector.multi_reduction <add>, %108, %cst_75 [0] : vector<8x256xf32> to vector<256xf32>
    %110 = vector.shape_cast %109 : vector<256xf32> to vector<1x256xf32>
    %111 = arith.mulf %107, %107 : vector<8x256xf32>
    %cst_76 = arith.constant dense<0.000000e+00> : vector<256xf32>
    %112 = vector.multi_reduction <add>, %111, %cst_76 [0] : vector<8x256xf32> to vector<256xf32>
    %113 = vector.shape_cast %112 : vector<256xf32> to vector<1x256xf32>
    %114 = arith.addf %110, %113 : vector<1x256xf32>
    %c0_77 = arith.constant 0 : index
    %c0_78 = arith.constant 0 : index
    %115 = vector.load %arg6[%c0_77, %c0_78] : memref<256x32xf32, #tpu.memory_space<vmem>>, vector<256x32xf32>
    %cst_79 = arith.constant dense<0.000000e+00> : vector<1x32xf32>
    %116 = tpu.matmul %114, %115, %cst_79 {dimension_numbers = #tpu.dot_dimension_numbers<[1], [0], [0], [1], [0, 0, 1, 1], [], []>} : vector<1x256xf32>, vector<256x32xf32>, vector<1x32xf32> -> vector<1x32xf32>
    %cst_80 = arith.constant 7.812500e-03 : f32
    %117 = vector.broadcast %cst_80 : f32 to vector<1x32xf32>
    %118 = arith.mulf %116, %117 : vector<1x32xf32>
    %c0_81 = arith.constant 0 : index
    %c0_82 = arith.constant 0 : index
    %119 = vector.load %arg8[%c0_81, %c0_82] : memref<1x32xf32, #tpu.memory_space<vmem>>, vector<1x32xf32>
    %cst_83 = arith.constant 9.99999974E-6 : f32
    %120 = vector.broadcast %cst_83 : f32 to vector<1x32xf32>
    %121 = arith.addf %118, %120 : vector<1x32xf32>
    %122 = math.rsqrt %121 : vector<1x32xf32>
    %123 = arith.mulf %119, %122 : vector<1x32xf32>
    %c0_84 = arith.constant 0 : index
    %c0_85 = arith.constant 0 : index
    %124 = vector.load %arg7[%c0_84, %c0_85] : memref<32x256xf32, #tpu.memory_space<vmem>>, vector<32x256xf32>
    %cst_86 = arith.constant dense<0.000000e+00> : vector<1x256xf32>
    %125 = tpu.matmul %123, %124, %cst_86 {dimension_numbers = #tpu.dot_dimension_numbers<[1], [0], [0], [1], [0, 0, 1, 1], [], []>} : vector<1x32xf32>, vector<32x256xf32>, vector<1x256xf32> -> vector<1x256xf32>
    %c0_87 = arith.constant 0 : index
    %c0_88 = arith.constant 0 : index
    %126 = vector.load %arg9[%c0_87, %c0_88] : memref<1x32xf32, #tpu.memory_space<vmem>>, vector<1x32xf32>
    %c0_89 = arith.constant 0 : index
    %c0_90 = arith.constant 0 : index
    %127 = vector.load %arg7[%c0_89, %c0_90] : memref<32x256xf32, #tpu.memory_space<vmem>>, vector<32x256xf32>
    %cst_91 = arith.constant dense<0.000000e+00> : vector<1x256xf32>
    %128 = tpu.matmul %126, %127, %cst_91 {dimension_numbers = #tpu.dot_dimension_numbers<[1], [0], [0], [1], [0, 0, 1, 1], [], []>} : vector<1x32xf32>, vector<32x256xf32>, vector<1x256xf32> -> vector<1x256xf32>
    %129 = vector.broadcast %125 : vector<1x256xf32> to vector<8x256xf32>
    %130 = arith.mulf %105, %129 : vector<8x256xf32>
    %131 = vector.broadcast %128 : vector<1x256xf32> to vector<8x256xf32>
    %132 = arith.addf %130, %131 : vector<8x256xf32>
    %cst_92 = arith.constant 0.000000e+00 : f32
    %133 = vector.broadcast %cst_92 : f32 to vector<8x256xf32>
    %134 = arith.maximumf %132, %133 : vector<8x256xf32>
    %135 = vector.broadcast %125 : vector<1x256xf32> to vector<8x256xf32>
    %136 = arith.mulf %107, %135 : vector<8x256xf32>
    %137 = vector.broadcast %128 : vector<1x256xf32> to vector<8x256xf32>
    %138 = arith.addf %136, %137 : vector<8x256xf32>
    %cst_93 = arith.constant 0.000000e+00 : f32
    %139 = vector.broadcast %cst_93 : f32 to vector<8x256xf32>
    %140 = arith.maximumf %138, %139 : vector<8x256xf32>
    %cst_94 = arith.constant 0.000000e+00 : f32
    %141 = vector.broadcast %cst_94 : f32 to vector<20x256xf32>
    %c0_95 = arith.constant 0 : index
    %c0_96 = arith.constant 0 : index
    %142 = vector.load %arg25[%c0_95, %c0_96] : memref<20x256xf32, #tpu.memory_space<vmem>>, vector<20x256xf32>
    tpu.vector_store %arg25[%c0_95, %c0_96], %141 {strides = array<i32>} : memref<20x256xf32, #tpu.memory_space<vmem>>, vector<20x256xf32>,
    %c1_97 = arith.constant 1 : index
    %c0_98 = arith.constant 0 : index
    %143 = vector.load %arg25[%c1_97, %c0_98] : memref<20x256xf32, #tpu.memory_space<vmem>>, vector<8x256xf32>
    tpu.vector_store %arg25[%c1_97, %c0_98], %134 {strides = array<i32>} : memref<20x256xf32, #tpu.memory_space<vmem>>, vector<8x256xf32>,
    %c11 = arith.constant 11 : index
    %c0_99 = arith.constant 0 : index
    %144 = vector.load %arg25[%c11, %c0_99] : memref<20x256xf32, #tpu.memory_space<vmem>>, vector<8x256xf32>
    tpu.vector_store %arg25[%c11, %c0_99], %140 {strides = array<i32>} : memref<20x256xf32, #tpu.memory_space<vmem>>, vector<8x256xf32>,
    %c0_100 = arith.constant 0 : index
    %c0_101 = arith.constant 0 : index
    %145 = vector.load %arg25[%c0_100, %c0_101] : memref<20x256xf32, #tpu.memory_space<vmem>>, vector<20x256xf32>
    %146 = arith.truncf %145 : vector<20x256xf32> to vector<20x256xbf16>
    %c0_102 = arith.constant 0 : index
    %c0_103 = arith.constant 0 : index
    %c0_104 = arith.constant 0 : index
    %147 = vector.load %arg11[%c0_102, %c0_103, %c0_104] : memref<3x256x256xbf16, #tpu.memory_space<vmem>>, vector<1x256x256xbf16>
    %148 = vector.shape_cast %147 : vector<1x256x256xbf16> to vector<256x256xbf16>
    %cst_105 = arith.constant dense<0.000000e+00> : vector<20x256xf32>
    %149 = tpu.matmul %146, %148, %cst_105 {dimension_numbers = #tpu.dot_dimension_numbers<[1], [0], [0], [1], [0, 0, 1, 1], [], []>} : vector<20x256xbf16>, vector<256x256xbf16>, vector<20x256xf32> -> vector<20x256xf32>
    %c1_106 = arith.constant 1 : index
    %c0_107 = arith.constant 0 : index
    %c0_108 = arith.constant 0 : index
    %150 = vector.load %arg11[%c1_106, %c0_107, %c0_108] : memref<3x256x256xbf16, #tpu.memory_space<vmem>>, vector<1x256x256xbf16>
    %151 = vector.shape_cast %150 : vector<1x256x256xbf16> to vector<256x256xbf16>
    %cst_109 = arith.constant dense<0.000000e+00> : vector<20x256xf32>
    %152 = tpu.matmul %146, %151, %cst_109 {dimension_numbers = #tpu.dot_dimension_numbers<[1], [0], [0], [1], [0, 0, 1, 1], [], []>} : vector<20x256xbf16>, vector<256x256xbf16>, vector<20x256xf32> -> vector<20x256xf32>
    %c2_110 = arith.constant 2 : index
    %c0_111 = arith.constant 0 : index
    %c0_112 = arith.constant 0 : index
    %153 = vector.load %arg11[%c2_110, %c0_111, %c0_112] : memref<3x256x256xbf16, #tpu.memory_space<vmem>>, vector<1x256x256xbf16>
    %154 = vector.shape_cast %153 : vector<1x256x256xbf16> to vector<256x256xbf16>
    %cst_113 = arith.constant dense<0.000000e+00> : vector<20x256xf32>
    %155 = tpu.matmul %146, %154, %cst_113 {dimension_numbers = #tpu.dot_dimension_numbers<[1], [0], [0], [1], [0, 0, 1, 1], [], []>} : vector<20x256xbf16>, vector<256x256xbf16>, vector<20x256xf32> -> vector<20x256xf32>
    %156 = vector.extract_strided_slice %149 {offsets = [0, 0], sizes = [8, 256], strides = [1, 1]} : vector<20x256xf32> to vector<8x256xf32>
    %157 = vector.extract_strided_slice %152 {offsets = [1, 0], sizes = [8, 256], strides = [1, 1]} : vector<20x256xf32> to vector<8x256xf32>
    %158 = arith.addf %156, %157 : vector<8x256xf32>
    %159 = vector.extract_strided_slice %155 {offsets = [2, 0], sizes = [8, 256], strides = [1, 1]} : vector<20x256xf32> to vector<8x256xf32>
    %160 = arith.addf %158, %159 : vector<8x256xf32>
    %161 = vector.extract_strided_slice %149 {offsets = [10, 0], sizes = [8, 256], strides = [1, 1]} : vector<20x256xf32> to vector<8x256xf32>
    %162 = vector.extract_strided_slice %152 {offsets = [11, 0], sizes = [8, 256], strides = [1, 1]} : vector<20x256xf32> to vector<8x256xf32>
    %163 = arith.addf %161, %162 : vector<8x256xf32>
    %164 = vector.extract_strided_slice %155 {offsets = [12, 0], sizes = [8, 256], strides = [1, 1]} : vector<20x256xf32> to vector<8x256xf32>
    %165 = arith.addf %163, %164 : vector<8x256xf32>
    %c0_114 = arith.constant 0 : index
    %c0_115 = arith.constant 0 : index
    %166 = vector.load %arg12[%c0_114, %c0_115] : memref<1x256xf32, #tpu.memory_space<vmem>>, vector<1x256xf32>
    %167 = vector.broadcast %166 : vector<1x256xf32> to vector<8x256xf32>
    %168 = arith.addf %160, %167 : vector<8x256xf32>
    %cst_116 = arith.constant 0.000000e+00 : f32
    %169 = vector.broadcast %cst_116 : f32 to vector<8x256xf32>
    %170 = arith.maximumf %168, %169 : vector<8x256xf32>
    %c0_117 = arith.constant 0 : index
    %c0_118 = arith.constant 0 : index
    %171 = vector.load %arg12[%c0_117, %c0_118] : memref<1x256xf32, #tpu.memory_space<vmem>>, vector<1x256xf32>
    %172 = vector.broadcast %171 : vector<1x256xf32> to vector<8x256xf32>
    %173 = arith.addf %165, %172 : vector<8x256xf32>
    %cst_119 = arith.constant 0.000000e+00 : f32
    %174 = vector.broadcast %cst_119 : f32 to vector<8x256xf32>
    %175 = arith.maximumf %173, %174 : vector<8x256xf32>
    %c1_120 = arith.constant 1 : index
    %c0_121 = arith.constant 0 : index
    %176 = vector.load %arg25[%c1_120, %c0_121] : memref<20x256xf32, #tpu.memory_space<vmem>>, vector<8x256xf32>
    tpu.vector_store %arg25[%c1_120, %c0_121], %170 {strides = array<i32>} : memref<20x256xf32, #tpu.memory_space<vmem>>, vector<8x256xf32>,
    %c11_122 = arith.constant 11 : index
    %c0_123 = arith.constant 0 : index
    %177 = vector.load %arg25[%c11_122, %c0_123] : memref<20x256xf32, #tpu.memory_space<vmem>>, vector<8x256xf32>
    tpu.vector_store %arg25[%c11_122, %c0_123], %175 {strides = array<i32>} : memref<20x256xf32, #tpu.memory_space<vmem>>, vector<8x256xf32>,
    %c0_124 = arith.constant 0 : index
    %c0_125 = arith.constant 0 : index
    %178 = vector.load %arg25[%c0_124, %c0_125] : memref<20x256xf32, #tpu.memory_space<vmem>>, vector<20x256xf32>
    %179 = arith.truncf %178 : vector<20x256xf32> to vector<20x256xbf16>
    %c0_126 = arith.constant 0 : index
    %c0_127 = arith.constant 0 : index
    %c0_128 = arith.constant 0 : index
    %180 = vector.load %arg13[%c0_126, %c0_127, %c0_128] : memref<3x256x256xbf16, #tpu.memory_space<vmem>>, vector<1x256x256xbf16>
    %181 = vector.shape_cast %180 : vector<1x256x256xbf16> to vector<256x256xbf16>
    %cst_129 = arith.constant dense<0.000000e+00> : vector<20x256xf32>
    %182 = tpu.matmul %179, %181, %cst_129 {dimension_numbers = #tpu.dot_dimension_numbers<[1], [0], [0], [1], [0, 0, 1, 1], [], []>} : vector<20x256xbf16>, vector<256x256xbf16>, vector<20x256xf32> -> vector<20x256xf32>
    %c1_130 = arith.constant 1 : index
    %c0_131 = arith.constant 0 : index
    %c0_132 = arith.constant 0 : index
    %183 = vector.load %arg13[%c1_130, %c0_131, %c0_132] : memref<3x256x256xbf16, #tpu.memory_space<vmem>>, vector<1x256x256xbf16>
    %184 = vector.shape_cast %183 : vector<1x256x256xbf16> to vector<256x256xbf16>
    %cst_133 = arith.constant dense<0.000000e+00> : vector<20x256xf32>
    %185 = tpu.matmul %179, %184, %cst_133 {dimension_numbers = #tpu.dot_dimension_numbers<[1], [0], [0], [1], [0, 0, 1, 1], [], []>} : vector<20x256xbf16>, vector<256x256xbf16>, vector<20x256xf32> -> vector<20x256xf32>
    %c2_134 = arith.constant 2 : index
    %c0_135 = arith.constant 0 : index
    %c0_136 = arith.constant 0 : index
    %186 = vector.load %arg13[%c2_134, %c0_135, %c0_136] : memref<3x256x256xbf16, #tpu.memory_space<vmem>>, vector<1x256x256xbf16>
    %187 = vector.shape_cast %186 : vector<1x256x256xbf16> to vector<256x256xbf16>
    %cst_137 = arith.constant dense<0.000000e+00> : vector<20x256xf32>
    %188 = tpu.matmul %179, %187, %cst_137 {dimension_numbers = #tpu.dot_dimension_numbers<[1], [0], [0], [1], [0, 0, 1, 1], [], []>} : vector<20x256xbf16>, vector<256x256xbf16>, vector<20x256xf32> -> vector<20x256xf32>
    %189 = vector.extract_strided_slice %182 {offsets = [0, 0], sizes = [8, 256], strides = [1, 1]} : vector<20x256xf32> to vector<8x256xf32>
    %190 = vector.extract_strided_slice %185 {offsets = [1, 0], sizes = [8, 256], strides = [1, 1]} : vector<20x256xf32> to vector<8x256xf32>
    %191 = arith.addf %189, %190 : vector<8x256xf32>
    %192 = vector.extract_strided_slice %188 {offsets = [2, 0], sizes = [8, 256], strides = [1, 1]} : vector<20x256xf32> to vector<8x256xf32>
    %193 = arith.addf %191, %192 : vector<8x256xf32>
    %194 = vector.extract_strided_slice %182 {offsets = [10, 0], sizes = [8, 256], strides = [1, 1]} : vector<20x256xf32> to vector<8x256xf32>
    %195 = vector.extract_strided_slice %185 {offsets = [11, 0], sizes = [8, 256], strides = [1, 1]} : vector<20x256xf32> to vector<8x256xf32>
    %196 = arith.addf %194, %195 : vector<8x256xf32>
    %197 = vector.extract_strided_slice %188 {offsets = [12, 0], sizes = [8, 256], strides = [1, 1]} : vector<20x256xf32> to vector<8x256xf32>
    %198 = arith.addf %196, %197 : vector<8x256xf32>
    %c0_138 = arith.constant 0 : index
    %c0_139 = arith.constant 0 : index
    %199 = vector.load %arg18[%c0_138, %c0_139] : memref<4x8xf32, #tpu.memory_space<vmem>>, vector<4x8xf32>
    %cst_140 = arith.constant dense<0.000000e+00> : vector<4x256xf32>
    %200 = tpu.matmul %199, %193, %cst_140 {dimension_numbers = #tpu.dot_dimension_numbers<[1], [0], [0], [1], [0, 0, 1, 1], [], []>} : vector<4x8xf32>, vector<8x256xf32>, vector<4x256xf32> -> vector<4x256xf32>
    %c0_141 = arith.constant 0 : index
    %c0_142 = arith.constant 0 : index
    %201 = vector.load %arg18[%c0_141, %c0_142] : memref<4x8xf32, #tpu.memory_space<vmem>>, vector<4x8xf32>
    %cst_143 = arith.constant dense<0.000000e+00> : vector<4x256xf32>
    %202 = tpu.matmul %201, %198, %cst_143 {dimension_numbers = #tpu.dot_dimension_numbers<[1], [0], [0], [1], [0, 0, 1, 1], [], []>} : vector<4x8xf32>, vector<8x256xf32>, vector<4x256xf32> -> vector<4x256xf32>
    %cst_144 = arith.constant dense<0.000000e+00> : vector<256xf32>
    %203 = vector.multi_reduction <add>, %200, %cst_144 [0] : vector<4x256xf32> to vector<256xf32>
    %204 = vector.shape_cast %203 : vector<256xf32> to vector<1x256xf32>
    %cst_145 = arith.constant dense<0.000000e+00> : vector<256xf32>
    %205 = vector.multi_reduction <add>, %202, %cst_145 [0] : vector<4x256xf32> to vector<256xf32>
    %206 = vector.shape_cast %205 : vector<256xf32> to vector<1x256xf32>
    %207 = arith.addf %204, %206 : vector<1x256xf32>
    %c0_146 = arith.constant 0 : index
    %c0_147 = arith.constant 0 : index
    %208 = vector.load %arg14[%c0_146, %c0_147] : memref<256x64xf32, #tpu.memory_space<vmem>>, vector<256x64xf32>
    %cst_148 = arith.constant dense<0.000000e+00> : vector<1x64xf32>
    %209 = tpu.matmul %207, %208, %cst_148 {dimension_numbers = #tpu.dot_dimension_numbers<[1], [0], [0], [1], [0, 0, 1, 1], [], []>} : vector<1x256xf32>, vector<256x64xf32>, vector<1x64xf32> -> vector<1x64xf32>
    %cst_149 = arith.constant 3.125000e-02 : f32
    %210 = vector.broadcast %cst_149 : f32 to vector<1x64xf32>
    %211 = arith.mulf %209, %210 : vector<1x64xf32>
    %c0_150 = arith.constant 0 : index
    %c0_151 = arith.constant 0 : index
    %212 = vector.load %arg15[%c0_150, %c0_151] : memref<64x256xf32, #tpu.memory_space<vmem>>, vector<64x256xf32>
    %cst_152 = arith.constant dense<0.000000e+00> : vector<1x256xf32>
    %213 = tpu.matmul %211, %212, %cst_152 {dimension_numbers = #tpu.dot_dimension_numbers<[1], [0], [0], [1], [0, 0, 1, 1], [], []>} : vector<1x64xf32>, vector<64x256xf32>, vector<1x256xf32> -> vector<1x256xf32>
    %214 = vector.broadcast %213 : vector<1x256xf32> to vector<4x256xf32>
    %215 = arith.subf %200, %214 : vector<4x256xf32>
    %216 = vector.broadcast %213 : vector<1x256xf32> to vector<4x256xf32>
    %217 = arith.subf %202, %216 : vector<4x256xf32>
    %218 = arith.mulf %215, %215 : vector<4x256xf32>
    %cst_153 = arith.constant dense<0.000000e+00> : vector<256xf32>
    %219 = vector.multi_reduction <add>, %218, %cst_153 [0] : vector<4x256xf32> to vector<256xf32>
    %220 = vector.shape_cast %219 : vector<256xf32> to vector<1x256xf32>
    %221 = arith.mulf %217, %217 : vector<4x256xf32>
    %cst_154 = arith.constant dense<0.000000e+00> : vector<256xf32>
    %222 = vector.multi_reduction <add>, %221, %cst_154 [0] : vector<4x256xf32> to vector<256xf32>
    %223 = vector.shape_cast %222 : vector<256xf32> to vector<1x256xf32>
    %224 = arith.addf %220, %223 : vector<1x256xf32>
    %c0_155 = arith.constant 0 : index
    %c0_156 = arith.constant 0 : index
    %225 = vector.load %arg14[%c0_155, %c0_156] : memref<256x64xf32, #tpu.memory_space<vmem>>, vector<256x64xf32>
    %cst_157 = arith.constant dense<0.000000e+00> : vector<1x64xf32>
    %226 = tpu.matmul %224, %225, %cst_157 {dimension_numbers = #tpu.dot_dimension_numbers<[1], [0], [0], [1], [0, 0, 1, 1], [], []>} : vector<1x256xf32>, vector<256x64xf32>, vector<1x64xf32> -> vector<1x64xf32>
    %cst_158 = arith.constant 3.125000e-02 : f32
    %227 = vector.broadcast %cst_158 : f32 to vector<1x64xf32>
    %228 = arith.mulf %226, %227 : vector<1x64xf32>
    %c0_159 = arith.constant 0 : index
    %c0_160 = arith.constant 0 : index
    %229 = vector.load %arg16[%c0_159, %c0_160] : memref<1x64xf32, #tpu.memory_space<vmem>>, vector<1x64xf32>
    %cst_161 = arith.constant 9.99999974E-6 : f32
    %230 = vector.broadcast %cst_161 : f32 to vector<1x64xf32>
    %231 = arith.addf %228, %230 : vector<1x64xf32>
    %232 = math.rsqrt %231 : vector<1x64xf32>
    %233 = arith.mulf %229, %232 : vector<1x64xf32>
    %c0_162 = arith.constant 0 : index
    %c0_163 = arith.constant 0 : index
    %234 = vector.load %arg15[%c0_162, %c0_163] : memref<64x256xf32, #tpu.memory_space<vmem>>, vector<64x256xf32>
    %cst_164 = arith.constant dense<0.000000e+00> : vector<1x256xf32>
    %235 = tpu.matmul %233, %234, %cst_164 {dimension_numbers = #tpu.dot_dimension_numbers<[1], [0], [0], [1], [0, 0, 1, 1], [], []>} : vector<1x64xf32>, vector<64x256xf32>, vector<1x256xf32> -> vector<1x256xf32>
    %c0_165 = arith.constant 0 : index
    %c0_166 = arith.constant 0 : index
    %236 = vector.load %arg17[%c0_165, %c0_166] : memref<1x64xf32, #tpu.memory_space<vmem>>, vector<1x64xf32>
    %c0_167 = arith.constant 0 : index
    %c0_168 = arith.constant 0 : index
    %237 = vector.load %arg15[%c0_167, %c0_168] : memref<64x256xf32, #tpu.memory_space<vmem>>, vector<64x256xf32>
    %cst_169 = arith.constant dense<0.000000e+00> : vector<1x256xf32>
    %238 = tpu.matmul %236, %237, %cst_169 {dimension_numbers = #tpu.dot_dimension_numbers<[1], [0], [0], [1], [0, 0, 1, 1], [], []>} : vector<1x64xf32>, vector<64x256xf32>, vector<1x256xf32> -> vector<1x256xf32>
    %239 = vector.broadcast %235 : vector<1x256xf32> to vector<4x256xf32>
    %240 = arith.mulf %215, %239 : vector<4x256xf32>
    %241 = vector.broadcast %238 : vector<1x256xf32> to vector<4x256xf32>
    %242 = arith.addf %240, %241 : vector<4x256xf32>
    %cst_170 = arith.constant 0.000000e+00 : f32
    %243 = vector.broadcast %cst_170 : f32 to vector<4x256xf32>
    %244 = arith.maximumf %242, %243 : vector<4x256xf32>
    %245 = vector.broadcast %235 : vector<1x256xf32> to vector<4x256xf32>
    %246 = arith.mulf %217, %245 : vector<4x256xf32>
    %247 = vector.broadcast %238 : vector<1x256xf32> to vector<4x256xf32>
    %248 = arith.addf %246, %247 : vector<4x256xf32>
    %cst_171 = arith.constant 0.000000e+00 : f32
    %249 = vector.broadcast %cst_171 : f32 to vector<4x256xf32>
    %250 = arith.maximumf %248, %249 : vector<4x256xf32>
    %251 = vector.extract_strided_slice %244 {offsets = [0, 0], sizes = [1, 256], strides = [1, 1]} : vector<4x256xf32> to vector<1x256xf32>
    %252 = arith.truncf %251 : vector<1x256xf32> to vector<1x256xbf16>
    %c0_172 = arith.constant 0 : index
    %c0_173 = arith.constant 0 : index
    %c0_174 = arith.constant 0 : index
    %253 = vector.load %arg19[%c0_172, %c0_173, %c0_174] : memref<4x256x16xbf16, #tpu.memory_space<vmem>>, vector<1x256x16xbf16>
    %254 = vector.shape_cast %253 : vector<1x256x16xbf16> to vector<256x16xbf16>
    %cst_175 = arith.constant dense<0.000000e+00> : vector<1x16xf32>
    %255 = tpu.matmul %252, %254, %cst_175 {dimension_numbers = #tpu.dot_dimension_numbers<[1], [0], [0], [1], [0, 0, 1, 1], [], []>} : vector<1x256xbf16>, vector<256x16xbf16>, vector<1x16xf32> -> vector<1x16xf32>
    %256 = vector.extract_strided_slice %244 {offsets = [1, 0], sizes = [1, 256], strides = [1, 1]} : vector<4x256xf32> to vector<1x256xf32>
    %257 = arith.truncf %256 : vector<1x256xf32> to vector<1x256xbf16>
    %c1_176 = arith.constant 1 : index
    %c0_177 = arith.constant 0 : index
    %c0_178 = arith.constant 0 : index
    %258 = vector.load %arg19[%c1_176, %c0_177, %c0_178] : memref<4x256x16xbf16, #tpu.memory_space<vmem>>, vector<1x256x16xbf16>
    %259 = vector.shape_cast %258 : vector<1x256x16xbf16> to vector<256x16xbf16>
    %cst_179 = arith.constant dense<0.000000e+00> : vector<1x16xf32>
    %260 = tpu.matmul %257, %259, %cst_179 {dimension_numbers = #tpu.dot_dimension_numbers<[1], [0], [0], [1], [0, 0, 1, 1], [], []>} : vector<1x256xbf16>, vector<256x16xbf16>, vector<1x16xf32> -> vector<1x16xf32>
    %261 = arith.addf %255, %260 : vector<1x16xf32>
    %262 = vector.extract_strided_slice %244 {offsets = [2, 0], sizes = [1, 256], strides = [1, 1]} : vector<4x256xf32> to vector<1x256xf32>
    %263 = arith.truncf %262 : vector<1x256xf32> to vector<1x256xbf16>
    %c2_180 = arith.constant 2 : index
    %c0_181 = arith.constant 0 : index
    %c0_182 = arith.constant 0 : index
    %264 = vector.load %arg19[%c2_180, %c0_181, %c0_182] : memref<4x256x16xbf16, #tpu.memory_space<vmem>>, vector<1x256x16xbf16>
    %265 = vector.shape_cast %264 : vector<1x256x16xbf16> to vector<256x16xbf16>
    %cst_183 = arith.constant dense<0.000000e+00> : vector<1x16xf32>
    %266 = tpu.matmul %263, %265, %cst_183 {dimension_numbers = #tpu.dot_dimension_numbers<[1], [0], [0], [1], [0, 0, 1, 1], [], []>} : vector<1x256xbf16>, vector<256x16xbf16>, vector<1x16xf32> -> vector<1x16xf32>
    %267 = arith.addf %261, %266 : vector<1x16xf32>
    %268 = vector.extract_strided_slice %244 {offsets = [3, 0], sizes = [1, 256], strides = [1, 1]} : vector<4x256xf32> to vector<1x256xf32>
    %269 = arith.truncf %268 : vector<1x256xf32> to vector<1x256xbf16>
    %c3 = arith.constant 3 : index
    %c0_184 = arith.constant 0 : index
    %c0_185 = arith.constant 0 : index
    %270 = vector.load %arg19[%c3, %c0_184, %c0_185] : memref<4x256x16xbf16, #tpu.memory_space<vmem>>, vector<1x256x16xbf16>
    %271 = vector.shape_cast %270 : vector<1x256x16xbf16> to vector<256x16xbf16>
    %cst_186 = arith.constant dense<0.000000e+00> : vector<1x16xf32>
    %272 = tpu.matmul %269, %271, %cst_186 {dimension_numbers = #tpu.dot_dimension_numbers<[1], [0], [0], [1], [0, 0, 1, 1], [], []>} : vector<1x256xbf16>, vector<256x16xbf16>, vector<1x16xf32> -> vector<1x16xf32>
    %273 = arith.addf %267, %272 : vector<1x16xf32>
    %c0_187 = arith.constant 0 : index
    %c0_188 = arith.constant 0 : index
    %274 = vector.load %arg20[%c0_187, %c0_188] : memref<1x16xf32, #tpu.memory_space<vmem>>, vector<1x16xf32>
    %275 = arith.addf %273, %274 : vector<1x16xf32>
    %cst_189 = arith.constant 0.000000e+00 : f32
    %276 = vector.broadcast %cst_189 : f32 to vector<1x16xf32>
    %277 = arith.maximumf %275, %276 : vector<1x16xf32>
    %278 = arith.truncf %277 : vector<1x16xf32> to vector<1x16xbf16>
    %c0_190 = arith.constant 0 : index
    %c0_191 = arith.constant 0 : index
    %279 = vector.load %arg21[%c0_190, %c0_191] : memref<16x128xbf16, #tpu.memory_space<vmem>>, vector<16x128xbf16>
    %cst_192 = arith.constant dense<0.000000e+00> : vector<1x128xf32>
    %280 = tpu.matmul %278, %279, %cst_192 {dimension_numbers = #tpu.dot_dimension_numbers<[1], [0], [0], [1], [0, 0, 1, 1], [], []>} : vector<1x16xbf16>, vector<16x128xbf16>, vector<1x128xf32> -> vector<1x128xf32>
    %c0_193 = arith.constant 0 : index
    %c0_194 = arith.constant 0 : index
    %281 = vector.load %arg22[%c0_193, %c0_194] : memref<1x128xf32, #tpu.memory_space<vmem>>, vector<1x128xf32>
    %282 = arith.addf %280, %281 : vector<1x128xf32>
    %c0_195 = arith.constant 0 : index
    %c0_196 = arith.constant 0 : index
    %283 = vector.load %arg23[%c0_195, %c0_196] : memref<2x128xf32, #tpu.memory_space<vmem>>, vector<1x128xf32>
    tpu.vector_store %arg23[%c0_195, %c0_196], %282 {strides = array<i32>} : memref<2x128xf32, #tpu.memory_space<vmem>>, vector<1x128xf32>,
    %284 = vector.extract_strided_slice %250 {offsets = [0, 0], sizes = [1, 256], strides = [1, 1]} : vector<4x256xf32> to vector<1x256xf32>
    %285 = arith.truncf %284 : vector<1x256xf32> to vector<1x256xbf16>
    %c0_197 = arith.constant 0 : index
    %c0_198 = arith.constant 0 : index
    %c0_199 = arith.constant 0 : index
    %286 = vector.load %arg19[%c0_197, %c0_198, %c0_199] : memref<4x256x16xbf16, #tpu.memory_space<vmem>>, vector<1x256x16xbf16>
    %287 = vector.shape_cast %286 : vector<1x256x16xbf16> to vector<256x16xbf16>
    %cst_200 = arith.constant dense<0.000000e+00> : vector<1x16xf32>
    %288 = tpu.matmul %285, %287, %cst_200 {dimension_numbers = #tpu.dot_dimension_numbers<[1], [0], [0], [1], [0, 0, 1, 1], [], []>} : vector<1x256xbf16>, vector<256x16xbf16>, vector<1x16xf32> -> vector<1x16xf32>
    %289 = vector.extract_strided_slice %250 {offsets = [1, 0], sizes = [1, 256], strides = [1, 1]} : vector<4x256xf32> to vector<1x256xf32>
    %290 = arith.truncf %289 : vector<1x256xf32> to vector<1x256xbf16>
    %c1_201 = arith.constant 1 : index
    %c0_202 = arith.constant 0 : index
    %c0_203 = arith.constant 0 : index
    %291 = vector.load %arg19[%c1_201, %c0_202, %c0_203] : memref<4x256x16xbf16, #tpu.memory_space<vmem>>, vector<1x256x16xbf16>
    %292 = vector.shape_cast %291 : vector<1x256x16xbf16> to vector<256x16xbf16>
    %cst_204 = arith.constant dense<0.000000e+00> : vector<1x16xf32>
    %293 = tpu.matmul %290, %292, %cst_204 {dimension_numbers = #tpu.dot_dimension_numbers<[1], [0], [0], [1], [0, 0, 1, 1], [], []>} : vector<1x256xbf16>, vector<256x16xbf16>, vector<1x16xf32> -> vector<1x16xf32>
    %294 = arith.addf %288, %293 : vector<1x16xf32>
    %295 = vector.extract_strided_slice %250 {offsets = [2, 0], sizes = [1, 256], strides = [1, 1]} : vector<4x256xf32> to vector<1x256xf32>
    %296 = arith.truncf %295 : vector<1x256xf32> to vector<1x256xbf16>
    %c2_205 = arith.constant 2 : index
    %c0_206 = arith.constant 0 : index
    %c0_207 = arith.constant 0 : index
    %297 = vector.load %arg19[%c2_205, %c0_206, %c0_207] : memref<4x256x16xbf16, #tpu.memory_space<vmem>>, vector<1x256x16xbf16>
    %298 = vector.shape_cast %297 : vector<1x256x16xbf16> to vector<256x16xbf16>
    %cst_208 = arith.constant dense<0.000000e+00> : vector<1x16xf32>
    %299 = tpu.matmul %296, %298, %cst_208 {dimension_numbers = #tpu.dot_dimension_numbers<[1], [0], [0], [1], [0, 0, 1, 1], [], []>} : vector<1x256xbf16>, vector<256x16xbf16>, vector<1x16xf32> -> vector<1x16xf32>
    %300 = arith.addf %294, %299 : vector<1x16xf32>
    %301 = vector.extract_strided_slice %250 {offsets = [3, 0], sizes = [1, 256], strides = [1, 1]} : vector<4x256xf32> to vector<1x256xf32>
    %302 = arith.truncf %301 : vector<1x256xf32> to vector<1x256xbf16>
    %c3_209 = arith.constant 3 : index
    %c0_210 = arith.constant 0 : index
    %c0_211 = arith.constant 0 : index
    %303 = vector.load %arg19[%c3_209, %c0_210, %c0_211] : memref<4x256x16xbf16, #tpu.memory_space<vmem>>, vector<1x256x16xbf16>
    %304 = vector.shape_cast %303 : vector<1x256x16xbf16> to vector<256x16xbf16>
    %cst_212 = arith.constant dense<0.000000e+00> : vector<1x16xf32>
    %305 = tpu.matmul %302, %304, %cst_212 {dimension_numbers = #tpu.dot_dimension_numbers<[1], [0], [0], [1], [0, 0, 1, 1], [], []>} : vector<1x256xbf16>, vector<256x16xbf16>, vector<1x16xf32> -> vector<1x16xf32>
    %306 = arith.addf %300, %305 : vector<1x16xf32>
    %c0_213 = arith.constant 0 : index
    %c0_214 = arith.constant 0 : index
    %307 = vector.load %arg20[%c0_213, %c0_214] : memref<1x16xf32, #tpu.memory_space<vmem>>, vector<1x16xf32>
    %308 = arith.addf %306, %307 : vector<1x16xf32>
    %cst_215 = arith.constant 0.000000e+00 : f32
    %309 = vector.broadcast %cst_215 : f32 to vector<1x16xf32>
    %310 = arith.maximumf %308, %309 : vector<1x16xf32>
    %311 = arith.truncf %310 : vector<1x16xf32> to vector<1x16xbf16>
    %c0_216 = arith.constant 0 : index
    %c0_217 = arith.constant 0 : index
    %312 = vector.load %arg21[%c0_216, %c0_217] : memref<16x128xbf16, #tpu.memory_space<vmem>>, vector<16x128xbf16>
    %cst_218 = arith.constant dense<0.000000e+00> : vector<1x128xf32>
    %313 = tpu.matmul %311, %312, %cst_218 {dimension_numbers = #tpu.dot_dimension_numbers<[1], [0], [0], [1], [0, 0, 1, 1], [], []>} : vector<1x16xbf16>, vector<16x128xbf16>, vector<1x128xf32> -> vector<1x128xf32>
    %c0_219 = arith.constant 0 : index
    %c0_220 = arith.constant 0 : index
    %314 = vector.load %arg22[%c0_219, %c0_220] : memref<1x128xf32, #tpu.memory_space<vmem>>, vector<1x128xf32>
    %315 = arith.addf %313, %314 : vector<1x128xf32>
    %c1_221 = arith.constant 1 : index
    %c0_222 = arith.constant 0 : index
    %316 = vector.load %arg23[%c1_221, %c0_222] : memref<2x128xf32, #tpu.memory_space<vmem>>, vector<1x128xf32>
    tpu.vector_store %arg23[%c1_221, %c0_222], %315 {strides = array<i32>} : memref<2x128xf32, #tpu.memory_space<vmem>>, vector<1x128xf32>,
    return
  }
}

</mosaic_0001>

<bundles_post_ra>
// kernel: siamese_conv_forward.1
= control target key start
LH: loop header
LB: loop body
LE: loop exit
PB: predicated region body
PF: predicated region fallthrough
CT: control target
= control target key end

     0   :  { %s12296_s0 = inlined_call_operand.vmem [shape: f32[36,16], index: 0, kind: input, shape index: {}]   ;;  %s12297_s1 = inlined_call_operand.vmem [shape: bf16[3,16,256], index: 1, kind: input, shape index: {}]   ;;  %s12298_s2 = inlined_call_operand.vmem [shape: f32[1,256], index: 2, kind: input, shape index: {}]   ;;  %s12299_s3 = inlined_call_operand.vmem [shape: bf16[3,256,256], index: 3, kind: input, shape index: {}]   ;;  %s12300_s4 = inlined_call_operand.vmem [shape: f32[1,256], index: 4, kind: input, shape index: {}]   ;;  %s12301_s5 = inlined_call_operand.hbm [shape: bf16[3,256,256], index: 5, kind: input, shape index: {}]   ;;  %s12302_s6 = inlined_call_operand.vmem [shape: f32[256,32], index: 6, kind: input, shape index: {}]   ;;  %s12303_s7 = inlined_call_operand.vmem [shape: f32[32,256], index: 7, kind: input, shape index: {}]   ;;  %s12304_s8 = inlined_call_operand.vmem [shape: f32[1,32], index: 8, kind: input, shape index: {}]   ;;  %s12305_s9 = inlined_call_operand.vmem [shape: f32[1,32], index: 9, kind: input, shape index: {}]   ;;  %s12306_s10 = inlined_call_operand.vmem [shape: f32[8,16], index: 10, kind: input, shape index: {}]   ;;  %s12307_s11 = inlined_call_operand.hbm [shape: bf16[3,256,256], index: 11, kind: input, shape index: {}]   ;;  %s12308_s12 = inlined_call_operand.vmem [shape: f32[1,256], index: 12, kind: input, shape index: {}]   ;;  %s12309_s13 = inlined_call_operand.hbm [shape: bf16[3,256,256], index: 13, kind: input, shape index: {}]   ;;  %s12310_s14 = inlined_call_operand.vmem [shape: f32[256,64], index: 14, kind: input, shape index: {}]   ;;  %s12311_s15 = inlined_call_operand.vmem [shape: f32[64,256], index: 15, kind: input, shape index: {}]   ;;  %s12312_s16 = inlined_call_operand.vmem [shape: f32[1,64], index: 16, kind: input, shape index: {}]   ;;  %s12313_s17 = inlined_call_operand.vmem [shape: f32[1,64], index: 17, kind: input, shape index: {}]   ;;  %s12314_s18 = inlined_call_operand.vmem [shape: f32[4,8], index: 18, kind: input, shape index: {}]   ;;  %s12315_s19 = inlined_call_operand.vmem [shape: bf16[4,256,16], index: 19, kind: input, shape index: {}]   ;;  %s12316_s20 = inlined_call_operand.vmem [shape: f32[1,16], index: 20, kind: input, shape index: {}]   ;;  %s12317_s21 = inlined_call_operand.vmem [shape: bf16[16,128], index: 21, kind: input, shape index: {}]   ;;  %s12318_s22 = inlined_call_operand.vmem [shape: f32[1,128], index: 22, kind: input, shape index: {}]   ;;  %s12319_s23 = inlined_call_operand.hbm [shape: f32[2,128], index: 23, kind: output, shape index: {}]  }
   0x1   :  { %12325 = sst [smem:[#allocation14_spill]] %s12296_s0 }
   0x2   :  { %12326 = sst [smem:[#allocation15_spill]] %s12297_s1 }
   0x3   :  { %12327 = sst [smem:[#allocation16_spill]] %s12298_s2 }
   0x4   :  { %12328 = sst [smem:[#allocation17_spill]] %s12299_s3 }
   0x5   :  { %12329 = sst [smem:[#allocation18_spill]] %s12300_s4 }
   0x6   :  { %12330 = sst [smem:[#allocation19_spill]] %s12301_s5 }
   0x7   :  { %12331 = sst [smem:[#allocation20_spill]] %s12302_s6 }
   0x8   :  { %12332 = sst [smem:[#allocation21_spill]] %s12303_s7 }
   0x9   :  { %12333 = sst [smem:[#allocation22_spill]] %s12319_s23 }
   0xa   :  { %28 = vsyncpa [#allocation5], 0 }
   0xb   :  { %29 = vsyncpa [#allocation8], 0 }
   0xc   :  { %30 = vsyncpa [#allocation6], 0  ;;  %s68_s24 = sshll.u32 %s12307_s11, 4  ;;  %s9578_s25 = smov [#allocation7]   ;;  %s69_s24 = int_to_ptr.hbm [resolvable:$true] %s68_s24 }
   0xd   :  { %s70_s5 = sshll.u32 %s9578_s25, 4  ;;  %s12334_s2 = sld [smem:[#allocation19_spill]]  ;;  %s71_s5 = int_to_ptr.vmem [resolvable:$true] %s70_s5 }
   0xe   :  { %s9579_s27 = smov 128   ;;  %s9580_s7 = smov 8  }
   0xf   :  { %76 = dma.hbm_to_vmem [thread:$0]  %s69_s24, 12288, %s71_s5, [#allocation8], %s9579_s27, %s9579_s27, %s9580_s7  }
  0x10   :  { %s9581_s28 = smov [#allocation4]   ;;  %s83_s23 = sshll.u32 %s12309_s13, 4  ;;  %s84_s23 = int_to_ptr.hbm [resolvable:$true] %s83_s23 }
  0x11   :  { %s47_s29 = sshll.u32 %s9581_s28, 4  ;;  %s9582_s11 = smov [#allocation9]   ;;  %s48_s29 = int_to_ptr.vmem [resolvable:$true] %s47_s29 }
  0x12   :  { %s85_s4 = sshll.u32 %s9582_s11, 4  ;;  %s86_s4 = int_to_ptr.vmem [resolvable:$true] %s85_s4 }
  0x13   :  { %s45_s6 = sshll.u32 %s12334_s2, 4  ;;  %s46_s6 = int_to_ptr.hbm [resolvable:$true] %s45_s6 }
  0x14   :  { %53 = dma.hbm_to_vmem [thread:$0]  %s46_s6, 12288, %s48_s29, [#allocation5], %s9579_s27, %s9579_s27, %s9580_s7  }
  0x15   :  { %91 = dma.hbm_to_vmem [thread:$0]  %s84_s23, 12288, %s86_s4, [#allocation8], %s9579_s27, %s9579_s27, %s9580_s7  }
  0x16   :  { %9572 = dma.done.wait [#allocation5], 12288  }
  0x17   :  { %9573 = vsyncadd [#allocation5], 4294955008 }
  0x18   :  { %9574 = dma.done.wait [#allocation8], 24576  }
  0x19   :  { %9575 = vsyncadd [#allocation8], 4294942720  ;;  %s12335_s25 = sld [smem:[#allocation15_spill]]  ;;  %vm143_vm0 = vcmask 130048   ;;  %vm323_vm1 = vcmask 1046528   ;;  %vm348_vm2 = vcmask 1045504  }
  0x1a   :  { %s12336_s24 = sld [smem:[#allocation14_spill]]  ;;  %vm455_vm3 = vcmask 1040384   ;;  %vm2721_vm4 = vcmask 261120   ;;  %vm4751_vm8 = vcmask 64512   ;;  %vm4847_vm9 = vcmask 1043456  }
  0x1b   :  { %s12337_s5 = sld [smem:[#allocation17_spill]]  ;;  %vm4967_vm10 = vcmask 523264  }
  0x1c   :  { %s12338_s29 = sld [smem:[#allocation16_spill]] }
  0x1d   :  { %s12339_s11 = sld [smem:[#allocation18_spill]] }
  0x1e   :  { %s12341_s3 = sld [smem:[#allocation21_spill]] }
  0x1f   :  { %v6567_v0 = vld [vmem:[%s12335_s25] sm:$0xf]  ;;  %v8946_v1 = vld [vmem:[%s12335_s25 + $0x4] sm:$0xf0]  ;;  %v8945_v2 = vld [vmem:[%s12335_s25 + $0x4] sm:$0xf] }
  0x20   :  { %v6568_v3 = vor.u32 %v8946_v1, %v6567_v0  ;;  %v6569_v4 = vld [vmem:[%s12335_s25 + $0x8] sm:$0xf0]  ;;  %v6583_v5 = vld [vmem:[%s12335_s25 + $0x10] sm:$0xf]  ;;  %v8948_v6 = vld [vmem:[%s12335_s25 + $0x14] sm:$0xf0] }
  0x21   :  { %v6572_v7 = vor.u32 %v8945_v2, %v6569_v4  ;;  %v6584_v8 = vor.u32 %v8948_v6, %v6583_v5  ;;  %v8947_v9 = vld [vmem:[%s12335_s25 + $0x14] sm:$0xf]  ;;  %v6585_v10 = vld [vmem:[%s12335_s25 + $0x18] sm:$0xf0]  ;;  %v123_v11 = vld [vmem:[%s12336_s24] sm:$0xff] }
  0x22   :  { %160 = vmatpush.bf16.msra.mxu0 %v6568_v3  ;;  %v6588_v12 = vor.u32 %v8947_v9, %v6585_v10  ;;  %v124_v13 = vld [vmem:[%s12336_s24 + $0x8] sm:$0xff]  ;;  %v6599_v15 = vld [vmem:[%s12335_s25 + $0x20] sm:$0xf]  ;;  %v8949_v17 = vld [vmem:[%s12335_s25 + $0x24] sm:$0xf] }
  0x23   :  { %183 = vmatpush.bf16.msra.mxu1 %v6572_v7  ;;  %219 = vmatpush.bf16.msra.mxu2 %v6584_v8  ;;  %v128_v14 = vpack.c.bf16 %v124_v13, %v123_v11  ;;  %v8950_v16 = vld [vmem:[%s12335_s25 + $0x24] sm:$0xf0]  ;;  %v6601_v19 = vld [vmem:[%s12335_s25 + $0x28] sm:$0xf0]  ;;  %v125_v21 = vld [vmem:[%s12336_s24 + $0x10] sm:$0xff] }
  0x24   :  { %242 = vmatpush.bf16.msra.mxu3 %v6588_v12  ;;  %v6600_v18 = vor.u32 %v8950_v16, %v6599_v15  ;;  %v6604_v20 = vor.u32 %v8949_v17, %v6601_v19  ;;  %v126_v22 = vld [vmem:[%s12336_s24 + $0x18] sm:$0xff]  ;;  %v127_v24 = vld [vmem:[%s12336_s24 + $0x20] sm:$0xf]  ;;  %v6669_v33 = vld [vmem:[%s12337_s5 + $0x70] sm:$0xf]  ;;  %s12340_s24 = sld [smem:[#allocation20_spill]] }
  0x25   :  { %6573 = vmatmul.msk.bf16.vlgmr.msra.gmra.mxu0 %vm143_vm0, %v128_v14  ;;  %v129_v23 = vpack.c.bf16 %v126_v22, %v125_v21  ;;  %v130_v25 = vpack.c.bf16 %v127_v24, %v127_v24  ;;  %v8966_v34 = vld [vmem:[%s12337_s5 + $0x74] sm:$0xf0]  ;;  %v6733_v35 = vld [vmem:[%s12337_s5 + $0xf0] sm:$0xf]  ;;  %v8965_v40 = vld [vmem:[%s12337_s5 + $0x74] sm:$0xf] }
  0x26   :  { %6576 = vmatmul.msk.bf16.vlgmr.msra.gmra.mxu1 %vm143_vm0, %v128_v14  ;;  %6589 = vmatmul.msk.bf16.vlgmr.msra.gmra.mxu2 %vm143_vm0, %v128_v14  ;;  %v6670_v38 = vor.u32 %v8966_v34, %v6669_v33  ;;  %v8982_v39 = vld [vmem:[%s12337_s5 + $0xf4] sm:$0xf0]  ;;  %v6671_v43 = vld [vmem:[%s12337_s5 + $0x78] sm:$0xf0]  ;;  %v8981_v44 = vld [vmem:[%s12337_s5 + $0xf4] sm:$0xf] }
  0x27   :  { %6592 = vmatmul.msk.bf16.vlgmr.msra.gmra.mxu3 %vm143_vm0, %v128_v14  ;;  %278 = vmatpush.bf16.msrb.mxu0 %v6600_v18  ;;  %v6734_v42 = vor.u32 %v8982_v39, %v6733_v35  ;;  %v6674_v45 = vor.u32 %v8965_v40, %v6671_v43  ;;  %v6735_v46 = vld [vmem:[%s12337_s5 + $0xf8] sm:$0xf0]  ;;  %v6661_v48 = vld [vmem:[%s12337_s5 + $0x60] sm:$0xf]  ;;  %v8964_v49 = vld [vmem:[%s12337_s5 + $0x64] sm:$0xf0] }
  0x28   :  { %301 = vmatpush.bf16.msrb.mxu1 %v6604_v20  ;;  %710 = vmatpush.bf16.msrb.mxu2 %v6670_v38  ;;  %v6738_v47 = vor.u32 %v8981_v44, %v6735_v46  ;;  %v6725_v50 = vld [vmem:[%s12337_s5 + $0xe0] sm:$0xf]  ;;  %v6662_v51 = vor.u32 %v8964_v49, %v6661_v48  ;;  %v8980_v52 = vld [vmem:[%s12337_s5 + $0xe4] sm:$0xf0]  ;;  %v8963_v53 = vld [vmem:[%s12337_s5 + $0x64] sm:$0xf] }
  0x29   :  { %733 = vmatpush.bf16.msrb.mxu3 %v6734_v42  ;;  %v6663_v54 = vld [vmem:[%s12337_s5 + $0x68] sm:$0xf0]  ;;  %v6726_v55 = vor.u32 %v8980_v52, %v6725_v50  ;;  %v8979_v57 = vld [vmem:[%s12337_s5 + $0xe4] sm:$0xf]  ;;  %v6653_v61 = vld [vmem:[%s12337_s5 + $0x50] sm:$0xf] }
  0x2a   :  { %v6666_v56 = vor.u32 %v8963_v53, %v6663_v54  ;;  %v6727_v58 = vld [vmem:[%s12337_s5 + $0xe8] sm:$0xf0]  ;;  %v8962_v62 = vld [vmem:[%s12337_s5 + $0x54] sm:$0xf0]  ;;  %v6717_v63 = vld [vmem:[%s12337_s5 + $0xd0] sm:$0xf] }
  0x2b   :  { %756 = vmatpush.bf16.msra.mxu0 %v6674_v45  ;;  %v6730_v59 = vor.u32 %v8979_v57, %v6727_v58  ;;  %v6654_v2 = vor.u32 %v8962_v62, %v6653_v61  ;;  %v8978_v3 = vld [vmem:[%s12337_s5 + $0xd4] sm:$0xf0]  ;;  %v8961_v4 = vld [vmem:[%s12337_s5 + $0x54] sm:$0xf]  ;;  %v6655_v7 = vld [vmem:[%s12337_s5 + $0x58] sm:$0xf0] }
  0x2c   :  { %779 = vmatpush.bf16.msra.mxu1 %v6738_v47  ;;  %711 = vmatpush.bf16.msrb.mxu2 %v6662_v51  ;;  %v6718_v6 = vor.u32 %v8978_v3, %v6717_v63  ;;  %v8977_v8 = vld [vmem:[%s12337_s5 + $0xd4] sm:$0xf]  ;;  %v6658_v9 = vor.u32 %v8961_v4, %v6655_v7  ;;  %v6719_v10 = vld [vmem:[%s12337_s5 + $0xd8] sm:$0xf0]  ;;  %v6645_v12 = vld [vmem:[%s12337_s5 + $0x40] sm:$0xf] }
  0x2d   :  { %734 = vmatpush.bf16.msrb.mxu3 %v6726_v55  ;;  %v6722_v11 = vor.u32 %v8977_v8, %v6719_v10  ;;  %v8960_v13 = vld [vmem:[%s12337_s5 + $0x44] sm:$0xf0]  ;;  %v8959_v17 = vld [vmem:[%s12337_s5 + $0x44] sm:$0xf]  ;;  %v6647_v19 = vld [vmem:[%s12337_s5 + $0x48] sm:$0xf0] }
  0x2e   :  { %v6646_v15 = vor.u32 %v8960_v13, %v6645_v12  ;;  %v8976_v16 = vld [vmem:[%s12337_s5 + $0xc4] sm:$0xf0]  ;;  %v8975_v20 = vld [vmem:[%s12337_s5 + $0xc4] sm:$0xf]  ;;  %v6650_v21 = vor.u32 %v8959_v17, %v6647_v19  ;;  %v6711_v22 = vld [vmem:[%s12337_s5 + $0xc8] sm:$0xf0] }
  0x2f   :  { %757 = vmatpush.bf16.msra.mxu0 %v6666_v56  ;;  %v6714_v24 = vor.u32 %v8975_v20, %v6711_v22  ;;  %v8958_v33 = vld [vmem:[%s12337_s5 + $0x34] sm:$0xf0]  ;;  %v6701_v34 = vld [vmem:[%s12337_s5 + $0xb0] sm:$0xf]  ;;  %v8957_v42 = vld [vmem:[%s12337_s5 + $0x34] sm:$0xf] }
  0x30   :  { %780 = vmatpush.bf16.msra.mxu1 %v6730_v59  ;;  %712 = vmatpush.bf16.msrb.mxu2 %v6654_v2  ;;  %v8974_v40 = vld [vmem:[%s12337_s5 + $0xb4] sm:$0xf0]  ;;  %v9583_v44 = vmov 0.0   ;;  %v6639_v46 = vld [vmem:[%s12337_s5 + $0x38] sm:$0xf0] }
  0x31   :  { %735 = vmatpush.bf16.msrb.mxu3 %v6718_v6  ;;  %441 = vst [vmem:[#allocation2 + $0x30] sm:$0xff] %v9583_v44  ;;  %v6702_v45 = vor.u32 %v8974_v40, %v6701_v34  ;;  %v8973_v47 = vld [vmem:[%s12337_s5 + $0xb4] sm:$0xf]  ;;  %v6642_v48 = vor.u32 %v8957_v42, %v6639_v46  ;;  %v6703_v49 = vld [vmem:[%s12337_s5 + $0xb8] sm:$0xf0] }
  0x32   :  { %442 = vst [vmem:[#allocation2] sm:$0xff] %v9583_v44  ;;  %v6706_v50 = vor.u32 %v8973_v47, %v6703_v49  ;;  %v6629_v51 = vld [vmem:[%s12337_s5 + $0x20] sm:$0xf]  ;;  %v8956_v52 = vld [vmem:[%s12337_s5 + $0x24] sm:$0xf0] }
  0x33   :  { %758 = vmatpush.bf16.msra.mxu0 %v6658_v9  ;;  %445 = vst [vmem:[#allocation2 + $0x48] sm:$0xff] %v9583_v44  ;;  %v6630_v53 = vor.u32 %v8956_v52, %v6629_v51  ;;  %v6693_v54 = vld [vmem:[%s12337_s5 + $0xa0] sm:$0xf]  ;;  %v8972_v55 = vld [vmem:[%s12337_s5 + $0xa4] sm:$0xf0] }
  0x34   :  { %781 = vmatpush.bf16.msra.mxu1 %v6722_v11  ;;  %713 = vmatpush.bf16.msrb.mxu2 %v6646_v15  ;;  %446 = vst [vmem:[#allocation2 + $0x28] sm:$0xff] %v9583_v44  ;;  %v6694_v56 = vor.u32 %v8972_v55, %v6693_v54  ;;  %v8955_v57 = vld [vmem:[%s12337_s5 + $0x24] sm:$0xf]  ;;  %v6631_v58 = vld [vmem:[%s12337_s5 + $0x28] sm:$0xf0] }
  0x35   :  { %6574 = vmatmul.msk.bf16.gmra.mxu0 %vm143_vm0, %v129_v23  ;;  %449 = vst [vmem:[#allocation2 + $0x40] sm:$0xf] %v9583_v44  ;;  %v6634_v59 = vor.u32 %v8955_v57, %v6631_v58  ;;  %v8971_v61 = vld [vmem:[%s12337_s5 + $0xa4] sm:$0xf]  ;;  %v6695_v62 = vld [vmem:[%s12337_s5 + $0xa8] sm:$0xf0] }
  0x36   :  { %6577 = vmatmul.msk.bf16.gmra.mxu1 %vm143_vm0, %v129_v23  ;;  %6590 = vmatmul.msk.bf16.gmra.mxu2 %vm143_vm0, %v129_v23  ;;  %450 = vst [vmem:[#allocation2 + $0x38] sm:$0xf] %v9583_v44  ;;  %v6698_v2 = vor.u32 %v8971_v61, %v6695_v62  ;;  %v6621_v3 = vld [vmem:[%s12337_s5 + $0x10] sm:$0xf]  ;;  %v8954_v4 = vld [vmem:[%s12337_s5 + $0x14] sm:$0xf0] }
  0x37   :  { %6593 = vmatmul.msk.bf16.gmra.mxu3 %vm143_vm0, %v129_v23  ;;  %759 = vmatpush.bf16.msra.mxu0 %v6650_v21  ;;  %2958 = vst [vmem:[#allocation3 + $0x8] sm:$0xff] %v9583_v44  ;;  %v6622_v8 = vor.u32 %v8954_v4, %v6621_v3  ;;  %v6685_v9 = vld [vmem:[%s12337_s5 + $0x90] sm:$0xf]  ;;  %v8970_v11 = vld [vmem:[%s12337_s5 + $0x94] sm:$0xf0] }
  0x38   :  { %782 = vmatpush.bf16.msra.mxu1 %v6714_v24  ;;  %2959 = vst [vmem:[#allocation3 + $0x10] sm:$0xff] %v9583_v44  ;;  %v8953_v12 = vld [vmem:[%s12337_s5 + $0x14] sm:$0xf]  ;;  %v6686_v13 = vor.u32 %v8970_v11, %v6685_v9  ;;  %v6687_v17 = vld [vmem:[%s12337_s5 + $0x98] sm:$0xf0] }
  0x39   :  { %2960 = vst [vmem:[#allocation3] sm:$0xff] %v9583_v44  ;;  %v8969_v15 = vld [vmem:[%s12337_s5 + $0x94] sm:$0xf]  ;;  %v8952_v20 = vld [vmem:[%s12337_s5 + $0x4] sm:$0xf0] }
  0x3a   :  { %2961 = vst [vmem:[#allocation3 + $0x18] sm:$0xff] %v9583_v44  ;;  %v6690_v19 = vor.u32 %v8969_v15, %v6687_v17  ;;  %v6677_v21 = vld [vmem:[%s12337_s5 + $0x80] sm:$0xf]  ;;  %v8968_v24 = vld [vmem:[%s12337_s5 + $0x84] sm:$0xf0] }
  0x3b   :  { %760 = vmatpush.bf16.msra.mxu0 %v6642_v48  ;;  %2962 = vst [vmem:[#allocation3 + $0x28] sm:$0xf] %v9583_v44  ;;  %v6678_v34 = vor.u32 %v8968_v24, %v6677_v21  ;;  %v8967_v40 = vld [vmem:[%s12337_s5 + $0x84] sm:$0xf]  ;;  %v6679_v42 = vld [vmem:[%s12337_s5 + $0x88] sm:$0xf0] }
  0x3c   :  { %783 = vmatpush.bf16.msra.mxu1 %v6706_v50  ;;  %2963 = vst [vmem:[#allocation3 + $0x20] sm:$0xf] %v9583_v44  ;;  %v415_v54 = vld [vmem:[%s12338_s29] sm:$0x3]  ;;  %v6893_v15 = vld [vmem:[%s12337_s5 + $0x1f0] sm:$0xf] }
  0x3d   :  { %v10026_v61 = vperm.slane %v415_v54, 0  ;;  %v10031_v4 = vperm.slane %v415_v54, 1  ;;  %v8997_v21 = vld [vmem:[%s12337_s5 + $0x174] sm:$0xf] }
  0x3f   :  { %761 = vmatpush.bf16.msra.mxu0 %v6634_v59 }
  0x40   :  { %784 = vmatpush.bf16.msra.mxu1 %v6698_v2 }
  0x44   :  { %785 = vmatpush.bf16.msra.mxu1 %v6690_v19 }
  0x45   :  { %6575 = vmatmul.msk.bf16.gmra.mxu0 %vm143_vm0, %v130_v25 }
  0x46   :  { %6578 = vmatmul.msk.bf16.gmra.mxu1 %vm143_vm0, %v130_v25  ;;  %6591 = vmatmul.msk.bf16.gmra.mxu2 %vm143_vm0, %v130_v25 }
  0x47   :  { %6594 = vmatmul.msk.bf16.gmra.mxu3 %vm143_vm0, %v130_v25 }
  0x55   :  { %6605 = vmatmul.msk.bf16.vlgmr.msrb.gmra.mxu0 %vm143_vm0, %v128_v14 }
  0x56   :  { %6608 = vmatmul.msk.bf16.vlgmr.msrb.gmra.mxu1 %vm143_vm0, %v128_v14  ;;  %v6709_v14 = vld [vmem:[%s12337_s5 + $0xc0] sm:$0xf] }
  0x57   :  { %v6710_v18 = vor.u32 %v8976_v16, %v6709_v14  ;;  %v6623_v14 = vld [vmem:[%s12337_s5 + $0x18] sm:$0xf0] }
  0x58   :  { %v6626_v16 = vor.u32 %v8953_v12, %v6623_v14  ;;  %v8998_v14 = vld [vmem:[%s12337_s5 + $0x174] sm:$0xf0] }
  0x59   :  { %736 = vmatpush.bf16.msrb.mxu3 %v6710_v18  ;;  %v6613_v18 = vld [vmem:[%s12337_s5] sm:$0xf] }
  0x5a   :  { %762 = vmatpush.bf16.msra.mxu0 %v6626_v16  ;;  %v6614_v22 = vor.u32 %v8952_v20, %v6613_v18  ;;  %v9014_v20 = vld [vmem:[%s12337_s5 + $0x1f4] sm:$0xf0] }
  0x5d   :  { %737 = vmatpush.bf16.msrb.mxu3 %v6702_v45  ;;  %v6682_v45 = vor.u32 %v8967_v40, %v6679_v42  ;;  %v9013_v40 = vld [vmem:[%s12337_s5 + $0x1f4] sm:$0xf] }
  0x5f   :  { %786 = vmatpush.bf16.msra.mxu1 %v6682_v45 }
  0x61   :  { %738 = vmatpush.bf16.msrb.mxu3 %v6694_v56 }
  0x65   :  { %6606 = vmatmul.msk.bf16.gmra.mxu0 %vm143_vm0, %v129_v23  ;;  %739 = vmatpush.bf16.msrb.mxu3 %v6686_v13  ;;  %v6829_v13 = vld [vmem:[%s12337_s5 + $0x170] sm:$0xf] }
  0x66   :  { %6609 = vmatmul.msk.bf16.gmra.mxu1 %vm143_vm0, %v129_v23  ;;  %v6830_v19 = vor.u32 %v8998_v14, %v6829_v13  ;;  %v8993_v13 = vld [vmem:[%s12337_s5 + $0x154] sm:$0xf] }
  0x69   :  { %740 = vmatpush.bf16.msrb.mxu3 %v6678_v34  ;;  %v6894_v34 = vor.u32 %v9014_v20, %v6893_v15 }
  0x6d   :  { %1018 = vmatpush.bf16.msra.mxu3 %v6894_v34 }
  0x75   :  { %6607 = vmatmul.msk.bf16.gmra.mxu0 %vm143_vm0, %v130_v25 }
  0x76   :  { %6610 = vmatmul.msk.bf16.gmra.mxu1 %vm143_vm0, %v130_v25  ;;  %v6637_v25 = vld [vmem:[%s12337_s5 + $0x30] sm:$0xf] }
  0x77   :  { %v6638_v39 = vor.u32 %v8958_v33, %v6637_v25  ;;  %v8951_v25 = vld [vmem:[%s12337_s5 + $0x4] sm:$0xf]  ;;  %v6615_v33 = vld [vmem:[%s12337_s5 + $0x8] sm:$0xf0] }
  0x79   :  { %714 = vmatpush.bf16.msrb.mxu2 %v6638_v39  ;;  %v6618_v39 = vor.u32 %v8951_v25, %v6615_v33 }
  0x7b   :  { %763 = vmatpush.bf16.msra.mxu0 %v6618_v39  ;;  %v6831_v39 = vld [vmem:[%s12337_s5 + $0x178] sm:$0xf0] }
  0x7c   :  { %v6834_v45 = vor.u32 %v8997_v21, %v6831_v39  ;;  %v6879_v39 = vld [vmem:[%s12337_s5 + $0x1d8] sm:$0xf0] }
  0x7d   :  { %715 = vmatpush.bf16.msrb.mxu2 %v6630_v53 }
  0x7f   :  { %1041 = vmatpush.bf16.msrb.mxu0 %v6834_v45 }
  0x81   :  { %716 = vmatpush.bf16.msrb.mxu2 %v6622_v8 }
  0x85   :  { %717 = vmatpush.bf16.msrb.mxu2 %v6614_v22 }
  0x89   :  { %995 = vmatpush.bf16.msra.mxu2 %v6830_v19  ;;  %v9009_v19 = vld [vmem:[%s12337_s5 + $0x1d4] sm:$0xf] }
  0xa2   :  { %v9783_v26 = vpop.f32.mrf.mxu0 }
  0xa3   :  { %v9785_v27 = vpop.f32.mrf.mxu1 }
  0xa9   :  { %v9787_v28 = vpop.f32.mrf.mxu2 }
  0xaa   :  { %v9789_v29 = vpop.f32.mrf.mxu3  ;;  %v9791_v30 = vpop.f32.mrf.mxu0  ;;  %v324_v49 = vrot.slane %v9787_v28, 1 }
  0xab   :  { %v9793_v31 = vpop.f32.mrf.mxu1  ;;  %v327_v51 = vrot.slane %v9789_v29, 1 }
  0xb1   :  { %v9795_v32 = vpop.f32.mrf.mxu2 }
  0xb2   :  { %v9806_v36 = vpop.f32.mrf.mxu3  ;;  %v9808_v37 = vpop.f32.mrf.mxu0  ;;  %v325_v50 = vrot.slane %v9795_v32, 1 }
  0xb3   :  { %v9816_v41 = vpop.f32.mrf.mxu1  ;;  %v328_v52 = vrot.slane %v9806_v36, 1 }
  0xb4   :  { %v326_v53 = vsel %vm323_vm1, %v324_v49, %v325_v50 }
  0xb5   :  { %v329_v55 = vsel %vm323_vm1, %v327_v51, %v328_v52  ;;  %v338_v28 = vadd.f32 %v326_v53, %v9783_v26  ;;  %v6885_v51 = vld [vmem:[%s12337_s5 + $0x1e0] sm:$0xf] }
  0xb6   :  { %v339_v62 = vadd.f32 %v329_v55, %v9785_v27  ;;  %v9012_v55 = vld [vmem:[%s12337_s5 + $0x1e4] sm:$0xf0] }
  0xb9   :  { %v9851_v60 = vpop.f32.mrf.mxu2 }
  0xba   :  { %v9862_v0 = vpop.f32.mrf.mxu3  ;;  %v9864_v1 = vpop.f32.mrf.mxu0  ;;  %v330_v59 = vrot.slane %v9851_v60, 1 }
  0xbb   :  { %v9872_v5 = vpop.f32.mrf.mxu1  ;;  %v332_v2 = vrot.slane %v9862_v0, 1 }
  0xbc   :  { %v331_v9 = vsel %vm323_vm1, %v325_v50, %v330_v59  ;;  %v8996_v50 = vld [vmem:[%s12337_s5 + $0x164] sm:$0xf0] }
  0xbd   :  { %v333_v27 = vsel %vm323_vm1, %v328_v52, %v332_v2  ;;  %v340_v22 = vadd.f32 %v331_v9, %v9791_v30 }
  0xbe   :  { %v341_v42 = vadd.f32 %v333_v27, %v9793_v31  ;;  %v6877_v27 = vld [vmem:[%s12337_s5 + $0x1d0] sm:$0xf] }
  0xc1   :  { %v9907_v23 = vpop.f32.mrf.mxu2 }
  0xc2   :  { %v9918_v35 = vpop.f32.mrf.mxu3  ;;  %v9920_v38 = vpop.f32.mrf.mxu0  ;;  %v371_v60 = vrot.slane %v9907_v23, 1  ;;  %v8991_v23 = vld [vmem:[%s12337_s5 + $0x144] sm:$0xf] }
  0xc3   :  { %v9928_v43 = vpop.f32.mrf.mxu1 }
  0xc9   :  { %v9963_v63 = vpop.f32.mrf.mxu2 }
  0xca   :  { %v9971_v6 = vpop.f32.mrf.mxu3  ;;  %v174_v7 = vpop.f32.mrf.mxu0  ;;  %v375_v16 = vrot.slane %v9963_v63, 1 }
  0xcb   :  { %v197_v10 = vpop.f32.mrf.mxu1  ;;  %v377_v0 = vrot.slane %v9971_v6, 1 }
  0xcc   :  { %v373_v10 = vrot.slane %v9918_v35, 1  ;;  %v6861_v35 = vld [vmem:[%s12337_s5 + $0x1b0] sm:$0xf] }
  0xd1   :  { %v233_v44 = vpop.f32.mrf.mxu2 }
  0xd2   :  { %v280_v46 = vpop.f32.mrf.mxu0  ;;  %v256_v47 = vpop.f32.mrf.mxu3 }
  0xd3   :  { %v303_v48 = vpop.f32.mrf.mxu1  ;;  %v349_v57 = vrot.slane %v280_v46, 2  ;;  %v6895_v46 = vld [vmem:[%s12337_s5 + $0x1f8] sm:$0xf0]  ;;  %v6821_v47 = vld [vmem:[%s12337_s5 + $0x160] sm:$0xf] }
  0xd4   :  { %v352_v29 = vrot.slane %v303_v48, 2  ;;  %v6898_v49 = vor.u32 %v9013_v40, %v6895_v46  ;;  %v6822_v54 = vor.u32 %v8996_v50, %v6821_v47  ;;  %v6805_v40 = vld [vmem:[%s12337_s5 + $0x140] sm:$0xf]  ;;  %v6882_v46 = vor.u32 %v9009_v19, %v6879_v39  ;;  %v8992_v47 = vld [vmem:[%s12337_s5 + $0x144] sm:$0xf0] }
  0xd5   :  { %v6789_v19 = vld [vmem:[%s12337_s5 + $0x120] sm:$0xf]  ;;  %v8988_v39 = vld [vmem:[%s12337_s5 + $0x124] sm:$0xf0] }
  0xd6   :  { %1064 = vmatpush.bf16.msrb.mxu1 %v6898_v49  ;;  %996 = vmatpush.bf16.msra.mxu2 %v6822_v54  ;;  %v376_v49 = vsel %vm323_vm1, %v371_v60, %v375_v16 }
  0xda   :  { %v282_v56 = vpop.f32.mrf.mxu0 }
  0xdb   :  { %v350_v32 = vrot.slane %v282_v56, 2  ;;  %v305_v58 = vpop.f32.mrf.mxu1  ;;  %v8995_v56 = vld [vmem:[%s12337_s5 + $0x164] sm:$0xf] }
  0xdc   :  { %v353_v36 = vrot.slane %v305_v58, 2  ;;  %v9011_v58 = vld [vmem:[%s12337_s5 + $0x1e4] sm:$0xf] }
  0xdd   :  { %v351_v3 = vsel %vm348_vm2, %v349_v57, %v350_v32  ;;  %v6886_v57 = vor.u32 %v9012_v55, %v6885_v51  ;;  %v6807_v55 = vld [vmem:[%s12337_s5 + $0x148] sm:$0xf0] }
  0xde   :  { %v363_v7 = vadd.f32 %v351_v3, %v338_v28  ;;  %v354_v26 = vsel %vm348_vm2, %v352_v29, %v353_v36  ;;  %v372_v29 = vsel %vm323_vm1, %v330_v59, %v371_v60  ;;  %v6887_v3 = vld [vmem:[%s12337_s5 + $0x1e8] sm:$0xf0]  ;;  %v374_v59 = vsel %vm323_vm1, %v332_v2, %v373_v10 }
  0xdf   :  { %v364_v8 = vadd.f32 %v354_v26, %v339_v62  ;;  %v8994_v26 = vld [vmem:[%s12337_s5 + $0x154] sm:$0xf0]  ;;  %1019 = vmatpush.bf16.msra.mxu3 %v6886_v57  ;;  %v6890_v9 = vor.u32 %v9011_v58, %v6887_v3  ;;  %v385_v20 = vadd.f32 %v372_v29, %v9808_v37  ;;  %v378_v29 = vsel %vm323_vm1, %v373_v10, %v377_v0  ;;  %v6797_v3 = vld [vmem:[%s12337_s5 + $0x130] sm:$0xf] }
  0xe0   :  { %v421_v11 = vadd.f32 %v10026_v61, %v363_v7  ;;  %v6813_v7 = vld [vmem:[%s12337_s5 + $0x150] sm:$0xf]  ;;  %v387_v10 = vadd.f32 %v376_v49, %v9864_v1  ;;  %v390_v1 = vadd.f32 %v377_v0, %v9928_v43  ;;  %v6863_v0 = vld [vmem:[%s12337_s5 + $0x1b8] sm:$0xf0] }
  0xe1   :  { %v422_v12 = vadd.f32 %v10031_v4, %v364_v8  ;;  %1065 = vmatpush.bf16.msrb.mxu1 %v6890_v9 }
  0xe2   :  { %v425_v17 = vmax.f32 %v421_v11, 0.0  ;;  %v10052_v18 = vpop.f32.mrf.mxu0  ;;  %v6814_v11 = vor.u32 %v8994_v26, %v6813_v7  ;;  %v8990_v7 = vld [vmem:[%s12337_s5 + $0x134] sm:$0xf0]  ;;  %v389_v26 = vadd.f32 %v375_v16, %v9920_v38 }
  0xe3   :  { %v426_v24 = vmax.f32 %v422_v12, 0.0  ;;  %v355_v25 = vrot.slane %v10052_v18, 2  ;;  %v10062_v33 = vpop.f32.mrf.mxu1  ;;  %v9010_v12 = vld [vmem:[%s12337_s5 + $0x1d4] sm:$0xf0]  ;;  %v6798_v9 = vor.u32 %v8990_v7, %v6797_v3  ;;  %v9001_v3 = vld [vmem:[%s12337_s5 + $0x194] sm:$0xf] }
  0xe4   :  { %v10071_v44 = vrot.slane %v425_v17, 7  ;;  %v357_v30 = vrot.slane %v10062_v33, 2  ;;  %v6878_v15 = vor.u32 %v9010_v12, %v6877_v27  ;;  %v6815_v17 = vld [vmem:[%s12337_s5 + $0x158] sm:$0xf0]  ;;  %997 = vmatpush.bf16.msra.mxu2 %v6814_v11  ;;  %v9007_v33 = vld [vmem:[%s12337_s5 + $0x1c4] sm:$0xf] }
  0xe5   :  { %v10080_v48 = vrot.slane %v426_v24, 7  ;;  %v356_v31 = vsel %vm348_vm2, %v350_v32, %v355_v25  ;;  %v6823_v32 = vld [vmem:[%s12337_s5 + $0x168] sm:$0xf0]  ;;  %v6818_v34 = vor.u32 %v8993_v13, %v6815_v17  ;;  %1066 = vmatpush.bf16.msrb.mxu1 %v6882_v46  ;;  %v9006_v11 = vld [vmem:[%s12337_s5 + $0x1b4] sm:$0xf0]  ;;  %v6790_v46 = vor.u32 %v8988_v39, %v6789_v19 }
  0xe6   :  { %468 = vst [vmem:[#allocation2 + $0x30] sm:$0xfe] %v10071_v44  ;;  %v365_v52 = vadd.f32 %v356_v31, %v340_v22  ;;  %v358_v53 = vsel %vm348_vm2, %v353_v36, %v357_v30  ;;  %v6826_v62 = vor.u32 %v8995_v56, %v6823_v32  ;;  %v6869_v31 = vld [vmem:[%s12337_s5 + $0x1c0] sm:$0xf]  ;;  %1020 = vmatpush.bf16.msra.mxu3 %v6878_v15  ;;  %v8989_v27 = vld [vmem:[%s12337_s5 + $0x134] sm:$0xf] }
  0xe7   :  { %469 = vst [vmem:[#allocation2] sm:$0xfe] %v10080_v48  ;;  %v366_v28 = vadd.f32 %v358_v53, %v341_v42  ;;  %v386_v42 = vadd.f32 %v374_v59, %v9816_v41  ;;  %v9008_v53 = vld [vmem:[%s12337_s5 + $0x1c4] sm:$0xf0]  ;;  %v6862_v12 = vor.u32 %v9006_v11, %v6861_v35  ;;  %v6799_v13 = vld [vmem:[%s12337_s5 + $0x138] sm:$0xf0]  ;;  %v388_v15 = vadd.f32 %v378_v29, %v9872_v5 }
  0xe8   :  { %v423_v36 = vadd.f32 %v10026_v61, %v365_v52  ;;  %1042 = vmatpush.bf16.msrb.mxu0 %v6826_v62  ;;  %v6806_v52 = vor.u32 %v8992_v47, %v6805_v40  ;;  %v6870_v58 = vor.u32 %v9008_v53, %v6869_v31  ;;  %v6802_v43 = vor.u32 %v8989_v27, %v6799_v13  ;;  %v6853_v40 = vld [vmem:[%s12337_s5 + $0x1a0] sm:$0xf]  ;;  %v8987_v47 = vld [vmem:[%s12337_s5 + $0x124] sm:$0xf]  ;;  %v6855_v53 = vld [vmem:[%s12337_s5 + $0x1a8] sm:$0xf0] }
  0xe9   :  { %v424_v8 = vadd.f32 %v10031_v4, %v366_v28  ;;  %v6847_v7 = vld [vmem:[%s12337_s5 + $0x198] sm:$0xf0]  ;;  %v6839_v19 = vld [vmem:[%s12337_s5 + $0x188] sm:$0xf0] }
  0xea   :  { %v427_v2 = vmax.f32 %v423_v36, 0.0  ;;  %v10137_v14 = vpop.f32.mrf.mxu0  ;;  %998 = vmatpush.bf16.msra.mxu2 %v6806_v52  ;;  %1021 = vmatpush.bf16.msra.mxu3 %v6870_v58 }
  0xeb   :  { %v428_v21 = vmax.f32 %v424_v8, 0.0  ;;  %v395_v22 = vrot.slane %v10137_v14, 2  ;;  %v10147_v24 = vpop.f32.mrf.mxu1 }
  0xec   :  { %v458_v45 = vrot.slane %v427_v2, 7  ;;  %v397_v37 = vrot.slane %v10147_v24, 2  ;;  %1043 = vmatpush.bf16.msrb.mxu0 %v6818_v34  ;;  %v9005_v2 = vld [vmem:[%s12337_s5 + $0x1b4] sm:$0xf] }
  0xed   :  { %v460_v41 = vrot.slane %v428_v21, 7  ;;  %v396_v50 = vsel %vm348_vm2, %v355_v25, %v395_v22  ;;  %v502_v51 = vld [vmem:[#allocation2 + $0x30] sm:$0xff]  ;;  %v6866_v34 = vor.u32 %v9005_v2, %v6863_v0  ;;  %v8983_v2 = vld [vmem:[%s12337_s5 + $0x104] sm:$0xf] }
  0xee   :  { %v459_v60 = vsel %vm455_vm3, %v10071_v44, %v458_v45  ;;  %472 = vst [vmem:[#allocation2 + $0x48] sm:$0x1] %v458_v45  ;;  %v409_v54 = vadd.f32 %v396_v50, %v385_v20  ;;  %v398_v18 = vsel %vm348_vm2, %v357_v30, %v397_v37  ;;  %v503_v25 = vld [vmem:[#allocation2] sm:$0xff]  ;;  %v6871_v30 = vld [vmem:[%s12337_s5 + $0x1c8] sm:$0xf0]  ;;  %999 = vmatpush.bf16.msra.mxu2 %v6798_v9 }
  0xef   :  { %v461_v56 = vsel %vm455_vm3, %v10080_v48, %v460_v41  ;;  %473 = vst [vmem:[#allocation2 + $0x28] sm:$0x1] %v460_v41  ;;  %v410_v28 = vadd.f32 %v398_v18, %v386_v42  ;;  %v10191_v44 = vpack.c.bf16 %v459_v60, %v502_v51  ;;  %v6810_v48 = vor.u32 %v8991_v23, %v6807_v55  ;;  %v9003_v41 = vld [vmem:[%s12337_s5 + $0x1a4] sm:$0xf]  ;;  %v6781_v23 = vld [vmem:[%s12337_s5 + $0x110] sm:$0xf] }
  0xf0   :  { %v429_v57 = vadd.f32 %v10026_v61, %v409_v54  ;;  %v10200_v32 = vpack.c.bf16 %v461_v56, %v503_v25  ;;  %v6874_v62 = vor.u32 %v9007_v33, %v6871_v30  ;;  %1022 = vmatpush.bf16.msra.mxu3 %v6862_v12  ;;  %v8986_v60 = vld [vmem:[%s12337_s5 + $0x114] sm:$0xf0]  ;;  %v6858_v18 = vor.u32 %v9003_v41, %v6855_v53  ;;  %v6845_v55 = vld [vmem:[%s12337_s5 + $0x190] sm:$0xf]  ;;  %v9045_v41 = vld [vmem:[%s12337_s5 + $0x2f4] sm:$0xf] }
  0xf1   :  { %v430_v36 = vadd.f32 %v10031_v4, %v410_v28  ;;  %718 = vmatmul.bf16.vlgmr.msrb.gmra.mxu2 %v10191_v44  ;;  %764 = vmatmul.bf16.vlgmr.msra.gmra.mxu0 %v10191_v44  ;;  %v6782_v25 = vor.u32 %v8986_v60, %v6781_v23  ;;  %v9002_v56 = vld [vmem:[%s12337_s5 + $0x194] sm:$0xf0]  ;;  %v9028_v53 = vld [vmem:[%s12337_s5 + $0x264] sm:$0xf0]  ;;  %v7045_v23 = vld [vmem:[%s12337_s5 + $0x2e0] sm:$0xf] }
  0xf2   :  { %v435_v59 = vmax.f32 %v429_v57, 0.0  ;;  %v290_v8 = vpop.f32.mrf.mxu0  ;;  %741 = vmatmul.bf16.vlgmr.msrb.gmra.mxu3 %v10200_v32  ;;  %787 = vmatmul.bf16.vlgmr.msra.gmra.mxu1 %v10200_v32  ;;  %v8985_v57 = vld [vmem:[%s12337_s5 + $0x114] sm:$0xf]  ;;  %v9044_v60 = vld [vmem:[%s12337_s5 + $0x2e4] sm:$0xf0] }
  0xf3   :  { %v436_v38 = vmax.f32 %v430_v36, 0.0  ;;  %v399_v63 = vrot.slane %v290_v8, 2  ;;  %v313_v16 = vpop.f32.mrf.mxu1  ;;  %1044 = vmatpush.bf16.msrb.mxu0 %v6810_v48  ;;  %1067 = vmatpush.bf16.msrb.mxu1 %v6874_v62  ;;  %v6846_v36 = vor.u32 %v9002_v56, %v6845_v55  ;;  %v8984_v8 = vld [vmem:[%s12337_s5 + $0x104] sm:$0xf0]  ;;  %v9043_v55 = vld [vmem:[%s12337_s5 + $0x2e4] sm:$0xf] }
  0xf4   :  { %v10241_v17 = vrot.slane %v435_v59, 7  ;;  %v401_v6 = vrot.slane %v313_v16, 2  ;;  %1000 = vmatpush.bf16.msra.mxu2 %v6790_v46  ;;  %v6773_v59 = vld [vmem:[%s12337_s5 + $0x100] sm:$0xf]  ;;  %v7053_v46 = vld [vmem:[%s12337_s5 + $0x2f0] sm:$0xf] }
  0xf5   :  { %v10249_v20 = vrot.slane %v436_v38, 7  ;;  %v400_v5 = vsel %vm348_vm2, %v395_v22, %v399_v63  ;;  %v413_v21 = vadd.f32 %v399_v63, %v389_v26  ;;  %v9004_v22 = vld [vmem:[%s12337_s5 + $0x1a4] sm:$0xf0]  ;;  %v6850_v26 = vor.u32 %v9001_v3, %v6847_v7  ;;  %v7039_v3 = vld [vmem:[%s12337_s5 + $0x2d8] sm:$0xf0] }
  0xf6   :  { %496 = vst [vmem:[#allocation2 + $0x48] sm:$0xf8] %v10241_v17  ;;  %v411_v42 = vadd.f32 %v400_v5, %v387_v10  ;;  %v402_v45 = vsel %vm348_vm2, %v397_v37, %v401_v6  ;;  %v414_v14 = vadd.f32 %v401_v6, %v390_v1  ;;  %v6854_v24 = vor.u32 %v9004_v22, %v6853_v40  ;;  %v6791_v37 = vld [vmem:[%s12337_s5 + $0x128] sm:$0xf0]  ;;  %v6837_v1 = vld [vmem:[%s12337_s5 + $0x180] sm:$0xf] }
  0xf7   :  { %497 = vst [vmem:[#allocation2 + $0x28] sm:$0xf8] %v10249_v20  ;;  %v433_v31 = vadd.f32 %v10026_v61, %v413_v21  ;;  %v412_v49 = vadd.f32 %v402_v45, %v388_v15  ;;  %1045 = vmatpush.bf16.msrb.mxu0 %v6802_v43  ;;  %1068 = vmatpush.bf16.msrb.mxu1 %v6866_v34  ;;  %v9000_v38 = vld [vmem:[%s12337_s5 + $0x184] sm:$0xf0]  ;;  %v6775_v15 = vld [vmem:[%s12337_s5 + $0x108] sm:$0xf0] }
  0xf8   :  { %v431_v50 = vadd.f32 %v10026_v61, %v411_v42  ;;  %v434_v51 = vadd.f32 %v10031_v4, %v414_v14  ;;  %v6794_v52 = vor.u32 %v8987_v47, %v6791_v37  ;;  %1023 = vmatpush.bf16.msra.mxu3 %v6854_v24  ;;  %1001 = vmatpush.bf16.msra.mxu2 %v6782_v25  ;;  %v6989_v45 = vld [vmem:[%s12337_s5 + $0x270] sm:$0xf]  ;;  %v9030_v14 = vld [vmem:[%s12337_s5 + $0x274] sm:$0xf0]  ;;  %v6983_v25 = vld [vmem:[%s12337_s5 + $0x268] sm:$0xf0] }
  0xf9   :  { %v439_v54 = vmax.f32 %v433_v31, 0.0  ;;  %v432_v61 = vadd.f32 %v10031_v4, %v412_v49  ;;  %v6783_v4 = vld [vmem:[%s12337_s5 + $0x118] sm:$0xf0]  ;;  %v6774_v27 = vor.u32 %v8984_v8, %v6773_v59  ;;  %v6838_v13 = vor.u32 %v9000_v38, %v6837_v1  ;;  %v9046_v47 = vld [vmem:[%s12337_s5 + $0x2f4] sm:$0xf0] }
  0xfa   :  { %v437_v28 = vmax.f32 %v431_v50, 0.0  ;;  %v440_v33 = vmax.f32 %v434_v51, 0.0  ;;  %v292_v30 = vpop.f32.mrf.mxu0  ;;  %v6786_v62 = vor.u32 %v8985_v57, %v6783_v4  ;;  %v6990_v22 = vor.u32 %v9030_v14, %v6989_v45  ;;  %v9029_v31 = vld [vmem:[%s12337_s5 + $0x274] sm:$0xf]  ;;  %v6991_v49 = vld [vmem:[%s12337_s5 + $0x278] sm:$0xf0] }
  0xfb   :  { %v486_v58 = vrot.slane %v439_v54, 7  ;;  %v438_v48 = vmax.f32 %v432_v61, 0.0  ;;  %v315_v29 = vpop.f32.mrf.mxu1  ;;  %1046 = vmatpush.bf16.msrb.mxu0 %v6794_v52  ;;  %1069 = vmatpush.bf16.msrb.mxu1 %v6858_v18  ;;  %v7054_v24 = vor.u32 %v9046_v47, %v7053_v46  ;;  %v6994_v37 = vor.u32 %v9029_v31, %v6991_v49  ;;  %v7055_v50 = vld [vmem:[%s12337_s5 + $0x2f8] sm:$0xf0]  ;;  %v6981_v51 = vld [vmem:[%s12337_s5 + $0x260] sm:$0xf] }
  0xfc   :  { %v482_v35 = vrot.slane %v437_v28, 7  ;;  %v488_v10 = vrot.slane %v440_v33, 7  ;;  %1024 = vmatpush.bf16.msra.mxu3 %v6846_v36  ;;  %1002 = vmatpush.bf16.msra.mxu2 %v6774_v27  ;;  %v7058_v52 = vor.u32 %v9045_v41, %v7055_v50  ;;  %v6982_v54 = vor.u32 %v9028_v53, %v6981_v51  ;;  %v9027_v18 = vld [vmem:[%s12337_s5 + $0x264] sm:$0xf]  ;;  %v7047_v28 = vld [vmem:[%s12337_s5 + $0x2e8] sm:$0xf0] }
  0xfd   :  { %v484_v9 = vrot.slane %v438_v48, 7  ;;  %v506_v11 = vld [vmem:[#allocation2 + $0x48] sm:$0xff]  ;;  %v7046_v61 = vor.u32 %v9044_v60, %v7045_v23  ;;  %v6986_v56 = vor.u32 %v9027_v18, %v6983_v25  ;;  %v6973_v33 = vld [vmem:[%s12337_s5 + $0x250] sm:$0xf]  ;;  %v9026_v30 = vld [vmem:[%s12337_s5 + $0x254] sm:$0xf0]  ;;  %v7050_v57 = vor.u32 %v9043_v55, %v7047_v28 }
  0xfe   :  { %v483_v63 = vsel %vm455_vm3, %v10241_v17, %v482_v35  ;;  %v487_v16 = vsel %vm455_vm3, %v482_v35, %v486_v58  ;;  %v507_v12 = vld [vmem:[#allocation2 + $0x28] sm:$0xff]  ;;  %v8999_v17 = vld [vmem:[%s12337_s5 + $0x184] sm:$0xf]  ;;  %v7037_v4 = vld [vmem:[%s12337_s5 + $0x2d0] sm:$0xf]  ;;  %v6974_v29 = vor.u32 %v9026_v30, %v6973_v33 }
  0xff   :  { %500 = vst [vmem:[#allocation2 + $0x40] sm:$0x7] %v487_v16  ;;  %v485_v6 = vsel %vm455_vm3, %v10249_v20, %v484_v9  ;;  %v489_v43 = vsel %vm455_vm3, %v484_v9, %v488_v10  ;;  %v10332_v0 = vpack.c.bf16 %v483_v63, %v506_v11  ;;  %1047 = vmatpush.bf16.msrb.mxu0 %v6786_v62  ;;  %v9042_v58 = vld [vmem:[%s12337_s5 + $0x2d4] sm:$0xf0]  ;;  %v9025_v48 = vld [vmem:[%s12337_s5 + $0x254] sm:$0xf] }
 0x100   :  { %501 = vst [vmem:[#allocation2 + $0x38] sm:$0x7] %v489_v43  ;;  %v10340_v5 = vpack.c.bf16 %v485_v6, %v507_v12  ;;  %1070 = vmatpush.bf16.msrb.mxu1 %v6850_v26  ;;  %v6778_v20 = vor.u32 %v8983_v2, %v6775_v15  ;;  %v6842_v21 = vor.u32 %v8999_v17, %v6839_v19  ;;  %v6975_v36 = vld [vmem:[%s12337_s5 + $0x258] sm:$0xf0]  ;;  %v9041_v62 = vld [vmem:[%s12337_s5 + $0x2d4] sm:$0xf] }
 0x101   :  { %723 = vmatmul.bf16.gmra.mxu2 %v10332_v0  ;;  %769 = vmatmul.bf16.gmra.mxu0 %v10332_v0  ;;  %v7038_v7 = vor.u32 %v9042_v58, %v7037_v4  ;;  %v6978_v35 = vor.u32 %v9025_v48, %v6975_v36  ;;  %v6965_v10 = vld [vmem:[%s12337_s5 + $0x240] sm:$0xf]  ;;  %v9024_v26 = vld [vmem:[%s12337_s5 + $0x244] sm:$0xf0]  ;;  %v7042_v59 = vor.u32 %v9041_v62, %v7039_v3  ;;  %v9023_v27 = vld [vmem:[%s12337_s5 + $0x244] sm:$0xf] }
 0x102   :  { %746 = vmatmul.bf16.gmra.mxu3 %v10340_v5  ;;  %792 = vmatmul.bf16.gmra.mxu1 %v10340_v5  ;;  %v7029_v8 = vld [vmem:[%s12337_s5 + $0x2c0] sm:$0xf]  ;;  %v6966_v9 = vor.u32 %v9024_v26, %v6965_v10  ;;  %v9040_v11 = vld [vmem:[%s12337_s5 + $0x2c4] sm:$0xf0]  ;;  %v6967_v1 = vld [vmem:[%s12337_s5 + $0x248] sm:$0xf0] }
 0x103   :  { %1025 = vmatpush.bf16.msra.mxu3 %v6838_v13  ;;  %1048 = vmatpush.bf16.msrb.mxu0 %v6778_v20  ;;  %v9039_v38 = vld [vmem:[%s12337_s5 + $0x2c4] sm:$0xf]  ;;  %v7031_v63 = vld [vmem:[%s12337_s5 + $0x2c8] sm:$0xf0]  ;;  %v7030_v16 = vor.u32 %v9040_v11, %v7029_v8  ;;  %v6970_v12 = vor.u32 %v9023_v27, %v6967_v1  ;;  %v6957_v2 = vld [vmem:[%s12337_s5 + $0x230] sm:$0xf] }
 0x104   :  { %1071 = vmatpush.bf16.msrb.mxu1 %v6842_v21  ;;  %1280 = vmatpush.bf16.msrb.mxu2 %v6990_v22  ;;  %v7034_v13 = vor.u32 %v9039_v38, %v7031_v63  ;;  %v9022_v15 = vld [vmem:[%s12337_s5 + $0x234] sm:$0xf0]  ;;  %v7021_v6 = vld [vmem:[%s12337_s5 + $0x2b0] sm:$0xf]  ;;  %v9021_v19 = vld [vmem:[%s12337_s5 + $0x234] sm:$0xf] }
 0x105   :  { %v6958_v43 = vor.u32 %v9022_v15, %v6957_v2  ;;  %v9038_v17 = vld [vmem:[%s12337_s5 + $0x2b4] sm:$0xf0]  ;;  %v6959_v20 = vld [vmem:[%s12337_s5 + $0x238] sm:$0xf0]  ;;  %v6949_v14 = vld [vmem:[%s12337_s5 + $0x220] sm:$0xf] }
 0x106   :  { %v510_v34 = vld [vmem:[#allocation2 + $0x40] sm:$0xf]  ;;  %v7022_v21 = vor.u32 %v9038_v17, %v7021_v6  ;;  %v7023_v45 = vld [vmem:[%s12337_s5 + $0x2b8] sm:$0xf0]  ;;  %v9020_v22 = vld [vmem:[%s12337_s5 + $0x224] sm:$0xf0] }
 0x107   :  { %v511_v39 = vld [vmem:[#allocation2 + $0x38] sm:$0xf]  ;;  %v10346_v40 = vpack.c.bf16 %v510_v34, %v510_v34  ;;  %1303 = vmatpush.bf16.msrb.mxu3 %v7054_v24  ;;  %1326 = vmatpush.bf16.msra.mxu0 %v6994_v37  ;;  %v6962_v34 = vor.u32 %v9021_v19, %v6959_v20  ;;  %v7013_v47 = vld [vmem:[%s12337_s5 + $0x2a0] sm:$0xf]  ;;  %v9036_v31 = vld [vmem:[%s12337_s5 + $0x2a4] sm:$0xf0]  ;;  %v6950_v49 = vor.u32 %v9020_v22, %v6949_v14 }
 0x108   :  { %v10348_v42 = vpack.c.bf16 %v511_v39, %v511_v39  ;;  %1349 = vmatpush.bf16.msra.mxu1 %v7058_v52  ;;  %1281 = vmatpush.bf16.msrb.mxu2 %v6982_v54  ;;  %v9037_v39 = vld [vmem:[%s12337_s5 + $0x2b4] sm:$0xf]  ;;  %v9019_v24 = vld [vmem:[%s12337_s5 + $0x224] sm:$0xf]  ;;  %v6951_v37 = vld [vmem:[%s12337_s5 + $0x228] sm:$0xf0]  ;;  %v7014_v53 = vor.u32 %v9036_v31, %v7013_v47 }
 0x109   :  { %v7026_v46 = vor.u32 %v9037_v39, %v7023_v45  ;;  %v9035_v41 = vld [vmem:[%s12337_s5 + $0x2a4] sm:$0xf]  ;;  %v7015_v50 = vld [vmem:[%s12337_s5 + $0x2a8] sm:$0xf0]  ;;  %v6941_v51 = vld [vmem:[%s12337_s5 + $0x210] sm:$0xf]  ;;  %v6954_v23 = vor.u32 %v9019_v24, %v6951_v37 }
 0x10a   :  { %v9018_v52 = vld [vmem:[%s12337_s5 + $0x214] sm:$0xf0]  ;;  %v7005_v60 = vld [vmem:[%s12337_s5 + $0x290] sm:$0xf]  ;;  %v9017_v25 = vld [vmem:[%s12337_s5 + $0x214] sm:$0xf] }
 0x10b   :  { %1304 = vmatpush.bf16.msrb.mxu3 %v7046_v61  ;;  %1327 = vmatpush.bf16.msra.mxu0 %v6986_v56  ;;  %v9034_v54 = vld [vmem:[%s12337_s5 + $0x294] sm:$0xf0]  ;;  %v7018_v61 = vor.u32 %v9035_v41, %v7015_v50  ;;  %v6942_v18 = vor.u32 %v9018_v52, %v6941_v51  ;;  %v6943_v55 = vld [vmem:[%s12337_s5 + $0x218] sm:$0xf0]  ;;  %v9033_v56 = vld [vmem:[%s12337_s5 + $0x294] sm:$0xf] }
 0x10c   :  { %1350 = vmatpush.bf16.msra.mxu1 %v7050_v57  ;;  %1282 = vmatpush.bf16.msrb.mxu2 %v6974_v29  ;;  %v7007_v28 = vld [vmem:[%s12337_s5 + $0x298] sm:$0xf0]  ;;  %v6933_v33 = vld [vmem:[%s12337_s5 + $0x200] sm:$0xf]  ;;  %v9016_v30 = vld [vmem:[%s12337_s5 + $0x204] sm:$0xf0]  ;;  %v7006_v57 = vor.u32 %v9034_v54, %v7005_v60  ;;  %v6946_v4 = vor.u32 %v9017_v25, %v6943_v55 }
 0x10d   :  { %v6997_v58 = vld [vmem:[%s12337_s5 + $0x280] sm:$0xf]  ;;  %v7010_v48 = vor.u32 %v9033_v56, %v7007_v28  ;;  %v6934_v29 = vor.u32 %v9016_v30, %v6933_v33  ;;  %v9032_v36 = vld [vmem:[%s12337_s5 + $0x284] sm:$0xf0]  ;;  %v9015_v62 = vld [vmem:[%s12337_s5 + $0x204] sm:$0xf] }
 0x10e   :  { %v6935_v3 = vld [vmem:[%s12337_s5 + $0x208] sm:$0xf0]  ;;  %v6998_v10 = vor.u32 %v9032_v36, %v6997_v58  ;;  %v9078_v60 = vld [vmem:[#allocation4 + $0xf4] sm:$0xf0]  ;;  %v9077_v54 = vld [vmem:[#allocation4 + $0xf4] sm:$0xf] }
 0x10f   :  { %1305 = vmatpush.bf16.msrb.mxu3 %v7038_v7  ;;  %1328 = vmatpush.bf16.msra.mxu0 %v6978_v35  ;;  %v9031_v7 = vld [vmem:[%s12337_s5 + $0x284] sm:$0xf]  ;;  %v6999_v35 = vld [vmem:[%s12337_s5 + $0x288] sm:$0xf0]  ;;  %v6938_v26 = vor.u32 %v9015_v62, %v6935_v3  ;;  %v7173_v55 = vld [vmem:[#allocation4 + $0xe0] sm:$0xf] }
 0x110   :  { %1351 = vmatpush.bf16.msra.mxu1 %v7042_v59  ;;  %1283 = vmatpush.bf16.msrb.mxu2 %v6966_v9  ;;  %v7002_v59 = vor.u32 %v9031_v7, %v6999_v35  ;;  %v9076_v56 = vld [vmem:[#allocation4 + $0xe4] sm:$0xf0]  ;;  %v9075_v28 = vld [vmem:[#allocation4 + $0xe4] sm:$0xf]  ;;  %v9061_v36 = vld [vmem:[#allocation4 + $0x74] sm:$0xf] }
 0x111   :  { %728 = vmatmul.bf16.gmra.mxu2 %v10346_v40  ;;  %774 = vmatmul.bf16.gmra.mxu0 %v10346_v40  ;;  %v7174_v30 = vor.u32 %v9076_v56, %v7173_v55  ;;  %v7119_v7 = vld [vmem:[#allocation4 + $0x78] sm:$0xf0]  ;;  %v9057_v55 = vld [vmem:[#allocation4 + $0x54] sm:$0xf] }
 0x112   :  { %751 = vmatmul.bf16.gmra.mxu3 %v10348_v42  ;;  %797 = vmatmul.bf16.gmra.mxu1 %v10348_v42  ;;  %v7103_v56 = vld [vmem:[#allocation4 + $0x58] sm:$0xf0] }
 0x113   :  { %1306 = vmatpush.bf16.msrb.mxu3 %v7030_v16  ;;  %1329 = vmatpush.bf16.msra.mxu0 %v6970_v12 }
 0x114   :  { %1352 = vmatpush.bf16.msra.mxu1 %v7034_v13  ;;  %1284 = vmatpush.bf16.msrb.mxu2 %v6958_v43 }
 0x117   :  { %1307 = vmatpush.bf16.msrb.mxu3 %v7022_v21  ;;  %1330 = vmatpush.bf16.msra.mxu0 %v6962_v34 }
 0x118   :  { %1353 = vmatpush.bf16.msra.mxu1 %v7026_v46  ;;  %1285 = vmatpush.bf16.msrb.mxu2 %v6950_v49 }
 0x11b   :  { %1308 = vmatpush.bf16.msrb.mxu3 %v7014_v53  ;;  %1331 = vmatpush.bf16.msra.mxu0 %v6954_v23  ;;  %v7181_v23 = vld [vmem:[#allocation4 + $0xf0] sm:$0xf] }
 0x11c   :  { %1354 = vmatpush.bf16.msra.mxu1 %v7018_v61  ;;  %1286 = vmatpush.bf16.msrb.mxu2 %v6942_v18  ;;  %v7182_v61 = vor.u32 %v9078_v60, %v7181_v23  ;;  %v7183_v18 = vld [vmem:[#allocation4 + $0xf8] sm:$0xf0] }
 0x11d   :  { %v7186_v25 = vor.u32 %v9077_v54, %v7183_v18  ;;  %v7101_v54 = vld [vmem:[#allocation4 + $0x50] sm:$0xf] }
 0x11f   :  { %1309 = vmatpush.bf16.msrb.mxu3 %v7006_v57  ;;  %1332 = vmatpush.bf16.msra.mxu0 %v6946_v4  ;;  %v7175_v57 = vld [vmem:[#allocation4 + $0xe8] sm:$0xf0] }
 0x120   :  { %1355 = vmatpush.bf16.msra.mxu1 %v7010_v48  ;;  %1287 = vmatpush.bf16.msrb.mxu2 %v6934_v29  ;;  %v7178_v58 = vor.u32 %v9075_v28, %v7175_v57  ;;  %v7117_v48 = vld [vmem:[#allocation4 + $0x70] sm:$0xf]  ;;  %v9062_v29 = vld [vmem:[#allocation4 + $0x74] sm:$0xf0] }
 0x121   :  { %1003 = vmatmul.bf16.vlgmr.msra.gmra.mxu2 %v10191_v44  ;;  %1049 = vmatmul.bf16.vlgmr.msrb.gmra.mxu0 %v10191_v44  ;;  %v7118_v3 = vor.u32 %v9062_v29, %v7117_v48  ;;  %v7149_v57 = vld [vmem:[#allocation4 + $0xb0] sm:$0xf]  ;;  %v9069_v48 = vld [vmem:[#allocation4 + $0xb4] sm:$0xf] }
 0x122   :  { %1026 = vmatmul.bf16.vlgmr.msra.gmra.mxu3 %v10200_v32  ;;  %1072 = vmatmul.bf16.vlgmr.msrb.gmra.mxu1 %v10200_v32 }
 0x123   :  { %1310 = vmatpush.bf16.msrb.mxu3 %v6998_v10  ;;  %1333 = vmatpush.bf16.msra.mxu0 %v6938_v26  ;;  %v7122_v10 = vor.u32 %v9061_v36, %v7119_v7  ;;  %v7165_v26 = vld [vmem:[#allocation4 + $0xd0] sm:$0xf]  ;;  %v7151_v36 = vld [vmem:[#allocation4 + $0xb8] sm:$0xf0]  ;;  %v7093_v7 = vld [vmem:[#allocation4 + $0x40] sm:$0xf] }
 0x124   :  { %1356 = vmatpush.bf16.msra.mxu1 %v7002_v59  ;;  %v9074_v59 = vld [vmem:[#allocation4 + $0xd4] sm:$0xf0]  ;;  %1752 = vmatpush.bf16.msra.mxu2 %v7118_v3  ;;  %v7154_v3 = vor.u32 %v9069_v48, %v7151_v36  ;;  %v7077_v48 = vld [vmem:[#allocation4 + $0x20] sm:$0xf]  ;;  %v9051_v36 = vld [vmem:[#allocation4 + $0x24] sm:$0xf] }
 0x127   :  { %1775 = vmatpush.bf16.msra.mxu3 %v7182_v61  ;;  %1798 = vmatpush.bf16.msrb.mxu0 %v7122_v10  ;;  %v9058_v61 = vld [vmem:[#allocation4 + $0x54] sm:$0xf0]  ;;  %v9056_v10 = vld [vmem:[#allocation4 + $0x44] sm:$0xf0] }
 0x128   :  { %1821 = vmatpush.bf16.msrb.mxu1 %v7186_v25  ;;  %v7102_v25 = vor.u32 %v9058_v61, %v7101_v54 }
 0x12b   :  { %1776 = vmatpush.bf16.msra.mxu3 %v7174_v30  ;;  %v7106_v30 = vor.u32 %v9057_v55, %v7103_v56  ;;  %v9066_v55 = vld [vmem:[#allocation4 + $0x94] sm:$0xf0]  ;;  %v9065_v56 = vld [vmem:[#allocation4 + $0x94] sm:$0xf] }
 0x12c   :  { %1822 = vmatpush.bf16.msrb.mxu1 %v7178_v58  ;;  %v9070_v58 = vld [vmem:[#allocation4 + $0xb4] sm:$0xf0] }
 0x12d   :  { %v7150_v29 = vor.u32 %v9070_v58, %v7149_v57  ;;  %v7135_v57 = vld [vmem:[#allocation4 + $0x98] sm:$0xf0] }
 0x12e   :  { %v7138_v58 = vor.u32 %v9065_v56, %v7135_v57  ;;  %v7063_v57 = vld [vmem:[#allocation4 + $0x8] sm:$0xf0] }
 0x131   :  { %1008 = vmatmul.bf16.gmra.mxu2 %v10332_v0  ;;  %1054 = vmatmul.bf16.gmra.mxu0 %v10332_v0 }
 0x132   :  { %1031 = vmatmul.bf16.gmra.mxu3 %v10340_v5  ;;  %1077 = vmatmul.bf16.gmra.mxu1 %v10340_v5 }
 0x141   :  { %1013 = vmatmul.bf16.gmra.mxu2 %v10346_v40  ;;  %1059 = vmatmul.bf16.gmra.mxu0 %v10346_v40 }
 0x142   :  { %1036 = vmatmul.bf16.gmra.mxu3 %v10348_v42  ;;  %1082 = vmatmul.bf16.gmra.mxu1 %v10348_v42 }
 0x151   :  { %1288 = vmatmul.bf16.vlgmr.msrb.gmra.mxu2 %v10191_v44  ;;  %1334 = vmatmul.bf16.vlgmr.msra.gmra.mxu0 %v10191_v44 }
 0x152   :  { %1311 = vmatmul.bf16.vlgmr.msrb.gmra.mxu3 %v10200_v32  ;;  %1357 = vmatmul.bf16.vlgmr.msra.gmra.mxu1 %v10200_v32 }
 0x161   :  { %1293 = vmatmul.bf16.gmra.mxu2 %v10332_v0  ;;  %1339 = vmatmul.bf16.gmra.mxu0 %v10332_v0 }
 0x162   :  { %1316 = vmatmul.bf16.gmra.mxu3 %v10340_v5  ;;  %1362 = vmatmul.bf16.gmra.mxu1 %v10340_v5 }
 0x16e   :  { %v765_v8 = vpop.f32.mrf.mxu0 }
 0x16f   :  { %v788_v9 = vpop.f32.mrf.mxu1 }
 0x170   :  { %v10566_v11 = vadd.f32 %v788_v9, %v765_v8  ;;  %v9073_v8 = vld [vmem:[#allocation4 + $0xd4] sm:$0xf]  ;;  %v7166_v9 = vor.u32 %v9074_v59, %v7165_v26  ;;  %v9055_v26 = vld [vmem:[#allocation4 + $0x44] sm:$0xf]  ;;  %v7094_v59 = vor.u32 %v9056_v10, %v7093_v7  ;;  %v7079_v7 = vld [vmem:[#allocation4 + $0x28] sm:$0xf0] }
 0x171   :  { %1298 = vmatmul.bf16.gmra.mxu2 %v10346_v40  ;;  %1344 = vmatmul.bf16.gmra.mxu0 %v10346_v40  ;;  %v7082_v10 = vor.u32 %v9051_v36, %v7079_v7 }
 0x172   :  { %1321 = vmatmul.bf16.gmra.mxu3 %v10348_v42  ;;  %1367 = vmatmul.bf16.gmra.mxu1 %v10348_v42 }
 0x173   :  { %1777 = vmatpush.bf16.msra.mxu3 %v7166_v9 }
 0x174   :  { %v719_v44 = vpop.f32.mrf.mxu2 }
 0x175   :  { %v742_v32 = vpop.f32.mrf.mxu3 }
 0x176   :  { %v10572_v27 = vadd.f32 %v742_v32, %v719_v44  ;;  %v10574_v0 = vpop.f32.mrf.mxu0  ;;  %v7167_v44 = vld [vmem:[#allocation4 + $0xd8] sm:$0xf0] }
 0x177   :  { %v10576_v1 = vpop.f32.mrf.mxu1  ;;  %v7170_v32 = vor.u32 %v9073_v8, %v7167_v44  ;;  %v7095_v8 = vld [vmem:[#allocation4 + $0x48] sm:$0xf0]  ;;  %v7141_v44 = vld [vmem:[#allocation4 + $0xa0] sm:$0xf] }
 0x178   :  { %v7098_v9 = vor.u32 %v9055_v26, %v7095_v8  ;;  %v7125_v26 = vld [vmem:[#allocation4 + $0x80] sm:$0xf]  ;;  %v9063_v8 = vld [vmem:[#allocation4 + $0x84] sm:$0xf] }
 0x179   :  { %1823 = vmatpush.bf16.msrb.mxu1 %v7170_v32  ;;  %v9068_v32 = vld [vmem:[#allocation4 + $0xa4] sm:$0xf0] }
 0x17c   :  { %v10578_v5 = vpop.f32.mrf.mxu2 }
 0x17d   :  { %v10580_v38 = vpop.f32.mrf.mxu3 }
 0x17e   :  { %v770_v63 = vpop.f32.mrf.mxu0 }
 0x17f   :  { %v793_v16 = vpop.f32.mrf.mxu1 }
 0x180   :  { %v10582_v12 = vadd.f32 %v793_v16, %v770_v63  ;;  %v7109_v63 = vld [vmem:[#allocation4 + $0x60] sm:$0xf]  ;;  %v9060_v16 = vld [vmem:[#allocation4 + $0x64] sm:$0xf0] }
 0x184   :  { %v724_v40 = vpop.f32.mrf.mxu2 }
 0x185   :  { %v747_v13 = vpop.f32.mrf.mxu3 }
 0x186   :  { %v10584_v2 = vadd.f32 %v747_v13, %v724_v40  ;;  %v10586_v42 = vpop.f32.mrf.mxu0  ;;  %v9059_v40 = vld [vmem:[#allocation4 + $0x64] sm:$0xf]  ;;  %v7110_v13 = vor.u32 %v9060_v16, %v7109_v63 }
 0x187   :  { %v10588_v15 = vpop.f32.mrf.mxu1  ;;  %v9067_v63 = vld [vmem:[#allocation4 + $0xa4] sm:$0xf] }
 0x188   :  { %1753 = vmatpush.bf16.msra.mxu2 %v7110_v13  ;;  %v7143_v13 = vld [vmem:[#allocation4 + $0xa8] sm:$0xf0] }
 0x18c   :  { %v10590_v6 = vpop.f32.mrf.mxu2  ;;  %1754 = vmatpush.bf16.msra.mxu2 %v7102_v25  ;;  %v7133_v25 = vld [vmem:[#allocation4 + $0x90] sm:$0xf] }
 0x18d   :  { %v10592_v43 = vpop.f32.mrf.mxu3 }
 0x18e   :  { %v775_v17 = vpop.f32.mrf.mxu0 }
 0x18f   :  { %v798_v19 = vpop.f32.mrf.mxu1 }
 0x190   :  { %v10594_v20 = vadd.f32 %v798_v19, %v775_v17  ;;  %v7111_v17 = vld [vmem:[#allocation4 + $0x68] sm:$0xf0]  ;;  %1755 = vmatpush.bf16.msra.mxu2 %v7094_v59  ;;  %v9064_v59 = vld [vmem:[#allocation4 + $0x84] sm:$0xf0] }
 0x191   :  { %v7114_v19 = vor.u32 %v9059_v40, %v7111_v17  ;;  %v7142_v40 = vor.u32 %v9068_v32, %v7141_v44  ;;  %v7126_v44 = vor.u32 %v9064_v59, %v7125_v26  ;;  %v7127_v32 = vld [vmem:[#allocation4 + $0x88] sm:$0xf0] }
 0x193   :  { %1799 = vmatpush.bf16.msrb.mxu0 %v7114_v19  ;;  %v7146_v19 = vor.u32 %v9067_v63, %v7143_v13  ;;  %v7069_v13 = vld [vmem:[#allocation4 + $0x10] sm:$0xf] }
 0x194   :  { %v729_v21 = vpop.f32.mrf.mxu2 }
 0x195   :  { %v752_v34 = vpop.f32.mrf.mxu3 }
 0x196   :  { %v10596_v39 = vadd.f32 %v752_v34, %v729_v21  ;;  %v777_v45 = vpop.f32.mrf.mxu0  ;;  %v7157_v21 = vld [vmem:[#allocation4 + $0xc0] sm:$0xf]  ;;  %v9072_v34 = vld [vmem:[#allocation4 + $0xc4] sm:$0xf0] }
 0x197   :  { %v800_v14 = vpop.f32.mrf.mxu1  ;;  %v9071_v45 = vld [vmem:[#allocation4 + $0xc4] sm:$0xf]  ;;  %1800 = vmatpush.bf16.msrb.mxu0 %v7106_v30  ;;  %v7134_v30 = vor.u32 %v9066_v55, %v7133_v25  ;;  %v9048_v25 = vld [vmem:[#allocation4 + $0x4] sm:$0xf0] }
 0x198   :  { %v9047_v55 = vld [vmem:[#allocation4 + $0x4] sm:$0xf] }
 0x19b   :  { %1801 = vmatpush.bf16.msrb.mxu0 %v7098_v9 }
 0x19c   :  { %v731_v46 = vpop.f32.mrf.mxu2 }
 0x19d   :  { %v754_v22 = vpop.f32.mrf.mxu3  ;;  %v7158_v46 = vor.u32 %v9072_v34, %v7157_v21  ;;  %v7085_v21 = vld [vmem:[#allocation4 + $0x30] sm:$0xf]  ;;  %v9054_v34 = vld [vmem:[#allocation4 + $0x34] sm:$0xf0] }
 0x19e   :  { %v10598_v47 = vpop.f32.mrf.mxu0  ;;  %v7159_v22 = vld [vmem:[#allocation4 + $0xc8] sm:$0xf0] }
 0x19f   :  { %v10600_v31 = vpop.f32.mrf.mxu1  ;;  %v7162_v60 = vor.u32 %v9071_v45, %v7159_v22  ;;  %1778 = vmatpush.bf16.msra.mxu3 %v7158_v46  ;;  %v9053_v45 = vld [vmem:[#allocation4 + $0x34] sm:$0xf]  ;;  %v7086_v22 = vor.u32 %v9054_v34, %v7085_v21 }
 0x1a0   :  { %v9049_v21 = vld [vmem:[#allocation4 + $0x14] sm:$0xf]  ;;  %v1074_v56 = vadd.f32 %v10600_v31, %v10598_v47 }
 0x1a1   :  { %1824 = vmatpush.bf16.msrb.mxu1 %v7162_v60  ;;  %v7087_v60 = vld [vmem:[#allocation4 + $0x38] sm:$0xf0]  ;;  %1756 = vmatpush.bf16.msra.mxu2 %v7086_v22 }
 0x1a2   :  { %v7090_v61 = vor.u32 %v9053_v45, %v7087_v60 }
 0x1a3   :  { %1779 = vmatpush.bf16.msra.mxu3 %v7150_v29  ;;  %v9052_v29 = vld [vmem:[#allocation4 + $0x24] sm:$0xf0] }
 0x1a4   :  { %v10602_v49 = vpop.f32.mrf.mxu2  ;;  %1802 = vmatpush.bf16.msrb.mxu0 %v7090_v61  ;;  %v7061_v61 = vld [vmem:[#allocation4] sm:$0xf] }
 0x1a5   :  { %v10604_v24 = vpop.f32.mrf.mxu3  ;;  %1825 = vmatpush.bf16.msrb.mxu1 %v7154_v3  ;;  %v7078_v3 = vor.u32 %v9052_v29, %v7077_v48 }
 0x1a6   :  { %v10606_v37 = vpop.f32.mrf.mxu0  ;;  %v1028_v31 = vadd.f32 %v10604_v24, %v10602_v49 }
 0x1a7   :  { %v10608_v41 = vpop.f32.mrf.mxu1  ;;  %1780 = vmatpush.bf16.msra.mxu3 %v7142_v40  ;;  %1757 = vmatpush.bf16.msra.mxu2 %v7078_v3  ;;  %v7130_v40 = vor.u32 %v9063_v8, %v7127_v32  ;;  %v1381_v3 = vrot.slane %v1074_v56, 1  ;;  %v1468_v8 = vld [vmem:[%s12339_s11] sm:$0x3]  ;;  %s9584_s11 = smov [#allocation10]  }
 0x1a8   :  { %1803 = vmatpush.bf16.msrb.mxu0 %v7082_v10  ;;  %v1378_v32 = vrot.slane %v1028_v31, 1 }
 0x1a9   :  { %1826 = vmatpush.bf16.msrb.mxu1 %v7146_v19  ;;  %v9050_v19 = vld [vmem:[#allocation4 + $0x14] sm:$0xf0] }
 0x1aa   :  { %v7070_v45 = vor.u32 %v9050_v19, %v7069_v13 }
 0x1ab   :  { %1781 = vmatpush.bf16.msra.mxu3 %v7134_v30  ;;  %v7062_v30 = vor.u32 %v9048_v25, %v7061_v61 }
 0x1ac   :  { %v10610_v50 = vpop.f32.mrf.mxu2  ;;  %1758 = vmatpush.bf16.msra.mxu2 %v7070_v45 }
 0x1ad   :  { %v10612_v51 = vpop.f32.mrf.mxu3  ;;  %1827 = vmatpush.bf16.msrb.mxu1 %v7138_v58  ;;  %v7066_v58 = vor.u32 %v9047_v55, %v7063_v57 }
 0x1ae   :  { %v10614_v52 = vpop.f32.mrf.mxu0 }
 0x1af   :  { %v10616_v53 = vpop.f32.mrf.mxu1  ;;  %1782 = vmatpush.bf16.msra.mxu3 %v7126_v44 }
 0x1b0   :  { %1759 = vmatpush.bf16.msra.mxu2 %v7062_v30  ;;  %v10648_v10 = vadd.f32 %v10616_v53, %v10614_v52  ;;  %v10659_v53 = vperm.slane %v1468_v8, 1  ;;  %v10689_v30 = vperm.slane %v1468_v8, 0  ;;  %v9107_v8 = vld [vmem:[#allocation4 + $0x1e4] sm:$0xf] }
 0x1b1   :  { %1828 = vmatpush.bf16.msrb.mxu1 %v7130_v40  ;;  %v791_v40 = vadd.f32 %v10576_v1, %v10574_v0 }
 0x1b2   :  { %v1386_v52 = vrot.slane %v10648_v10, 1  ;;  %v10701_v10 = vadd.f32 %v10588_v15, %v10586_v42 }
 0x1b4   :  { %v10618_v33 = vpop.f32.mrf.mxu2 }
 0x1b5   :  { %v10620_v4 = vpop.f32.mrf.mxu3 }
 0x1b6   :  { %v10622_v62 = vpop.f32.mrf.mxu0 }
 0x1b7   :  { %v10624_v35 = vpop.f32.mrf.mxu1 }
 0x1bc   :  { %v10626_v14 = vpop.f32.mrf.mxu2 }
 0x1bd   :  { %v10628_v23 = vpop.f32.mrf.mxu3 }
 0x1be   :  { %v10630_v18 = vpop.f32.mrf.mxu0  ;;  %v10682_v1 = vadd.f32 %v10628_v23, %v10626_v14 }
 0x1bf   :  { %v10632_v28 = vpop.f32.mrf.mxu1 }
 0x1c4   :  { %v10634_v16 = vpop.f32.mrf.mxu2 }
 0x1c5   :  { %v10636_v17 = vpop.f32.mrf.mxu3 }
 0x1c6   :  { %v1062_v46 = vpop.f32.mrf.mxu0 }
 0x1c7   :  { %v1085_v54 = vpop.f32.mrf.mxu1  ;;  %v7071_v46 = vld [vmem:[#allocation4 + $0x18] sm:$0xf0] }
 0x1c8   :  { %v7074_v60 = vor.u32 %v9049_v21, %v7071_v46  ;;  %v1076_v54 = vadd.f32 %v10608_v41, %v10606_v37  ;;  %v10644_v37 = vadd.f32 %v10612_v51, %v10610_v50 }
 0x1ca   :  { %1804 = vmatpush.bf16.msrb.mxu0 %v7074_v60  ;;  %v1382_v48 = vrot.slane %v1076_v54, 1  ;;  %v1379_v50 = vrot.slane %v10644_v37, 1  ;;  %v9110_v54 = vld [vmem:[#allocation4 + $0x1f4] sm:$0xf0] }
 0x1cc   :  { %v1016_v9 = vpop.f32.mrf.mxu2  ;;  %v1383_v26 = vsel %vm323_vm1, %v1381_v3, %v1382_v48  ;;  %v1380_v21 = vsel %vm323_vm1, %v1378_v32, %v1379_v50  ;;  %v1387_v0 = vsel %vm323_vm1, %v1382_v48, %v1386_v52 }
 0x1cd   :  { %v1039_v63 = vpop.f32.mrf.mxu3  ;;  %v1393_v44 = vadd.f32 %v1383_v26, %v10566_v11  ;;  %v1033_v11 = vadd.f32 %v10620_v4, %v10618_v33  ;;  %v7309_v4 = vld [vmem:[#allocation4 + $0x1f0] sm:$0xf] }
 0x1ce   :  { %v1335_v34 = vpop.f32.mrf.mxu0  ;;  %1805 = vmatpush.bf16.msrb.mxu0 %v7066_v58  ;;  %v7310_v55 = vor.u32 %v9110_v54, %v7309_v4 }
 0x1cf   :  { %v1358_v22 = vpop.f32.mrf.mxu1  ;;  %v1384_v23 = vrot.slane %v1033_v11, 1 }
 0x1d0   :  { %v1359_v41 = vadd.f32 %v1358_v22, %v1335_v34  ;;  %v10671_v34 = vadd.f32 %v10624_v35, %v10622_v62  ;;  %v10677_v22 = vadd.f32 %v10580_v38, %v10578_v5  ;;  %v9109_v62 = vld [vmem:[#allocation4 + $0x1f4] sm:$0xf]  ;;  %v7311_v5 = vld [vmem:[#allocation4 + $0x1f8] sm:$0xf0]  ;;  %v1392_v38 = vadd.f32 %v1380_v21, %v10572_v27  ;;  %2060 = vmatpush.bf16.msrb.mxu3 %v7310_v55 }
 0x1d1   :  { %v7314_v14 = vor.u32 %v9109_v62, %v7311_v5  ;;  %v7295_v62 = vld [vmem:[#allocation4 + $0x1d8] sm:$0xf0] }
 0x1d2   :  { %v1405_v51 = vrot.slane %v1359_v41, 2  ;;  %v1426_v57 = vrot.slane %v10671_v34, 1  ;;  %v7301_v41 = vld [vmem:[#allocation4 + $0x1e0] sm:$0xf] }
 0x1d3   :  { %2106 = vmatpush.bf16.msra.mxu1 %v7314_v14  ;;  %v9092_v14 = vld [vmem:[#allocation4 + $0x164] sm:$0xf0] }
 0x1d4   :  { %v1289_v29 = vpop.f32.mrf.mxu2 }
 0x1d5   :  { %v1312_v36 = vpop.f32.mrf.mxu3 }
 0x1d6   :  { %v1337_v7 = vpop.f32.mrf.mxu0  ;;  %v1313_v63 = vadd.f32 %v1312_v36, %v1289_v29  ;;  %v1395_v29 = vadd.f32 %v1387_v0, %v791_v40  ;;  %v1424_v36 = vrot.slane %v10682_v1, 1  ;;  %v9093_v40 = vld [vmem:[#allocation4 + $0x174] sm:$0xf]  ;;  %v9106_v0 = vld [vmem:[#allocation4 + $0x1d4] sm:$0xf0] }
 0x1d7   :  { %v1360_v47 = vpop.f32.mrf.mxu1 }
 0x1d8   :  { %v1361_v59 = vadd.f32 %v1360_v47, %v1337_v7  ;;  %v1402_v35 = vrot.slane %v1313_v63, 2  ;;  %v9108_v7 = vld [vmem:[#allocation4 + $0x1e4] sm:$0xf0]  ;;  %v10705_v47 = vadd.f32 %v10632_v28, %v10630_v18  ;;  %v7245_v28 = vld [vmem:[#allocation4 + $0x170] sm:$0xf]  ;;  %v1425_v21 = vsel %vm323_vm1, %v1384_v23, %v1424_v36 }
 0x1d9   :  { %v9094_v63 = vld [vmem:[#allocation4 + $0x174] sm:$0xf0] }
 0x1da   :  { %v1406_v9 = vrot.slane %v1361_v59, 2  ;;  %v7302_v59 = vor.u32 %v9108_v7, %v7301_v41  ;;  %v7285_v7 = vld [vmem:[#allocation4 + $0x1c0] sm:$0xf] }
 0x1dc   :  { %v1407_v49 = vsel %vm348_vm2, %v1405_v51, %v1406_v9  ;;  %v1291_v24 = vpop.f32.mrf.mxu2  ;;  %v7303_v51 = vld [vmem:[#allocation4 + $0x1e8] sm:$0xf0]  ;;  %2061 = vmatpush.bf16.msrb.mxu3 %v7302_v59 }
 0x1dd   :  { %v1417_v13 = vadd.f32 %v1407_v49, %v1393_v44  ;;  %v1314_v19 = vpop.f32.mrf.mxu3  ;;  %v10712_v44 = vadd.f32 %v10592_v43, %v10590_v6  ;;  %v7306_v18 = vor.u32 %v9107_v8, %v7303_v51  ;;  %v1427_v49 = vsel %vm323_vm1, %v1386_v52, %v1426_v57  ;;  %v9105_v52 = vld [vmem:[#allocation4 + $0x1d4] sm:$0xf]  ;;  %v9104_v8 = vld [vmem:[#allocation4 + $0x1c4] sm:$0xf0] }
 0x1de   :  { %v10673_v45 = vadd.f32 %v1314_v19, %v1291_v24  ;;  %v1340_v46 = vpop.f32.mrf.mxu0  ;;  %v7246_v43 = vor.u32 %v9094_v63, %v7245_v28  ;;  %v7293_v19 = vld [vmem:[#allocation4 + $0x1d0] sm:$0xf]  ;;  %v9090_v63 = vld [vmem:[#allocation4 + $0x154] sm:$0xf0] }
 0x1df   :  { %v1475_v60 = vadd.f32 %v10659_v53, %v1417_v13  ;;  %v1363_v33 = vpop.f32.mrf.mxu1  ;;  %v7247_v13 = vld [vmem:[#allocation4 + $0x178] sm:$0xf0]  ;;  %2107 = vmatpush.bf16.msra.mxu1 %v7306_v18  ;;  %v7294_v54 = vor.u32 %v9106_v0, %v7293_v19  ;;  %v7287_v18 = vld [vmem:[#allocation4 + $0x1c8] sm:$0xf0]  ;;  %v7229_v28 = vld [vmem:[#allocation4 + $0x150] sm:$0xf] }
 0x1e0   :  { %v1403_v61 = vrot.slane %v10673_v45, 2  ;;  %v10686_v25 = vadd.f32 %v1363_v33, %v1340_v46  ;;  %v7250_v46 = vor.u32 %v9093_v40, %v7247_v13  ;;  %2037 = vmatpush.bf16.msrb.mxu2 %v7246_v43  ;;  %v7231_v43 = vld [vmem:[#allocation4 + $0x158] sm:$0xf0]  ;;  %v7230_v19 = vor.u32 %v9090_v63, %v7229_v28 }
 0x1e1   :  { %v1479_v56 = vmax.f32 %v1475_v60, 0.0  ;;  %v1430_v60 = vrot.slane %v10705_v47, 1  ;;  %2062 = vmatpush.bf16.msrb.mxu3 %v7294_v54  ;;  %v9101_v54 = vld [vmem:[#allocation4 + $0x1b4] sm:$0xf]  ;;  %v9087_v47 = vld [vmem:[#allocation4 + $0x144] sm:$0xf] }
 0x1e2   :  { %v1404_v58 = vsel %vm348_vm2, %v1402_v35, %v1403_v61  ;;  %v1410_v48 = vrot.slane %v10686_v25, 2  ;;  %v7237_v35 = vld [vmem:[#allocation4 + $0x160] sm:$0xf]  ;;  %2083 = vmatpush.bf16.msra.mxu0 %v7250_v46 }
 0x1e3   :  { %v10697_v3 = vrot.slane %v1479_v56, 7  ;;  %v1416_v27 = vadd.f32 %v1404_v58, %v1392_v38  ;;  %v7298_v56 = vor.u32 %v9105_v52, %v7295_v62  ;;  %v1439_v58 = vadd.f32 %v1427_v49, %v10582_v12  ;;  %v7279_v62 = vld [vmem:[#allocation4 + $0x1b8] sm:$0xf0] }
 0x1e4   :  { %v1411_v31 = vsel %vm348_vm2, %v1406_v9, %v1410_v48  ;;  %v1294_v26 = vpop.f32.mrf.mxu2  ;;  %v1385_v9 = vsel %vm323_vm1, %v1379_v50, %v1384_v23  ;;  %v9091_v23 = vld [vmem:[#allocation4 + $0x164] sm:$0xf]  ;;  %v7238_v41 = vor.u32 %v9092_v14, %v7237_v35  ;;  %v1431_v45 = vsel %vm323_vm1, %v1426_v57, %v1430_v60  ;;  %v7221_v14 = vld [vmem:[#allocation4 + $0x140] sm:$0xf] }
 0x1e5   :  { %1511 = vst [vmem:[#allocation2] sm:$0xfe] %v10697_v3  ;;  %v1474_v42 = vadd.f32 %v10689_v30, %v1416_v27  ;;  %v1419_v15 = vadd.f32 %v1411_v31, %v1395_v29  ;;  %v1317_v32 = vpop.f32.mrf.mxu3  ;;  %v1394_v55 = vadd.f32 %v1385_v9, %v10677_v22  ;;  %v7239_v22 = vld [vmem:[#allocation4 + $0x168] sm:$0xf0]  ;;  %v10743_v31 = vadd.f32 %v1425_v21, %v10584_v2 }
 0x1e6   :  { %v10722_v24 = vadd.f32 %v1317_v32, %v1294_v26  ;;  %v1342_v6 = vpop.f32.mrf.mxu0  ;;  %2108 = vmatpush.bf16.msra.mxu1 %v7298_v56  ;;  %v7242_v12 = vor.u32 %v9091_v23, %v7239_v22  ;;  %2038 = vmatpush.bf16.msrb.mxu2 %v7238_v41  ;;  %v9103_v32 = vld [vmem:[#allocation4 + $0x1c4] sm:$0xf]  ;;  %v1443_v35 = vadd.f32 %v1430_v60, %v10594_v20  ;;  %v9088_v23 = vld [vmem:[#allocation4 + $0x144] sm:$0xf0]  ;;  %v7223_v60 = vld [vmem:[#allocation4 + $0x148] sm:$0xf0] }
 0x1e7   :  { %v1478_v11 = vmax.f32 %v1474_v42, 0.0  ;;  %v1477_v37 = vadd.f32 %v10659_v53, %v1419_v15  ;;  %v1365_v50 = vpop.f32.mrf.mxu1  ;;  %v7286_v15 = vor.u32 %v9104_v8, %v7285_v7  ;;  %v7290_v49 = vor.u32 %v9103_v32, %v7287_v18  ;;  %v7213_v32 = vld [vmem:[#allocation4 + $0x130] sm:$0xf] }
 0x1e8   :  { %v1408_v33 = vrot.slane %v10722_v24, 2  ;;  %v10730_v4 = vadd.f32 %v1365_v50, %v1342_v6  ;;  %2084 = vmatpush.bf16.msra.mxu0 %v7242_v12  ;;  %v9089_v6 = vld [vmem:[#allocation4 + $0x154] sm:$0xf]  ;;  %v7282_v56 = vor.u32 %v9101_v54, %v7279_v62  ;;  %v7222_v20 = vor.u32 %v9088_v23, %v7221_v14  ;;  %v7269_v12 = vld [vmem:[#allocation4 + $0x1a0] sm:$0xf] }
 0x1e9   :  { %v10733_v5 = vrot.slane %v1478_v11, 7  ;;  %v1481_v38 = vmax.f32 %v1477_v37, 0.0  ;;  %2063 = vmatpush.bf16.msrb.mxu3 %v7286_v15  ;;  %v7234_v21 = vor.u32 %v9089_v6, %v7231_v43  ;;  %v7277_v11 = vld [vmem:[#allocation4 + $0x1b0] sm:$0xf]  ;;  %v9102_v37 = vld [vmem:[#allocation4 + $0x1b4] sm:$0xf0] }
 0x1ea   :  { %v1409_v29 = vsel %vm348_vm2, %v1403_v61, %v1408_v33  ;;  %v1450_v27 = vrot.slane %v10730_v4, 2  ;;  %v10753_v61 = vadd.f32 %v10636_v17, %v10634_v16  ;;  %v7278_v52 = vor.u32 %v9102_v37, %v7277_v11  ;;  %2109 = vmatpush.bf16.msra.mxu1 %v7290_v49  ;;  %2039 = vmatpush.bf16.msrb.mxu2 %v7230_v19  ;;  %v7261_v43 = vld [vmem:[#allocation4 + $0x190] sm:$0xf]  ;;  %v9097_v11 = vld [vmem:[#allocation4 + $0x194] sm:$0xf] }
 0x1eb   :  { %1510 = vst [vmem:[#allocation2 + $0x30] sm:$0xfe] %v10733_v5  ;;  %v1502_v26 = vrot.slane %v1481_v38, 7  ;;  %v1418_v59 = vadd.f32 %v1409_v29, %v1394_v55  ;;  %v7263_v37 = vld [vmem:[#allocation4 + $0x198] sm:$0xf0] }
 0x1ec   :  { %v1451_v2 = vsel %vm348_vm2, %v1410_v48, %v1450_v27  ;;  %v1296_v51 = vpop.f32.mrf.mxu2  ;;  %v1545_v42 = vld [vmem:[#allocation2] sm:$0xff]  ;;  %v1428_v50 = vrot.slane %v10753_v61, 1  ;;  %2085 = vmatpush.bf16.msra.mxu0 %v7234_v21  ;;  %v7266_v54 = vor.u32 %v9097_v11, %v7263_v37  ;;  %v7431_v37 = vld [vmem:[#allocation4 + $0x2e8] sm:$0xf0] }
 0x1ed   :  { %v1503_v34 = vsel %vm455_vm3, %v10697_v3, %v1502_v26  ;;  %1515 = vst [vmem:[#allocation2 + $0x28] sm:$0x1] %v1502_v26  ;;  %v1476_v57 = vadd.f32 %v10689_v30, %v1418_v59  ;;  %v1463_v16 = vadd.f32 %v1451_v2, %v1439_v58  ;;  %v1319_v17 = vpop.f32.mrf.mxu3  ;;  %v1441_v58 = vadd.f32 %v1431_v45, %v10701_v10  ;;  %v9100_v2 = vld [vmem:[#allocation4 + $0x1a4] sm:$0xf0]  ;;  %v7205_v62 = vld [vmem:[#allocation4 + $0x120] sm:$0xf] }
 0x1ee   :  { %v10763_v25 = vadd.f32 %v1319_v17, %v1296_v51  ;;  %v1345_v48 = vpop.f32.mrf.mxu0  ;;  %v10765_v9 = vpack.c.bf16 %v1503_v34, %v1545_v42  ;;  %2064 = vmatpush.bf16.msrb.mxu3 %v7278_v52  ;;  %v7226_v59 = vor.u32 %v9087_v47, %v7223_v60  ;;  %v1429_v24 = vsel %vm323_vm1, %v1424_v36, %v1428_v50  ;;  %v9099_v51 = vld [vmem:[#allocation4 + $0x1a4] sm:$0xf]  ;;  %v7271_v36 = vld [vmem:[#allocation4 + $0x1a8] sm:$0xf0]  ;;  %v7215_v17 = vld [vmem:[#allocation4 + $0x138] sm:$0xf0] }
 0x1ef   :  { %v1480_v40 = vmax.f32 %v1476_v57, 0.0  ;;  %v1483_v3 = vadd.f32 %v10659_v53, %v1463_v16  ;;  %v1368_v13 = vpop.f32.mrf.mxu1  ;;  %2110 = vmatpush.bf16.msra.mxu1 %v7282_v56  ;;  %2040 = vmatpush.bf16.msrb.mxu2 %v7222_v20  ;;  %v7270_v1 = vor.u32 %v9100_v2, %v7269_v12  ;;  %v7274_v34 = vor.u32 %v9099_v51, %v7271_v36  ;;  %v9086_v57 = vld [vmem:[#allocation4 + $0x134] sm:$0xf0]  ;;  %v9085_v16 = vld [vmem:[#allocation4 + $0x134] sm:$0xf] }
 0x1f0   :  { %v1448_v46 = vrot.slane %v10763_v25, 2  ;;  %v1369_v0 = vadd.f32 %v1368_v13, %v1345_v48  ;;  %1783 = vmatmul.bf16.vlgmr.msra.gmra.mxu3 %v10765_v9  ;;  %1829 = vmatmul.bf16.vlgmr.msrb.gmra.mxu1 %v10765_v9  ;;  %v7214_v49 = vor.u32 %v9086_v57, %v7213_v32  ;;  %v7218_v6 = vor.u32 %v9085_v16, %v7215_v17  ;;  %v7207_v56 = vld [vmem:[#allocation4 + $0x128] sm:$0xf0]  ;;  %v9096_v20 = vld [vmem:[#allocation4 + $0x184] sm:$0xf0] }
 0x1f1   :  { %v1500_v55 = vrot.slane %v1480_v40, 7  ;;  %v1489_v38 = vmax.f32 %v1483_v3, 0.0  ;;  %2086 = vmatpush.bf16.msra.mxu0 %v7226_v59  ;;  %v9098_v40 = vld [vmem:[#allocation4 + $0x194] sm:$0xf0]  ;;  %v1442_v3 = vadd.f32 %v1428_v50, %v10596_v39  ;;  %v9095_v47 = vld [vmem:[#allocation4 + $0x184] sm:$0xf] }
 0x1f2   :  { %v1449_v29 = vsel %vm348_vm2, %v1408_v33, %v1448_v46  ;;  %v1454_v41 = vrot.slane %v1369_v0, 2  ;;  %v1544_v22 = vld [vmem:[#allocation2 + $0x30] sm:$0xff]  ;;  %2065 = vmatpush.bf16.msrb.mxu3 %v7270_v1  ;;  %v7262_v21 = vor.u32 %v9098_v40, %v7261_v43  ;;  %v1440_v0 = vadd.f32 %v1429_v24, %v10712_v44  ;;  %v9082_v12 = vld [vmem:[#allocation4 + $0x114] sm:$0xf0]  ;;  %v7199_v51 = vld [vmem:[#allocation4 + $0x118] sm:$0xf0] }
 0x1f3   :  { %v1501_v7 = vsel %vm455_vm3, %v10733_v5, %v1500_v55  ;;  %1514 = vst [vmem:[#allocation2 + $0x48] sm:$0x1] %v1500_v55  ;;  %v10783_v26 = vrot.slane %v1489_v38, 7  ;;  %v1462_v10 = vadd.f32 %v1449_v29, %v10743_v31  ;;  %2111 = vmatpush.bf16.msra.mxu1 %v7274_v34  ;;  %2041 = vmatpush.bf16.msrb.mxu2 %v7214_v49  ;;  %v9083_v38 = vld [vmem:[#allocation4 + $0x124] sm:$0xf] }
 0x1f4   :  { %v1455_v33 = vsel %vm348_vm2, %v1450_v27, %v1454_v41  ;;  %v1467_v8 = vadd.f32 %v1454_v41, %v1443_v35  ;;  %v1299_v45 = vpop.f32.mrf.mxu2  ;;  %v10794_v5 = vpack.c.bf16 %v1501_v7, %v1544_v22  ;;  %v9084_v35 = vld [vmem:[#allocation4 + $0x124] sm:$0xf0]  ;;  %v7210_v44 = vor.u32 %v9083_v38, %v7207_v56  ;;  %v7197_v59 = vld [vmem:[#allocation4 + $0x110] sm:$0xf]  ;;  %v9081_v2 = vld [vmem:[#allocation4 + $0x114] sm:$0xf] }
 0x1f5   :  { %1539 = vst [vmem:[#allocation2 + $0x28] sm:$0xf8] %v10783_v26  ;;  %v1482_v31 = vadd.f32 %v10689_v30, %v1462_v10  ;;  %v1465_v42 = vadd.f32 %v1455_v33, %v1441_v58  ;;  %v1322_v15 = vpop.f32.mrf.mxu3  ;;  %v7206_v50 = vor.u32 %v9084_v35, %v7205_v62  ;;  %2087 = vmatpush.bf16.msra.mxu0 %v7218_v6  ;;  %v7253_v58 = vld [vmem:[#allocation4 + $0x180] sm:$0xf]  ;;  %v7255_v10 = vld [vmem:[#allocation4 + $0x188] sm:$0xf0] }
 0x1f6   :  { %v1487_v4 = vadd.f32 %v10659_v53, %v1467_v8  ;;  %v1323_v27 = vadd.f32 %v1322_v15, %v1299_v45  ;;  %v1347_v18 = vpop.f32.mrf.mxu0  ;;  %1760 = vmatmul.bf16.vlgmr.msra.gmra.mxu2 %v10794_v5  ;;  %1806 = vmatmul.bf16.vlgmr.msrb.gmra.mxu0 %v10794_v5  ;;  %v7254_v8 = vor.u32 %v9096_v20, %v7253_v58  ;;  %v9080_v1 = vld [vmem:[#allocation4 + $0x104] sm:$0xf0]  ;;  %v9079_v32 = vld [vmem:[#allocation4 + $0x104] sm:$0xf]  ;;  %v9142_v49 = vld [vmem:[#allocation4 + $0x2f4] sm:$0xf0] }
 0x1f7   :  { %v1488_v28 = vmax.f32 %v1482_v31, 0.0  ;;  %v1485_v63 = vadd.f32 %v10659_v53, %v1465_v42  ;;  %v1370_v48 = vpop.f32.mrf.mxu1  ;;  %2066 = vmatpush.bf16.msrb.mxu3 %v7262_v21  ;;  %2112 = vmatpush.bf16.msra.mxu1 %v7266_v54  ;;  %v7258_v45 = vor.u32 %v9095_v47, %v7255_v10  ;;  %v7202_v42 = vor.u32 %v9081_v2, %v7199_v51  ;;  %v9141_v6 = vld [vmem:[#allocation4 + $0x2f4] sm:$0xf]  ;;  %v7439_v40 = vld [vmem:[#allocation4 + $0x2f8] sm:$0xf0] }
 0x1f8   :  { %v1493_v13 = vmax.f32 %v1487_v4, 0.0  ;;  %v1452_v19 = vrot.slane %v1323_v27, 2  ;;  %2042 = vmatpush.bf16.msrb.mxu2 %v7206_v50  ;;  %v7191_v4 = vld [vmem:[#allocation4 + $0x108] sm:$0xf0]  ;;  %v7437_v48 = vld [vmem:[#allocation4 + $0x2f0] sm:$0xf]  ;;  %v7442_v21 = vor.u32 %v9141_v6, %v7439_v40 }
 0x1f9   :  { %v1522_v52 = vrot.slane %v1488_v28, 7  ;;  %v1491_v53 = vmax.f32 %v1485_v63, 0.0  ;;  %2088 = vmatpush.bf16.msra.mxu0 %v7210_v44  ;;  %v7194_v16 = vor.u32 %v9079_v32, %v7191_v4  ;;  %v7438_v43 = vor.u32 %v9142_v49, %v7437_v48  ;;  %v9139_v11 = vld [vmem:[#allocation4 + $0x2e4] sm:$0xf]  ;;  %v7373_v54 = vld [vmem:[#allocation4 + $0x270] sm:$0xf] }
 0x1fa   :  { %v1530_v55 = vrot.slane %v1493_v13, 7  ;;  %v1453_v61 = vsel %vm348_vm2, %v1448_v46, %v1452_v19  ;;  %v1466_v39 = vadd.f32 %v1452_v19, %v1442_v3  ;;  %v7429_v3 = vld [vmem:[#allocation4 + $0x2e0] sm:$0xf]  ;;  %v9140_v13 = vld [vmem:[#allocation4 + $0x2e4] sm:$0xf0] }
 0x1fb   :  { %1538 = vst [vmem:[#allocation2 + $0x48] sm:$0xf8] %v1522_v52  ;;  %v1526_v14 = vrot.slane %v1491_v53, 7  ;;  %v1464_v23 = vadd.f32 %v1453_v61, %v1440_v0  ;;  %2067 = vmatpush.bf16.msrb.mxu3 %v7254_v8  ;;  %2113 = vmatpush.bf16.msra.mxu1 %v7258_v45  ;;  %v7430_v0 = vor.u32 %v9140_v13, %v7429_v3  ;;  %v9126_v62 = vld [vmem:[#allocation4 + $0x274] sm:$0xf0] }
 0x1fc   :  { %v1486_v29 = vadd.f32 %v10689_v30, %v1466_v39  ;;  %v1301_v41 = vpop.f32.mrf.mxu2  ;;  %v1549_v22 = vld [vmem:[#allocation2 + $0x28] sm:$0xff]  ;;  %v9125_v35 = vld [vmem:[#allocation4 + $0x274] sm:$0xf]  ;;  %v7375_v61 = vld [vmem:[#allocation4 + $0x278] sm:$0xf0] }
 0x1fd   :  { %v1527_v25 = vsel %vm455_vm3, %v10783_v26, %v1526_v14  ;;  %v1531_v46 = vsel %vm455_vm3, %v1526_v14, %v1530_v55  ;;  %v1484_v60 = vadd.f32 %v10689_v30, %v1464_v23  ;;  %v1324_v7 = vpop.f32.mrf.mxu3  ;;  %v7198_v26 = vor.u32 %v9082_v12, %v7197_v59  ;;  %v7189_v30 = vld [vmem:[#allocation4 + $0x100] sm:$0xf]  ;;  %2089 = vmatpush.bf16.msra.mxu0 %v7202_v42  ;;  %v7421_v39 = vld [vmem:[#allocation4 + $0x2d0] sm:$0xf]  ;;  %v9138_v50 = vld [vmem:[#allocation4 + $0x2d4] sm:$0xf0] }
 0x1fe   :  { %v1492_v24 = vmax.f32 %v1486_v29, 0.0  ;;  %v10814_v33 = vpack.c.bf16 %v1527_v25, %v1549_v22  ;;  %1543 = vst [vmem:[#allocation2 + $0x38] sm:$0x7] %v1531_v46  ;;  %v7190_v57 = vor.u32 %v9080_v1, %v7189_v30  ;;  %v7374_v55 = vor.u32 %v9126_v62, %v7373_v54  ;;  %v9137_v14 = vld [vmem:[#allocation4 + $0x2d4] sm:$0xf] }
 0x1ff   :  { %v1490_v31 = vmax.f32 %v1484_v60, 0.0  ;;  %2043 = vmatpush.bf16.msrb.mxu2 %v7198_v26  ;;  %2345 = vmatpush.bf16.msra.mxu3 %v7438_v43  ;;  %v7378_v38 = vor.u32 %v9125_v35, %v7375_v61  ;;  %v7422_v56 = vor.u32 %v9138_v50, %v7421_v39  ;;  %v7423_v23 = vld [vmem:[#allocation4 + $0x2d8] sm:$0xf0]  ;;  %v7365_v44 = vld [vmem:[#allocation4 + $0x260] sm:$0xf] }
 0x200   :  { %v1528_v15 = vrot.slane %v1492_v24, 7  ;;  %1788 = vmatmul.bf16.gmra.mxu3 %v10814_v33  ;;  %1834 = vmatmul.bf16.gmra.mxu1 %v10814_v33  ;;  %v7426_v58 = vor.u32 %v9137_v14, %v7423_v23  ;;  %v9124_v29 = vld [vmem:[#allocation4 + $0x264] sm:$0xf0]  ;;  %v9123_v41 = vld [vmem:[#allocation4 + $0x264] sm:$0xf] }
 0x201   :  { %v1524_v36 = vrot.slane %v1490_v31, 7  ;;  %2090 = vmatpush.bf16.msra.mxu0 %v7194_v16  ;;  %2391 = vmatpush.bf16.msrb.mxu1 %v7442_v21  ;;  %v7367_v22 = vld [vmem:[#allocation4 + $0x268] sm:$0xf0]  ;;  %v7366_v20 = vor.u32 %v9124_v29, %v7365_v44  ;;  %v7413_v25 = vld [vmem:[#allocation4 + $0x2c0] sm:$0xf] }
 0x202   :  { %v1548_v27 = vld [vmem:[#allocation2 + $0x48] sm:$0xff]  ;;  %v7370_v47 = vor.u32 %v9123_v41, %v7367_v22  ;;  %v9135_v60 = vld [vmem:[#allocation4 + $0x2c4] sm:$0xf]  ;;  %v7357_v10 = vld [vmem:[#allocation4 + $0x250] sm:$0xf] }
 0x203   :  { %v1525_v18 = vsel %vm455_vm3, %v1522_v52, %v1524_v36  ;;  %v1529_v34 = vsel %vm455_vm3, %v1524_v36, %v1528_v15  ;;  %2044 = vmatpush.bf16.msrb.mxu2 %v7190_v57  ;;  %v7434_v52 = vor.u32 %v9139_v11, %v7431_v37  ;;  %2346 = vmatpush.bf16.msra.mxu3 %v7430_v0  ;;  %v9136_v46 = vld [vmem:[#allocation4 + $0x2c4] sm:$0xf0]  ;;  %v7415_v7 = vld [vmem:[#allocation4 + $0x2c8] sm:$0xf0]  ;;  %v9122_v59 = vld [vmem:[#allocation4 + $0x254] sm:$0xf0] }
 0x204   :  { %v10820_v17 = vpack.c.bf16 %v1525_v18, %v1548_v27  ;;  %1542 = vst [vmem:[#allocation2 + $0x40] sm:$0x7] %v1529_v34  ;;  %v7414_v12 = vor.u32 %v9136_v46, %v7413_v25  ;;  %v7418_v24 = vor.u32 %v9135_v60, %v7415_v7  ;;  %v9121_v8 = vld [vmem:[#allocation4 + $0x254] sm:$0xf]  ;;  %v7359_v45 = vld [vmem:[#allocation4 + $0x258] sm:$0xf0]  ;;  %v7358_v2 = vor.u32 %v9122_v59, %v7357_v10 }
 0x205   :  { %v1553_v28 = vld [vmem:[#allocation2 + $0x38] sm:$0xf]  ;;  %2392 = vmatpush.bf16.msrb.mxu1 %v7434_v52  ;;  %2368 = vmatpush.bf16.msrb.mxu0 %v7378_v38  ;;  %v7362_v51 = vor.u32 %v9121_v8, %v7359_v45  ;;  %v7405_v31 = vld [vmem:[#allocation4 + $0x2b0] sm:$0xf]  ;;  %v9133_v42 = vld [vmem:[#allocation4 + $0x2b4] sm:$0xf] }
 0x206   :  { %1765 = vmatmul.bf16.gmra.mxu2 %v10820_v17  ;;  %1811 = vmatmul.bf16.gmra.mxu0 %v10820_v17  ;;  %v10824_v63 = vpack.c.bf16 %v1553_v28, %v1553_v28  ;;  %v9134_v26 = vld [vmem:[#allocation4 + $0x2b4] sm:$0xf0]  ;;  %v7407_v30 = vld [vmem:[#allocation4 + $0x2b8] sm:$0xf0]  ;;  %v7349_v1 = vld [vmem:[#allocation4 + $0x240] sm:$0xf] }
 0x207   :  { %2322 = vmatpush.bf16.msra.mxu2 %v7374_v55  ;;  %2347 = vmatpush.bf16.msra.mxu3 %v7422_v56  ;;  %v7406_v15 = vor.u32 %v9134_v26, %v7405_v31  ;;  %v9120_v36 = vld [vmem:[#allocation4 + $0x244] sm:$0xf0]  ;;  %v7410_v32 = vor.u32 %v9133_v42, %v7407_v30  ;;  %v9119_v27 = vld [vmem:[#allocation4 + $0x244] sm:$0xf]  ;;  %v7351_v18 = vld [vmem:[#allocation4 + $0x248] sm:$0xf0] }
 0x208   :  { %v7350_v4 = vor.u32 %v9120_v36, %v7349_v1  ;;  %v7397_v34 = vld [vmem:[#allocation4 + $0x2a0] sm:$0xf]  ;;  %v7354_v57 = vor.u32 %v9119_v27, %v7351_v18  ;;  %v9132_v16 = vld [vmem:[#allocation4 + $0x2a4] sm:$0xf0]  ;;  %v9131_v28 = vld [vmem:[#allocation4 + $0x2a4] sm:$0xf] }
 0x209   :  { %2393 = vmatpush.bf16.msrb.mxu1 %v7426_v58  ;;  %2369 = vmatpush.bf16.msrb.mxu0 %v7370_v47  ;;  %v7399_v48 = vld [vmem:[#allocation4 + $0x2a8] sm:$0xf0]  ;;  %v7398_v49 = vor.u32 %v9132_v16, %v7397_v34  ;;  %v7341_v43 = vld [vmem:[#allocation4 + $0x230] sm:$0xf]  ;;  %v9118_v40 = vld [vmem:[#allocation4 + $0x234] sm:$0xf0] }
 0x20a   :  { %v7402_v6 = vor.u32 %v9131_v28, %v7399_v48  ;;  %v9117_v3 = vld [vmem:[#allocation4 + $0x234] sm:$0xf]  ;;  %v7342_v13 = vor.u32 %v9118_v40, %v7341_v43  ;;  %v7389_v21 = vld [vmem:[#allocation4 + $0x290] sm:$0xf]  ;;  %v9130_v11 = vld [vmem:[#allocation4 + $0x294] sm:$0xf0] }
 0x20b   :  { %v1552_v19 = vld [vmem:[#allocation2 + $0x40] sm:$0xf]  ;;  %2323 = vmatpush.bf16.msra.mxu2 %v7366_v20  ;;  %2348 = vmatpush.bf16.msra.mxu3 %v7414_v12  ;;  %v7390_v0 = vor.u32 %v9130_v11, %v7389_v21  ;;  %v9129_v52 = vld [vmem:[#allocation4 + $0x294] sm:$0xf]  ;;  %v7391_v54 = vld [vmem:[#allocation4 + $0x298] sm:$0xf0] }
 0x20c   :  { %v10828_v53 = vpack.c.bf16 %v1552_v19, %v1552_v19  ;;  %v7343_v19 = vld [vmem:[#allocation4 + $0x238] sm:$0xf0]  ;;  %v7333_v62 = vld [vmem:[#allocation4 + $0x220] sm:$0xf]  ;;  %v7394_v35 = vor.u32 %v9129_v52, %v7391_v54  ;;  %v9116_v55 = vld [vmem:[#allocation4 + $0x224] sm:$0xf0] }
 0x20d   :  { %2394 = vmatpush.bf16.msrb.mxu1 %v7418_v24  ;;  %2370 = vmatpush.bf16.msrb.mxu0 %v7362_v51  ;;  %v7346_v37 = vor.u32 %v9117_v3, %v7343_v19  ;;  %v9115_v61 = vld [vmem:[#allocation4 + $0x224] sm:$0xf]  ;;  %v7335_v39 = vld [vmem:[#allocation4 + $0x228] sm:$0xf0]  ;;  %v7334_v50 = vor.u32 %v9116_v55, %v7333_v62  ;;  %v7381_v56 = vld [vmem:[#allocation4 + $0x280] sm:$0xf] }
 0x20e   :  { %v7338_v38 = vor.u32 %v9115_v61, %v7335_v39  ;;  %v9128_v14 = vld [vmem:[#allocation4 + $0x284] sm:$0xf0]  ;;  %v9127_v23 = vld [vmem:[#allocation4 + $0x284] sm:$0xf]  ;;  %v7383_v44 = vld [vmem:[#allocation4 + $0x288] sm:$0xf0] }
 0x20f   :  { %2324 = vmatpush.bf16.msra.mxu2 %v7358_v2  ;;  %2349 = vmatpush.bf16.msra.mxu3 %v7406_v15  ;;  %v7325_v58 = vld [vmem:[#allocation4 + $0x210] sm:$0xf]  ;;  %v9114_v29 = vld [vmem:[#allocation4 + $0x214] sm:$0xf0]  ;;  %v7382_v41 = vor.u32 %v9128_v14, %v7381_v56  ;;  %v7386_v22 = vor.u32 %v9127_v23, %v7383_v44  ;;  %v9113_v20 = vld [vmem:[#allocation4 + $0x214] sm:$0xf] }
 0x210   :  { %1793 = vmatmul.bf16.gmra.mxu3 %v10824_v63  ;;  %1839 = vmatmul.bf16.gmra.mxu1 %v10824_v63  ;;  %v7327_v47 = vld [vmem:[#allocation4 + $0x218] sm:$0xf0]  ;;  %v7326_v25 = vor.u32 %v9114_v29, %v7325_v58  ;;  %v7317_v60 = vld [vmem:[#allocation4 + $0x200] sm:$0xf]  ;;  %v9112_v7 = vld [vmem:[#allocation4 + $0x204] sm:$0xf0] }
 0x211   :  { %2395 = vmatpush.bf16.msrb.mxu1 %v7410_v32  ;;  %2371 = vmatpush.bf16.msrb.mxu0 %v7354_v57  ;;  %v7330_v46 = vor.u32 %v9113_v20, %v7327_v47  ;;  %v9111_v10 = vld [vmem:[#allocation4 + $0x204] sm:$0xf]  ;;  %v7318_v59 = vor.u32 %v9112_v7, %v7317_v60  ;;  %v7319_v12 = vld [vmem:[#allocation4 + $0x208] sm:$0xf0] }
 0x212   :  { %v7322_v24 = vor.u32 %v9111_v10, %v7319_v12 }
 0x213   :  { %2325 = vmatpush.bf16.msra.mxu2 %v7350_v4  ;;  %2350 = vmatpush.bf16.msra.mxu3 %v7398_v49 }
 0x215   :  { %2396 = vmatpush.bf16.msrb.mxu1 %v7402_v6  ;;  %2372 = vmatpush.bf16.msrb.mxu0 %v7346_v37 }
 0x216   :  { %1770 = vmatmul.bf16.gmra.mxu2 %v10828_v53  ;;  %1816 = vmatmul.bf16.gmra.mxu0 %v10828_v53 }
 0x217   :  { %2326 = vmatpush.bf16.msra.mxu2 %v7342_v13  ;;  %2351 = vmatpush.bf16.msra.mxu3 %v7390_v0 }
 0x219   :  { %2397 = vmatpush.bf16.msrb.mxu1 %v7394_v35  ;;  %2373 = vmatpush.bf16.msrb.mxu0 %v7338_v38 }
 0x21b   :  { %2327 = vmatpush.bf16.msra.mxu2 %v7334_v50  ;;  %2352 = vmatpush.bf16.msra.mxu3 %v7382_v41 }
 0x21d   :  { %2398 = vmatpush.bf16.msrb.mxu1 %v7386_v22  ;;  %2374 = vmatpush.bf16.msrb.mxu0 %v7330_v46 }
 0x21f   :  { %2328 = vmatpush.bf16.msra.mxu2 %v7326_v25 }
 0x220   :  { %2068 = vmatmul.bf16.vlgmr.msrb.gmra.mxu3 %v10765_v9  ;;  %2114 = vmatmul.bf16.vlgmr.msra.gmra.mxu1 %v10765_v9 }
 0x221   :  { %2375 = vmatpush.bf16.msrb.mxu0 %v7322_v24 }
 0x223   :  { %2329 = vmatpush.bf16.msra.mxu2 %v7318_v59 }
 0x226   :  { %2045 = vmatmul.bf16.vlgmr.msrb.gmra.mxu2 %v10794_v5  ;;  %2091 = vmatmul.bf16.vlgmr.msra.gmra.mxu0 %v10794_v5 }
 0x230   :  { %2073 = vmatmul.bf16.gmra.mxu3 %v10814_v33  ;;  %2119 = vmatmul.bf16.gmra.mxu1 %v10814_v33 }
 0x236   :  { %2050 = vmatmul.bf16.gmra.mxu2 %v10820_v17  ;;  %2096 = vmatmul.bf16.gmra.mxu0 %v10820_v17 }
 0x240   :  { %2078 = vmatmul.bf16.gmra.mxu3 %v10824_v63  ;;  %2124 = vmatmul.bf16.gmra.mxu1 %v10824_v63 }
 0x246   :  { %2055 = vmatmul.bf16.gmra.mxu2 %v10828_v53  ;;  %2101 = vmatmul.bf16.gmra.mxu0 %v10828_v53 }
 0x250   :  { %2353 = vmatmul.bf16.vlgmr.msra.gmra.mxu3 %v10765_v9  ;;  %2399 = vmatmul.bf16.vlgmr.msrb.gmra.mxu1 %v10765_v9 }
 0x256   :  { %2330 = vmatmul.bf16.vlgmr.msra.gmra.mxu2 %v10794_v5  ;;  %2376 = vmatmul.bf16.vlgmr.msrb.gmra.mxu0 %v10794_v5 }
 0x260   :  { %2358 = vmatmul.bf16.gmra.mxu3 %v10814_v33  ;;  %2404 = vmatmul.bf16.gmra.mxu1 %v10814_v33 }
 0x266   :  { %2335 = vmatmul.bf16.gmra.mxu2 %v10820_v17  ;;  %2381 = vmatmul.bf16.gmra.mxu0 %v10820_v17 }
 0x26d   :  { %v10852_v8 = vpop.f32.mrf.mxu1 }
 0x270   :  { %2363 = vmatmul.bf16.gmra.mxu3 %v10824_v63  ;;  %2409 = vmatmul.bf16.gmra.mxu1 %v10824_v63 }
 0x273   :  { %v1784_v45 = vpop.f32.mrf.mxu3  ;;  %v10856_v9 = vpop.f32.mrf.mxu0 }
 0x275   :  { %v1832_v2 = vpop.f32.mrf.mxu1 }
 0x276   :  { %2340 = vmatmul.bf16.gmra.mxu2 %v10828_v53  ;;  %2386 = vmatmul.bf16.gmra.mxu0 %v10828_v53 }
 0x279   :  { %v1761_v5 = vpop.f32.mrf.mxu2 }
 0x27a   :  { %v1785_v33 = vadd.f32 %v1784_v45, %v1761_v5 }
 0x27b   :  { %v10860_v51 = vpop.f32.mrf.mxu3  ;;  %v1809_v31 = vpop.f32.mrf.mxu0 }
 0x27c   :  { %v10862_v17 = vadd.f32 %v1832_v2, %v1809_v31 }
 0x27d   :  { %v10864_v26 = vpop.f32.mrf.mxu1 }
 0x281   :  { %v10866_v42 = vpop.f32.mrf.mxu2 }
 0x283   :  { %v1789_v63 = vpop.f32.mrf.mxu3  ;;  %v10868_v15 = vpop.f32.mrf.mxu0 }
 0x285   :  { %v1837_v30 = vpop.f32.mrf.mxu1 }
 0x289   :  { %v1766_v1 = vpop.f32.mrf.mxu2 }
 0x28a   :  { %v10870_v36 = vadd.f32 %v1789_v63, %v1766_v1 }
 0x28b   :  { %v10872_v32 = vpop.f32.mrf.mxu3  ;;  %v1814_v53 = vpop.f32.mrf.mxu0 }
 0x28c   :  { %v10874_v4 = vadd.f32 %v1837_v30, %v1814_v53 }
 0x28d   :  { %v10876_v27 = vpop.f32.mrf.mxu1 }
 0x291   :  { %v10878_v18 = vpop.f32.mrf.mxu2 }
 0x293   :  { %v1794_v34 = vpop.f32.mrf.mxu3  ;;  %v10880_v57 = vpop.f32.mrf.mxu0 }
 0x295   :  { %v1842_v16 = vpop.f32.mrf.mxu1 }
 0x299   :  { %v1771_v28 = vpop.f32.mrf.mxu2 }
 0x29a   :  { %v10882_v48 = vadd.f32 %v1794_v34, %v1771_v28 }
 0x29b   :  { %v1796_v49 = vpop.f32.mrf.mxu3  ;;  %v1819_v6 = vpop.f32.mrf.mxu0 }
 0x29d   :  { %v2115_v43 = vpop.f32.mrf.mxu1 }
 0x2a1   :  { %v1773_v40 = vpop.f32.mrf.mxu2 }
 0x2a3   :  { %v2069_v3 = vpop.f32.mrf.mxu3  ;;  %v2092_v13 = vpop.f32.mrf.mxu0 }
 0x2a4   :  { %v2116_v63 = vadd.f32 %v2115_v43, %v2092_v13 }
 0x2a5   :  { %v2117_v19 = vpop.f32.mrf.mxu1 }
 0x2a6   :  { %v2423_v49 = vrot.slane %v2116_v63, 1 }
 0x2a9   :  { %v2046_v21 = vpop.f32.mrf.mxu2 }
 0x2aa   :  { %v2070_v11 = vadd.f32 %v2069_v3, %v2046_v21 }
 0x2ab   :  { %v2071_v37 = vpop.f32.mrf.mxu3  ;;  %v2094_v0 = vpop.f32.mrf.mxu0 }
 0x2ac   :  { %v2420_v61 = vrot.slane %v2070_v11, 1 }
 0x2ad   :  { %v2120_v52 = vpop.f32.mrf.mxu1 }
 0x2b1   :  { %v2048_v54 = vpop.f32.mrf.mxu2 }
 0x2b2   :  { %v2072_v62 = vadd.f32 %v2071_v37, %v2048_v54  ;;  %v1831_v54 = vadd.f32 %v10852_v8, %v10856_v9 }
 0x2b3   :  { %v2074_v35 = vpop.f32.mrf.mxu3  ;;  %v2097_v55 = vpop.f32.mrf.mxu0 }
 0x2b4   :  { %v2421_v39 = vrot.slane %v2072_v62, 1  ;;  %v10895_v5 = vadd.f32 %v2120_v52, %v2097_v55 }
 0x2b5   :  { %v2122_v50 = vpop.f32.mrf.mxu1 }
 0x2b6   :  { %v2422_v38 = vsel %vm323_vm1, %v2420_v61, %v2421_v39  ;;  %v2428_v30 = vrot.slane %v10895_v5, 1 }
 0x2b7   :  { %v10885_v56 = vadd.f32 %v2422_v38, %v1785_v33  ;;  %v2118_v33 = vadd.f32 %v2117_v19, %v2094_v0 }
 0x2b9   :  { %v2051_v14 = vpop.f32.mrf.mxu2  ;;  %v2424_v53 = vrot.slane %v2118_v33, 1 }
 0x2ba   :  { %v10898_v16 = vadd.f32 %v2074_v35, %v2051_v14 }
 0x2bb   :  { %v10887_v23 = vpop.f32.mrf.mxu3  ;;  %v2099_v44 = vpop.f32.mrf.mxu0  ;;  %v2429_v3 = vsel %vm323_vm1, %v2424_v53, %v2428_v30  ;;  %v2425_v37 = vsel %vm323_vm1, %v2423_v49, %v2424_v53  ;;  %v1841_v53 = vadd.f32 %v10876_v27, %v10880_v57 }
 0x2bc   :  { %v2426_v43 = vrot.slane %v10898_v16, 1  ;;  %v2437_v62 = vadd.f32 %v2429_v3, %v10862_v17 }
 0x2bd   :  { %v2125_v58 = vpop.f32.mrf.mxu1 }
 0x2c1   :  { %v10889_v29 = vpop.f32.mrf.mxu2 }
 0x2c3   :  { %v10891_v41 = vpop.f32.mrf.mxu3  ;;  %v2102_v22 = vpop.f32.mrf.mxu0 }
 0x2c5   :  { %v2127_v20 = vpop.f32.mrf.mxu1 }
 0x2c6   :  { %v2435_v20 = vadd.f32 %v2425_v37, %v1831_v54 }
 0x2c9   :  { %v10893_v47 = vpop.f32.mrf.mxu2 }
 0x2cb   :  { %v2081_v25 = vpop.f32.mrf.mxu3  ;;  %v2104_v46 = vpop.f32.mrf.mxu0 }
 0x2cc   :  { %v2427_v25 = vsel %vm323_vm1, %v2421_v39, %v2426_v43 }
 0x2cd   :  { %v2400_v60 = vpop.f32.mrf.mxu1 }
 0x2d1   :  { %v2058_v7 = vpop.f32.mrf.mxu2 }
 0x2d2   :  { %v1787_v7 = vadd.f32 %v10860_v51, %v10866_v42 }
 0x2d3   :  { %v2354_v10 = vpop.f32.mrf.mxu3  ;;  %v2377_v59 = vpop.f32.mrf.mxu0 }
 0x2d4   :  { %v2401_v28 = vadd.f32 %v2400_v60, %v2377_v59  ;;  %v2123_v59 = vadd.f32 %v2122_v50, %v2099_v44  ;;  %v2077_v50 = vadd.f32 %v10887_v23, %v10889_v29 }
 0x2d5   :  { %v2402_v12 = vpop.f32.mrf.mxu1 }
 0x2d6   :  { %v2447_v13 = vrot.slane %v2401_v28, 2  ;;  %v2466_v29 = vrot.slane %v2077_v50, 1  ;;  %v2651_v50 = vld [vmem:[%s12340_s24 + $0x58] sm:$0xff] }
 0x2d9   :  { %v2331_v24 = vpop.f32.mrf.mxu2 }
 0x2da   :  { %v2355_v35 = vadd.f32 %v2354_v10, %v2331_v24  ;;  %v10916_v10 = vld [vmem:[%s12306_s10] sm:$0xff]  ;;  %s12342_s10 = sld [smem:[#allocation22_spill]] }
 0x2db   :  { %v2356_v45 = vpop.f32.mrf.mxu3  ;;  %v2379_v2 = vpop.f32.mrf.mxu0 }
 0x2dc   :  { %v2403_v1 = vadd.f32 %v2402_v12, %v2379_v2  ;;  %v2126_v12 = vadd.f32 %v2125_v58, %v2102_v22  ;;  %v2444_v24 = vrot.slane %v2355_v35, 2  ;;  %v2436_v2 = vadd.f32 %v2427_v25, %v1787_v7 }
 0x2dd   :  { %v2405_v31 = vpop.f32.mrf.mxu1  ;;  %v2080_v22 = vadd.f32 %v10891_v41, %v10893_v47 }
 0x2de   :  { %v2448_v21 = vrot.slane %v2403_v1, 2  ;;  %v2472_v63 = vrot.slane %v2126_v12, 1 }
 0x2df   :  { %v2470_v3 = vrot.slane %v2080_v22, 1  ;;  %v11036_v22 = vld [vmem:[%s12340_s24 + $0xb8] sm:$0xff] }
 0x2e0   :  { %v2449_v61 = vsel %vm348_vm2, %v2447_v13, %v2448_v21  ;;  %v2485_v47 = vadd.f32 %v2472_v63, %v1841_v53  ;;  %v11048_v53 = vld [vmem:[%s12340_s24 + $0xb0] sm:$0xff]  ;;  %s6554_s30 = sshll.u32 %s12342_s10, 4  ;;  %s6555_s30 = int_to_ptr.hbm [resolvable:$true] %s6554_s30 }
 0x2e1   :  { %v2333_v34 = vpop.f32.mrf.mxu2  ;;  %v2459_v17 = vadd.f32 %v2449_v61, %v2435_v20 }
 0x2e2   :  { %v2357_v0 = vadd.f32 %v2356_v45, %v2333_v34 }
 0x2e3   :  { %v2359_v6 = vpop.f32.mrf.mxu3  ;;  %v2382_v40 = vpop.f32.mrf.mxu0 }
 0x2e4   :  { %v2406_v11 = vadd.f32 %v2405_v31, %v2382_v40  ;;  %v2445_v46 = vrot.slane %v2357_v0, 2  ;;  %v2468_v31 = vrot.slane %v2123_v59, 1  ;;  %v10960_v59 = vld [vmem:[%s12340_s24 + $0xf0] sm:$0xff] }
 0x2e5   :  { %v2407_v19 = vpop.f32.mrf.mxu1 }
 0x2e6   :  { %v2452_v52 = vrot.slane %v2406_v11, 2  ;;  %v2446_v51 = vsel %vm348_vm2, %v2444_v24, %v2445_v46  ;;  %v2469_v49 = vsel %vm323_vm1, %v2428_v30, %v2468_v31 }
 0x2e7   :  { %v2458_v58 = vadd.f32 %v2446_v51, %v10885_v56  ;;  %v1836_v56 = vadd.f32 %v10864_v26, %v10868_v15  ;;  %v2467_v26 = vsel %vm323_vm1, %v2426_v43, %v2466_v29  ;;  %v2471_v15 = vsel %vm323_vm1, %v2466_v29, %v2470_v3  ;;  %v10994_v51 = vld [vmem:[%s12340_s24 + $0xd8] sm:$0xff]  ;;  %v11096_v29 = vld [vmem:[%s12340_s24 + $0x90] sm:$0xff] }
 0x2e8   :  { %v2453_v55 = vsel %vm348_vm2, %v2448_v21, %v2452_v52  ;;  %v2480_v25 = vadd.f32 %v2467_v26, %v10870_v36 }
 0x2e9   :  { %v2336_v38 = vpop.f32.mrf.mxu2  ;;  %v2461_v14 = vadd.f32 %v2453_v55, %v2437_v62  ;;  %v2481_v21 = vadd.f32 %v2469_v49, %v1836_v56  ;;  %v11067_v49 = vld [vmem:[%s12340_s24 + $0x38] sm:$0xff]  ;;  %v11091_v56 = vld [vmem:[%s12340_s24 + $0x28] sm:$0xff] }
 0x2ea   :  { %v2360_v60 = vadd.f32 %v2359_v6, %v2336_v38  ;;  %v2473_v6 = vsel %vm323_vm1, %v2468_v31, %v2472_v63  ;;  %v2484_v38 = vadd.f32 %v2470_v3, %v10882_v48  ;;  %v10953_v48 = vld [vmem:[%s12340_s24 + $0xf8] sm:$0xff]  ;;  %v11011_v31 = vld [vmem:[%s12340_s24 + $0x60] sm:$0xff]  ;;  %v11016_v63 = vld [vmem:[%s12340_s24 + $0xc8] sm:$0xff] }
 0x2eb   :  { %v2361_v8 = vpop.f32.mrf.mxu3  ;;  %v2384_v9 = vpop.f32.mrf.mxu0  ;;  %2548 = vmatpush.msrb.mxu3 %v2461_v14  ;;  %v2483_v30 = vadd.f32 %v2473_v6, %v10874_v4  ;;  %v11072_v6 = vld [vmem:[%s12340_s24 + $0xa0] sm:$0xff]  ;;  %v11115_v3 = vld [vmem:[%s12340_s24 + $0x18] sm:$0xff] }
 0x2ec   :  { %v2450_v45 = vrot.slane %v2360_v60, 2  ;;  %v2408_v33 = vadd.f32 %v2407_v19, %v2384_v9 }
 0x2ed   :  { %v2410_v39 = vpop.f32.mrf.mxu1  ;;  %2549 = vmatpush.msrb.mxu3 %v2459_v17 }
 0x2ee   :  { %v2451_v5 = vsel %vm348_vm2, %v2445_v46, %v2450_v45  ;;  %7444 = vmatmul.msk.f32.vlgmr.msrb.gmra.mxu3 %vm143_vm0, %v10916_v10  ;;  %v2492_v1 = vrot.slane %v2408_v33, 2  ;;  %v10989_v33 = vld [vmem:[%s12340_s24 + $0x70] sm:$0xff] }
 0x2ef   :  { %v2460_v42 = vadd.f32 %v2451_v5, %v2436_v2  ;;  %v10979_v5 = vld [vmem:[%s12340_s24 + $0xe0] sm:$0xff] }
 0x2f0   :  { %v2493_v27 = vsel %vm348_vm2, %v2452_v52, %v2492_v1  ;;  %v1792_v52 = vadd.f32 %v10872_v32, %v10878_v18 }
 0x2f1   :  { %v2338_v44 = vpop.f32.mrf.mxu2  ;;  %2528 = vmatpush.msrb.mxu2 %v2460_v42  ;;  %v2505_v13 = vadd.f32 %v2493_v27, %v2481_v21  ;;  %v10999_v42 = vld [vmem:[%s12340_s24 + $0x68] sm:$0xff]  ;;  %v11120_v27 = vld [vmem:[%s12340_s24 + $0x80] sm:$0xff] }
 0x2f2   :  { %v2362_v40 = vadd.f32 %v2361_v8, %v2338_v44  ;;  %v2482_v16 = vadd.f32 %v2471_v15, %v1792_v52  ;;  %v2664_v44 = vld [vmem:[%s12340_s24 + $0xc0] sm:$0xff]  ;;  %v11134_v21 = vld [vmem:[%s12340_s24 + $0x8] sm:$0xff] }
 0x2f3   :  { %v2364_v34 = vpop.f32.mrf.mxu3  ;;  %v2387_v28 = vpop.f32.mrf.mxu0  ;;  %2529 = vmatpush.msrb.mxu2 %v2458_v58  ;;  %v2563_v46 = vrot.slane %v2505_v13, 2  ;;  %v11031_v58 = vld [vmem:[%s12340_s24 + $0x50] sm:$0xff] }
 0x2f4   :  { %v2411_v23 = vadd.f32 %v2410_v39, %v2387_v28  ;;  %7443 = vmatmul.msk.f32.vlgmr.msrb.gmra.mxu2 %vm143_vm0, %v10916_v10  ;;  %v2490_v11 = vrot.slane %v2362_v40, 2  ;;  %v10974_v39 = vld [vmem:[%s12340_s24 + $0x78] sm:$0xff]  ;;  %v11060_v28 = vld [vmem:[%s12340_s24 + $0xa8] sm:$0xff]  ;;  %v11079_v40 = vld [vmem:[%s12340_s24 + $0x30] sm:$0xff] }
 0x2f5   :  { %v2412_v41 = vpop.f32.mrf.mxu1 }
 0x2f6   :  { %v2496_v57 = vrot.slane %v2411_v23, 2  ;;  %v2491_v14 = vsel %vm348_vm2, %v2450_v45, %v2490_v11  ;;  %v10967_v45 = vld [vmem:[%s12340_s24 + $0xe8] sm:$0xff]  ;;  %v11084_v23 = vld [vmem:[%s12340_s24 + $0x98] sm:$0xff]  ;;  %v11103_v41 = vld [vmem:[%s12340_s24 + $0x20] sm:$0xff] }
 0x2f7   :  { %v2504_v18 = vadd.f32 %v2491_v14, %v2480_v25 }
 0x2f8   :  { %v2497_v37 = vsel %vm348_vm2, %v2492_v1, %v2496_v57  ;;  %v2509_v19 = vadd.f32 %v2496_v57, %v2485_v47  ;;  %v11043_v1 = vld [vmem:[%s12340_s24 + $0x48] sm:$0xff]  ;;  %v11127_v57 = vld [vmem:[%s12340_s24 + $0x10] sm:$0xff] }
 0x2f9   :  { %v2507_v0 = vadd.f32 %v2497_v37, %v2483_v30  ;;  %v2341_v54 = vpop.f32.mrf.mxu2  ;;  %v2560_v24 = vrot.slane %v2504_v18, 2  ;;  %v11108_v47 = vld [vmem:[%s12340_s24 + $0x88] sm:$0xff]  ;;  %v11141_v30 = vld [vmem:[%s12340_s24] sm:$0xff]  ;;  %v11150_v37 = vld [vmem:[%s12341_s3 + $0x30] sm:$0xff] }
 0x2fa   :  { %v2568_v62 = vrot.slane %v2509_v19, 2  ;;  %v2365_v35 = vadd.f32 %v2364_v34, %v2341_v54  ;;  %v11055_v34 = vld [vmem:[%s12340_s24 + $0x40] sm:$0xff]  ;;  %v11155_v19 = vld [vmem:[%s12341_s3 + $0x38] sm:$0xff]  ;;  %2737 = vmatpush.msra.mxu0 %v11150_v37 }
 0x2fb   :  { %v2366_v55 = vpop.f32.mrf.mxu3  ;;  %v2389_v4 = vpop.f32.mrf.mxu0  ;;  %v2564_v61 = vrot.slane %v2507_v0, 2  ;;  %2757 = vmatpush.msra.mxu1 %v11155_v19 }
 0x2fc   :  { %v2494_v20 = vrot.slane %v2365_v35, 2 }
 0x2fd   :  { %v2569_v43 = vsel %vm348_vm2, %v2564_v61, %v2568_v62  ;;  %v2565_v32 = vsel %vm348_vm2, %v2563_v46, %v2564_v61 }
 0x2fe   :  { %v2495_v60 = vsel %vm348_vm2, %v2490_v11, %v2494_v20  ;;  %v2508_v7 = vadd.f32 %v2494_v20, %v2484_v38  ;;  %2608 = vmatpush.msra.mxu3 %v2569_v43 }
 0x2ff   :  { %v2506_v8 = vadd.f32 %v2495_v60, %v2482_v16 }
 0x300   :  { %v2566_v9 = vrot.slane %v2508_v7, 2  ;;  %2609 = vmatpush.msra.mxu3 %v2565_v32 }
 0x301   :  { %v2561_v36 = vrot.slane %v2506_v8, 2  ;;  %v2343_v17 = vpop.f32.mrf.mxu2  ;;  %7446 = vmatmul.msk.f32.vlgmr.msra.gmra.mxu3 %vm143_vm0, %v10916_v10 }
 0x302   :  { %2692 = vmatpush.msrb.mxu3 %v10953_v48 }
 0x303   :  { %v2567_v12 = vsel %vm348_vm2, %v2561_v36, %v2566_v9  ;;  %v2562_v2 = vsel %vm348_vm2, %v2560_v24, %v2561_v36  ;;  %v2717_v24 = vld [vmem:[%s12341_s3 + $0x20] sm:$0xff] }
 0x304   :  { %2588 = vmatpush.msra.mxu2 %v2567_v12  ;;  %2693 = vmatpush.msrb.mxu3 %v10960_v59 }
 0x305   :  { %2738 = vmatpush.msra.mxu0 %v2717_v24 }
 0x306   :  { %2589 = vmatpush.msra.mxu2 %v2562_v2  ;;  %2694 = vmatpush.msrb.mxu3 %v10967_v45  ;;  %v2715_v2 = vld [vmem:[%s12341_s3 + $0x10] sm:$0xff] }
 0x307   :  { %7445 = vmatmul.msk.f32.vlgmr.msra.gmra.mxu2 %vm143_vm0, %v10916_v10  ;;  %v11006_v10 = vld [vmem:[%s12340_s24 + $0xd0] sm:$0xff]  ;;  %2739 = vmatpush.msra.mxu0 %v2715_v2 }
 0x308   :  { %2672 = vmatpush.msrb.mxu2 %v10974_v39  ;;  %2695 = vmatpush.msrb.mxu3 %v10979_v5 }
 0x30a   :  { %2673 = vmatpush.msrb.mxu2 %v10989_v33  ;;  %2696 = vmatpush.msrb.mxu3 %v10994_v51 }
 0x30c   :  { %2674 = vmatpush.msrb.mxu2 %v10999_v42  ;;  %2697 = vmatpush.msrb.mxu3 %v11006_v10 }
 0x30e   :  { %2675 = vmatpush.msrb.mxu2 %v11011_v31  ;;  %2698 = vmatpush.msrb.mxu3 %v11016_v63 }
 0x310   :  { %2676 = vmatpush.msrb.mxu2 %v2651_v50  ;;  %2699 = vmatpush.msrb.mxu3 %v2664_v44 }
 0x312   :  { %2677 = vmatpush.msrb.mxu2 %v11031_v58  ;;  %2700 = vmatpush.msrb.mxu3 %v11036_v22 }
 0x314   :  { %2678 = vmatpush.msrb.mxu2 %v11043_v1  ;;  %2701 = vmatpush.msrb.mxu3 %v11048_v53 }
 0x316   :  { %2679 = vmatpush.msrb.mxu2 %v11055_v34  ;;  %2702 = vmatpush.msrb.mxu3 %v11060_v28 }
 0x318   :  { %2680 = vmatpush.msrb.mxu2 %v11067_v49  ;;  %2703 = vmatpush.msrb.mxu3 %v11072_v6 }
 0x31a   :  { %2681 = vmatpush.msrb.mxu2 %v11079_v40  ;;  %2704 = vmatpush.msrb.mxu3 %v11084_v23 }
 0x31c   :  { %2682 = vmatpush.msrb.mxu2 %v11091_v56  ;;  %2705 = vmatpush.msrb.mxu3 %v11096_v29 }
 0x31e   :  { %2683 = vmatpush.msrb.mxu2 %v11103_v41  ;;  %2706 = vmatpush.msrb.mxu3 %v11108_v47 }
 0x320   :  { %2684 = vmatpush.msrb.mxu2 %v11115_v3  ;;  %2707 = vmatpush.msrb.mxu3 %v11120_v27 }
 0x322   :  { %2821 = vmatpush.msra.mxu3 %v10953_v48  ;;  %2685 = vmatpush.msrb.mxu2 %v11127_v57 }
 0x324   :  { %2822 = vmatpush.msra.mxu3 %v10960_v59  ;;  %2686 = vmatpush.msrb.mxu2 %v11134_v21 }
 0x326   :  { %2823 = vmatpush.msra.mxu3 %v10967_v45  ;;  %2687 = vmatpush.msrb.mxu2 %v11141_v30  ;;  %v2718_v45 = vld [vmem:[%s12341_s3 + $0x28] sm:$0xff] }
 0x327   :  { %2758 = vmatpush.msra.mxu1 %v2718_v45 }
 0x328   :  { %2801 = vmatpush.msra.mxu2 %v10974_v39  ;;  %2824 = vmatpush.msra.mxu3 %v10979_v5  ;;  %v2716_v39 = vld [vmem:[%s12341_s3 + $0x18] sm:$0xff]  ;;  %v2713_v5 = vld [vmem:[%s12341_s3] sm:$0xff] }
 0x329   :  { %2759 = vmatpush.msra.mxu1 %v2716_v39  ;;  %2740 = vmatpush.msra.mxu0 %v2713_v5 }
 0x32a   :  { %2802 = vmatpush.msra.mxu2 %v10989_v33  ;;  %2825 = vmatpush.msra.mxu3 %v10994_v51  ;;  %v2714_v33 = vld [vmem:[%s12341_s3 + $0x8] sm:$0xff] }
 0x32b   :  { %2760 = vmatpush.msra.mxu1 %v2714_v33  ;;  %2870 = vmatpush.msrb.mxu0 %v11150_v37 }
 0x32c   :  { %2803 = vmatpush.msra.mxu2 %v10999_v42  ;;  %2826 = vmatpush.msra.mxu3 %v11006_v10 }
 0x32d   :  { %2890 = vmatpush.msrb.mxu1 %v11155_v19  ;;  %2871 = vmatpush.msrb.mxu0 %v2717_v24 }
 0x32e   :  { %2804 = vmatpush.msra.mxu2 %v11011_v31  ;;  %2827 = vmatpush.msra.mxu3 %v11016_v63 }
 0x32f   :  { %2891 = vmatpush.msrb.mxu1 %v2718_v45  ;;  %2872 = vmatpush.msrb.mxu0 %v2715_v2 }
 0x330   :  { %2805 = vmatpush.msra.mxu2 %v2651_v50  ;;  %2828 = vmatpush.msra.mxu3 %v2664_v44 }
 0x331   :  { %2892 = vmatpush.msrb.mxu1 %v2716_v39  ;;  %2873 = vmatpush.msrb.mxu0 %v2713_v5 }
 0x332   :  { %2806 = vmatpush.msra.mxu2 %v11031_v58  ;;  %2829 = vmatpush.msra.mxu3 %v11036_v22 }
 0x333   :  { %2893 = vmatpush.msrb.mxu1 %v2714_v33 }
 0x334   :  { %2807 = vmatpush.msra.mxu2 %v11043_v1  ;;  %2830 = vmatpush.msra.mxu3 %v11048_v53 }
 0x336   :  { %2808 = vmatpush.msra.mxu2 %v11055_v34  ;;  %2831 = vmatpush.msra.mxu3 %v11060_v28 }
 0x338   :  { %2809 = vmatpush.msra.mxu2 %v11067_v49  ;;  %2832 = vmatpush.msra.mxu3 %v11072_v6 }
 0x33a   :  { %2810 = vmatpush.msra.mxu2 %v11079_v40  ;;  %2833 = vmatpush.msra.mxu3 %v11084_v23 }
 0x33c   :  { %2811 = vmatpush.msra.mxu2 %v11091_v56  ;;  %2834 = vmatpush.msra.mxu3 %v11096_v29 }
 0x33e   :  { %2812 = vmatpush.msra.mxu2 %v11103_v41  ;;  %2835 = vmatpush.msra.mxu3 %v11108_v47 }
 0x340   :  { %2813 = vmatpush.msra.mxu2 %v11115_v3  ;;  %2836 = vmatpush.msra.mxu3 %v11120_v27 }
 0x342   :  { %2814 = vmatpush.msra.mxu2 %v11127_v57 }
 0x344   :  { %2815 = vmatpush.msra.mxu2 %v11134_v21 }
 0x346   :  { %2816 = vmatpush.msra.mxu2 %v11141_v30 }
 0x371   :  { %v11143_v11 = vpop.f32.mrf.mxu3 }
 0x372   :  { %v2620_v13 = vrot.slane %v11143_v11, 4 }
 0x374   :  { %v2621_v54 = vadd.f32 %v2620_v13, %v11143_v11 }
 0x376   :  { %v2622_v15 = vrot.slane %v2621_v54, 2 }
 0x377   :  { %v11164_v0 = vpop.f32.mrf.mxu2 }
 0x378   :  { %v2614_v26 = vrot.slane %v11164_v0, 4  ;;  %v2623_v55 = vadd.f32 %v2622_v15, %v2621_v54 }
 0x37a   :  { %v2615_v35 = vadd.f32 %v2614_v26, %v11164_v0  ;;  %v2624_v20 = vrot.slane %v2623_v55, 1 }
 0x37c   :  { %v2616_v61 = vrot.slane %v2615_v35, 2  ;;  %v2625_v7 = vadd.f32 %v2624_v20, %v2623_v55 }
 0x37e   :  { %v2617_v43 = vadd.f32 %v2616_v61, %v2615_v35 }
 0x380   :  { %v2618_v18 = vrot.slane %v2617_v43, 1 }
 0x382   :  { %v2619_v17 = vadd.f32 %v2618_v18, %v2617_v43  ;;  %v7577_v18 = vld [vmem:[#allocation7 + $0xf8] sm:$0xf0] }
 0x384   :  { %v11172_v62 = vpop.f32.mrf.mxu3 }
 0x385   :  { %v2632_v52 = vrot.slane %v11172_v62, 4 }
 0x387   :  { %v2633_v4 = vadd.f32 %v2632_v52, %v11172_v62 }
 0x389   :  { %v2634_v38 = vrot.slane %v2633_v4, 2 }
 0x38a   :  { %v11183_v14 = vpop.f32.mrf.mxu2 }
 0x38b   :  { %v2635_v25 = vadd.f32 %v2634_v38, %v2633_v4  ;;  %v2626_v16 = vrot.slane %v11183_v14, 4 }
 0x38d   :  { %v2636_v46 = vrot.slane %v2635_v25, 1  ;;  %v2627_v60 = vadd.f32 %v2626_v16, %v11183_v14 }
 0x38f   :  { %v2637_v8 = vadd.f32 %v2636_v46, %v2635_v25  ;;  %v2628_v32 = vrot.slane %v2627_v60, 2  ;;  %v9157_v46 = vld [vmem:[#allocation7 + $0x74] sm:$0xf] }
 0x391   :  { %v2639_v48 = vadd.f32 %v2637_v8, %v2625_v7  ;;  %v2629_v9 = vadd.f32 %v2628_v32, %v2627_v60  ;;  %v7513_v7 = vld [vmem:[#allocation7 + $0x78] sm:$0xf0]  ;;  %v9173_v8 = vld [vmem:[#allocation7 + $0xf4] sm:$0xf] }
 0x392   :  { %v7516_v32 = vor.u32 %v9157_v46, %v7513_v7  ;;  %v9150_v46 = vld [vmem:[#allocation7 + $0x34] sm:$0xf0] }
 0x393   :  { %v2630_v36 = vrot.slane %v2629_v9, 1  ;;  %2708 = vmatmul.f32.vlgmr.msrb.gmra.mxu3 %v2639_v48  ;;  %v7580_v48 = vor.u32 %v9173_v8, %v7577_v18  ;;  %v9166_v8 = vld [vmem:[#allocation7 + $0xb4] sm:$0xf0]  ;;  %v7481_v18 = vld [vmem:[#allocation7 + $0x38] sm:$0xf0] }
 0x395   :  { %v2631_v59 = vadd.f32 %v2630_v36, %v2629_v9  ;;  %3240 = vmatpush.bf16.msrb.mxu3 %v7580_v48 }
 0x397   :  { %v2638_v12 = vadd.f32 %v2631_v59, %v2619_v17 }
 0x399   :  { %2688 = vmatmul.f32.vlgmr.msrb.gmra.mxu2 %v2638_v12 }
 0x39a   :  { %3222 = vmatpush.bf16.msrb.mxu2 %v7516_v32  ;;  %v9149_v32 = vld [vmem:[#allocation7 + $0x34] sm:$0xf] }
 0x416   :  { %v2709_v51 = vpop.f32.mrf.mxu3 }
 0x41c   :  { %v2689_v42 = vpop.f32.mrf.mxu2 }
 0x41d   :  { %v2710_v10 = vadd.f32 %v2709_v51, %v2689_v42 }
 0x41f   :  { %v2712_v31 = vmul.f32 0.0078125, %v2710_v10 }
 0x421   :  { %7447 = vmatmul.msk.f32.vlgmr.msra.gmra.mxu0 %vm2721_vm4, %v2712_v31  ;;  %7448 = vmatmul.msk.f32.vlgmr.msra.gmra.mxu1 %vm2721_vm4, %v2712_v31 }
 0x422   :  { %2914 = vmatpush.msra.mxu0 %v11150_v37  ;;  %2934 = vmatpush.msra.mxu1 %v11155_v19 }
 0x424   :  { %2915 = vmatpush.msra.mxu0 %v2717_v24  ;;  %2935 = vmatpush.msra.mxu1 %v2718_v45  ;;  %v7511_v24 = vld [vmem:[#allocation7 + $0x70] sm:$0xf]  ;;  %v9158_v45 = vld [vmem:[#allocation7 + $0x74] sm:$0xf0] }
 0x425   :  { %v7512_v42 = vor.u32 %v9158_v45, %v7511_v24  ;;  %v9148_v24 = vld [vmem:[#allocation7 + $0x24] sm:$0xf0]  ;;  %v7535_v45 = vld [vmem:[#allocation7 + $0xa0] sm:$0xf] }
 0x426   :  { %2916 = vmatpush.msra.mxu0 %v2715_v2  ;;  %2936 = vmatpush.msra.mxu1 %v2716_v39  ;;  %v7575_v2 = vld [vmem:[#allocation7 + $0xf0] sm:$0xf]  ;;  %v9174_v39 = vld [vmem:[#allocation7 + $0xf4] sm:$0xf0] }
 0x427   :  { %v7576_v10 = vor.u32 %v9174_v39, %v7575_v2  ;;  %v9164_v39 = vld [vmem:[#allocation7 + $0xa4] sm:$0xf0] }
 0x428   :  { %2917 = vmatpush.msra.mxu0 %v2713_v5  ;;  %2937 = vmatpush.msra.mxu1 %v2714_v33  ;;  %v2842_v5 = vld [vmem:[%s12304_s8] sm:$0x1] }
 0x49e   :  { %v2742_v63 = vpop.f32.mrf.mxu0  ;;  %v2762_v50 = vpop.f32.mrf.mxu1 }
 0x49f   :  { %v2765_v44 = vperm.slane %v2742_v63, 0  ;;  %v2766_v58 = vperm.slane %v2762_v50, 0  ;;  %v2898_v63 = vld [vmem:[%s12305_s9] sm:$0x1] }
 0x4a0   :  { %v7503_v50 = vld [vmem:[#allocation7 + $0x60] sm:$0xf] }
 0x4a1   :  { %v11225_v22 = vsub.f32 %v11164_v0, %v2765_v44  ;;  %v11228_v1 = vsub.f32 %v11183_v14, %v2765_v44  ;;  %v11231_v53 = vsub.f32 %v11143_v11, %v2766_v58  ;;  %v11234_v34 = vsub.f32 %v11172_v62, %v2766_v58  ;;  %v9156_v44 = vld [vmem:[#allocation7 + $0x64] sm:$0xf0]  ;;  %v7567_v58 = vld [vmem:[#allocation7 + $0xe0] sm:$0xf] }
 0x4a3   :  { %v2771_v28 = vmul.f32 %v11225_v22, %v11225_v22  ;;  %v2785_v49 = vmul.f32 %v11228_v1, %v11228_v1  ;;  %v2772_v6 = vmul.f32 %v11231_v53, %v11231_v53  ;;  %v2786_v40 = vmul.f32 %v11234_v34, %v11234_v34 }
 0x4a5   :  { %v2773_v23 = vrot.slane %v2771_v28, 4  ;;  %v2787_v56 = vrot.slane %v2785_v49, 4  ;;  %v2779_v29 = vrot.slane %v2772_v6, 4  ;;  %v2793_v41 = vrot.slane %v2786_v40, 4 }
 0x4a7   :  { %v2774_v47 = vadd.f32 %v2773_v23, %v2771_v28  ;;  %v2788_v3 = vadd.f32 %v2787_v56, %v2785_v49  ;;  %v2780_v27 = vadd.f32 %v2779_v29, %v2772_v6  ;;  %v2794_v57 = vadd.f32 %v2793_v41, %v2786_v40  ;;  %v9172_v49 = vld [vmem:[#allocation7 + $0xe4] sm:$0xf0]  ;;  %v9155_v6 = vld [vmem:[#allocation7 + $0x64] sm:$0xf]  ;;  %v7505_v40 = vld [vmem:[#allocation7 + $0x68] sm:$0xf0] }
 0x4a8   :  { %v7504_v28 = vor.u32 %v9156_v44, %v7503_v50  ;;  %v7568_v23 = vor.u32 %v9172_v49, %v7567_v58  ;;  %v7508_v56 = vor.u32 %v9155_v6, %v7505_v40  ;;  %v9171_v29 = vld [vmem:[#allocation7 + $0xe4] sm:$0xf]  ;;  %v7569_v41 = vld [vmem:[#allocation7 + $0xe8] sm:$0xf0]  ;;  %v7463_v50 = vld [vmem:[#allocation7 + $0x10] sm:$0xf] }
 0x4a9   :  { %v2775_v21 = vrot.slane %v2774_v47, 2  ;;  %v2789_v30 = vrot.slane %v2788_v3, 2  ;;  %v2781_v11 = vrot.slane %v2780_v27, 2  ;;  %v2795_v37 = vrot.slane %v2794_v57, 2  ;;  %v9146_v44 = vld [vmem:[#allocation7 + $0x14] sm:$0xf0] }
 0x4aa   :  { %3223 = vmatpush.bf16.msrb.mxu2 %v7508_v56  ;;  %v7527_v58 = vld [vmem:[#allocation7 + $0x90] sm:$0xf]  ;;  %v9162_v49 = vld [vmem:[#allocation7 + $0x94] sm:$0xf0]  ;;  %v9145_v6 = vld [vmem:[#allocation7 + $0x14] sm:$0xf] }
 0x4ab   :  { %v2776_v19 = vadd.f32 %v2775_v21, %v2774_v47  ;;  %v2790_v13 = vadd.f32 %v2789_v30, %v2788_v3  ;;  %v2782_v0 = vadd.f32 %v2781_v11, %v2780_v27  ;;  %v2796_v54 = vadd.f32 %v2795_v37, %v2794_v57  ;;  %v7495_v3 = vld [vmem:[#allocation7 + $0x50] sm:$0xf]  ;;  %v9154_v27 = vld [vmem:[#allocation7 + $0x54] sm:$0xf0]  ;;  %v9153_v11 = vld [vmem:[#allocation7 + $0x54] sm:$0xf] }
 0x4ac   :  { %v7572_v47 = vor.u32 %v9171_v29, %v7569_v41  ;;  %v7559_v57 = vld [vmem:[#allocation7 + $0xd0] sm:$0xf]  ;;  %v7496_v21 = vor.u32 %v9154_v27, %v7495_v3  ;;  %v9170_v30 = vld [vmem:[#allocation7 + $0xd4] sm:$0xf0]  ;;  %v7497_v37 = vld [vmem:[#allocation7 + $0x58] sm:$0xf0] }
 0x4ad   :  { %v2777_v26 = vrot.slane %v2776_v19, 1  ;;  %v2791_v15 = vrot.slane %v2790_v13, 1  ;;  %v2783_v62 = vrot.slane %v2782_v0, 1  ;;  %v2797_v35 = vrot.slane %v2796_v54, 1  ;;  %v7465_v40 = vld [vmem:[#allocation7 + $0x18] sm:$0xf0] }
 0x4ae   :  { %3241 = vmatpush.bf16.msrb.mxu3 %v7572_v47  ;;  %v7468_v56 = vor.u32 %v9145_v6, %v7465_v40  ;;  %v9161_v29 = vld [vmem:[#allocation7 + $0x94] sm:$0xf]  ;;  %v7529_v41 = vld [vmem:[#allocation7 + $0x98] sm:$0xf0]  ;;  %v7455_v47 = vld [vmem:[#allocation7] sm:$0xf] }
 0x4af   :  { %v2778_v52 = vadd.f32 %v2777_v26, %v2776_v19  ;;  %v2792_v55 = vadd.f32 %v2791_v15, %v2790_v13  ;;  %v2784_v4 = vadd.f32 %v2783_v62, %v2782_v0  ;;  %v2798_v61 = vadd.f32 %v2797_v35, %v2796_v54  ;;  %v9169_v0 = vld [vmem:[#allocation7 + $0xd4] sm:$0xf]  ;;  %v7561_v54 = vld [vmem:[#allocation7 + $0xd8] sm:$0xf0]  ;;  %v7487_v15 = vld [vmem:[#allocation7 + $0x40] sm:$0xf] }
 0x4b0   :  { %v7560_v19 = vor.u32 %v9170_v30, %v7559_v57  ;;  %v7500_v13 = vor.u32 %v9153_v11, %v7497_v37  ;;  %v7564_v26 = vor.u32 %v9169_v0, %v7561_v54  ;;  %v9152_v62 = vld [vmem:[#allocation7 + $0x44] sm:$0xf0]  ;;  %v7551_v35 = vld [vmem:[#allocation7 + $0xc0] sm:$0xf]  ;;  %v7532_v3 = vor.u32 %v9161_v29, %v7529_v41  ;;  %v9143_v37 = vld [vmem:[#allocation7 + $0x4] sm:$0xf] }
 0x4b1   :  { %v2799_v38 = vadd.f32 %v2792_v55, %v2778_v52  ;;  %v2800_v14 = vadd.f32 %v2798_v61, %v2784_v4  ;;  %v7488_v52 = vor.u32 %v9152_v62, %v7487_v15  ;;  %v9168_v55 = vld [vmem:[#allocation7 + $0xc4] sm:$0xf0]  ;;  %v9151_v4 = vld [vmem:[#allocation7 + $0x44] sm:$0xf]  ;;  %v7489_v61 = vld [vmem:[#allocation7 + $0x48] sm:$0xf0] }
 0x4b2   :  { %3224 = vmatpush.bf16.msrb.mxu2 %v7500_v13  ;;  %3242 = vmatpush.bf16.msrb.mxu3 %v7564_v26  ;;  %v9144_v27 = vld [vmem:[#allocation7 + $0x4] sm:$0xf0]  ;;  %v7519_v57 = vld [vmem:[#allocation7 + $0x80] sm:$0xf]  ;;  %v9159_v13 = vld [vmem:[#allocation7 + $0x84] sm:$0xf] }
 0x4b3   :  { %2817 = vmatmul.f32.vlgmr.msra.gmra.mxu2 %v2799_v38  ;;  %2837 = vmatmul.f32.vlgmr.msra.gmra.mxu3 %v2800_v14  ;;  %v7552_v38 = vor.u32 %v9168_v55, %v7551_v35  ;;  %v7492_v14 = vor.u32 %v9151_v4, %v7489_v61  ;;  %v7456_v30 = vor.u32 %v9144_v27, %v7455_v47  ;;  %v7521_v54 = vld [vmem:[#allocation7 + $0x88] sm:$0xf0]  ;;  %v7639_v35 = vld [vmem:[#allocation7 + $0x170] sm:$0xf]  ;;  %v7689_v6 = vld [vmem:[#allocation7 + $0x1d8] sm:$0xf0] }
 0x4b4   :  { %v7524_v26 = vor.u32 %v9159_v13, %v7521_v54  ;;  %v7703_v55 = vld [vmem:[#allocation7 + $0x1f0] sm:$0xf]  ;;  %v7615_v40 = vld [vmem:[#allocation7 + $0x140] sm:$0xf]  ;;  %v9200_v27 = vld [vmem:[#allocation7 + $0x1c4] sm:$0xf0] }
 0x4b5   :  { %v7617_v13 = vld [vmem:[#allocation7 + $0x148] sm:$0xf0] }
 0x4b6   :  { %3225 = vmatpush.bf16.msrb.mxu2 %v7492_v14  ;;  %v9206_v14 = vld [vmem:[#allocation7 + $0x1f4] sm:$0xf0] }
 0x536   :  { %v2818_v20 = vpop.f32.mrf.mxu2  ;;  %v2838_v25 = vpop.f32.mrf.mxu3 }
 0x537   :  { %v2839_v16 = vadd.f32 %v2838_v25, %v2818_v20  ;;  %v9167_v20 = vld [vmem:[#allocation7 + $0xc4] sm:$0xf]  ;;  %v7553_v25 = vld [vmem:[#allocation7 + $0xc8] sm:$0xf0] }
 0x539   :  { %v2841_v43 = vmul.f32 0.0078125, %v2839_v16  ;;  %v7556_v16 = vor.u32 %v9167_v20, %v7553_v25  ;;  %v9189_v20 = vld [vmem:[#allocation7 + $0x174] sm:$0xf]  ;;  %v7704_v25 = vor.u32 %v9206_v14, %v7703_v55  ;;  %v7607_v14 = vld [vmem:[#allocation7 + $0x130] sm:$0xf] }
 0x53b   :  { %v2843_v60 = vadd.f32 1e-05, %v2841_v43  ;;  %v7479_v43 = vld [vmem:[#allocation7 + $0x30] sm:$0xf]  ;;  %3243 = vmatpush.bf16.msrb.mxu3 %v7556_v16  ;;  %v7641_v16 = vld [vmem:[#allocation7 + $0x178] sm:$0xf0] }
 0x53c   :  { %v7480_v7 = vor.u32 %v9150_v46, %v7479_v43  ;;  %v9205_v43 = vld [vmem:[#allocation7 + $0x1f4] sm:$0xf]  ;;  %v7705_v46 = vld [vmem:[#allocation7 + $0x1f8] sm:$0xf0] }
 0x53d   :  { %9472 = vrsqrt.f32 %v2843_v60  ;;  %vm2850_vm6 = vweird.f32 %v2843_v60 }
 0x543   :  { %v9473_v9 = vpop.eup %9472 }
 0x544   :  { %v2845_v36 = vmul.f32 %v9473_v9, %v2843_v60  ;;  %vm2851_vm5 = vweird.f32 %v9473_v9  ;;  %v7543_v60 = vld [vmem:[#allocation7 + $0xb0] sm:$0xf] }
 0x545   :  { %vm2852_vm7 = vmor %vm2850_vm6, %vm2851_vm5  ;;  %v7544_v48 = vor.u32 %v9166_v8, %v7543_v60  ;;  %v7631_v60 = vld [vmem:[#allocation7 + $0x160] sm:$0xf] }
 0x546   :  { %v2846_v17 = vmul.f32 %v9473_v9, %v2845_v36  ;;  %v9165_v36 = vld [vmem:[#allocation7 + $0xb4] sm:$0xf]  ;;  %v7695_v8 = vld [vmem:[#allocation7 + $0x1e0] sm:$0xf] }
 0x548   :  { %v2847_v59 = vmul.f32 0.5, %v2846_v17  ;;  %v7545_v17 = vld [vmem:[#allocation7 + $0xb8] sm:$0xf0] }
 0x54a   :  { %v2848_v12 = vsub.f32 1.5, %v2847_v59  ;;  %v7548_v59 = vor.u32 %v9165_v36, %v7545_v17  ;;  %v9187_v36 = vld [vmem:[#allocation7 + $0x164] sm:$0xf]  ;;  %v7633_v17 = vld [vmem:[#allocation7 + $0x168] sm:$0xf0] }
 0x54c   :  { %v2849_v33 = vmul.f32 %v9473_v9, %v2848_v12  ;;  %v7471_v12 = vld [vmem:[#allocation7 + $0x20] sm:$0xf]  ;;  %3244 = vmatpush.bf16.msrb.mxu3 %v7548_v59 }
 0x54d   :  { %v7472_v2 = vor.u32 %v9148_v24, %v7471_v12  ;;  %v9203_v12 = vld [vmem:[#allocation7 + $0x1e4] sm:$0xf]  ;;  %v7697_v24 = vld [vmem:[#allocation7 + $0x1e8] sm:$0xf0] }
 0x54e   :  { %v2853_v51 = vsel %vm2852_vm7, %v9473_v9, %v2849_v33  ;;  %v7484_v9 = vor.u32 %v9149_v32, %v7481_v18  ;;  %v7473_v33 = vld [vmem:[#allocation7 + $0x28] sm:$0xf0]  ;;  %v7644_v32 = vor.u32 %v9189_v20, %v7641_v16  ;;  %v7708_v18 = vor.u32 %v9205_v43, %v7705_v46  ;;  %v9182_v20 = vld [vmem:[#allocation7 + $0x134] sm:$0xf0]  ;;  %v9181_v46 = vld [vmem:[#allocation7 + $0x134] sm:$0xf] }
 0x54f   :  { %v2854_v31 = vmul.f32 %v2853_v51, %v2842_v5  ;;  %v9147_v5 = vld [vmem:[#allocation7 + $0x24] sm:$0xf]  ;;  %v7536_v51 = vor.u32 %v9164_v39, %v7535_v45  ;;  %v7623_v45 = vld [vmem:[#allocation7 + $0x150] sm:$0xf]  ;;  %v7700_v39 = vor.u32 %v9203_v12, %v7697_v24  ;;  %v7608_v16 = vor.u32 %v9182_v20, %v7607_v14  ;;  %v9198_v43 = vld [vmem:[#allocation7 + $0x1b4] sm:$0xf0] }
 0x550   :  { %3226 = vmatpush.bf16.msrb.mxu2 %v7484_v9  ;;  %v9204_v9 = vld [vmem:[#allocation7 + $0x1e4] sm:$0xf0]  ;;  %v9179_v24 = vld [vmem:[#allocation7 + $0x124] sm:$0xf]  ;;  %v7833_v14 = vld [vmem:[#allocation7 + $0x2f8] sm:$0xf0] }
 0x551   :  { %7449 = vmatmul.msk.f32.vlgmr.msrb.gmra.mxu0 %vm2721_vm4, %v2854_v31  ;;  %7450 = vmatmul.msk.f32.vlgmr.msrb.gmra.mxu1 %vm2721_vm4, %v2854_v31  ;;  %v7537_v31 = vld [vmem:[#allocation7 + $0xa8] sm:$0xf0]  ;;  %v7696_v59 = vor.u32 %v9204_v9, %v7695_v8  ;;  %v9197_v8 = vld [vmem:[#allocation7 + $0x1b4] sm:$0xf]  ;;  %v9196_v12 = vld [vmem:[#allocation7 + $0x1a4] sm:$0xf0] }
 0x552   :  { %3186 = vmatpush.bf16.msrb.mxu0 %v7512_v42  ;;  %3204 = vmatpush.bf16.msrb.mxu1 %v7576_v10  ;;  %v7476_v42 = vor.u32 %v9147_v5, %v7473_v33  ;;  %v9163_v10 = vld [vmem:[#allocation7 + $0xa4] sm:$0xf]  ;;  %v9186_v5 = vld [vmem:[#allocation7 + $0x154] sm:$0xf0]  ;;  %v7687_v33 = vld [vmem:[#allocation7 + $0x1d0] sm:$0xf] }
 0x553   :  { %v7759_v20 = vld [vmem:[#allocation7 + $0x260] sm:$0xf] }
 0x554   :  { %3227 = vmatpush.bf16.msrb.mxu2 %v7476_v42  ;;  %v7624_v42 = vor.u32 %v9186_v5, %v7623_v45 }
 0x556   :  { %3187 = vmatpush.bf16.msrb.mxu0 %v7504_v28  ;;  %3205 = vmatpush.bf16.msrb.mxu1 %v7568_v23  ;;  %v7464_v28 = vor.u32 %v9146_v44, %v7463_v50  ;;  %v7528_v23 = vor.u32 %v9162_v49, %v7527_v58 }
 0x558   :  { %3228 = vmatpush.bf16.msrb.mxu2 %v7468_v56 }
 0x559   :  { %7451 = vmatmul.msk.f32.vlgmr.msra.gmra.mxu0 %vm2721_vm4, %v2898_v63  ;;  %7452 = vmatmul.msk.f32.vlgmr.msra.gmra.mxu1 %vm2721_vm4, %v2898_v63  ;;  %v7540_v63 = vor.u32 %v9163_v10, %v7537_v31  ;;  %v9185_v10 = vld [vmem:[#allocation7 + $0x154] sm:$0xf]  ;;  %v7625_v31 = vld [vmem:[#allocation7 + $0x158] sm:$0xf0] }
 0x55a   :  { %3188 = vmatpush.bf16.msrb.mxu0 %v7496_v21  ;;  %3206 = vmatpush.bf16.msrb.mxu1 %v7560_v19  ;;  %v9160_v21 = vld [vmem:[#allocation7 + $0x84] sm:$0xf0]  ;;  %v7457_v19 = vld [vmem:[#allocation7 + $0x8] sm:$0xf0] }
 0x55b   :  { %3245 = vmatpush.bf16.msrb.mxu3 %v7540_v63  ;;  %v7520_v11 = vor.u32 %v9160_v21, %v7519_v57  ;;  %v7460_v0 = vor.u32 %v9143_v37, %v7457_v19  ;;  %v9201_v63 = vld [vmem:[#allocation7 + $0x1d4] sm:$0xf]  ;;  %v9183_v21 = vld [vmem:[#allocation7 + $0x144] sm:$0xf] }
 0x55c   :  { %v7692_v57 = vor.u32 %v9201_v63, %v7689_v6  ;;  %v7593_v6 = vld [vmem:[#allocation7 + $0x118] sm:$0xf0] }
 0x55d   :  { %3229 = vmatpush.bf16.msrb.mxu2 %v7460_v0  ;;  %v9199_v0 = vld [vmem:[#allocation7 + $0x1c4] sm:$0xf] }
 0x55e   :  { %3189 = vmatpush.bf16.msrb.mxu0 %v7488_v52  ;;  %3207 = vmatpush.bf16.msrb.mxu1 %v7552_v38  ;;  %v9190_v52 = vld [vmem:[#allocation7 + $0x174] sm:$0xf0] }
 0x55f   :  { %3246 = vmatpush.bf16.msrb.mxu3 %v7532_v3  ;;  %v7640_v38 = vor.u32 %v9190_v52, %v7639_v35  ;;  %v7679_v3 = vld [vmem:[#allocation7 + $0x1c0] sm:$0xf]  ;;  %v7620_v35 = vor.u32 %v9183_v21, %v7617_v13  ;;  %v9175_v21 = vld [vmem:[#allocation7 + $0x104] sm:$0xf] }
 0x560   :  { %v9191_v13 = vld [vmem:[#allocation7 + $0x184] sm:$0xf] }
 0x561   :  { %3487 = vmatpush.bf16.msra.mxu2 %v7644_v32 }
 0x562   :  { %3190 = vmatpush.bf16.msrb.mxu0 %v7480_v7  ;;  %3208 = vmatpush.bf16.msrb.mxu1 %v7544_v48  ;;  %v9188_v7 = vld [vmem:[#allocation7 + $0x164] sm:$0xf0] }
 0x563   :  { %3247 = vmatpush.bf16.msrb.mxu3 %v7524_v26  ;;  %v7632_v48 = vor.u32 %v9188_v7, %v7631_v60  ;;  %v7609_v7 = vld [vmem:[#allocation7 + $0x138] sm:$0xf0] }
 0x564   :  { %v7612_v32 = vor.u32 %v9181_v46, %v7609_v7  ;;  %v9236_v46 = vld [vmem:[#allocation7 + $0x2e4] sm:$0xf0] }
 0x566   :  { %3191 = vmatpush.bf16.msrb.mxu0 %v7472_v2  ;;  %3209 = vmatpush.bf16.msrb.mxu1 %v7536_v51  ;;  %v7636_v2 = vor.u32 %v9187_v36, %v7633_v17  ;;  %v9202_v51 = vld [vmem:[#allocation7 + $0x1d4] sm:$0xf0]  ;;  %v9180_v36 = vld [vmem:[#allocation7 + $0x124] sm:$0xf0]  ;;  %v7663_v17 = vld [vmem:[#allocation7 + $0x1a0] sm:$0xf] }
 0x567   :  { %3505 = vmatpush.bf16.msra.mxu3 %v7708_v18  ;;  %v7688_v49 = vor.u32 %v9202_v51, %v7687_v33  ;;  %v7673_v18 = vld [vmem:[#allocation7 + $0x1b8] sm:$0xf0]  ;;  %v7664_v45 = vor.u32 %v9196_v12, %v7663_v17  ;;  %v7665_v33 = vld [vmem:[#allocation7 + $0x1a8] sm:$0xf0]  ;;  %v7591_v51 = vld [vmem:[#allocation7 + $0x110] sm:$0xf] }
 0x568   :  { %3488 = vmatpush.bf16.msra.mxu2 %v7636_v2  ;;  %v7676_v9 = vor.u32 %v9197_v8, %v7673_v18  ;;  %v7601_v2 = vld [vmem:[#allocation7 + $0x128] sm:$0xf0]  ;;  %v9219_v8 = vld [vmem:[#allocation7 + $0x264] sm:$0xf]  ;;  %v9218_v17 = vld [vmem:[#allocation7 + $0x254] sm:$0xf0] }
 0x569   :  { %v7604_v5 = vor.u32 %v9179_v24, %v7601_v2  ;;  %v9235_v18 = vld [vmem:[#allocation7 + $0x2e4] sm:$0xf]  ;;  %v7815_v24 = vld [vmem:[#allocation7 + $0x2d0] sm:$0xf]  ;;  %v9217_v2 = vld [vmem:[#allocation7 + $0x254] sm:$0xf] }
 0x56a   :  { %3192 = vmatpush.bf16.msrb.mxu0 %v7464_v28  ;;  %3210 = vmatpush.bf16.msrb.mxu1 %v7528_v23  ;;  %v9184_v23 = vld [vmem:[#allocation7 + $0x144] sm:$0xf0] }
 0x56b   :  { %3506 = vmatpush.bf16.msra.mxu3 %v7700_v39  ;;  %v9195_v39 = vld [vmem:[#allocation7 + $0x1a4] sm:$0xf] }
 0x56e   :  { %3193 = vmatpush.bf16.msrb.mxu0 %v7456_v30  ;;  %3211 = vmatpush.bf16.msrb.mxu1 %v7520_v11 }
 0x56f   :  { %3507 = vmatpush.bf16.msra.mxu3 %v7692_v57 }
 0x572   :  { %3451 = vmatpush.bf16.msra.mxu0 %v7640_v38  ;;  %3469 = vmatpush.bf16.msra.mxu1 %v7704_v25  ;;  %v7671_v25 = vld [vmem:[#allocation7 + $0x1b0] sm:$0xf] }
 0x573   :  { %v7672_v60 = vor.u32 %v9198_v43, %v7671_v25  ;;  %v7823_v43 = vld [vmem:[#allocation7 + $0x2e0] sm:$0xf] }
 0x574   :  { %v7824_v7 = vor.u32 %v9236_v46, %v7823_v43  ;;  %v9210_v43 = vld [vmem:[#allocation7 + $0x214] sm:$0xf0] }
 0x576   :  { %3452 = vmatpush.bf16.msra.mxu0 %v7632_v48  ;;  %3470 = vmatpush.bf16.msra.mxu1 %v7696_v59  ;;  %v7599_v48 = vld [vmem:[#allocation7 + $0x120] sm:$0xf] }
 0x577   :  { %v7600_v59 = vor.u32 %v9180_v36, %v7599_v48  ;;  %v7751_v36 = vld [vmem:[#allocation7 + $0x250] sm:$0xf] }
 0x57a   :  { %3453 = vmatpush.bf16.msra.mxu0 %v7624_v42  ;;  %3471 = vmatpush.bf16.msra.mxu1 %v7688_v49 }
 0x5ce   :  { %v2875_v15 = vpop.f32.mrf.mxu0  ;;  %v2895_v62 = vpop.f32.mrf.mxu1 }
 0x5cf   :  { %v2942_v4 = vperm.slane %v2875_v15, 0  ;;  %v2943_v61 = vperm.slane %v2895_v62, 0 }
 0x5d1   :  { %v2944_v50 = vmul.f32 %v2942_v4, %v11225_v22  ;;  %v2952_v44 = vmul.f32 %v2942_v4, %v11228_v1  ;;  %v2945_v56 = vmul.f32 %v2943_v61, %v11231_v53  ;;  %v2953_v29 = vmul.f32 %v2943_v61, %v11234_v34  ;;  %v7681_v53 = vld [vmem:[#allocation7 + $0x1c8] sm:$0xf0] }
 0x5d2   :  { %v7628_v22 = vor.u32 %v9185_v10, %v7625_v31  ;;  %v7616_v1 = vor.u32 %v9184_v23, %v7615_v40  ;;  %v7680_v34 = vor.u32 %v9200_v27, %v7679_v3  ;;  %v7684_v52 = vor.u32 %v9199_v0, %v7681_v53  ;;  %v9178_v31 = vld [vmem:[#allocation7 + $0x114] sm:$0xf0]  ;;  %v9193_v40 = vld [vmem:[#allocation7 + $0x194] sm:$0xf]  ;;  %v9176_v27 = vld [vmem:[#allocation7 + $0x104] sm:$0xf0] }
 0x5d3   :  { %v7668_v10 = vor.u32 %v9195_v39, %v7665_v33  ;;  %v7592_v63 = vor.u32 %v9178_v31, %v7591_v51  ;;  %v7649_v0 = vld [vmem:[#allocation7 + $0x188] sm:$0xf0]  ;;  %v7752_v39 = vor.u32 %v9218_v17, %v7751_v36  ;;  %v9233_v33 = vld [vmem:[#allocation7 + $0x2d4] sm:$0xf]  ;;  %v7817_v51 = vld [vmem:[#allocation7 + $0x2d8] sm:$0xf0] }
 0x5d4   :  { %3489 = vmatpush.bf16.msra.mxu2 %v7628_v22  ;;  %3454 = vmatpush.bf16.msra.mxu0 %v7616_v1  ;;  %v7647_v22 = vld [vmem:[#allocation7 + $0x180] sm:$0xf]  ;;  %v9192_v1 = vld [vmem:[#allocation7 + $0x184] sm:$0xf0] }
 0x5d5   :  { %3472 = vmatpush.bf16.msra.mxu1 %v7680_v34  ;;  %3508 = vmatpush.bf16.msra.mxu3 %v7684_v52  ;;  %v7652_v34 = vor.u32 %v9191_v13, %v7649_v0  ;;  %v9221_v52 = vld [vmem:[#allocation7 + $0x274] sm:$0xf]  ;;  %v7743_v31 = vld [vmem:[#allocation7 + $0x240] sm:$0xf] }
 0x5d6   :  { %v2919_v58 = vpop.f32.mrf.mxu0  ;;  %v2939_v28 = vpop.f32.mrf.mxu1 }
 0x5d7   :  { %v2946_v41 = vperm.slane %v2919_v58, 0  ;;  %v2947_v47 = vperm.slane %v2939_v28, 0  ;;  %v9177_v58 = vld [vmem:[#allocation7 + $0x114] sm:$0xf] }
 0x5d8   :  { %3490 = vmatpush.bf16.msra.mxu2 %v7620_v35  ;;  %3455 = vmatpush.bf16.msra.mxu0 %v7608_v16  ;;  %v9238_v35 = vld [vmem:[#allocation7 + $0x2f4] sm:$0xf0]  ;;  %v9220_v16 = vld [vmem:[#allocation7 + $0x264] sm:$0xf0] }
 0x5d9   :  { %v2948_v30 = vadd.f32 %v2946_v41, %v2944_v50  ;;  %v2954_v11 = vadd.f32 %v2952_v44, %v2946_v41  ;;  %v2949_v37 = vadd.f32 %v2947_v47, %v2945_v56  ;;  %v2955_v19 = vadd.f32 %v2953_v29, %v2947_v47  ;;  %3473 = vmatpush.bf16.msra.mxu1 %v7672_v60  ;;  %v7655_v50 = vld [vmem:[#allocation7 + $0x190] sm:$0xf]  ;;  %v9194_v44 = vld [vmem:[#allocation7 + $0x194] sm:$0xf0]  ;;  %v7657_v29 = vld [vmem:[#allocation7 + $0x198] sm:$0xf0] }
 0x5da   :  { %3509 = vmatpush.bf16.msra.mxu3 %v7676_v9  ;;  %v7656_v49 = vor.u32 %v9194_v44, %v7655_v50  ;;  %v7596_v56 = vor.u32 %v9177_v58, %v7593_v6  ;;  %v7583_v41 = vld [vmem:[#allocation7 + $0x100] sm:$0xf]  ;;  %v7660_v3 = vor.u32 %v9193_v40, %v7657_v29  ;;  %v7760_v60 = vor.u32 %v9220_v16, %v7759_v20  ;;  %v7825_v9 = vld [vmem:[#allocation7 + $0x2e8] sm:$0xf0]  ;;  %v9232_v44 = vld [vmem:[#allocation7 + $0x2c4] sm:$0xf0] }
 0x5db   :  { %v2950_v54 = vmax.f32 %v2948_v30, 0.0  ;;  %v2956_v26 = vmax.f32 %v2954_v11, 0.0  ;;  %v2951_v15 = vmax.f32 %v2949_v37, 0.0  ;;  %v2957_v62 = vmax.f32 %v2955_v19, 0.0  ;;  %v7585_v30 = vld [vmem:[#allocation7 + $0x108] sm:$0xf0] }
 0x5dc   :  { %3491 = vmatpush.bf16.msra.mxu2 %v7612_v32  ;;  %3456 = vmatpush.bf16.msra.mxu0 %v7600_v59  ;;  %v7584_v57 = vor.u32 %v9176_v27, %v7583_v41  ;;  %v7648_v37 = vor.u32 %v9192_v1, %v7647_v22  ;;  %v7588_v19 = vor.u32 %v9175_v21, %v7585_v30  ;;  %v7761_v32 = vld [vmem:[#allocation7 + $0x268] sm:$0xf0]  ;;  %v7807_v50 = vld [vmem:[#allocation7 + $0x2c0] sm:$0xf]  ;;  %v9215_v58 = vld [vmem:[#allocation7 + $0x244] sm:$0xf] }
 0x5dd   :  { %v2966_v55 = vrot.slane %v2950_v54, 7  ;;  %v2976_v4 = vrot.slane %v2956_v26, 5  ;;  %v2967_v61 = vrot.slane %v2951_v15, 7  ;;  %v2977_v38 = vrot.slane %v2957_v62, 5  ;;  %3474 = vmatpush.bf16.msra.mxu1 %v7664_v45  ;;  %v7767_v54 = vld [vmem:[#allocation7 + $0x270] sm:$0xf] }
 0x5de   :  { %3510 = vmatpush.bf16.msra.mxu3 %v7668_v10  ;;  %v9222_v26 = vld [vmem:[#allocation7 + $0x274] sm:$0xf0]  ;;  %v7831_v15 = vld [vmem:[#allocation7 + $0x2f0] sm:$0xf]  ;;  %v7764_v48 = vor.u32 %v9219_v8, %v7761_v32  ;;  %v7828_v12 = vor.u32 %v9235_v18, %v7825_v9  ;;  %v7809_v29 = vld [vmem:[#allocation7 + $0x2c8] sm:$0xf0] }
 0x5df   :  { %2970 = vst [vmem:[#allocation3 + $0x8] sm:$0xfe] %v2966_v55  ;;  %v7768_v62 = vor.u32 %v9222_v26, %v7767_v54  ;;  %v9234_v45 = vld [vmem:[#allocation7 + $0x2d4] sm:$0xf0]  ;;  %v7799_v21 = vld [vmem:[#allocation7 + $0x2b0] sm:$0xf] }
 0x5e0   :  { %2972 = vst [vmem:[#allocation3] sm:$0x1] %v2966_v55  ;;  %3492 = vmatpush.bf16.msra.mxu2 %v7604_v5  ;;  %3457 = vmatpush.bf16.msra.mxu0 %v7592_v63  ;;  %v7769_v55 = vld [vmem:[#allocation7 + $0x278] sm:$0xf0]  ;;  %v9216_v63 = vld [vmem:[#allocation7 + $0x244] sm:$0xf0] }
 0x5e1   :  { %2980 = vst [vmem:[#allocation3] sm:$0xf8] %v2976_v4  ;;  %3475 = vmatpush.bf16.msra.mxu1 %v7656_v49  ;;  %v7753_v5 = vld [vmem:[#allocation7 + $0x258] sm:$0xf0]  ;;  %v7820_v49 = vor.u32 %v9233_v33, %v7817_v51  ;;  %v7744_v40 = vor.u32 %v9216_v63, %v7743_v31  ;;  %v9214_v1 = vld [vmem:[#allocation7 + $0x234] sm:$0xf0] }
 0x5e2   :  { %2982 = vst [vmem:[#allocation3 + $0x28] sm:$0x7] %v2976_v4  ;;  %3511 = vmatpush.bf16.msra.mxu3 %v7660_v3  ;;  %v7832_v4 = vor.u32 %v9238_v35, %v7831_v15  ;;  %v7756_v10 = vor.u32 %v9217_v2, %v7753_v5  ;;  %v7801_v54 = vld [vmem:[#allocation7 + $0x2b8] sm:$0xf0]  ;;  %v7727_v26 = vld [vmem:[#allocation7 + $0x220] sm:$0xf] }
 0x5e3   :  { %2971 = vst [vmem:[#allocation3 + $0x10] sm:$0xfe] %v2967_v61  ;;  %v7791_v35 = vld [vmem:[#allocation7 + $0x2a0] sm:$0xf]  ;;  %v7719_v16 = vld [vmem:[#allocation7 + $0x210] sm:$0xf] }
 0x5e4   :  { %2973 = vst [vmem:[#allocation3 + $0x18] sm:$0x1] %v2967_v61  ;;  %3493 = vmatpush.bf16.msra.mxu2 %v7596_v56  ;;  %3458 = vmatpush.bf16.msra.mxu0 %v7584_v57  ;;  %v7772_v61 = vor.u32 %v9221_v52, %v7769_v55  ;;  %v9231_v56 = vld [vmem:[#allocation7 + $0x2c4] sm:$0xf]  ;;  %v7735_v57 = vld [vmem:[#allocation7 + $0x230] sm:$0xf]  ;;  %v7720_v32 = vor.u32 %v9210_v43, %v7719_v16 }
 0x5e5   :  { %2981 = vst [vmem:[#allocation3 + $0x18] sm:$0xf8] %v2977_v38  ;;  %3476 = vmatpush.bf16.msra.mxu1 %v7648_v37  ;;  %v7812_v27 = vor.u32 %v9231_v56, %v7809_v29  ;;  %v7736_v30 = vor.u32 %v9214_v1, %v7735_v57  ;;  %v9213_v37 = vld [vmem:[#allocation7 + $0x234] sm:$0xf]  ;;  %v9228_v52 = vld [vmem:[#allocation7 + $0x2a4] sm:$0xf0] }
 0x5e6   :  { %2983 = vst [vmem:[#allocation3 + $0x20] sm:$0x7] %v2977_v38  ;;  %v2984_v42 = vld [vmem:[#allocation3 + $0x8] sm:$0xff]  ;;  %3512 = vmatpush.bf16.msra.mxu3 %v7652_v34  ;;  %v9237_v38 = vld [vmem:[#allocation7 + $0x2f4] sm:$0xf] }
 0x5e7   :  { %v7836_v25 = vor.u32 %v9237_v38, %v7833_v14  ;;  %v9229_v34 = vld [vmem:[#allocation7 + $0x2b4] sm:$0xf]  ;;  %v7729_v38 = vld [vmem:[#allocation7 + $0x228] sm:$0xf0]  ;;  %v9227_v14 = vld [vmem:[#allocation7 + $0x2a4] sm:$0xf] }
 0x5e8   :  { %v2986_v28 = vld [vmem:[#allocation3] sm:$0xff]  ;;  %3494 = vmatpush.bf16.msra.mxu2 %v7588_v19  ;;  %v7737_v19 = vld [vmem:[#allocation7 + $0x238] sm:$0xf0]  ;;  %v7804_v15 = vor.u32 %v9229_v34, %v7801_v54  ;;  %v9207_v2 = vld [vmem:[#allocation7 + $0x204] sm:$0xf] }
 0x5e9   :  { %v11258_v23 = vpack.c.bf16 %v2986_v28, %v2984_v42  ;;  %v2988_v59 = vld [vmem:[#allocation3 + $0x28] sm:$0xf]  ;;  %v7816_v42 = vor.u32 %v9234_v45, %v7815_v24  ;;  %v7745_v28 = vld [vmem:[#allocation7 + $0x248] sm:$0xf0]  ;;  %v7740_v0 = vor.u32 %v9213_v37, %v7737_v19  ;;  %v9209_v8 = vld [vmem:[#allocation7 + $0x214] sm:$0xf] }
 0x5ea   :  { %v2985_v47 = vld [vmem:[#allocation3 + $0x10] sm:$0xff]  ;;  %v11266_v6 = vpack.c.bf16 %v2988_v59, %v2988_v59  ;;  %v7748_v3 = vor.u32 %v9215_v58, %v7745_v28  ;;  %v7721_v18 = vld [vmem:[#allocation7 + $0x218] sm:$0xf0]  ;;  %v9224_v45 = vld [vmem:[#allocation7 + $0x284] sm:$0xf0] }
 0x5eb   :  { %3194 = vmatmul.bf16.vlgmr.msrb.gmra.mxu0 %v11258_v23  ;;  %3230 = vmatmul.bf16.vlgmr.msrb.gmra.mxu2 %v11258_v23  ;;  %v7785_v9 = vld [vmem:[#allocation7 + $0x298] sm:$0xf0]  ;;  %v7724_v17 = vor.u32 %v9209_v8, %v7721_v18  ;;  %v7711_v59 = vld [vmem:[#allocation7 + $0x200] sm:$0xf]  ;;  %v9223_v51 = vld [vmem:[#allocation7 + $0x284] sm:$0xf] }
 0x5ec   :  { %v2987_v11 = vld [vmem:[#allocation3 + $0x18] sm:$0xff]  ;;  %3716 = vmatpush.bf16.msrb.mxu0 %v7768_v62  ;;  %3752 = vmatpush.bf16.msrb.mxu2 %v7772_v61  ;;  %v9211_v61 = vld [vmem:[#allocation7 + $0x224] sm:$0xf]  ;;  %v7775_v24 = vld [vmem:[#allocation7 + $0x280] sm:$0xf] }
 0x5ed   :  { %v11262_v53 = vpack.c.bf16 %v2987_v11, %v2985_v47  ;;  %v2989_v41 = vld [vmem:[#allocation3 + $0x20] sm:$0xf]  ;;  %v7808_v47 = vor.u32 %v9232_v44, %v7807_v50  ;;  %v9230_v11 = vld [vmem:[#allocation7 + $0x2b4] sm:$0xf0]  ;;  %v9212_v62 = vld [vmem:[#allocation7 + $0x224] sm:$0xf0]  ;;  %v7732_v20 = vor.u32 %v9211_v61, %v7729_v38 }
 0x5ee   :  { %v11270_v22 = vpack.c.bf16 %v2989_v41, %v2989_v41  ;;  %v7800_v13 = vor.u32 %v9230_v11, %v7799_v21  ;;  %v7728_v55 = vor.u32 %v9212_v62, %v7727_v26  ;;  %v7895_v19 = vld [vmem:[#allocation9 + $0x70] sm:$0xf]  ;;  %v7897_v26 = vld [vmem:[#allocation9 + $0x78] sm:$0xf0]  ;;  %v9251_v61 = vld [vmem:[#allocation9 + $0x64] sm:$0xf] }
 0x5ef   :  { %3212 = vmatmul.bf16.vlgmr.msrb.gmra.mxu1 %v11262_v53  ;;  %3248 = vmatmul.bf16.vlgmr.msrb.gmra.mxu3 %v11262_v53  ;;  %v7889_v38 = vld [vmem:[#allocation9 + $0x68] sm:$0xf0]  ;;  %v9269_v16 = vld [vmem:[#allocation9 + $0xf4] sm:$0xf]  ;;  %v7879_v8 = vld [vmem:[#allocation9 + $0x50] sm:$0xf] }
 0x5f0   :  { %3734 = vmatpush.bf16.msrb.mxu1 %v7832_v4  ;;  %3770 = vmatpush.bf16.msrb.mxu3 %v7836_v25  ;;  %v7792_v4 = vor.u32 %v9228_v52, %v7791_v35  ;;  %v7793_v25 = vld [vmem:[#allocation7 + $0x2a8] sm:$0xf0]  ;;  %v7887_v35 = vld [vmem:[#allocation9 + $0x60] sm:$0xf]  ;;  %v9252_v52 = vld [vmem:[#allocation9 + $0x64] sm:$0xf0] }
 0x5f1   :  { %3717 = vmatpush.bf16.msrb.mxu0 %v7760_v60  ;;  %3753 = vmatpush.bf16.msrb.mxu2 %v7764_v48  ;;  %v7796_v46 = vor.u32 %v9227_v14, %v7793_v25  ;;  %v7783_v60 = vld [vmem:[#allocation7 + $0x290] sm:$0xf]  ;;  %v9225_v48 = vld [vmem:[#allocation7 + $0x294] sm:$0xf]  ;;  %v7892_v14 = vor.u32 %v9251_v61, %v7889_v38  ;;  %v9270_v25 = vld [vmem:[#allocation9 + $0xf4] sm:$0xf0] }
 0x5f2   :  { %v7788_v5 = vor.u32 %v9225_v48, %v7785_v9  ;;  %v9249_v9 = vld [vmem:[#allocation9 + $0x54] sm:$0xf]  ;;  %v7935_v61 = vld [vmem:[#allocation9 + $0xc0] sm:$0xf]  ;;  %v9264_v38 = vld [vmem:[#allocation9 + $0xc4] sm:$0xf0] }
 0x5f4   :  { %3735 = vmatpush.bf16.msrb.mxu1 %v7824_v7  ;;  %3771 = vmatpush.bf16.msrb.mxu3 %v7828_v12  ;;  %v9226_v7 = vld [vmem:[#allocation7 + $0x294] sm:$0xf0]  ;;  %v9208_v12 = vld [vmem:[#allocation7 + $0x204] sm:$0xf0] }
 0x5f5   :  { %3718 = vmatpush.bf16.msrb.mxu0 %v7752_v39  ;;  %3754 = vmatpush.bf16.msrb.mxu2 %v7756_v10  ;;  %v7784_v36 = vor.u32 %v9226_v7, %v7783_v60  ;;  %v7713_v39 = vld [vmem:[#allocation7 + $0x208] sm:$0xf0]  ;;  %v7712_v33 = vor.u32 %v9208_v12, %v7711_v59  ;;  %v7776_v10 = vor.u32 %v9224_v45, %v7775_v24  ;;  %v7961_v60 = vld [vmem:[#allocation9 + $0xf8] sm:$0xf0]  ;;  %v7951_v59 = vld [vmem:[#allocation9 + $0xe0] sm:$0xf] }
 0x5f6   :  { %v7716_v31 = vor.u32 %v9207_v2, %v7713_v39  ;;  %v7964_v7 = vor.u32 %v9269_v16, %v7961_v60  ;;  %v9268_v12 = vld [vmem:[#allocation9 + $0xe4] sm:$0xf0]  ;;  %v9267_v2 = vld [vmem:[#allocation9 + $0xe4] sm:$0xf]  ;;  %v7953_v39 = vld [vmem:[#allocation9 + $0xe8] sm:$0xf0] }
 0x5f7   :  { %v7952_v45 = vor.u32 %v9268_v12, %v7951_v59  ;;  %v7937_v16 = vld [vmem:[#allocation9 + $0xc8] sm:$0xf0]  ;;  %v7855_v60 = vld [vmem:[#allocation9 + $0x20] sm:$0xf]  ;;  %v9262_v59 = vld [vmem:[#allocation9 + $0xb4] sm:$0xf0] }
 0x5f8   :  { %3736 = vmatpush.bf16.msrb.mxu1 %v7816_v42  ;;  %3772 = vmatpush.bf16.msrb.mxu3 %v7820_v49  ;;  %v7777_v42 = vld [vmem:[#allocation7 + $0x288] sm:$0xf0]  ;;  %v9261_v12 = vld [vmem:[#allocation9 + $0xb4] sm:$0xf] }
 0x5f9   :  { %3719 = vmatpush.bf16.msrb.mxu0 %v7744_v40  ;;  %3755 = vmatpush.bf16.msrb.mxu2 %v7748_v3  ;;  %v7780_v63 = vor.u32 %v9223_v51, %v7777_v42  ;;  %v9248_v51 = vld [vmem:[#allocation9 + $0x44] sm:$0xf0] }
 0x5fb   :  { %3199 = vmatmul.bf16.gmra.mxu0 %v11266_v6  ;;  %3235 = vmatmul.bf16.gmra.mxu2 %v11266_v6 }
 0x5fc   :  { %3737 = vmatpush.bf16.msrb.mxu1 %v7808_v47  ;;  %3773 = vmatpush.bf16.msrb.mxu3 %v7812_v27 }
 0x5fd   :  { %3720 = vmatpush.bf16.msrb.mxu0 %v7736_v30  ;;  %3756 = vmatpush.bf16.msrb.mxu2 %v7740_v0  ;;  %v9253_v0 = vld [vmem:[#allocation9 + $0x74] sm:$0xf] }
 0x5ff   :  { %3217 = vmatmul.bf16.gmra.mxu1 %v11270_v22  ;;  %3253 = vmatmul.bf16.gmra.mxu3 %v11270_v22 }
 0x600   :  { %3738 = vmatpush.bf16.msrb.mxu1 %v7800_v13  ;;  %3774 = vmatpush.bf16.msrb.mxu3 %v7804_v15  ;;  %v9254_v13 = vld [vmem:[#allocation9 + $0x74] sm:$0xf0]  ;;  %v7900_v15 = vor.u32 %v9253_v0, %v7897_v26  ;;  %v7863_v0 = vld [vmem:[#allocation9 + $0x30] sm:$0xf]  ;;  %v9245_v26 = vld [vmem:[#allocation9 + $0x34] sm:$0xf] }
 0x601   :  { %3721 = vmatpush.bf16.msrb.mxu0 %v7728_v55  ;;  %3757 = vmatpush.bf16.msrb.mxu2 %v7732_v20  ;;  %v7896_v54 = vor.u32 %v9254_v13, %v7895_v19  ;;  %v7959_v20 = vld [vmem:[#allocation9 + $0xf0] sm:$0xf]  ;;  %v7945_v19 = vld [vmem:[#allocation9 + $0xd8] sm:$0xf0] }
 0x604   :  { %3739 = vmatpush.bf16.msrb.mxu1 %v7792_v4  ;;  %3775 = vmatpush.bf16.msrb.mxu3 %v7796_v46  ;;  %v7888_v4 = vor.u32 %v9252_v52, %v7887_v35  ;;  %v7960_v46 = vor.u32 %v9270_v25, %v7959_v20  ;;  %v7865_v52 = vld [vmem:[#allocation9 + $0x38] sm:$0xf0]  ;;  %v7936_v20 = vor.u32 %v9264_v38, %v7935_v61  ;;  %v9263_v25 = vld [vmem:[#allocation9 + $0xc4] sm:$0xf]  ;;  %v7841_v38 = vld [vmem:[#allocation9 + $0x8] sm:$0xf0] }
 0x605   :  { %3722 = vmatpush.bf16.msrb.mxu0 %v7720_v32  ;;  %3758 = vmatpush.bf16.msrb.mxu2 %v7724_v17  ;;  %v9250_v32 = vld [vmem:[#allocation9 + $0x54] sm:$0xf0]  ;;  %v9239_v61 = vld [vmem:[#allocation9 + $0x4] sm:$0xf] }
 0x606   :  { %v7880_v48 = vor.u32 %v9250_v32, %v7879_v8  ;;  %v9243_v8 = vld [vmem:[#allocation9 + $0x24] sm:$0xf] }
 0x608   :  { %3740 = vmatpush.bf16.msrb.mxu1 %v7784_v36  ;;  %3776 = vmatpush.bf16.msrb.mxu3 %v7788_v5  ;;  %v7881_v36 = vld [vmem:[#allocation9 + $0x58] sm:$0xf0]  ;;  %v7956_v5 = vor.u32 %v9267_v2, %v7953_v39 }
 0x609   :  { %3723 = vmatpush.bf16.msrb.mxu0 %v7712_v33  ;;  %3759 = vmatpush.bf16.msrb.mxu2 %v7716_v31  ;;  %v7884_v17 = vor.u32 %v9249_v9, %v7881_v36  ;;  %v7871_v33 = vld [vmem:[#allocation9 + $0x40] sm:$0xf]  ;;  %v9247_v31 = vld [vmem:[#allocation9 + $0x44] sm:$0xf]  ;;  %v7857_v9 = vld [vmem:[#allocation9 + $0x28] sm:$0xf0] }
 0x60a   :  { %v7860_v36 = vor.u32 %v9243_v8, %v7857_v9  ;;  %v7929_v39 = vld [vmem:[#allocation9 + $0xb8] sm:$0xf0]  ;;  %v9286_v9 = vld [vmem:[#allocation9 + $0x174] sm:$0xf0] }
 0x60b   :  { %3459 = vmatmul.bf16.vlgmr.msra.gmra.mxu0 %v11258_v23  ;;  %3495 = vmatmul.bf16.vlgmr.msra.gmra.mxu2 %v11258_v23 }
 0x60c   :  { %3741 = vmatpush.bf16.msrb.mxu1 %v7776_v10  ;;  %3777 = vmatpush.bf16.msrb.mxu3 %v7780_v63  ;;  %v7872_v10 = vor.u32 %v9248_v51, %v7871_v33  ;;  %v7873_v63 = vld [vmem:[#allocation9 + $0x48] sm:$0xf0]  ;;  %v7847_v33 = vld [vmem:[#allocation9 + $0x10] sm:$0xf]  ;;  %v9242_v51 = vld [vmem:[#allocation9 + $0x14] sm:$0xf0] }
 0x60d   :  { %4092 = vmatpush.bf16.msra.mxu0 %v7896_v54  ;;  %4128 = vmatpush.bf16.msra.mxu2 %v7900_v15  ;;  %v9246_v54 = vld [vmem:[#allocation9 + $0x34] sm:$0xf0] }
 0x60e   :  { %v7864_v35 = vor.u32 %v9246_v54, %v7863_v0 }
 0x60f   :  { %3477 = vmatmul.bf16.vlgmr.msra.gmra.mxu1 %v11262_v53  ;;  %3513 = vmatmul.bf16.vlgmr.msra.gmra.mxu3 %v11262_v53 }
 0x610   :  { %4110 = vmatpush.bf16.msra.mxu1 %v7960_v46  ;;  %4146 = vmatpush.bf16.msra.mxu3 %v7964_v7  ;;  %v7940_v46 = vor.u32 %v9263_v25, %v7937_v16  ;;  %v9244_v7 = vld [vmem:[#allocation9 + $0x24] sm:$0xf0] }
 0x611   :  { %4093 = vmatpush.bf16.msra.mxu0 %v7888_v4  ;;  %4129 = vmatpush.bf16.msra.mxu2 %v7892_v14  ;;  %v7868_v4 = vor.u32 %v9245_v26, %v7865_v52  ;;  %v7839_v26 = vld [vmem:[#allocation9] sm:$0xf] }
 0x614   :  { %4111 = vmatpush.bf16.msra.mxu1 %v7952_v45  ;;  %4147 = vmatpush.bf16.msra.mxu3 %v7956_v5  ;;  %v7932_v5 = vor.u32 %v9261_v12, %v7929_v39  ;;  %v8025_v12 = vld [vmem:[#allocation9 + $0x178] sm:$0xf0] }
 0x615   :  { %4094 = vmatpush.bf16.msra.mxu0 %v7880_v48  ;;  %4130 = vmatpush.bf16.msra.mxu2 %v7884_v17  ;;  %v7856_v48 = vor.u32 %v9244_v7, %v7855_v60  ;;  %v7927_v17 = vld [vmem:[#allocation9 + $0xb0] sm:$0xf]  ;;  %v7913_v60 = vld [vmem:[#allocation9 + $0x98] sm:$0xf0] }
 0x616   :  { %v7928_v2 = vor.u32 %v9262_v59, %v7927_v17 }
 0x619   :  { %4095 = vmatpush.bf16.msra.mxu0 %v7872_v10 }
 0x61b   :  { %3464 = vmatmul.bf16.gmra.mxu0 %v11266_v6  ;;  %3500 = vmatmul.bf16.gmra.mxu2 %v11266_v6 }
 0x61d   :  { %4096 = vmatpush.bf16.msra.mxu0 %v7864_v35 }
 0x61f   :  { %3482 = vmatmul.bf16.gmra.mxu1 %v11270_v22  ;;  %3518 = vmatmul.bf16.gmra.mxu3 %v11270_v22 }
 0x621   :  { %4097 = vmatpush.bf16.msra.mxu0 %v7856_v48  ;;  %v8023_v48 = vld [vmem:[#allocation9 + $0x170] sm:$0xf] }
 0x62b   :  { %3724 = vmatmul.bf16.vlgmr.msrb.gmra.mxu0 %v11258_v23  ;;  %3760 = vmatmul.bf16.vlgmr.msrb.gmra.mxu2 %v11258_v23 }
 0x62f   :  { %3742 = vmatmul.bf16.vlgmr.msrb.gmra.mxu1 %v11262_v53  ;;  %3778 = vmatmul.bf16.vlgmr.msrb.gmra.mxu3 %v11262_v53 }
 0x63b   :  { %3729 = vmatmul.bf16.gmra.mxu0 %v11266_v6  ;;  %3765 = vmatmul.bf16.gmra.mxu2 %v11266_v6 }
 0x63f   :  { %3747 = vmatmul.bf16.gmra.mxu1 %v11270_v22  ;;  %3783 = vmatmul.bf16.gmra.mxu3 %v11270_v22 }
 0x668   :  { %v11290_v50 = vpop.f32.mrf.mxu0 }
 0x66c   :  { %v11292_v44 = vpop.f32.mrf.mxu1 }
 0x66d   :  { %v3214_v7 = vadd.f32 %v11292_v44, %v11290_v50 }
 0x66e   :  { %v11294_v58 = vpop.f32.mrf.mxu2 }
 0x670   :  { %v11296_v28 = vpop.f32.mrf.mxu0 }
 0x672   :  { %v11298_v23 = vpop.f32.mrf.mxu3 }
 0x674   :  { %v11300_v49 = vpop.f32.mrf.mxu1 }
 0x676   :  { %v11302_v53 = vpop.f32.mrf.mxu2 }
 0x678   :  { %v11304_v40 = vpop.f32.mrf.mxu0 }
 0x67a   :  { %v11306_v6 = vpop.f32.mrf.mxu3 }
 0x67c   :  { %v11308_v56 = vpop.f32.mrf.mxu1 }
 0x67e   :  { %v3236_v29 = vpop.f32.mrf.mxu2 }
 0x680   :  { %v3202_v41 = vpop.f32.mrf.mxu0 }
 0x681   :  { %v7943_v41 = vld [vmem:[#allocation9 + $0xd0] sm:$0xf] }
 0x682   :  { %v3254_v47 = vpop.f32.mrf.mxu3 }
 0x683   :  { %v11310_v3 = vadd.f32 %v3254_v47, %v3236_v29  ;;  %v7876_v29 = vor.u32 %v9247_v31, %v7873_v63  ;;  %v9266_v47 = vld [vmem:[#allocation9 + $0xd4] sm:$0xf0]  ;;  %v7848_v63 = vor.u32 %v9242_v51, %v7847_v33 }
 0x684   :  { %v3220_v27 = vpop.f32.mrf.mxu1 }
 0x685   :  { %4131 = vmatpush.bf16.msra.mxu2 %v7876_v29  ;;  %v7849_v29 = vld [vmem:[#allocation9 + $0x18] sm:$0xf0]  ;;  %4098 = vmatpush.bf16.msra.mxu0 %v7848_v63 }
 0x686   :  { %v3238_v22 = vpop.f32.mrf.mxu2 }
 0x687   :  { %v7944_v22 = vor.u32 %v9266_v47, %v7943_v41  ;;  %v7919_v47 = vld [vmem:[#allocation9 + $0xa0] sm:$0xf] }
 0x688   :  { %v11312_v57 = vpop.f32.mrf.mxu0 }
 0x689   :  { %4112 = vmatpush.bf16.msra.mxu1 %v7944_v22  ;;  %4132 = vmatpush.bf16.msra.mxu2 %v7868_v4  ;;  %v9260_v22 = vld [vmem:[#allocation9 + $0xa4] sm:$0xf0] }
 0x68a   :  { %v3256_v1 = vpop.f32.mrf.mxu3 }
 0x68b   :  { %v9265_v1 = vld [vmem:[#allocation9 + $0xd4] sm:$0xf] }
 0x68c   :  { %v11314_v21 = vpop.f32.mrf.mxu1  ;;  %v7948_v13 = vor.u32 %v9265_v1, %v7945_v19  ;;  %v9259_v1 = vld [vmem:[#allocation9 + $0xa4] sm:$0xf] }
 0x68d   :  { %4113 = vmatpush.bf16.msra.mxu1 %v7936_v20  ;;  %4133 = vmatpush.bf16.msra.mxu2 %v7860_v36  ;;  %v3479_v19 = vadd.f32 %v11314_v21, %v11312_v57  ;;  %v7844_v21 = vor.u32 %v9239_v61, %v7841_v38  ;;  %v9285_v36 = vld [vmem:[#allocation9 + $0x174] sm:$0xf]  ;;  %v8087_v61 = vld [vmem:[#allocation9 + $0x1f0] sm:$0xf]  ;;  %v9302_v38 = vld [vmem:[#allocation9 + $0x1f4] sm:$0xf0] }
 0x68e   :  { %v11316_v30 = vpop.f32.mrf.mxu2  ;;  %4148 = vmatpush.bf16.msra.mxu3 %v7948_v13  ;;  %v8028_v33 = vor.u32 %v9285_v36, %v8025_v12  ;;  %v7999_v12 = vld [vmem:[#allocation9 + $0x140] sm:$0xf] }
 0x68f   :  { %v3792_v20 = vrot.slane %v3479_v19, 1 }
 0x690   :  { %v11318_v11 = vpop.f32.mrf.mxu0 }
 0x691   :  { %4114 = vmatpush.bf16.msra.mxu1 %v7928_v2  ;;  %v9256_v2 = vld [vmem:[#allocation9 + $0x84] sm:$0xf0] }
 0x692   :  { %v11320_v37 = vpop.f32.mrf.mxu3  ;;  %4149 = vmatpush.bf16.msra.mxu3 %v7940_v46 }
 0x693   :  { %v11344_v13 = vadd.f32 %v11320_v37, %v11316_v30  ;;  %v7911_v30 = vld [vmem:[#allocation9 + $0x90] sm:$0xf]  ;;  %v9258_v37 = vld [vmem:[#allocation9 + $0x94] sm:$0xf0] }
 0x694   :  { %v11322_v34 = vpop.f32.mrf.mxu1  ;;  %v7912_v46 = vor.u32 %v9258_v37, %v7911_v30  ;;  %v3216_v30 = vadd.f32 %v11300_v49, %v11296_v28  ;;  %v3219_v37 = vadd.f32 %v11308_v56, %v11304_v40  ;;  %v9281_v28 = vld [vmem:[#allocation9 + $0x154] sm:$0xf]  ;;  %v8009_v49 = vld [vmem:[#allocation9 + $0x158] sm:$0xf0] }
 0x695   :  { %v11338_v10 = vadd.f32 %v11322_v34, %v11318_v11  ;;  %v7920_v11 = vor.u32 %v9260_v22, %v7919_v47  ;;  %v7921_v34 = vld [vmem:[#allocation9 + $0xa8] sm:$0xf0]  ;;  %v3795_v25 = vrot.slane %v11344_v13, 1  ;;  %v8012_v36 = vor.u32 %v9281_v28, %v8009_v49  ;;  %v8063_v28 = vld [vmem:[#allocation9 + $0x1c0] sm:$0xf] }
 0x696   :  { %v11324_v62 = vpop.f32.mrf.mxu2  ;;  %4150 = vmatpush.bf16.msra.mxu3 %v7932_v5  ;;  %v7924_v54 = vor.u32 %v9259_v1, %v7921_v34  ;;  %v8017_v13 = vld [vmem:[#allocation9 + $0x168] sm:$0xf0]  ;;  %v9296_v49 = vld [vmem:[#allocation9 + $0x1c4] sm:$0xf0] }
 0x697   :  { %v3793_v35 = vrot.slane %v11338_v10, 1  ;;  %4115 = vmatpush.bf16.msra.mxu1 %v7920_v11 }
 0x698   :  { %v11326_v55 = vpop.f32.mrf.mxu0 }
 0x699   :  { %v3794_v17 = vsel %vm323_vm1, %v3792_v20, %v3793_v35  ;;  %v8089_v20 = vld [vmem:[#allocation9 + $0x1f8] sm:$0xf0] }
 0x69a   :  { %v11328_v43 = vpop.f32.mrf.mxu3  ;;  %4151 = vmatpush.bf16.msra.mxu3 %v7924_v54  ;;  %v3800_v47 = vadd.f32 %v3794_v17, %v3214_v7  ;;  %v8081_v17 = vld [vmem:[#allocation9 + $0x1e8] sm:$0xf0] }
 0x69b   :  { %v11349_v57 = vadd.f32 %v11328_v43, %v11324_v62  ;;  %v11357_v62 = vld [vmem:[%s12308_s12] sm:$0x3]  ;;  %4116 = vmatpush.bf16.msra.mxu1 %v7912_v46 }
 0x69c   :  { %v11330_v18 = vpop.f32.mrf.mxu1  ;;  %v11375_v34 = vperm.slane %v11357_v62, 0 }
 0x69d   :  { %v11364_v59 = vadd.f32 %v11330_v18, %v11326_v55  ;;  %v3796_v39 = vrot.slane %v11349_v57, 1  ;;  %v8015_v18 = vld [vmem:[#allocation9 + $0x160] sm:$0xf]  ;;  %v7993_v57 = vld [vmem:[#allocation9 + $0x138] sm:$0xf0] }
 0x69e   :  { %v11332_v24 = vpop.f32.mrf.mxu2 }
 0x6a0   :  { %v3467_v42 = vpop.f32.mrf.mxu0 }
 0x6a1   :  { %v9241_v42 = vld [vmem:[#allocation9 + $0x14] sm:$0xf] }
 0x6a2   :  { %v11334_v27 = vpop.f32.mrf.mxu3  ;;  %v7852_v41 = vor.u32 %v9241_v42, %v7849_v29  ;;  %v9255_v42 = vld [vmem:[#allocation9 + $0x84] sm:$0xf]  ;;  %v9284_v29 = vld [vmem:[#allocation9 + $0x164] sm:$0xf0] }
 0x6a3   :  { %v8016_v19 = vor.u32 %v9284_v29, %v8015_v18  ;;  %v11391_v46 = vadd.f32 %v11334_v27, %v11332_v24  ;;  %v9300_v24 = vld [vmem:[#allocation9 + $0x1e4] sm:$0xf0]  ;;  %v9299_v27 = vld [vmem:[#allocation9 + $0x1e4] sm:$0xf] }
 0x6a4   :  { %v3485_v15 = vpop.f32.mrf.mxu1  ;;  %4134 = vmatpush.bf16.msra.mxu2 %v7852_v41  ;;  %v9283_v41 = vld [vmem:[#allocation9 + $0x164] sm:$0xf] }
 0x6a5   :  { %v9240_v15 = vld [vmem:[#allocation9 + $0x4] sm:$0xf0] }
 0x6a6   :  { %v3503_v14 = vpop.f32.mrf.mxu2  ;;  %v7840_v4 = vor.u32 %v9240_v15, %v7839_v26  ;;  %v8020_v26 = vor.u32 %v9283_v41, %v8017_v13  ;;  %v3250_v15 = vadd.f32 %v11298_v23, %v11294_v58  ;;  %v8088_v23 = vor.u32 %v9302_v38, %v8087_v61  ;;  %v8071_v41 = vld [vmem:[#allocation9 + $0x1d0] sm:$0xf] }
 0x6a7   :  { %v9257_v14 = vld [vmem:[#allocation9 + $0x94] sm:$0xf] }
 0x6a8   :  { %v3725_v32 = vpop.f32.mrf.mxu0  ;;  %4099 = vmatpush.bf16.msra.mxu0 %v7840_v4  ;;  %4135 = vmatpush.bf16.msra.mxu2 %v7844_v21  ;;  %v7916_v43 = vor.u32 %v9257_v14, %v7913_v60  ;;  %v9301_v21 = vld [vmem:[#allocation9 + $0x1f4] sm:$0xf] }
 0x6a9   :  { %v8092_v7 = vor.u32 %v9301_v21, %v8089_v20 }
 0x6aa   :  { %v3521_v45 = vpop.f32.mrf.mxu3  ;;  %4152 = vmatpush.bf16.msra.mxu3 %v7916_v43  ;;  %v8079_v43 = vld [vmem:[#allocation9 + $0x1e0] sm:$0xf] }
 0x6ab   :  { %v7903_v45 = vld [vmem:[#allocation9 + $0x80] sm:$0xf] }
 0x6ac   :  { %v3743_v31 = vpop.f32.mrf.mxu1  ;;  %v7904_v51 = vor.u32 %v9256_v2, %v7903_v45  ;;  %4393 = vmatpush.bf16.msrb.mxu2 %v8028_v33  ;;  %v9280_v45 = vld [vmem:[#allocation9 + $0x144] sm:$0xf0] }
 0x6ad   :  { %v3744_v8 = vadd.f32 %v3743_v31, %v3725_v32  ;;  %v8024_v32 = vor.u32 %v9286_v9, %v8023_v48  ;;  %v7905_v31 = vld [vmem:[#allocation9 + $0x88] sm:$0xf0] }
 0x6ae   :  { %v3761_v0 = vpop.f32.mrf.mxu2  ;;  %v7908_v55 = vor.u32 %v9255_v42, %v7905_v31  ;;  %4117 = vmatpush.bf16.msra.mxu1 %v7904_v51  ;;  %v8000_v51 = vor.u32 %v9280_v45, %v7999_v12  ;;  %v9279_v42 = vld [vmem:[#allocation9 + $0x144] sm:$0xf]  ;;  %v8001_v31 = vld [vmem:[#allocation9 + $0x148] sm:$0xf0] }
 0x6af   :  { %4357 = vmatpush.bf16.msrb.mxu0 %v8024_v32  ;;  %v3806_v22 = vrot.slane %v3744_v8, 2  ;;  %v8084_v32 = vor.u32 %v9299_v27, %v8081_v17  ;;  %v8004_v29 = vor.u32 %v9279_v42, %v8001_v31  ;;  %v7983_v27 = vld [vmem:[#allocation9 + $0x120] sm:$0xf]  ;;  %v9276_v17 = vld [vmem:[#allocation9 + $0x124] sm:$0xf0] }
 0x6b0   :  { %v3727_v52 = vpop.f32.mrf.mxu0  ;;  %4153 = vmatpush.bf16.msra.mxu3 %v7908_v55  ;;  %4394 = vmatpush.bf16.msrb.mxu2 %v8020_v26  ;;  %v8073_v26 = vld [vmem:[#allocation9 + $0x1d8] sm:$0xf0]  ;;  %v9275_v12 = vld [vmem:[#allocation9 + $0x124] sm:$0xf]  ;;  %v9294_v42 = vld [vmem:[#allocation9 + $0x1b4] sm:$0xf0] }
 0x6b2   :  { %v3779_v16 = vpop.f32.mrf.mxu3  ;;  %4375 = vmatpush.bf16.msrb.mxu1 %v8088_v23 }
 0x6b3   :  { %v11366_v50 = vadd.f32 %v3779_v16, %v3761_v0  ;;  %v3818_v0 = vrot.slane %v11364_v59, 1  ;;  %4358 = vmatpush.bf16.msrb.mxu0 %v8016_v19  ;;  %v9282_v16 = vld [vmem:[#allocation9 + $0x154] sm:$0xf0] }
 0x6b4   :  { %v3745_v44 = vpop.f32.mrf.mxu1  ;;  %4411 = vmatpush.bf16.msrb.mxu3 %v8092_v7  ;;  %4395 = vmatpush.bf16.msrb.mxu2 %v8012_v36 }
 0x6b5   :  { %v11369_v5 = vadd.f32 %v3745_v44, %v3727_v52  ;;  %v3809_v11 = vrot.slane %v11366_v50, 2  ;;  %v3797_v52 = vsel %vm323_vm1, %v3795_v25, %v3796_v39  ;;  %v8007_v25 = vld [vmem:[#allocation9 + $0x150] sm:$0xf]  ;;  %v3819_v56 = vsel %vm323_vm1, %v3793_v35, %v3818_v0 }
 0x6b6   :  { %v3763_v63 = vpop.f32.mrf.mxu2  ;;  %v8008_v8 = vor.u32 %v9282_v16, %v8007_v25  ;;  %v3801_v40 = vadd.f32 %v3797_v52, %v3250_v15  ;;  %v8080_v44 = vor.u32 %v9300_v24, %v8079_v43  ;;  %v3828_v2 = vadd.f32 %v3818_v0, %v3219_v37  ;;  %v9277_v16 = vld [vmem:[#allocation9 + $0x134] sm:$0xf] }
 0x6b7   :  { %v3807_v1 = vrot.slane %v11369_v5, 2  ;;  %v11401_v35 = vperm.slane %v11357_v62, 1  ;;  %v7991_v5 = vld [vmem:[#allocation9 + $0x130] sm:$0xf] }
 0x6b8   :  { %v3730_v54 = vpop.f32.mrf.mxu0  ;;  %4359 = vmatpush.bf16.msrb.mxu0 %v8008_v8  ;;  %4376 = vmatpush.bf16.msrb.mxu1 %v8080_v44  ;;  %v7996_v8 = vor.u32 %v9277_v16, %v7993_v57  ;;  %v9290_v16 = vld [vmem:[#allocation9 + $0x194] sm:$0xf0]  ;;  %v9289_v57 = vld [vmem:[#allocation9 + $0x194] sm:$0xf] }
 0x6b9   :  { %v3808_v4 = vsel %vm348_vm2, %v3806_v22, %v3807_v1  ;;  %v3826_v22 = vadd.f32 %v3819_v56, %v3216_v30  ;;  %4412 = vmatpush.bf16.msrb.mxu3 %v8084_v32  ;;  %4396 = vmatpush.bf16.msrb.mxu2 %v8004_v29  ;;  %v7984_v32 = vor.u32 %v9276_v17, %v7983_v27  ;;  %v8057_v29 = vld [vmem:[#allocation9 + $0x1b8] sm:$0xf0]  ;;  %v8143_v27 = vld [vmem:[#allocation9 + $0x260] sm:$0xf]  ;;  %v9316_v17 = vld [vmem:[#allocation9 + $0x264] sm:$0xf0] }
 0x6ba   :  { %v3814_v14 = vadd.f32 %v3808_v4, %v3800_v47  ;;  %v3781_v58 = vpop.f32.mrf.mxu3  ;;  %v9298_v47 = vld [vmem:[#allocation9 + $0x1d4] sm:$0xf0] }
 0x6bb   :  { %v11393_v60 = vadd.f32 %v3781_v58, %v3763_v63  ;;  %v3820_v63 = vrot.slane %v11391_v46, 1  ;;  %v8072_v0 = vor.u32 %v9298_v47, %v8071_v41  ;;  %v7975_v41 = vld [vmem:[#allocation9 + $0x110] sm:$0xf] }
 0x6bc   :  { %v3850_v48 = vadd.f32 %v11375_v34, %v3814_v14  ;;  %v3748_v9 = vpop.f32.mrf.mxu1  ;;  %4360 = vmatpush.bf16.msrb.mxu0 %v8000_v51  ;;  %v3252_v14 = vadd.f32 %v11306_v6, %v11302_v53  ;;  %v8064_v6 = vor.u32 %v9296_v49, %v8063_v28  ;;  %v8055_v51 = vld [vmem:[#allocation9 + $0x1b0] sm:$0xf] }
 0x6bd   :  { %v3810_v59 = vrot.slane %v11393_v60, 2  ;;  %v3749_v50 = vadd.f32 %v3748_v9, %v3730_v54  ;;  %v9297_v54 = vld [vmem:[#allocation9 + $0x1d4] sm:$0xf]  ;;  %v3821_v21 = vsel %vm323_vm1, %v3796_v39, %v3820_v63  ;;  %4377 = vmatpush.bf16.msrb.mxu1 %v8072_v0  ;;  %v3829_v39 = vadd.f32 %v3820_v63, %v11310_v3  ;;  %4397 = vmatpush.bf16.msrb.mxu2 %v7996_v8  ;;  %v7977_v0 = vld [vmem:[#allocation9 + $0x118] sm:$0xf0] }
 0x6be   :  { %v3852_v10 = vmax.f32 %v3850_v48, 0.0  ;;  %v3766_v33 = vpop.f32.mrf.mxu2  ;;  %v3827_v43 = vadd.f32 %v3821_v21, %v3252_v14  ;;  %v8065_v48 = vld [vmem:[#allocation9 + $0x1c8] sm:$0xf0]  ;;  %v8056_v63 = vor.u32 %v9294_v42, %v8055_v51  ;;  %v9318_v8 = vld [vmem:[#allocation9 + $0x274] sm:$0xf0] }
 0x6bf   :  { %v3811_v55 = vsel %vm348_vm2, %v3809_v11, %v3810_v59  ;;  %v3832_v18 = vrot.slane %v3749_v50, 2  ;;  %v8076_v11 = vor.u32 %v9297_v54, %v8073_v26  ;;  %v8047_v54 = vld [vmem:[#allocation9 + $0x1a0] sm:$0xf]  ;;  %v8135_v51 = vld [vmem:[#allocation9 + $0x250] sm:$0xf] }
 0x6c0   :  { %v3864_v19 = vrot.slane %v3852_v10, 7  ;;  %v3815_v13 = vadd.f32 %v3811_v55, %v3801_v40  ;;  %v3732_v62 = vpop.f32.mrf.mxu0  ;;  %v9293_v55 = vld [vmem:[#allocation9 + $0x1b4] sm:$0xf]  ;;  %v9314_v42 = vld [vmem:[#allocation9 + $0x254] sm:$0xf0] }
 0x6c1   :  { %v3833_v15 = vsel %vm348_vm2, %v3807_v1, %v3832_v18  ;;  %v3842_v52 = vadd.f32 %v3832_v18, %v3828_v2  ;;  %v9278_v1 = vld [vmem:[#allocation9 + $0x134] sm:$0xf0]  ;;  %4413 = vmatpush.bf16.msrb.mxu3 %v8076_v11  ;;  %4378 = vmatpush.bf16.msrb.mxu1 %v8064_v6  ;;  %v7985_v2 = vld [vmem:[#allocation9 + $0x128] sm:$0xf0] }
 0x6c2   :  { %3868 = vst [vmem:[#allocation3 + $0x8] sm:$0xfe] %v3864_v19  ;;  %v3840_v4 = vadd.f32 %v3833_v15, %v3826_v22  ;;  %v3784_v61 = vpop.f32.mrf.mxu3  ;;  %v3851_v38 = vadd.f32 %v11401_v35, %v3815_v13  ;;  %v7992_v25 = vor.u32 %v9278_v1, %v7991_v5  ;;  %v8060_v22 = vor.u32 %v9293_v55, %v8057_v29  ;;  %v9273_v13 = vld [vmem:[#allocation9 + $0x114] sm:$0xf]  ;;  %v9292_v15 = vld [vmem:[#allocation9 + $0x1a4] sm:$0xf0] }
 0x6c3   :  { %3870 = vst [vmem:[#allocation3] sm:$0x1] %v3864_v19  ;;  %v3856_v30 = vadd.f32 %v11375_v34, %v3842_v52  ;;  %v3785_v37 = vadd.f32 %v3784_v61, %v3766_v33  ;;  %v7988_v33 = vor.u32 %v9275_v12, %v7985_v2  ;;  %v9274_v19 = vld [vmem:[#allocation9 + $0x114] sm:$0xf0]  ;;  %v7980_v26 = vor.u32 %v9273_v13, %v7977_v0  ;;  %v9291_v52 = vld [vmem:[#allocation9 + $0x1a4] sm:$0xf] }
 0x6c4   :  { %v3854_v58 = vadd.f32 %v11375_v34, %v3840_v4  ;;  %v3853_v23 = vmax.f32 %v3851_v38, 0.0  ;;  %v3750_v20 = vpop.f32.mrf.mxu1  ;;  %4361 = vmatpush.bf16.msrb.mxu0 %v7992_v25  ;;  %v9295_v34 = vld [vmem:[#allocation9 + $0x1c4] sm:$0xf]  ;;  %v8048_v4 = vor.u32 %v9292_v15, %v8047_v54  ;;  %v8049_v61 = vld [vmem:[#allocation9 + $0x1a8] sm:$0xf0]  ;;  %v8136_v29 = vor.u32 %v9314_v42, %v8135_v51 }
 0x6c5   :  { %v3860_v46 = vmax.f32 %v3856_v30, 0.0  ;;  %v3834_v7 = vrot.slane %v3785_v37, 2  ;;  %v8068_v24 = vor.u32 %v9295_v34, %v8065_v48  ;;  %4398 = vmatpush.bf16.msrb.mxu2 %v7988_v33  ;;  %4379 = vmatpush.bf16.msrb.mxu1 %v8056_v63  ;;  %v7967_v38 = vld [vmem:[#allocation9 + $0x100] sm:$0xf]  ;;  %v8052_v37 = vor.u32 %v9291_v52, %v8049_v61  ;;  %v9272_v5 = vld [vmem:[#allocation9 + $0x104] sm:$0xf0] }
 0x6c6   :  { %v3858_v40 = vmax.f32 %v3854_v58, 0.0  ;;  %v3865_v56 = vrot.slane %v3853_v23, 7  ;;  %v3768_v53 = vpop.f32.mrf.mxu2  ;;  %v7968_v14 = vor.u32 %v9272_v5, %v7967_v38  ;;  %v9271_v58 = vld [vmem:[#allocation9 + $0x104] sm:$0xf]  ;;  %v7969_v23 = vld [vmem:[#allocation9 + $0x108] sm:$0xf0] }
 0x6c7   :  { %v3878_v9 = vrot.slane %v3860_v46, 7  ;;  %v3835_v36 = vsel %vm348_vm2, %v3810_v59, %v3834_v7  ;;  %v3843_v3 = vadd.f32 %v3834_v7, %v3829_v39  ;;  %4414 = vmatpush.bf16.msrb.mxu3 %v8068_v24  ;;  %v7972_v20 = vor.u32 %v9271_v58, %v7969_v23  ;;  %v8039_v25 = vld [vmem:[#allocation9 + $0x190] sm:$0xf]  ;;  %v8041_v46 = vld [vmem:[#allocation9 + $0x198] sm:$0xf0] }
 0x6c8   :  { %v3876_v50 = vrot.slane %v3858_v40, 7  ;;  %v3841_v44 = vadd.f32 %v3835_v36, %v3827_v43  ;;  %3869 = vst [vmem:[#allocation3 + $0x10] sm:$0xfe] %v3865_v56  ;;  %4362 = vmatpush.bf16.msrb.mxu0 %v7984_v32  ;;  %v8040_v39 = vor.u32 %v9290_v16, %v8039_v25  ;;  %v8151_v7 = vld [vmem:[#allocation9 + $0x270] sm:$0xf]  ;;  %v8044_v49 = vor.u32 %v9289_v57, %v8041_v46 }
 0x6c9   :  { %v3857_v45 = vadd.f32 %v11401_v35, %v3843_v3  ;;  %3871 = vst [vmem:[#allocation3 + $0x18] sm:$0x1] %v3865_v56  ;;  %v3890_v21 = vld [vmem:[#allocation3 + $0x8] sm:$0xff]  ;;  %4399 = vmatpush.bf16.msrb.mxu2 %v7980_v26  ;;  %4380 = vmatpush.bf16.msrb.mxu1 %v8048_v4  ;;  %v8152_v43 = vor.u32 %v9318_v8, %v8151_v7  ;;  %v9317_v40 = vld [vmem:[#allocation9 + $0x274] sm:$0xf] }
 0x6ca   :  { %v3879_v60 = vsel %vm455_vm3, %v3876_v50, %v3878_v9  ;;  %3886 = vst [vmem:[#allocation3] sm:$0xf8] %v3876_v50  ;;  %v3855_v59 = vadd.f32 %v11401_v35, %v3841_v44  ;;  %v3786_v10 = vpop.f32.mrf.mxu3  ;;  %v7976_v35 = vor.u32 %v9274_v19, %v7975_v41  ;;  %v8153_v56 = vld [vmem:[#allocation9 + $0x278] sm:$0xf0]  ;;  %v8031_v53 = vld [vmem:[#allocation9 + $0x180] sm:$0xf]  ;;  %v8144_v44 = vor.u32 %v9316_v17, %v8143_v27 }
 0x6cb   :  { %3888 = vst [vmem:[#allocation3 + $0x28] sm:$0x7] %v3879_v60  ;;  %v3861_v31 = vmax.f32 %v3857_v45, 0.0  ;;  %4415 = vmatpush.bf16.msrb.mxu3 %v8060_v22  ;;  %v8156_v6 = vor.u32 %v9317_v40, %v8153_v56  ;;  %v9288_v34 = vld [vmem:[#allocation9 + $0x184] sm:$0xf0] }
 0x6cc   :  { %v3859_v18 = vmax.f32 %v3855_v59, 0.0  ;;  %4363 = vmatpush.bf16.msrb.mxu0 %v7976_v35  ;;  %v9287_v48 = vld [vmem:[#allocation9 + $0x184] sm:$0xf]  ;;  %v8033_v9 = vld [vmem:[#allocation9 + $0x188] sm:$0xf0]  ;;  %v8032_v3 = vor.u32 %v9288_v34, %v8031_v53 }
 0x6cd   :  { %v3880_v47 = vrot.slane %v3861_v31, 7  ;;  %4400 = vmatpush.bf16.msrb.mxu2 %v7972_v20  ;;  %4381 = vmatpush.bf16.msrb.mxu1 %v8040_v39  ;;  %v8036_v24 = vor.u32 %v9287_v48, %v8033_v9  ;;  %v9315_v32 = vld [vmem:[#allocation9 + $0x264] sm:$0xf]  ;;  %v8145_v12 = vld [vmem:[#allocation9 + $0x268] sm:$0xf0] }
 0x6ce   :  { %v3877_v62 = vrot.slane %v3859_v18, 7  ;;  %v8148_v45 = vor.u32 %v9315_v32, %v8145_v12  ;;  %v8215_v2 = vld [vmem:[#allocation9 + $0x2f0] sm:$0xf]  ;;  %v9334_v60 = vld [vmem:[#allocation9 + $0x2f4] sm:$0xf0] }
 0x6cf   :  { %4416 = vmatpush.bf16.msrb.mxu3 %v8052_v37  ;;  %v3891_v28 = vld [vmem:[#allocation3 + $0x10] sm:$0xff]  ;;  %v9333_v59 = vld [vmem:[#allocation9 + $0x2f4] sm:$0xf]  ;;  %v8216_v10 = vor.u32 %v9334_v60, %v8215_v2  ;;  %v8217_v33 = vld [vmem:[#allocation9 + $0x2f8] sm:$0xf0] }
 0x6d0   :  { %v3881_v11 = vsel %vm455_vm3, %v3877_v62, %v3880_v47  ;;  %3887 = vst [vmem:[#allocation3 + $0x18] sm:$0xf8] %v3877_v62  ;;  %4364 = vmatpush.bf16.msrb.mxu0 %v7968_v14  ;;  %v8220_v31 = vor.u32 %v9333_v59, %v8217_v33  ;;  %v9313_v63 = vld [vmem:[#allocation9 + $0x254] sm:$0xf]  ;;  %v8137_v55 = vld [vmem:[#allocation9 + $0x258] sm:$0xf0] }
 0x6d1   :  { %3889 = vst [vmem:[#allocation3 + $0x20] sm:$0x7] %v3881_v11  ;;  %v3892_v30 = vld [vmem:[#allocation3] sm:$0xff]  ;;  %4382 = vmatpush.bf16.msrb.mxu1 %v8032_v3  ;;  %v8207_v18 = vld [vmem:[#allocation9 + $0x2e0] sm:$0xf]  ;;  %v8140_v41 = vor.u32 %v9313_v63, %v8137_v55 }
 0x6d2   :  { %v11426_v1 = vpack.c.bf16 %v3892_v30, %v3890_v21  ;;  %v9332_v47 = vld [vmem:[#allocation9 + $0x2e4] sm:$0xf0]  ;;  %v9331_v22 = vld [vmem:[#allocation9 + $0x2e4] sm:$0xf]  ;;  %v8209_v19 = vld [vmem:[#allocation9 + $0x2e8] sm:$0xf0] }
 0x6d3   :  { %4417 = vmatpush.bf16.msrb.mxu3 %v8044_v49  ;;  %v3894_v13 = vld [vmem:[#allocation3 + $0x28] sm:$0xf]  ;;  %v8208_v62 = vor.u32 %v9332_v47, %v8207_v18  ;;  %v8212_v35 = vor.u32 %v9331_v22, %v8209_v19  ;;  %v8127_v0 = vld [vmem:[#allocation9 + $0x240] sm:$0xf]  ;;  %v9312_v54 = vld [vmem:[#allocation9 + $0x244] sm:$0xf0] }
 0x6d4   :  { %4100 = vmatmul.bf16.vlgmr.msra.gmra.mxu0 %v11426_v1  ;;  %4136 = vmatmul.bf16.vlgmr.msra.gmra.mxu2 %v11426_v1  ;;  %v9311_v26 = vld [vmem:[#allocation9 + $0x244] sm:$0xf]  ;;  %v8129_v15 = vld [vmem:[#allocation9 + $0x248] sm:$0xf0]  ;;  %v8199_v52 = vld [vmem:[#allocation9 + $0x2d0] sm:$0xf]  ;;  %v8128_v38 = vor.u32 %v9312_v54, %v8127_v0  ;;  %v11434_v30 = vpack.c.bf16 %v3894_v13, %v3894_v13 }
 0x6d5   :  { %4622 = vmatpush.bf16.msra.mxu0 %v8152_v43  ;;  %4658 = vmatpush.bf16.msra.mxu2 %v8156_v6  ;;  %v9330_v11 = vld [vmem:[#allocation9 + $0x2d4] sm:$0xf0]  ;;  %v9329_v4 = vld [vmem:[#allocation9 + $0x2d4] sm:$0xf]  ;;  %v8201_v61 = vld [vmem:[#allocation9 + $0x2d8] sm:$0xf0]  ;;  %v8132_v21 = vor.u32 %v9311_v26, %v8129_v15 }
 0x6d6   :  { %v8200_v37 = vor.u32 %v9330_v11, %v8199_v52  ;;  %v8204_v5 = vor.u32 %v9329_v4, %v8201_v61  ;;  %v8119_v58 = vld [vmem:[#allocation9 + $0x230] sm:$0xf]  ;;  %v9310_v23 = vld [vmem:[#allocation9 + $0x234] sm:$0xf0]  ;;  %v9309_v20 = vld [vmem:[#allocation9 + $0x234] sm:$0xf] }
 0x6d7   :  { %v3893_v36 = vld [vmem:[#allocation3 + $0x18] sm:$0xff]  ;;  %4418 = vmatpush.bf16.msrb.mxu3 %v8036_v24  ;;  %v8121_v25 = vld [vmem:[#allocation9 + $0x238] sm:$0xf0]  ;;  %v8191_v16 = vld [vmem:[#allocation9 + $0x2c0] sm:$0xf]  ;;  %v8120_v39 = vor.u32 %v9310_v23, %v8119_v58 }
 0x6d8   :  { %v11430_v50 = vpack.c.bf16 %v3893_v36, %v3891_v28  ;;  %v3895_v14 = vld [vmem:[#allocation3 + $0x20] sm:$0xf]  ;;  %v9328_v57 = vld [vmem:[#allocation9 + $0x2c4] sm:$0xf0]  ;;  %v8124_v46 = vor.u32 %v9309_v20, %v8121_v25  ;;  %v9327_v7 = vld [vmem:[#allocation9 + $0x2c4] sm:$0xf] }
 0x6d9   :  { %4623 = vmatpush.bf16.msra.mxu0 %v8144_v44  ;;  %4659 = vmatpush.bf16.msra.mxu2 %v8148_v45  ;;  %v8193_v8 = vld [vmem:[#allocation9 + $0x2c8] sm:$0xf0]  ;;  %v8111_v28 = vld [vmem:[#allocation9 + $0x220] sm:$0xf]  ;;  %v9308_v49 = vld [vmem:[#allocation9 + $0x224] sm:$0xf0]  ;;  %v8192_v56 = vor.u32 %v9328_v57, %v8191_v16  ;;  %v11438_v6 = vpack.c.bf16 %v3895_v14, %v3895_v14 }
 0x6da   :  { %4118 = vmatmul.bf16.vlgmr.msra.gmra.mxu1 %v11430_v50  ;;  %4154 = vmatmul.bf16.vlgmr.msra.gmra.mxu3 %v11430_v50  ;;  %v9307_v43 = vld [vmem:[#allocation9 + $0x224] sm:$0xf]  ;;  %v8113_v40 = vld [vmem:[#allocation9 + $0x228] sm:$0xf0]  ;;  %v8196_v53 = vor.u32 %v9327_v7, %v8193_v8  ;;  %v8112_v34 = vor.u32 %v9308_v49, %v8111_v28  ;;  %v8183_v9 = vld [vmem:[#allocation9 + $0x2b0] sm:$0xf] }
 0x6db   :  { %4640 = vmatpush.bf16.msra.mxu1 %v8216_v10  ;;  %4676 = vmatpush.bf16.msra.mxu3 %v8220_v31  ;;  %v8116_v48 = vor.u32 %v9307_v43, %v8113_v40  ;;  %v9326_v36 = vld [vmem:[#allocation9 + $0x2b4] sm:$0xf0]  ;;  %v9325_v3 = vld [vmem:[#allocation9 + $0x2b4] sm:$0xf]  ;;  %v8185_v24 = vld [vmem:[#allocation9 + $0x2b8] sm:$0xf0] }
 0x6dc   :  { %v8103_v27 = vld [vmem:[#allocation9 + $0x210] sm:$0xf]  ;;  %v9306_v17 = vld [vmem:[#allocation9 + $0x214] sm:$0xf0]  ;;  %v8184_v44 = vor.u32 %v9326_v36, %v8183_v9  ;;  %v8188_v32 = vor.u32 %v9325_v3, %v8185_v24  ;;  %v9305_v12 = vld [vmem:[#allocation9 + $0x214] sm:$0xf] }
 0x6dd   :  { %4624 = vmatpush.bf16.msra.mxu0 %v8136_v29  ;;  %4660 = vmatpush.bf16.msra.mxu2 %v8140_v41  ;;  %v8105_v45 = vld [vmem:[#allocation9 + $0x218] sm:$0xf0]  ;;  %v8175_v2 = vld [vmem:[#allocation9 + $0x2a0] sm:$0xf]  ;;  %v9324_v60 = vld [vmem:[#allocation9 + $0x2a4] sm:$0xf0]  ;;  %v8104_v33 = vor.u32 %v9306_v17, %v8103_v27 }
 0x6de   :  { %v9323_v59 = vld [vmem:[#allocation9 + $0x2a4] sm:$0xf]  ;;  %v8177_v10 = vld [vmem:[#allocation9 + $0x2a8] sm:$0xf0]  ;;  %v8108_v51 = vor.u32 %v9305_v12, %v8105_v45  ;;  %v8095_v42 = vld [vmem:[#allocation9 + $0x200] sm:$0xf]  ;;  %v8176_v18 = vor.u32 %v9324_v60, %v8175_v2 }
 0x6df   :  { %4641 = vmatpush.bf16.msra.mxu1 %v8208_v62  ;;  %4677 = vmatpush.bf16.msra.mxu3 %v8212_v35  ;;  %v9304_v31 = vld [vmem:[#allocation9 + $0x204] sm:$0xf0]  ;;  %v9303_v63 = vld [vmem:[#allocation9 + $0x204] sm:$0xf]  ;;  %v8097_v55 = vld [vmem:[#allocation9 + $0x208] sm:$0xf0]  ;;  %v8180_v29 = vor.u32 %v9323_v59, %v8177_v10 }
 0x6e0   :  { %v8167_v41 = vld [vmem:[#allocation9 + $0x290] sm:$0xf]  ;;  %v9322_v47 = vld [vmem:[#allocation9 + $0x294] sm:$0xf0]  ;;  %v9321_v22 = vld [vmem:[#allocation9 + $0x294] sm:$0xf]  ;;  %v8096_v13 = vor.u32 %v9304_v31, %v8095_v42  ;;  %v8100_v62 = vor.u32 %v9303_v63, %v8097_v55 }
 0x6e1   :  { %4625 = vmatpush.bf16.msra.mxu0 %v8128_v38  ;;  %4661 = vmatpush.bf16.msra.mxu2 %v8132_v21  ;;  %v8169_v19 = vld [vmem:[#allocation9 + $0x298] sm:$0xf0]  ;;  %v8168_v35 = vor.u32 %v9322_v47, %v8167_v41  ;;  %v8159_v54 = vld [vmem:[#allocation9 + $0x280] sm:$0xf]  ;;  %v9320_v26 = vld [vmem:[#allocation9 + $0x284] sm:$0xf0] }
 0x6e2   :  { %v8172_v0 = vor.u32 %v9321_v22, %v8169_v19  ;;  %v9319_v15 = vld [vmem:[#allocation9 + $0x284] sm:$0xf]  ;;  %v8161_v52 = vld [vmem:[#allocation9 + $0x288] sm:$0xf0]  ;;  %v8160_v11 = vor.u32 %v9320_v26, %v8159_v54  ;;  %v11485_v42 = vld [vmem:[%s12310_s14 + $0x70] sm:$0xff] }
 0x6e3   :  { %4642 = vmatpush.bf16.msra.mxu1 %v8200_v37  ;;  %4678 = vmatpush.bf16.msra.mxu3 %v8204_v5  ;;  %v8164_v4 = vor.u32 %v9319_v15, %v8161_v52  ;;  %v11492_v63 = vld [vmem:[%s12310_s14 + $0xf0] sm:$0xff]  ;;  %v11497_v55 = vld [vmem:[%s12310_s14 + $0x68] sm:$0xff]  ;;  %v11509_v47 = vld [vmem:[%s12310_s14 + $0x60] sm:$0xff] }
 0x6e4   :  { %4105 = vmatmul.bf16.gmra.mxu0 %v11434_v30  ;;  %4141 = vmatmul.bf16.gmra.mxu2 %v11434_v30  ;;  %v11514_v22 = vld [vmem:[%s12310_s14 + $0xe0] sm:$0xff] }
 0x6e5   :  { %4626 = vmatpush.bf16.msra.mxu0 %v8120_v39  ;;  %4662 = vmatpush.bf16.msra.mxu2 %v8124_v46 }
 0x6e7   :  { %4643 = vmatpush.bf16.msra.mxu1 %v8192_v56  ;;  %4679 = vmatpush.bf16.msra.mxu3 %v8196_v53 }
 0x6e9   :  { %4627 = vmatpush.bf16.msra.mxu0 %v8112_v34  ;;  %4663 = vmatpush.bf16.msra.mxu2 %v8116_v48 }
 0x6ea   :  { %4123 = vmatmul.bf16.gmra.mxu1 %v11438_v6  ;;  %4159 = vmatmul.bf16.gmra.mxu3 %v11438_v6 }
 0x6eb   :  { %4644 = vmatpush.bf16.msra.mxu1 %v8184_v44  ;;  %4680 = vmatpush.bf16.msra.mxu3 %v8188_v32 }
 0x6ed   :  { %4628 = vmatpush.bf16.msra.mxu0 %v8104_v33  ;;  %4664 = vmatpush.bf16.msra.mxu2 %v8108_v51  ;;  %v11475_v33 = vld [vmem:[%s12310_s14 + $0x78] sm:$0xff] }
 0x6ee   :  { %v11480_v51 = vld [vmem:[%s12310_s14 + $0xf8] sm:$0xff] }
 0x6ef   :  { %4645 = vmatpush.bf16.msra.mxu1 %v8176_v18  ;;  %4681 = vmatpush.bf16.msra.mxu3 %v8180_v29  ;;  %v11502_v18 = vld [vmem:[%s12310_s14 + $0xe8] sm:$0xff] }
 0x6f1   :  { %4629 = vmatpush.bf16.msra.mxu0 %v8096_v13  ;;  %4665 = vmatpush.bf16.msra.mxu2 %v8100_v62 }
 0x6f3   :  { %4646 = vmatpush.bf16.msra.mxu1 %v8168_v35  ;;  %4682 = vmatpush.bf16.msra.mxu3 %v8172_v0 }
 0x6f4   :  { %4365 = vmatmul.bf16.vlgmr.msrb.gmra.mxu0 %v11426_v1  ;;  %4401 = vmatmul.bf16.vlgmr.msrb.gmra.mxu2 %v11426_v1 }
 0x6f5   :  { %4910 = vmatpush.msrb.mxu2 %v11475_v33 }
 0x6f7   :  { %4647 = vmatpush.bf16.msra.mxu1 %v8160_v11  ;;  %4683 = vmatpush.bf16.msra.mxu3 %v8164_v4 }
 0x6f8   :  { %4911 = vmatpush.msrb.mxu2 %v11485_v42 }
 0x6fa   :  { %4383 = vmatmul.bf16.vlgmr.msrb.gmra.mxu1 %v11430_v50  ;;  %4419 = vmatmul.bf16.vlgmr.msrb.gmra.mxu3 %v11430_v50 }
 0x6fb   :  { %4930 = vmatpush.msrb.mxu3 %v11480_v51  ;;  %4912 = vmatpush.msrb.mxu2 %v11497_v55 }
 0x6fd   :  { %4931 = vmatpush.msrb.mxu3 %v11492_v63  ;;  %4913 = vmatpush.msrb.mxu2 %v11509_v47 }
 0x6ff   :  { %4932 = vmatpush.msrb.mxu3 %v11502_v18 }
 0x701   :  { %4933 = vmatpush.msrb.mxu3 %v11514_v22 }
 0x704   :  { %4370 = vmatmul.bf16.gmra.mxu0 %v11434_v30  ;;  %4406 = vmatmul.bf16.gmra.mxu2 %v11434_v30 }
 0x70a   :  { %4388 = vmatmul.bf16.gmra.mxu1 %v11438_v6  ;;  %4424 = vmatmul.bf16.gmra.mxu3 %v11438_v6 }
 0x714   :  { %4630 = vmatmul.bf16.vlgmr.msra.gmra.mxu0 %v11426_v1  ;;  %4666 = vmatmul.bf16.vlgmr.msra.gmra.mxu2 %v11426_v1 }
 0x71a   :  { %4648 = vmatmul.bf16.vlgmr.msra.gmra.mxu1 %v11430_v50  ;;  %4684 = vmatmul.bf16.vlgmr.msra.gmra.mxu3 %v11430_v50 }
 0x724   :  { %4635 = vmatmul.bf16.gmra.mxu0 %v11434_v30  ;;  %4671 = vmatmul.bf16.gmra.mxu2 %v11434_v30 }
 0x72a   :  { %4653 = vmatmul.bf16.gmra.mxu1 %v11438_v6  ;;  %4689 = vmatmul.bf16.gmra.mxu3 %v11438_v6 }
 0x751   :  { %v11458_v61 = vpop.f32.mrf.mxu0 }
 0x757   :  { %v11460_v38 = vpop.f32.mrf.mxu1  ;;  %v4137_v21 = vpop.f32.mrf.mxu2 }
 0x758   :  { %v4120_v11 = vadd.f32 %v11460_v38, %v11458_v61 }
 0x759   :  { %v4103_v37 = vpop.f32.mrf.mxu0 }
 0x75d   :  { %v4155_v5 = vpop.f32.mrf.mxu3 }
 0x75e   :  { %v11462_v1 = vadd.f32 %v4155_v5, %v4137_v21 }
 0x75f   :  { %v4121_v14 = vpop.f32.mrf.mxu1  ;;  %v4139_v58 = vpop.f32.mrf.mxu2 }
 0x760   :  { %v11464_v50 = vadd.f32 %v4121_v14, %v4103_v37 }
 0x761   :  { %v4106_v23 = vpop.f32.mrf.mxu0 }
 0x765   :  { %v4157_v20 = vpop.f32.mrf.mxu3 }
 0x766   :  { %v11466_v30 = vadd.f32 %v4157_v20, %v4139_v58 }
 0x767   :  { %v4124_v25 = vpop.f32.mrf.mxu1  ;;  %v4142_v16 = vpop.f32.mrf.mxu2 }
 0x768   :  { %v11468_v57 = vadd.f32 %v4124_v25, %v4106_v23 }
 0x769   :  { %v4108_v39 = vpop.f32.mrf.mxu0 }
 0x76d   :  { %v4160_v46 = vpop.f32.mrf.mxu3 }
 0x76e   :  { %v11470_v7 = vadd.f32 %v4160_v46, %v4142_v16  ;;  %v4750_v46 = vld [vmem:[%s12314_s18] sm:$0xf] }
 0x76f   :  { %v4126_v8 = vpop.f32.mrf.mxu1  ;;  %v4144_v28 = vpop.f32.mrf.mxu2 }
 0x771   :  { %v4366_v49 = vpop.f32.mrf.mxu0 }
 0x775   :  { %v4162_v43 = vpop.f32.mrf.mxu3 }
 0x777   :  { %v4384_v40 = vpop.f32.mrf.mxu1  ;;  %v4402_v56 = vpop.f32.mrf.mxu2 }
 0x778   :  { %v4385_v31 = vadd.f32 %v4384_v40, %v4366_v49 }
 0x779   :  { %v4368_v53 = vpop.f32.mrf.mxu0 }
 0x77a   :  { %v4698_v19 = vrot.slane %v4385_v31, 1 }
 0x77d   :  { %v4420_v6 = vpop.f32.mrf.mxu3 }
 0x77e   :  { %v4421_v35 = vadd.f32 %v4420_v6, %v4402_v56 }
 0x77f   :  { %v4386_v34 = vpop.f32.mrf.mxu1  ;;  %v4404_v48 = vpop.f32.mrf.mxu2 }
 0x780   :  { %v4387_v59 = vadd.f32 %v4386_v34, %v4368_v53  ;;  %v4701_v58 = vrot.slane %v4421_v35, 1 }
 0x781   :  { %v4371_v9 = vpop.f32.mrf.mxu0 }
 0x782   :  { %v4699_v29 = vrot.slane %v4387_v59, 1 }
 0x784   :  { %v4700_v26 = vsel %vm323_vm1, %v4698_v19, %v4699_v29 }
 0x785   :  { %v4422_v36 = vpop.f32.mrf.mxu3  ;;  %v4706_v14 = vadd.f32 %v4700_v26, %v4120_v11  ;;  %v11559_v26 = vld [vmem:[%s12310_s14 + $0x48] sm:$0xff]  ;;  %v11577_v11 = vld [vmem:[%s12310_s14 + $0xd0] sm:$0xff] }
 0x786   :  { %v4423_v13 = vadd.f32 %v4422_v36, %v4404_v48 }
 0x787   :  { %v4389_v3 = vpop.f32.mrf.mxu1  ;;  %v4407_v24 = vpop.f32.mrf.mxu2 }
 0x788   :  { %v4390_v15 = vadd.f32 %v4389_v3, %v4371_v9  ;;  %v4702_v21 = vrot.slane %v4423_v13, 1 }
 0x789   :  { %v4373_v27 = vpop.f32.mrf.mxu0 }
 0x78a   :  { %v4724_v23 = vrot.slane %v4390_v15, 1  ;;  %v4703_v8 = vsel %vm323_vm1, %v4701_v58, %v4702_v21  ;;  %v11565_v15 = vld [vmem:[%s12310_s14 + $0xd8] sm:$0xff] }
 0x78b   :  { %v4707_v6 = vadd.f32 %v4703_v8, %v11462_v1  ;;  %4934 = vmatpush.msrb.mxu3 %v11565_v15  ;;  %v11613_v58 = vld [vmem:[%s12310_s14 + $0xb8] sm:$0xff]  ;;  %v11654_v8 = vld [vmem:[%s12310_s14 + $0x8] sm:$0xff] }
 0x78c   :  { %v4725_v43 = vsel %vm323_vm1, %v4699_v29, %v4724_v23  ;;  %v4734_v48 = vadd.f32 %v4724_v23, %v11468_v57  ;;  %v11618_v23 = vld [vmem:[%s12310_s14 + $0x20] sm:$0xff] }
 0x78d   :  { %v4425_v17 = vpop.f32.mrf.mxu3  ;;  %4935 = vmatpush.msrb.mxu3 %v11577_v11 }
 0x78e   :  { %v4426_v61 = vadd.f32 %v4425_v17, %v4407_v24  ;;  %v4732_v24 = vadd.f32 %v4725_v43, %v11464_v50  ;;  %v11687_v43 = vld [vmem:[%s12310_s14 + $0x80] sm:$0xff] }
 0x78f   :  { %v4391_v44 = vpop.f32.mrf.mxu1  ;;  %v4409_v32 = vpop.f32.mrf.mxu2 }
 0x790   :  { %v4726_v9 = vrot.slane %v4426_v61, 1  ;;  %v11661_v61 = vld [vmem:[%s12310_s14 + $0x98] sm:$0xff] }
 0x791   :  { %v4631_v12 = vpop.f32.mrf.mxu0 }
 0x795   :  { %v4427_v45 = vpop.f32.mrf.mxu3 }
 0x796   :  { %v4727_v45 = vsel %vm323_vm1, %v4702_v21, %v4726_v9  ;;  %v11589_v21 = vld [vmem:[%s12310_s14 + $0xc8] sm:$0xff] }
 0x797   :  { %v4649_v2 = vpop.f32.mrf.mxu1  ;;  %v4667_v60 = vpop.f32.mrf.mxu2  ;;  %v4733_v50 = vadd.f32 %v4727_v45, %v11466_v30  ;;  %v11547_v30 = vld [vmem:[%s12310_s14 + $0x58] sm:$0xff]  ;;  %4936 = vmatpush.msrb.mxu3 %v11589_v21 }
 0x798   :  { %v4650_v62 = vadd.f32 %v4649_v2, %v4631_v12  ;;  %4914 = vmatpush.msrb.mxu2 %v11547_v30 }
 0x799   :  { %v4633_v10 = vpop.f32.mrf.mxu0 }
 0x79a   :  { %v4712_v37 = vrot.slane %v4650_v62, 2 }
 0x79d   :  { %v4685_v41 = vpop.f32.mrf.mxu3 }
 0x79e   :  { %v4686_v20 = vadd.f32 %v4685_v41, %v4667_v60 }
 0x79f   :  { %v4651_v0 = vpop.f32.mrf.mxu1  ;;  %v4669_v54 = vpop.f32.mrf.mxu2 }
 0x7a0   :  { %v4652_v52 = vadd.f32 %v4651_v0, %v4633_v10  ;;  %v4715_v40 = vrot.slane %v4686_v20, 2  ;;  %v4735_v10 = vadd.f32 %v4726_v9, %v11470_v7  ;;  %v11553_v7 = vld [vmem:[%s12310_s14 + $0x50] sm:$0xff]  ;;  %v11734_v9 = vld [vmem:[%s12311_s15 + $0x40] sm:$0xff] }
 0x7a1   :  { %v4636_v4 = vpop.f32.mrf.mxu0  ;;  %4915 = vmatpush.msrb.mxu2 %v11553_v7  ;;  %v11625_v20 = vld [vmem:[%s12310_s14 + $0xb0] sm:$0xff] }
 0x7a2   :  { %v4713_v5 = vrot.slane %v4652_v52, 2  ;;  %v11570_v52 = vld [vmem:[%s12310_s14 + $0x40] sm:$0xff] }
 0x7a3   :  { %4916 = vmatpush.msrb.mxu2 %v11559_v26 }
 0x7a4   :  { %v4714_v25 = vsel %vm348_vm2, %v4712_v37, %v4713_v5  ;;  %v11594_v37 = vld [vmem:[%s12310_s14 + $0x30] sm:$0xff] }
 0x7a5   :  { %v4720_v16 = vadd.f32 %v4714_v25, %v4706_v14  ;;  %v4687_v39 = vpop.f32.mrf.mxu3  ;;  %4917 = vmatpush.msrb.mxu2 %v11570_v52  ;;  %v11606_v14 = vld [vmem:[%s12310_s14 + $0x28] sm:$0xff]  ;;  %v11630_v25 = vld [vmem:[%s12310_s14 + $0x18] sm:$0xff] }
 0x7a6   :  { %v4688_v38 = vadd.f32 %v4687_v39, %v4669_v54  ;;  %v11642_v39 = vld [vmem:[%s12310_s14 + $0x10] sm:$0xff] }
 0x7a7   :  { %v4654_v28 = vpop.f32.mrf.mxu1  ;;  %v4672_v49 = vpop.f32.mrf.mxu2  ;;  %4770 = vmatpush.msrb.mxu0 %v4720_v16  ;;  %v11637_v16 = vld [vmem:[%s12310_s14 + $0xa8] sm:$0xff] }
 0x7a8   :  { %v4716_v56 = vrot.slane %v4688_v38, 2  ;;  %v4655_v53 = vadd.f32 %v4654_v28, %v4636_v4  ;;  %8221 = vmatmul.msk.f32.vlgmr.msrb.gmra.mxu0 %vm4751_vm8, %v4750_v46  ;;  %v11582_v4 = vld [vmem:[%s12310_s14 + $0x38] sm:$0xff]  ;;  %v11666_v38 = vld [vmem:[%s12310_s14] sm:$0xff]  ;;  %v11673_v28 = vld [vmem:[%s12310_s14 + $0x90] sm:$0xff] }
 0x7a9   :  { %v4638_v34 = vpop.f32.mrf.mxu0  ;;  %4918 = vmatpush.msrb.mxu2 %v11582_v4 }
 0x7aa   :  { %v4717_v36 = vsel %vm348_vm2, %v4715_v40, %v4716_v56  ;;  %v4738_v3 = vrot.slane %v4655_v53, 2  ;;  %v11708_v53 = vld [vmem:[%s12311_s15 + $0x60] sm:$0xff]  ;;  %v11720_v34 = vld [vmem:[%s12311_s15 + $0x50] sm:$0xff] }
 0x7ab   :  { %v4721_v27 = vadd.f32 %v4717_v36, %v4707_v6  ;;  %4919 = vmatpush.msrb.mxu2 %v11594_v37  ;;  %v11739_v36 = vld [vmem:[%s12311_s15 + $0x48] sm:$0xff] }
 0x7ac   :  { %v4739_v17 = vsel %vm348_vm2, %v4713_v5, %v4738_v3  ;;  %v4748_v44 = vadd.f32 %v4738_v3, %v4734_v48  ;;  %v11601_v5 = vld [vmem:[%s12310_s14 + $0xc0] sm:$0xff]  ;;  %v11725_v48 = vld [vmem:[%s12311_s15 + $0x58] sm:$0xff] }
 0x7ad   :  { %v4746_v32 = vadd.f32 %v4739_v17, %v4732_v24  ;;  %v4690_v12 = vpop.f32.mrf.mxu3  ;;  %4790 = vmatpush.msrb.mxu1 %v4721_v27  ;;  %4937 = vmatpush.msrb.mxu3 %v11601_v5  ;;  %v11752_v24 = vld [vmem:[%s12311_s15 + $0x30] sm:$0xff] }
 0x7ae   :  { %v4800_v2 = vrot.slane %v4748_v44, 2  ;;  %v4691_v1 = vadd.f32 %v4690_v12, %v4672_v49  ;;  %8222 = vmatmul.msk.f32.vlgmr.msrb.gmra.mxu1 %vm4751_vm8, %v4750_v46  ;;  %4920 = vmatpush.msrb.mxu2 %v11606_v14  ;;  %v11680_v49 = vld [vmem:[%s12310_s14 + $0x88] sm:$0xff] }
 0x7af   :  { %v4799_v57 = vrot.slane %v4746_v32, 2  ;;  %v4656_v60 = vpop.f32.mrf.mxu1  ;;  %v4674_v59 = vpop.f32.mrf.mxu2  ;;  %4938 = vmatpush.msrb.mxu3 %v11613_v58 }
 0x7b0   :  { %v4740_v31 = vrot.slane %v4691_v1, 2  ;;  %4921 = vmatpush.msrb.mxu2 %v11618_v23 }
 0x7b1   :  { %v4801_v29 = vsel %vm348_vm2, %v4799_v57, %v4800_v2  ;;  %4939 = vmatpush.msrb.mxu3 %v11625_v20 }
 0x7b2   :  { %v4741_v41 = vsel %vm348_vm2, %v4716_v56, %v4740_v31  ;;  %v4749_v19 = vadd.f32 %v4740_v31, %v4735_v10  ;;  %4822 = vmatpush.msra.mxu0 %v4801_v29  ;;  %4922 = vmatpush.msrb.mxu2 %v11630_v25  ;;  %v11703_v56 = vld [vmem:[%s12311_s15 + $0x78] sm:$0xff] }
 0x7b3   :  { %v4747_v13 = vadd.f32 %v4741_v41, %v4733_v50  ;;  %8223 = vmatmul.msk.f32.vlgmr.msra.gmra.mxu0 %vm4751_vm8, %v4750_v46  ;;  %4940 = vmatpush.msrb.mxu3 %v11637_v16 }
 0x7b4   :  { %v4803_v62 = vrot.slane %v4749_v19, 2  ;;  %4923 = vmatpush.msrb.mxu2 %v11642_v39 }
 0x7b5   :  { %v4802_v35 = vrot.slane %v4747_v13, 2  ;;  %v4692_v0 = vpop.f32.mrf.mxu3 }
 0x7b6   :  { %4924 = vmatpush.msrb.mxu2 %v11654_v8 }
 0x7b7   :  { %v4804_v54 = vsel %vm348_vm2, %v4802_v35, %v4803_v62 }
 0x7b8   :  { %4842 = vmatpush.msra.mxu1 %v4804_v54  ;;  %4925 = vmatpush.msrb.mxu2 %v11666_v38 }
 0x7b9   :  { %8224 = vmatmul.msk.f32.vlgmr.msra.gmra.mxu1 %vm4751_vm8, %v4750_v46  ;;  %v11649_v46 = vld [vmem:[%s12310_s14 + $0xa0] sm:$0xff] }
 0x7ba   :  { %4941 = vmatpush.msrb.mxu3 %v11649_v46  ;;  %5051 = vmatpush.msra.mxu2 %v11475_v33 }
 0x7bb   :  { %4999 = vmatpush.msrb.mxu1 %v11703_v56 }
 0x7bc   :  { %4942 = vmatpush.msrb.mxu3 %v11661_v61  ;;  %5052 = vmatpush.msra.mxu2 %v11485_v42  ;;  %v11698_v42 = vld [vmem:[%s12311_s15 + $0x70] sm:$0xff] }
 0x7bd   :  { %4979 = vmatpush.msrb.mxu0 %v11698_v42 }
 0x7be   :  { %4943 = vmatpush.msrb.mxu3 %v11673_v28  ;;  %5053 = vmatpush.msra.mxu2 %v11497_v55  ;;  %v11715_v55 = vld [vmem:[%s12311_s15 + $0x68] sm:$0xff] }
 0x7bf   :  { %4980 = vmatpush.msrb.mxu0 %v11708_v53  ;;  %5000 = vmatpush.msrb.mxu1 %v11715_v55 }
 0x7c0   :  { %4944 = vmatpush.msrb.mxu3 %v11680_v49  ;;  %5054 = vmatpush.msra.mxu2 %v11509_v47 }
 0x7c1   :  { %4981 = vmatpush.msrb.mxu0 %v11720_v34  ;;  %5001 = vmatpush.msrb.mxu1 %v11725_v48 }
 0x7c2   :  { %4945 = vmatpush.msrb.mxu3 %v11687_v43  ;;  %5055 = vmatpush.msra.mxu2 %v11547_v30 }
 0x7c3   :  { %4982 = vmatpush.msrb.mxu0 %v11734_v9  ;;  %5002 = vmatpush.msrb.mxu1 %v11739_v36 }
 0x7c4   :  { %5071 = vmatpush.msra.mxu3 %v11480_v51  ;;  %5056 = vmatpush.msra.mxu2 %v11553_v7 }
 0x7c5   :  { %4983 = vmatpush.msrb.mxu0 %v11752_v24 }
 0x7c6   :  { %5072 = vmatpush.msra.mxu3 %v11492_v63  ;;  %v11757_v63 = vld [vmem:[%s12311_s15 + $0x38] sm:$0xff]  ;;  %5057 = vmatpush.msra.mxu2 %v11559_v26 }
 0x7c7   :  { %5003 = vmatpush.msrb.mxu1 %v11757_v63 }
 0x7c8   :  { %5073 = vmatpush.msra.mxu3 %v11502_v18  ;;  %5058 = vmatpush.msra.mxu2 %v11570_v52  ;;  %v4955_v52 = vld [vmem:[%s12311_s15 + $0x20] sm:$0xff] }
 0x7c9   :  { %4984 = vmatpush.msrb.mxu0 %v4955_v52 }
 0x7ca   :  { %5074 = vmatpush.msra.mxu3 %v11514_v22  ;;  %5059 = vmatpush.msra.mxu2 %v11582_v4  ;;  %v4953_v4 = vld [vmem:[%s12311_s15 + $0x10] sm:$0xff] }
 0x7cb   :  { %4985 = vmatpush.msrb.mxu0 %v4953_v4 }
 0x7cc   :  { %5075 = vmatpush.msra.mxu3 %v11565_v15  ;;  %5060 = vmatpush.msra.mxu2 %v11594_v37  ;;  %v4951_v37 = vld [vmem:[%s12311_s15] sm:$0xff] }
 0x7cd   :  { %4986 = vmatpush.msrb.mxu0 %v4951_v37 }
 0x7ce   :  { %5076 = vmatpush.msra.mxu3 %v11577_v11  ;;  %5061 = vmatpush.msra.mxu2 %v11606_v14  ;;  %v4956_v11 = vld [vmem:[%s12311_s15 + $0x28] sm:$0xff] }
 0x7cf   :  { %5004 = vmatpush.msrb.mxu1 %v4956_v11  ;;  %5116 = vmatpush.msra.mxu0 %v11698_v42 }
 0x7d0   :  { %5077 = vmatpush.msra.mxu3 %v11589_v21  ;;  %5062 = vmatpush.msra.mxu2 %v11618_v23  ;;  %v4954_v21 = vld [vmem:[%s12311_s15 + $0x18] sm:$0xff] }
 0x7d1   :  { %5005 = vmatpush.msrb.mxu1 %v4954_v21  ;;  %5117 = vmatpush.msra.mxu0 %v11708_v53 }
 0x7d2   :  { %5078 = vmatpush.msra.mxu3 %v11601_v5  ;;  %5063 = vmatpush.msra.mxu2 %v11630_v25  ;;  %v4952_v5 = vld [vmem:[%s12311_s15 + $0x8] sm:$0xff] }
 0x7d3   :  { %5006 = vmatpush.msrb.mxu1 %v4952_v5  ;;  %5118 = vmatpush.msra.mxu0 %v11720_v34 }
 0x7d4   :  { %5079 = vmatpush.msra.mxu3 %v11613_v58  ;;  %5064 = vmatpush.msra.mxu2 %v11642_v39 }
 0x7d5   :  { %5136 = vmatpush.msra.mxu1 %v11703_v56  ;;  %5119 = vmatpush.msra.mxu0 %v11734_v9 }
 0x7d6   :  { %5080 = vmatpush.msra.mxu3 %v11625_v20  ;;  %5065 = vmatpush.msra.mxu2 %v11654_v8 }
 0x7d7   :  { %5137 = vmatpush.msra.mxu1 %v11715_v55  ;;  %5120 = vmatpush.msra.mxu0 %v11752_v24 }
 0x7d8   :  { %5081 = vmatpush.msra.mxu3 %v11637_v16  ;;  %5066 = vmatpush.msra.mxu2 %v11666_v38 }
 0x7d9   :  { %5138 = vmatpush.msra.mxu1 %v11725_v48  ;;  %5121 = vmatpush.msra.mxu0 %v4955_v52 }
 0x7da   :  { %5082 = vmatpush.msra.mxu3 %v11649_v46 }
 0x7db   :  { %5139 = vmatpush.msra.mxu1 %v11739_v36  ;;  %5122 = vmatpush.msra.mxu0 %v4953_v4 }
 0x7dc   :  { %5083 = vmatpush.msra.mxu3 %v11661_v61 }
 0x7dd   :  { %5140 = vmatpush.msra.mxu1 %v11757_v63  ;;  %5123 = vmatpush.msra.mxu0 %v4951_v37 }
 0x7de   :  { %5084 = vmatpush.msra.mxu3 %v11673_v28 }
 0x7df   :  { %5141 = vmatpush.msra.mxu1 %v4956_v11 }
 0x7e0   :  { %5085 = vmatpush.msra.mxu3 %v11680_v49 }
 0x7e1   :  { %5142 = vmatpush.msra.mxu1 %v4954_v21 }
 0x7e2   :  { %5086 = vmatpush.msra.mxu3 %v11687_v43 }
 0x7e3   :  { %5143 = vmatpush.msra.mxu1 %v4952_v5 }
 0x825   :  { %v11689_v40 = vpop.f32.mrf.mxu0 }
 0x826   :  { %v4848_v33 = vsel %vm4847_vm9, %v11689_v40, 0.0 }
 0x827   :  { %v4849_v6 = vrot.slane %v4848_v33, 4 }
 0x829   :  { %v4850_v47 = vadd.f32 %v4849_v6, %v4848_v33 }
 0x82b   :  { %v11743_v51 = vpop.f32.mrf.mxu1  ;;  %v4851_v17 = vrot.slane %v4850_v47, 2 }
 0x82c   :  { %v4855_v3 = vsel %vm4847_vm9, %v11743_v51, 0.0 }
 0x82d   :  { %v4856_v27 = vrot.slane %v4855_v3, 4  ;;  %v4852_v22 = vadd.f32 %v4851_v17, %v4850_v47 }
 0x82f   :  { %v4857_v32 = vadd.f32 %v4856_v27, %v4855_v3  ;;  %v4853_v59 = vrot.slane %v4852_v22, 1 }
 0x830   :  { %v11767_v44 = vpop.f32.mrf.mxu0 }
 0x831   :  { %v4862_v18 = vsel %vm4847_vm9, %v11767_v44, 0.0  ;;  %v4858_v2 = vrot.slane %v4857_v32, 2  ;;  %v4854_v19 = vadd.f32 %v4853_v59, %v4852_v22 }
 0x832   :  { %v4863_v12 = vrot.slane %v4862_v18, 4 }
 0x833   :  { %v4859_v50 = vadd.f32 %v4858_v2, %v4857_v32 }
 0x834   :  { %v4864_v45 = vadd.f32 %v4863_v12, %v4862_v18 }
 0x835   :  { %v4860_v35 = vrot.slane %v4859_v50, 1 }
 0x836   :  { %v4865_v1 = vrot.slane %v4864_v45, 2  ;;  %v11777_v57 = vpop.f32.mrf.mxu1 }
 0x837   :  { %v4869_v60 = vsel %vm4847_vm9, %v11777_v57, 0.0  ;;  %v4861_v7 = vadd.f32 %v4860_v35, %v4859_v50 }
 0x838   :  { %v4866_v10 = vadd.f32 %v4865_v1, %v4864_v45  ;;  %v4870_v31 = vrot.slane %v4869_v60, 4 }
 0x83a   :  { %v4867_v29 = vrot.slane %v4866_v10, 1  ;;  %v4871_v41 = vadd.f32 %v4870_v31, %v4869_v60 }
 0x83c   :  { %v4868_v13 = vadd.f32 %v4867_v29, %v4866_v10  ;;  %v4872_v62 = vrot.slane %v4871_v41, 2 }
 0x83e   :  { %v4876_v0 = vadd.f32 %v4868_v13, %v4854_v19  ;;  %v4873_v54 = vadd.f32 %v4872_v62, %v4871_v41  ;;  %v9366_v62 = vld [vmem:[%s12315_s19 + $0xf8] sm:$0xff] }
 0x840   :  { %v4874_v30 = vrot.slane %v4873_v54, 1  ;;  %4926 = vmatmul.f32.vlgmr.msrb.gmra.mxu2 %v4876_v0  ;;  %v9365_v0 = vld [vmem:[%s12315_s19 + $0xf0] sm:$0xff] }
 0x842   :  { %v4875_v26 = vadd.f32 %v4874_v30, %v4873_v54  ;;  %v9358_v54 = vld [vmem:[%s12315_s19 + $0xb8] sm:$0xff]  ;;  %v9364_v30 = vld [vmem:[%s12315_s19 + $0xe8] sm:$0xff] }
 0x843   :  { %5379 = vmatpush.bf16.msrb.mxu2 %v9358_v54  ;;  %v9372_v54 = vld [vmem:[%s12315_s19 + $0x128] sm:$0xff] }
 0x844   :  { %v4877_v15 = vadd.f32 %v4875_v26, %v4861_v7  ;;  %v9357_v7 = vld [vmem:[%s12315_s19 + $0xb0] sm:$0xff] }
 0x846   :  { %4946 = vmatmul.f32.vlgmr.msrb.gmra.mxu3 %v4877_v15  ;;  %v9363_v15 = vld [vmem:[%s12315_s19 + $0xe0] sm:$0xff] }
 0x847   :  { %5392 = vmatpush.bf16.msrb.mxu3 %v9366_v62  ;;  %5380 = vmatpush.bf16.msrb.mxu2 %v9357_v7  ;;  %v9385_v62 = vld [vmem:[%s12315_s19 + $0x190] sm:$0xff]  ;;  %v9392_v7 = vld [vmem:[%s12315_s19 + $0x1c8] sm:$0xff] }
 0x84b   :  { %5393 = vmatpush.bf16.msrb.mxu3 %v9365_v0  ;;  %v9377_v0 = vld [vmem:[%s12315_s19 + $0x150] sm:$0xff] }
 0x84f   :  { %5394 = vmatpush.bf16.msrb.mxu3 %v9364_v30  ;;  %v9384_v30 = vld [vmem:[%s12315_s19 + $0x188] sm:$0xff] }
 0x853   :  { %5395 = vmatpush.bf16.msrb.mxu3 %v9363_v15  ;;  %v9371_v15 = vld [vmem:[%s12315_s19 + $0x120] sm:$0xff] }
 0x8c3   :  { %v4927_v14 = vpop.f32.mrf.mxu2 }
 0x8c9   :  { %v4947_v58 = vpop.f32.mrf.mxu3 }
 0x8ca   :  { %v4948_v23 = vadd.f32 %v4947_v58, %v4927_v14  ;;  %v9355_v14 = vld [vmem:[%s12315_s19 + $0xa0] sm:$0xff]  ;;  %v9361_v58 = vld [vmem:[%s12315_s19 + $0xd0] sm:$0xff] }
 0x8cc   :  { %v4950_v20 = vmul.f32 0.03125, %v4948_v23  ;;  %v5092_v23 = vld [vmem:[%s12312_s16] sm:$0x1]  ;;  %s6552_s16 = sshll.u32 %s9584_s11, 4  ;;  %s6553_s16 = int_to_ptr.vmem [resolvable:$true] %s6552_s16 }
 0x8ce   :  { %8225 = vmatmul.msk.f32.vlgmr.msrb.gmra.mxu0 %vm4967_vm10, %v4950_v20  ;;  %8226 = vmatmul.msk.f32.vlgmr.msrb.gmra.mxu1 %vm4967_vm10, %v4950_v20 }
 0x8cf   :  { %5160 = vmatpush.msrb.mxu0 %v11698_v42  ;;  %5180 = vmatpush.msrb.mxu1 %v11703_v56 }
 0x8d1   :  { %5161 = vmatpush.msrb.mxu0 %v11708_v53  ;;  %5181 = vmatpush.msrb.mxu1 %v11715_v55 }
 0x8d3   :  { %5162 = vmatpush.msrb.mxu0 %v11720_v34  ;;  %5182 = vmatpush.msrb.mxu1 %v11725_v48 }
 0x8d5   :  { %5163 = vmatpush.msrb.mxu0 %v11734_v9  ;;  %5183 = vmatpush.msrb.mxu1 %v11739_v36 }
 0x8d7   :  { %5164 = vmatpush.msrb.mxu0 %v11752_v24  ;;  %5184 = vmatpush.msrb.mxu1 %v11757_v63 }
 0x8d9   :  { %5165 = vmatpush.msrb.mxu0 %v4955_v52  ;;  %5185 = vmatpush.msrb.mxu1 %v4956_v11 }
 0x8db   :  { %5166 = vmatpush.msrb.mxu0 %v4953_v4  ;;  %5186 = vmatpush.msrb.mxu1 %v4954_v21  ;;  %v9356_v4 = vld [vmem:[%s12315_s19 + $0xa8] sm:$0xff]  ;;  %v9362_v21 = vld [vmem:[%s12315_s19 + $0xd8] sm:$0xff] }
 0x8dc   :  { %5381 = vmatpush.bf16.msrb.mxu2 %v9356_v4  ;;  %5396 = vmatpush.bf16.msrb.mxu3 %v9362_v21  ;;  %v9375_v4 = vld [vmem:[%s12315_s19 + $0x140] sm:$0xff]  ;;  %v9370_v21 = vld [vmem:[%s12315_s19 + $0x118] sm:$0xff] }
 0x8dd   :  { %5167 = vmatpush.msrb.mxu0 %v4951_v37  ;;  %5187 = vmatpush.msrb.mxu1 %v4952_v5 }
 0x8e0   :  { %5382 = vmatpush.bf16.msrb.mxu2 %v9355_v14  ;;  %5397 = vmatpush.bf16.msrb.mxu3 %v9361_v58 }
 0x94b   :  { %v4988_v25 = vpop.f32.mrf.mxu0  ;;  %v5008_v16 = vpop.f32.mrf.mxu1 }
 0x94c   :  { %v5011_v39 = vperm.slane %v4988_v25, 0  ;;  %v5012_v46 = vperm.slane %v5008_v16, 0  ;;  %v9342_v16 = vld [vmem:[%s12315_s19 + $0x38] sm:$0xff] }
 0x94e   :  { %v11837_v8 = vsub.f32 %v11689_v40, %v5011_v39  ;;  %v11840_v61 = vsub.f32 %v11767_v44, %v5011_v39  ;;  %v11843_v38 = vsub.f32 %v11743_v51, %v5012_v46  ;;  %v11846_v28 = vsub.f32 %v11777_v57, %v5012_v46  ;;  %v9350_v39 = vld [vmem:[%s12315_s19 + $0x78] sm:$0xff] }
 0x950   :  { %v5017_v49 = vmul.f32 %v11837_v8, %v11837_v8  ;;  %v5033_v43 = vmul.f32 %v11840_v61, %v11840_v61  ;;  %v5018_v33 = vmul.f32 %v11843_v38, %v11843_v38  ;;  %v5034_v40 = vmul.f32 %v11846_v28, %v11846_v28 }
 0x952   :  { %v5019_v42 = vsel %vm4847_vm9, %v5017_v49, 0.0  ;;  %v5035_v56 = vsel %vm4847_vm9, %v5033_v43, 0.0  ;;  %v5026_v53 = vsel %vm4847_vm9, %v5018_v33, 0.0  ;;  %v5042_v55 = vsel %vm4847_vm9, %v5034_v40, 0.0  ;;  %v9360_v49 = vld [vmem:[%s12315_s19 + $0xc8] sm:$0xff]  ;;  %v9354_v43 = vld [vmem:[%s12315_s19 + $0x98] sm:$0xff] }
 0x953   :  { %v5020_v6 = vrot.slane %v5019_v42, 4  ;;  %v5036_v34 = vrot.slane %v5035_v56, 4  ;;  %v5027_v48 = vrot.slane %v5026_v53, 4  ;;  %v5043_v9 = vrot.slane %v5042_v55, 4  ;;  %v9341_v33 = vld [vmem:[%s12315_s19 + $0x30] sm:$0xff]  ;;  %5398 = vmatpush.bf16.msrb.mxu3 %v9360_v49  ;;  %5383 = vmatpush.bf16.msrb.mxu2 %v9354_v43 }
 0x954   :  { %v9349_v40 = vld [vmem:[%s12315_s19 + $0x70] sm:$0xff] }
 0x955   :  { %v5021_v36 = vadd.f32 %v5020_v6, %v5019_v42  ;;  %v5037_v51 = vadd.f32 %v5036_v34, %v5035_v56  ;;  %v5028_v47 = vadd.f32 %v5027_v48, %v5026_v53  ;;  %v5044_v3 = vadd.f32 %v5043_v9, %v5042_v55  ;;  %v9359_v42 = vld [vmem:[%s12315_s19 + $0xc0] sm:$0xff]  ;;  %v9353_v56 = vld [vmem:[%s12315_s19 + $0x90] sm:$0xff]  ;;  %v9382_v53 = vld [vmem:[%s12315_s19 + $0x178] sm:$0xff] }
 0x956   :  { %v5148_v55 = vld [vmem:[%s12313_s17] sm:$0x1]  ;;  %v9340_v6 = vld [vmem:[%s12315_s19 + $0x28] sm:$0xff]  ;;  %v9381_v9 = vld [vmem:[%s12315_s19 + $0x170] sm:$0xff] }
 0x957   :  { %v5022_v24 = vrot.slane %v5021_v36, 2  ;;  %v5038_v63 = vrot.slane %v5037_v51, 2  ;;  %v5029_v27 = vrot.slane %v5028_v47, 2  ;;  %v5045_v17 = vrot.slane %v5044_v3, 2  ;;  %v9348_v34 = vld [vmem:[%s12315_s19 + $0x68] sm:$0xff]  ;;  %5399 = vmatpush.bf16.msrb.mxu3 %v9359_v42  ;;  %5384 = vmatpush.bf16.msrb.mxu2 %v9353_v56 }
 0x958   :  { %v9352_v48 = vld [vmem:[%s12315_s19 + $0x88] sm:$0xff] }
 0x959   :  { %v5023_v44 = vadd.f32 %v5022_v24, %v5021_v36  ;;  %v5039_v18 = vadd.f32 %v5038_v63, %v5037_v51  ;;  %v5030_v32 = vadd.f32 %v5029_v27, %v5028_v47  ;;  %v5046_v12 = vadd.f32 %v5045_v17, %v5044_v3  ;;  %v9339_v36 = vld [vmem:[%s12315_s19 + $0x20] sm:$0xff]  ;;  %v9380_v47 = vld [vmem:[%s12315_s19 + $0x168] sm:$0xff]  ;;  %v9338_v3 = vld [vmem:[%s12315_s19 + $0x18] sm:$0xff] }
 0x95a   :  { %v9347_v51 = vld [vmem:[%s12315_s19 + $0x60] sm:$0xff]  ;;  %v9346_v24 = vld [vmem:[%s12315_s19 + $0x58] sm:$0xff]  ;;  %v9337_v63 = vld [vmem:[%s12315_s19 + $0x10] sm:$0xff] }
 0x95b   :  { %v5024_v22 = vrot.slane %v5023_v44, 1  ;;  %v5040_v45 = vrot.slane %v5039_v18, 1  ;;  %v5031_v2 = vrot.slane %v5030_v32, 1  ;;  %v5047_v1 = vrot.slane %v5046_v12, 1  ;;  %5385 = vmatpush.bf16.msrb.mxu2 %v9352_v48  ;;  %v9345_v27 = vld [vmem:[%s12315_s19 + $0x50] sm:$0xff]  ;;  %v9336_v17 = vld [vmem:[%s12315_s19 + $0x8] sm:$0xff] }
 0x95d   :  { %v5025_v57 = vadd.f32 %v5024_v22, %v5023_v44  ;;  %v5041_v60 = vadd.f32 %v5040_v45, %v5039_v18  ;;  %v5032_v59 = vadd.f32 %v5031_v2, %v5030_v32  ;;  %v5048_v10 = vadd.f32 %v5047_v1, %v5046_v12  ;;  %v9344_v44 = vld [vmem:[%s12315_s19 + $0x48] sm:$0xff]  ;;  %v9335_v18 = vld [vmem:[%s12315_s19] sm:$0xff]  ;;  %v9390_v12 = vld [vmem:[%s12315_s19 + $0x1b8] sm:$0xff] }
 0x95e   :  { %v9343_v32 = vld [vmem:[%s12315_s19 + $0x40] sm:$0xff]  ;;  %v9398_v22 = vld [vmem:[%s12315_s19 + $0x1f8] sm:$0xff]  ;;  %v9389_v45 = vld [vmem:[%s12315_s19 + $0x1b0] sm:$0xff] }
 0x95f   :  { %v5049_v31 = vadd.f32 %v5041_v60, %v5025_v57  ;;  %v5050_v50 = vadd.f32 %v5048_v10, %v5032_v59  ;;  %v9397_v2 = vld [vmem:[%s12315_s19 + $0x1f0] sm:$0xff]  ;;  %v9388_v1 = vld [vmem:[%s12315_s19 + $0x1a8] sm:$0xff]  ;;  %v9387_v60 = vld [vmem:[%s12315_s19 + $0x1a0] sm:$0xff] }
 0x960   :  { %v9396_v57 = vld [vmem:[%s12315_s19 + $0x1e8] sm:$0xff]  ;;  %v9395_v59 = vld [vmem:[%s12315_s19 + $0x1e0] sm:$0xff] }
 0x961   :  { %5067 = vmatmul.f32.vlgmr.msra.gmra.mxu2 %v5049_v31  ;;  %5087 = vmatmul.f32.vlgmr.msra.gmra.mxu3 %v5050_v50  ;;  %v9379_v10 = vld [vmem:[%s12315_s19 + $0x160] sm:$0xff]  ;;  %v9374_v50 = vld [vmem:[%s12315_s19 + $0x138] sm:$0xff] }
 0x962   :  { %5675 = vmatpush.bf16.msra.mxu3 %v9382_v53  ;;  %v9351_v31 = vld [vmem:[%s12315_s19 + $0x80] sm:$0xff] }
 0x963   :  { %5386 = vmatpush.bf16.msrb.mxu2 %v9351_v31  ;;  %v9418_v31 = vld [vmem:[%s12315_s19 + $0x90] sm:$0xff] }
 0x966   :  { %5676 = vmatpush.bf16.msra.mxu3 %v9381_v9 }
 0x967   :  { %5662 = vmatpush.bf16.msra.mxu2 %v9374_v50 }
 0x96a   :  { %5677 = vmatpush.bf16.msra.mxu3 %v9380_v47  ;;  %v9422_v47 = vld [vmem:[%s12315_s19 + $0xb0] sm:$0xff] }
 0x96e   :  { %5678 = vmatpush.bf16.msra.mxu3 %v9379_v10 }
 0x9e4   :  { %v5068_v29 = vpop.f32.mrf.mxu2  ;;  %v5088_v41 = vpop.f32.mrf.mxu3 }
 0x9e5   :  { %v5089_v19 = vadd.f32 %v5088_v41, %v5068_v29  ;;  %v9386_v29 = vld [vmem:[%s12315_s19 + $0x198] sm:$0xff] }
 0x9e6   :  { %v9394_v41 = vld [vmem:[%s12315_s19 + $0x1d8] sm:$0xff] }
 0x9e7   :  { %v5091_v13 = vmul.f32 0.03125, %v5089_v19  ;;  %v9378_v19 = vld [vmem:[%s12315_s19 + $0x158] sm:$0xff] }
 0x9e8   :  { %5679 = vmatpush.bf16.msra.mxu3 %v9378_v19  ;;  %v9401_v19 = vld [vmem:[%s12315_s19 + $0x8] sm:$0xff] }
 0x9e9   :  { %v5093_v35 = vadd.f32 1e-05, %v5091_v13  ;;  %v9373_v13 = vld [vmem:[%s12315_s19 + $0x130] sm:$0xff] }
 0x9ea   :  { %5663 = vmatpush.bf16.msra.mxu2 %v9373_v13 }
 0x9eb   :  { %9474 = vrsqrt.f32 %v5093_v35  ;;  %vm5100_vm12 = vweird.f32 %v5093_v35 }
 0x9ec   :  { %5680 = vmatpush.bf16.msra.mxu3 %v9377_v0  ;;  %v9400_v0 = vld [vmem:[%s12315_s19] sm:$0xff] }
 0x9ee   :  { %5664 = vmatpush.bf16.msra.mxu2 %v9372_v54  ;;  %v9447_v54 = vld [vmem:[%s12315_s19 + $0x178] sm:$0xff] }
 0x9f1   :  { %v9475_v26 = vpop.eup %9474 }
 0x9f2   :  { %v5095_v52 = vmul.f32 %v9475_v26, %v5093_v35  ;;  %vm5101_vm11 = vweird.f32 %v9475_v26  ;;  %v9393_v35 = vld [vmem:[%s12315_s19 + $0x1d0] sm:$0xff]  ;;  %5665 = vmatpush.bf16.msra.mxu2 %v9371_v15  ;;  %v9439_v15 = vld [vmem:[%s12315_s19 + $0x138] sm:$0xff] }
 0x9f3   :  { %vm5102_vm13 = vmor %vm5100_vm12, %vm5101_vm11 }
 0x9f4   :  { %v5096_v11 = vmul.f32 %v9475_v26, %v5095_v52  ;;  %v9383_v52 = vld [vmem:[%s12315_s19 + $0x180] sm:$0xff] }
 0x9f6   :  { %v5097_v37 = vmul.f32 0.5, %v5096_v11  ;;  %v9391_v11 = vld [vmem:[%s12315_s19 + $0x1c0] sm:$0xff]  ;;  %5666 = vmatpush.bf16.msra.mxu2 %v9370_v21 }
 0x9f8   :  { %v5098_v5 = vsub.f32 1.5, %v5097_v37  ;;  %v9369_v37 = vld [vmem:[%s12315_s19 + $0x110] sm:$0xff] }
 0x9fa   :  { %v5099_v20 = vmul.f32 %v9475_v26, %v5098_v5  ;;  %5667 = vmatpush.bf16.msra.mxu2 %v9369_v37  ;;  %v9368_v5 = vld [vmem:[%s12315_s19 + $0x108] sm:$0xff]  ;;  %v9438_v37 = vld [vmem:[%s12315_s19 + $0x130] sm:$0xff] }
 0x9fc   :  { %v5103_v25 = vsel %vm5102_vm13, %v9475_v26, %v5099_v20  ;;  %v9376_v26 = vld [vmem:[%s12315_s19 + $0x148] sm:$0xff] }
 0x9fd   :  { %v5104_v46 = vmul.f32 %v5103_v25, %v5092_v23  ;;  %5681 = vmatpush.bf16.msra.mxu3 %v9376_v26  ;;  %v9367_v23 = vld [vmem:[%s12315_s19 + $0x100] sm:$0xff] }
 0x9fe   :  { %5668 = vmatpush.bf16.msra.mxu2 %v9368_v5  ;;  %v9445_v5 = vld [vmem:[%s12315_s19 + $0x168] sm:$0xff] }
 0x9ff   :  { %8227 = vmatmul.msk.f32.vlgmr.msra.gmra.mxu0 %vm4967_vm10, %v5104_v46  ;;  %8228 = vmatmul.msk.f32.vlgmr.msra.gmra.mxu1 %vm4967_vm10, %v5104_v46 }
 0xa00   :  { %5501 = vmatpush.bf16.msra.mxu0 %v9342_v16  ;;  %5514 = vmatpush.bf16.msra.mxu1 %v9350_v39 }
 0xa01   :  { %5682 = vmatpush.bf16.msra.mxu3 %v9375_v4  ;;  %v9454_v4 = vld [vmem:[%s12315_s19 + $0x1b0] sm:$0xff] }
 0xa02   :  { %5669 = vmatpush.bf16.msra.mxu2 %v9367_v23  ;;  %v9444_v23 = vld [vmem:[%s12315_s19 + $0x160] sm:$0xff] }
 0xa04   :  { %5502 = vmatpush.bf16.msra.mxu0 %v9341_v33  ;;  %5515 = vmatpush.bf16.msra.mxu1 %v9349_v40 }
 0xa07   :  { %8229 = vmatmul.msk.f32.vlgmr.msrb.gmra.mxu0 %vm4967_vm10, %v5148_v55  ;;  %8230 = vmatmul.msk.f32.vlgmr.msrb.gmra.mxu1 %vm4967_vm10, %v5148_v55  ;;  %v9431_v55 = vld [vmem:[%s12315_s19 + $0xf8] sm:$0xff] }
 0xa08   :  { %5503 = vmatpush.bf16.msra.mxu0 %v9340_v6  ;;  %5516 = vmatpush.bf16.msra.mxu1 %v9348_v34  ;;  %v9407_v6 = vld [vmem:[%s12315_s19 + $0x38] sm:$0xff] }
 0xa0c   :  { %5504 = vmatpush.bf16.msra.mxu0 %v9339_v36  ;;  %5517 = vmatpush.bf16.msra.mxu1 %v9347_v51  ;;  %v9430_v36 = vld [vmem:[%s12315_s19 + $0xf0] sm:$0xff] }
 0xa0d   :  { %v9406_v51 = vld [vmem:[%s12315_s19 + $0x30] sm:$0xff] }
 0xa10   :  { %5505 = vmatpush.bf16.msra.mxu0 %v9338_v3  ;;  %5518 = vmatpush.bf16.msra.mxu1 %v9346_v24  ;;  %v9429_v3 = vld [vmem:[%s12315_s19 + $0xe8] sm:$0xff] }
 0xa11   :  { %v9405_v24 = vld [vmem:[%s12315_s19 + $0x28] sm:$0xff] }
 0xa14   :  { %5506 = vmatpush.bf16.msra.mxu0 %v9337_v63  ;;  %5519 = vmatpush.bf16.msra.mxu1 %v9345_v27  ;;  %v9421_v63 = vld [vmem:[%s12315_s19 + $0xa8] sm:$0xff]  ;;  %v9428_v27 = vld [vmem:[%s12315_s19 + $0xe0] sm:$0xff] }
 0xa18   :  { %5507 = vmatpush.bf16.msra.mxu0 %v9336_v17  ;;  %5520 = vmatpush.bf16.msra.mxu1 %v9344_v44  ;;  %v9404_v17 = vld [vmem:[%s12315_s19 + $0x20] sm:$0xff] }
 0xa19   :  { %v9420_v44 = vld [vmem:[%s12315_s19 + $0xa0] sm:$0xff] }
 0xa1c   :  { %5508 = vmatpush.bf16.msra.mxu0 %v9335_v18  ;;  %5521 = vmatpush.bf16.msra.mxu1 %v9343_v32  ;;  %v9427_v18 = vld [vmem:[%s12315_s19 + $0xd8] sm:$0xff] }
 0xa20   :  { %5822 = vmatpush.bf16.msrb.mxu0 %v9390_v12  ;;  %5835 = vmatpush.bf16.msrb.mxu1 %v9398_v22  ;;  %v9403_v12 = vld [vmem:[%s12315_s19 + $0x18] sm:$0xff] }
 0xa24   :  { %5823 = vmatpush.bf16.msrb.mxu0 %v9389_v45  ;;  %5836 = vmatpush.bf16.msrb.mxu1 %v9397_v2 }
 0xa28   :  { %5824 = vmatpush.bf16.msrb.mxu0 %v9388_v1  ;;  %5837 = vmatpush.bf16.msrb.mxu1 %v9396_v57  ;;  %v9419_v1 = vld [vmem:[%s12315_s19 + $0x98] sm:$0xff] }
 0xa2c   :  { %5825 = vmatpush.bf16.msrb.mxu0 %v9387_v60  ;;  %5838 = vmatpush.bf16.msrb.mxu1 %v9395_v59  ;;  %v9426_v60 = vld [vmem:[%s12315_s19 + $0xd0] sm:$0xff] }
 0xa30   :  { %5826 = vmatpush.bf16.msrb.mxu0 %v9386_v29  ;;  %5839 = vmatpush.bf16.msrb.mxu1 %v9394_v41  ;;  %v9425_v29 = vld [vmem:[%s12315_s19 + $0xc8] sm:$0xff] }
 0xa34   :  { %5827 = vmatpush.bf16.msrb.mxu0 %v9385_v62  ;;  %5840 = vmatpush.bf16.msrb.mxu1 %v9393_v35  ;;  %v9424_v62 = vld [vmem:[%s12315_s19 + $0xc0] sm:$0xff] }
 0xa38   :  { %5828 = vmatpush.bf16.msrb.mxu0 %v9384_v30  ;;  %5841 = vmatpush.bf16.msrb.mxu1 %v9392_v7  ;;  %v9455_v30 = vld [vmem:[%s12315_s19 + $0x1b8] sm:$0xff]  ;;  %v9416_v7 = vld [vmem:[%s12315_s19 + $0x80] sm:$0xff] }
 0xa3c   :  { %5829 = vmatpush.bf16.msrb.mxu0 %v9383_v52  ;;  %5842 = vmatpush.bf16.msrb.mxu1 %v9391_v11  ;;  %v9446_v11 = vld [vmem:[%s12315_s19 + $0x170] sm:$0xff] }
 0xa7c   :  { %v12059_v14 = vpop.f32.mrf.mxu0  ;;  %v5145_v58 = vpop.f32.mrf.mxu1 }
 0xa7d   :  { %v5192_v20 = vperm.slane %v12059_v14, 0  ;;  %v5193_v25 = vperm.slane %v5145_v58, 0  ;;  %v9453_v14 = vld [vmem:[%s12315_s19 + $0x1a8] sm:$0xff] }
 0xa7e   :  { %v9437_v58 = vld [vmem:[%s12315_s19 + $0x128] sm:$0xff] }
 0xa7f   :  { %v5194_v46 = vmul.f32 %v5192_v20, %v11837_v8  ;;  %v5195_v49 = vmul.f32 %v5193_v25, %v11843_v38  ;;  %v9423_v38 = vld [vmem:[%s12315_s19 + $0xb8] sm:$0xff]  ;;  %v5203_v45 = vmul.f32 %v5193_v25, %v11846_v28  ;;  %v9402_v28 = vld [vmem:[%s12315_s19 + $0x10] sm:$0xff]  ;;  %v5202_v10 = vmul.f32 %v5192_v20, %v11840_v61  ;;  %v9417_v61 = vld [vmem:[%s12315_s19 + $0x88] sm:$0xff] }
 0xa80   :  { %v9452_v20 = vld [vmem:[%s12315_s19 + $0x1a0] sm:$0xff] }
 0xa81   :  { %v9436_v25 = vld [vmem:[%s12315_s19 + $0x120] sm:$0xff] }
 0xa84   :  { %v12065_v16 = vpop.f32.mrf.mxu0  ;;  %v5189_v39 = vpop.f32.mrf.mxu1 }
 0xa85   :  { %v5196_v43 = vperm.slane %v12065_v16, 0  ;;  %v5197_v33 = vperm.slane %v5189_v39, 0  ;;  %v9443_v16 = vld [vmem:[%s12315_s19 + $0x158] sm:$0xff] }
 0xa86   :  { %v9451_v39 = vld [vmem:[%s12315_s19 + $0x198] sm:$0xff] }
 0xa87   :  { %v5198_v40 = vadd.f32 %v5196_v43, %v5194_v46  ;;  %v5199_v42 = vadd.f32 %v5197_v33, %v5195_v49  ;;  %v5205_v59 = vadd.f32 %v5203_v45, %v5197_v33  ;;  %v5204_v50 = vadd.f32 %v5202_v10, %v5196_v43  ;;  %v9435_v46 = vld [vmem:[%s12315_s19 + $0x118] sm:$0xff]  ;;  %v9442_v49 = vld [vmem:[%s12315_s19 + $0x150] sm:$0xff] }
 0xa88   :  { %v9450_v43 = vld [vmem:[%s12315_s19 + $0x190] sm:$0xff] }
 0xa89   :  { %v5200_v56 = vmax.f32 %v5198_v40, 0.0  ;;  %v5201_v53 = vmax.f32 %v5199_v42, 0.0  ;;  %v5207_v41 = vmax.f32 %v5205_v59, 0.0  ;;  %v5206_v13 = vmax.f32 %v5204_v50, 0.0  ;;  %v9434_v33 = vld [vmem:[%s12315_s19 + $0x110] sm:$0xff]  ;;  %v9441_v40 = vld [vmem:[%s12315_s19 + $0x148] sm:$0xff] }
 0xa8a   :  { %v9449_v42 = vld [vmem:[%s12315_s19 + $0x188] sm:$0xff] }
 0xa8b   :  { %v5208_v34 = vpack.c.bf16 %v5200_v56, %v5200_v56  ;;  %v5209_v48 = vpack.c.bf16 %v5201_v53, %v5201_v53  ;;  %v12138_v35 = vpack.c.bf16 %v5207_v41, %v5207_v41  ;;  %v5879_v26 = vpack.c.bf16 %v5206_v13, %v5206_v13  ;;  %v9433_v56 = vld [vmem:[%s12315_s19 + $0x108] sm:$0xff]  ;;  %v9440_v53 = vld [vmem:[%s12315_s19 + $0x140] sm:$0xff] }
 0xa8c   :  { %v5849_v13 = vld [vmem:[%s12316_s20] sm:$0x1] }
 0xa8d   :  { %v5276_v8 = vshrl.u32 %v5208_v34, 16  ;;  %5509 = vmatmul.bf16.vlgmr.msra.gmra.mxu0 %v5208_v34  ;;  %5522 = vmatmul.bf16.vlgmr.msra.gmra.mxu1 %v5209_v48  ;;  %v5279_v9 = vshrl.u32 %v5209_v48, 16  ;;  %v5562_v2 = vrot.slane %v5208_v34, 1  ;;  %v5563_v57 = vrot.slane %v5209_v48, 1 }
 0xa8e   :  { %6062 = vmatpush.bf16.msra.mxu0 %v9431_v55  ;;  %6171 = vmatpush.bf16.msra.mxu1 %v9407_v6  ;;  %v5949_v52 = vshrl.u32 %v12138_v35, 16  ;;  %v5946_v21 = vshrl.u32 %v5879_v26, 16  ;;  %v9448_v55 = vld [vmem:[%s12315_s19 + $0x180] sm:$0xff]  ;;  %v6232_v34 = vrot.slane %v12138_v35, 1 }
 0xa8f   :  { %5387 = vmatmul.bf16.vlgmr.msrb.gmra.mxu2 %v5276_v8  ;;  %5400 = vmatmul.bf16.vlgmr.msrb.gmra.mxu3 %v5279_v9  ;;  %v5722_v32 = vrot.slane %v5276_v8, 1  ;;  %v5723_v22 = vrot.slane %v5279_v9, 1  ;;  %v9432_v6 = vld [vmem:[%s12315_s19 + $0x100] sm:$0xff]  ;;  %v6231_v8 = vrot.slane %v5879_v26, 1  ;;  %v9415_v9 = vld [vmem:[%s12315_s19 + $0x78] sm:$0xff] }
 0xa90   :  { %6049 = vmatpush.bf16.msrb.mxu3 %v9423_v38  ;;  %v6390_v48 = vrot.slane %v5946_v21, 1  ;;  %v9399_v38 = vld [vmem:[%s12317_s21] sm:$0xff] }
 0xa91   :  { %5872 = vmatpush.bf16.msrb.mxu2 %v9399_v38 }
 0xa92   :  { %6063 = vmatpush.bf16.msra.mxu0 %v9430_v36  ;;  %6172 = vmatpush.bf16.msra.mxu1 %v9406_v51  ;;  %v9414_v36 = vld [vmem:[%s12315_s19 + $0x70] sm:$0xff]  ;;  %v9413_v51 = vld [vmem:[%s12315_s19 + $0x68] sm:$0xff] }
 0xa94   :  { %6050 = vmatpush.bf16.msrb.mxu3 %v9422_v47  ;;  %v9412_v47 = vld [vmem:[%s12315_s19 + $0x60] sm:$0xff] }
 0xa96   :  { %6064 = vmatpush.bf16.msra.mxu0 %v9429_v3  ;;  %6173 = vmatpush.bf16.msra.mxu1 %v9405_v24  ;;  %v9411_v3 = vld [vmem:[%s12315_s19 + $0x58] sm:$0xff]  ;;  %v9410_v24 = vld [vmem:[%s12315_s19 + $0x50] sm:$0xff] }
 0xa98   :  { %6051 = vmatpush.bf16.msrb.mxu3 %v9421_v63 }
 0xa9a   :  { %6065 = vmatpush.bf16.msra.mxu0 %v9428_v27  ;;  %6174 = vmatpush.bf16.msra.mxu1 %v9404_v17  ;;  %v9409_v17 = vld [vmem:[%s12315_s19 + $0x48] sm:$0xff] }
 0xa9c   :  { %6052 = vmatpush.bf16.msrb.mxu3 %v9420_v44  ;;  %v9408_v44 = vld [vmem:[%s12315_s19 + $0x40] sm:$0xff] }
 0xa9d   :  { %5830 = vmatmul.bf16.vlgmr.msrb.gmra.mxu0 %v5722_v32  ;;  %5843 = vmatmul.bf16.vlgmr.msrb.gmra.mxu1 %v5723_v22 }
 0xa9e   :  { %6066 = vmatpush.bf16.msra.mxu0 %v9427_v18  ;;  %6175 = vmatpush.bf16.msra.mxu1 %v9403_v12 }
 0xa9f   :  { %5670 = vmatmul.bf16.vlgmr.msra.gmra.mxu2 %v5562_v2  ;;  %5683 = vmatmul.bf16.vlgmr.msra.gmra.mxu3 %v5563_v57 }
 0xaa0   :  { %6053 = vmatpush.bf16.msrb.mxu3 %v9419_v1  ;;  %6184 = vmatpush.bf16.msra.mxu2 %v9415_v9  ;;  %v9464_v9 = vld [vmem:[%s12317_s21] sm:$0xff] }
 0xaa2   :  { %6067 = vmatpush.bf16.msra.mxu0 %v9426_v60  ;;  %6176 = vmatpush.bf16.msra.mxu1 %v9402_v28 }
 0xaa4   :  { %6054 = vmatpush.bf16.msrb.mxu3 %v9418_v31  ;;  %6185 = vmatpush.bf16.msra.mxu2 %v9414_v36 }
 0xaa6   :  { %6068 = vmatpush.bf16.msra.mxu0 %v9425_v29  ;;  %6177 = vmatpush.bf16.msra.mxu1 %v9401_v19 }
 0xaa8   :  { %6055 = vmatpush.bf16.msrb.mxu3 %v9417_v61  ;;  %6186 = vmatpush.bf16.msra.mxu2 %v9413_v51 }
 0xaaa   :  { %6069 = vmatpush.bf16.msra.mxu0 %v9424_v62  ;;  %6178 = vmatpush.bf16.msra.mxu1 %v9400_v0 }
 0xaac   :  { %6056 = vmatpush.bf16.msrb.mxu3 %v9416_v7  ;;  %6187 = vmatpush.bf16.msra.mxu2 %v9412_v47 }
 0xaad   :  { %6070 = vmatmul.bf16.vlgmr.msra.gmra.mxu0 %v5949_v52  ;;  %6179 = vmatmul.bf16.vlgmr.msra.gmra.mxu1 %v5879_v26 }
 0xaae   :  { %6344 = vmatpush.bf16.msrb.mxu0 %v9447_v54  ;;  %6490 = vmatpush.bf16.msrb.mxu1 %v9455_v30 }
 0xaaf   :  { %6057 = vmatmul.bf16.vlgmr.msrb.gmra.mxu3 %v5946_v21  ;;  %v9462_v21 = vld [vmem:[%s12315_s19 + $0x1f0] sm:$0xff] }
 0xab0   :  { %6331 = vmatpush.bf16.msra.mxu3 %v9439_v15  ;;  %6188 = vmatpush.bf16.msra.mxu2 %v9411_v3 }
 0xab2   :  { %6345 = vmatpush.bf16.msrb.mxu0 %v9446_v11  ;;  %6491 = vmatpush.bf16.msrb.mxu1 %v9454_v4  ;;  %v9463_v11 = vld [vmem:[%s12315_s19 + $0x1f8] sm:$0xff] }
 0xab4   :  { %6332 = vmatpush.bf16.msra.mxu3 %v9438_v37  ;;  %6189 = vmatpush.bf16.msra.mxu2 %v9410_v24 }
 0xab6   :  { %6346 = vmatpush.bf16.msrb.mxu0 %v9445_v5  ;;  %6492 = vmatpush.bf16.msrb.mxu1 %v9453_v14 }
 0xab8   :  { %6333 = vmatpush.bf16.msra.mxu3 %v9437_v58  ;;  %6190 = vmatpush.bf16.msra.mxu2 %v9409_v17 }
 0xaba   :  { %6347 = vmatpush.bf16.msrb.mxu0 %v9444_v23  ;;  %6493 = vmatpush.bf16.msrb.mxu1 %v9452_v20  ;;  %v9461_v23 = vld [vmem:[%s12315_s19 + $0x1e8] sm:$0xff] }
 0xabc   :  { %6334 = vmatpush.bf16.msra.mxu3 %v9436_v25  ;;  %6191 = vmatpush.bf16.msra.mxu2 %v9408_v44  ;;  %v9460_v25 = vld [vmem:[%s12315_s19 + $0x1e0] sm:$0xff] }
 0xabe   :  { %6348 = vmatpush.bf16.msrb.mxu0 %v9443_v16  ;;  %6494 = vmatpush.bf16.msrb.mxu1 %v9451_v39  ;;  %v9459_v39 = vld [vmem:[%s12315_s19 + $0x1d8] sm:$0xff] }
 0xac0   :  { %6335 = vmatpush.bf16.msra.mxu3 %v9435_v46  ;;  %v9458_v46 = vld [vmem:[%s12315_s19 + $0x1d0] sm:$0xff] }
 0xac2   :  { %6349 = vmatpush.bf16.msrb.mxu0 %v9442_v49  ;;  %6495 = vmatpush.bf16.msrb.mxu1 %v9450_v43  ;;  %v9457_v49 = vld [vmem:[%s12315_s19 + $0x1c8] sm:$0xff] }
 0xac4   :  { %6336 = vmatpush.bf16.msra.mxu3 %v9434_v33 }
 0xac6   :  { %6350 = vmatpush.bf16.msrb.mxu0 %v9441_v40  ;;  %6496 = vmatpush.bf16.msrb.mxu1 %v9449_v42  ;;  %v9456_v40 = vld [vmem:[%s12315_s19 + $0x1c0] sm:$0xff]  ;;  %v6391_v42 = vrot.slane %v5949_v52, 1 }
 0xac8   :  { %6337 = vmatpush.bf16.msra.mxu3 %v9433_v56 }
 0xaca   :  { %6351 = vmatpush.bf16.msrb.mxu0 %v9440_v53  ;;  %6497 = vmatpush.bf16.msrb.mxu1 %v9448_v55 }
 0xacc   :  { %6338 = vmatpush.bf16.msra.mxu3 %v9432_v6 }
 0xacd   :  { %6352 = vmatmul.bf16.vlgmr.msrb.gmra.mxu0 %v6232_v34  ;;  %6498 = vmatmul.bf16.vlgmr.msrb.gmra.mxu1 %v6390_v48  ;;  %v5855_v48 = vld [vmem:[%s12318_s22] sm:$0x1] }
 0xacf   :  { %6339 = vmatmul.bf16.vlgmr.msra.gmra.mxu3 %v6231_v8 }
 0xad0   :  { %6540 = vmatpush.bf16.msrb.mxu3 %v9464_v9 }
 0xb0a   :  { %v5510_v63 = vpop.f32.mrf.mxu0  ;;  %v5523_v27 = vpop.f32.mrf.mxu1 }
 0xb12   :  { %v5388_v18 = vpop.f32.mrf.mxu2  ;;  %v5512_v32 = vpop.f32.mrf.mxu0 }
 0xb13   :  { %v5401_v12 = vpop.f32.mrf.mxu3  ;;  %v5525_v22 = vpop.f32.mrf.mxu1 }
 0xb14   :  { %v5402_v60 = vadd.f32 %v5401_v12, %v5388_v18  ;;  %v6523_v12 = vld [vmem:[%s12318_s22] sm:$0x1] }
 0xb16   :  { %v5511_v59 = vadd.f32 %v5510_v63, %v5402_v60  ;;  %v6517_v63 = vld [vmem:[%s12316_s20] sm:$0x1] }
 0xb18   :  { %v5524_v29 = vadd.f32 %v5523_v27, %v5511_v59 }
 0xb1a   :  { %v5390_v45 = vpop.f32.mrf.mxu2  ;;  %v5831_v2 = vpop.f32.mrf.mxu0 }
 0xb1b   :  { %v5403_v1 = vpop.f32.mrf.mxu3  ;;  %v5844_v57 = vpop.f32.mrf.mxu1 }
 0xb1c   :  { %v5845_v19 = vadd.f32 %v5844_v57, %v5831_v2 }
 0xb22   :  { %v5671_v28 = vpop.f32.mrf.mxu2  ;;  %v5833_v10 = vpop.f32.mrf.mxu0 }
 0xb23   :  { %v5684_v31 = vpop.f32.mrf.mxu3  ;;  %v5846_v50 = vpop.f32.mrf.mxu1 }
 0xb24   :  { %v5685_v41 = vadd.f32 %v5684_v31, %v5671_v28 }
 0xb26   :  { %v5688_v61 = vadd.f32 %v5685_v41, %v5524_v29 }
 0xb28   :  { %v5848_v62 = vadd.f32 %v5845_v19, %v5688_v61 }
 0xb2a   :  { %v5850_v0 = vadd.f32 %v5849_v13, %v5848_v62  ;;  %v5673_v54 = vpop.f32.mrf.mxu2  ;;  %v6071_v30 = vpop.f32.mrf.mxu0 }
 0xb2b   :  { %v5686_v7 = vpop.f32.mrf.mxu3  ;;  %v6180_v26 = vpop.f32.mrf.mxu1 }
 0xb2c   :  { %v5851_v15 = vmax.f32 %v5850_v0, 0.0 }
 0xb2e   :  { %v5852_v4 = vpack.c.bf16 %v5851_v15, %v5851_v15 }
 0xb30   :  { %8587 = vmatmul.msk.bf16.vlgmr.msrb.gmra.mxu2 %vm143_vm0, %v5852_v4 }
 0xb31   :  { %6503 = vmatpush.bf16.msrb.mxu2 %v9463_v11 }
 0xb32   :  { %v6073_v37 = vpop.f32.mrf.mxu0 }
 0xb33   :  { %v6058_v5 = vpop.f32.mrf.mxu3  ;;  %v6182_v14 = vpop.f32.mrf.mxu1 }
 0xb34   :  { %v6072_v58 = vadd.f32 %v6071_v30, %v6058_v5 }
 0xb35   :  { %6504 = vmatpush.bf16.msrb.mxu2 %v9462_v21 }
 0xb36   :  { %v6181_v20 = vadd.f32 %v6180_v26, %v6072_v58 }
 0xb39   :  { %6505 = vmatpush.bf16.msrb.mxu2 %v9461_v23 }
 0xb3b   :  { %v6060_v16 = vpop.f32.mrf.mxu3 }
 0xb3d   :  { %6506 = vmatpush.bf16.msrb.mxu2 %v9460_v25 }
 0xb40   :  { %6192 = vmatmul.bf16.vlgmr.msra.gmra.mxu2 %v12138_v35 }
 0xb41   :  { %6507 = vmatpush.bf16.msrb.mxu2 %v9459_v39 }
 0xb45   :  { %6508 = vmatpush.bf16.msrb.mxu2 %v9458_v46 }
 0xb49   :  { %6509 = vmatpush.bf16.msrb.mxu2 %v9457_v49 }
 0xb4a   :  { %v6353_v43 = vpop.f32.mrf.mxu0  ;;  %v6499_v33 = vpop.f32.mrf.mxu1 }
 0xb4d   :  { %6510 = vmatpush.bf16.msrb.mxu2 %v9456_v40 }
 0xb50   :  { %6511 = vmatmul.bf16.vlgmr.msrb.gmra.mxu2 %v6391_v42 }
 0xb52   :  { %v6355_v56 = vpop.f32.mrf.mxu0  ;;  %v6340_v53 = vpop.f32.mrf.mxu3 }
 0xb53   :  { %v6501_v55 = vpop.f32.mrf.mxu1  ;;  %v6354_v6 = vadd.f32 %v6353_v43, %v6340_v53 }
 0xb5a   :  { %v6342_v34 = vpop.f32.mrf.mxu3 }
 0xbb3   :  { %v5874_v8 = vpop.f32.mrf.mxu2 }
 0xbb4   :  { %v5875_v38 = vadd.f32 %v5874_v8, %v5855_v48 }
 0xbb6   :  { %5878 = vst [vmem:[#allocation10] sm:$0x1] %v5875_v38 }
 0xbbb   :  { %v5876_v36 = vpop.f32.mrf.mxu2 }
 0xbc3   :  { %v6193_v35 = vpop.f32.mrf.mxu2 }
 0xbc4   :  { %v6194_v52 = vadd.f32 %v6193_v35, %v6181_v20 }
 0xbc6   :  { %v6357_v51 = vadd.f32 %v6354_v6, %v6194_v52 }
 0xbcb   :  { %v6195_v47 = vpop.f32.mrf.mxu2 }
 0xbd3   :  { %v6512_v3 = vpop.f32.mrf.mxu2 }
 0xbd4   :  { %v6513_v24 = vadd.f32 %v6512_v3, %v6499_v33 }
 0xbd6   :  { %v6516_v27 = vadd.f32 %v6513_v24, %v6357_v51 }
 0xbd8   :  { %v6518_v17 = vadd.f32 %v6517_v63, %v6516_v27 }
 0xbda   :  { %v6519_v44 = vmax.f32 %v6518_v17, 0.0 }
 0xbdb   :  { %v6514_v18 = vpop.f32.mrf.mxu2 }
 0xbdc   :  { %v6520_v32 = vpack.c.bf16 %v6519_v44, %v6519_v44 }
 0xbde   :  { %8944 = vmatmul.msk.bf16.vlgmr.msrb.gmra.mxu3 %vm143_vm0, %v6520_v32 }
 0xc61   :  { %v6542_v22 = vpop.f32.mrf.mxu3 }
 0xc62   :  { %v6543_v45 = vadd.f32 %v6542_v22, %v6523_v12 }
 0xc64   :  { %6546 = vst [vmem:[#allocation10 + $0x1] sm:$0x1] %v6543_v45 }
 0xc65   :  { %6557 = dma.vmem_to_hbm [thread:$0]  %s6553_s16, 32, %s6555_s30, [#allocation6]  }
 0xc69   :  { %v6544_v2 = vpop.f32.mrf.mxu3 }
 0xc6a   :  { %9576 = dma.done.wait [#allocation6], 32  }
 0xc6b   :  { %9577 = vsyncadd [#allocation6], 4294967264 }
 0xc6c   :  { %6562 = vsyncpa [#allocation5], 1 }
 0xc6d   :  { %6563 = vsyncpa [#allocation8], 1 }
 0xc6e   :  { %6564 = vsyncpa [#allocation6], 1 }

</bundles_post_ra>
